<compile_context>
chip_gen: v7x
topology: tpu7x:2x2x1
jax: 0.10.0
libtpu: 0.0.40
codegen_flags: <defaults>
</compile_context>

<pallas_src>
import functools

import jax
import jax.numpy as jnp
from jax.experimental import pallas as pl
from jax.experimental.pallas import tpu as pltpu

# Explicit scoped-VMEM budget: fits v7x's 64 MiB physical VMEM with headroom,
# and is harmless (<=) on v5e/v6e's 128 MiB.
_VMEM_LIMIT = 48 * 1024 * 1024
_BATCH_QUANTUM = 16          # batch padding / tiling quantum (bf16 sublane tile)


def _round_up(x, m):
    return ((x + m - 1) // m) * m


def _pick_tile(total, quantum, max_tile):
    """Largest multiple of `quantum` dividing `total`, <= max_tile.

    Falls back to `total` (one big block) when no such divisor exists, so the
    grid always covers the array exactly.
    """
    if total <= max_tile:
        return total
    t = (max_tile // quantum) * quantum
    while t >= quantum:
        if total % t == 0:
            return t
        t -= quantum
    return total


def _pick_batch_tile(bp, max_tile):
    tb = _pick_tile(bp, _BATCH_QUANTUM, max_tile)
    # v7x megacore: ensure >= 2 programs on the 'parallel' batch axis whenever
    # the batch is large enough to split across both TensorCores.
    if tb == bp and bp >= 2 * _BATCH_QUANTUM:
        tb = _pick_tile(bp, _BATCH_QUANTUM, bp // 2)
    return tb


# ----------------------------------------------------------------------------
# Encoder: 1x1-conv backbone stand-in + ReLU + global average pool + Linear
# (BatchNorm folded).  One pallas_call; grid = (batch_tiles, hw_chunks) with
# the spatial axis 'arbitrary' (running pooled-sum accumulation in scratch).
# ----------------------------------------------------------------------------
def _encoder_kernel(x_ref, wconv_ref, wlin_ref, blin_ref, emb_ref, acc_ref,
                    *, inv_hw):
    hj = pl.program_id(1)

    @pl.when(hj == 0)
    def _():
        acc_ref[...] = jnp.zeros_like(acc_ref)

    w = wconv_ref[...]                                   # [C, F] f32
    tb, hwc, _c = x_ref.shape
    f_dim = w.shape[1]
    sub = 8 if hwc >= 8 else hwc

    # Running pooled sum; only a [tb, sub, F] slab is ever live (bounded vreg /
    # VMEM footprint instead of a full [tb, HW, F] intermediate).
    acc = acc_ref[...]
    for s0 in range(0, hwc, sub):                        # static loop
        s1 = min(s0 + sub, hwc)
        xs = x_ref[:, s0:s1, :]                          # [tb, s, C]
        feat = jnp.dot(xs.reshape(tb * (s1 - s0), _c), w,
                       preferred_element_type=jnp.float32)   # [tb*s, F]
        feat = jnp.maximum(feat, 0.0)                    # ReLU
        acc = acc + jnp.sum(feat.reshape(tb, s1 - s0, f_dim), axis=1)
    acc_ref[...] = acc

    @pl.when(hj == pl.num_programs(1) - 1)
    def _():
        pooled = (acc_ref[...] * inv_hw).astype(jnp.bfloat16)    # [tb, F]
        emb = (jnp.dot(pooled, wlin_ref[...],
                       preferred_element_type=jnp.float32)
               + blin_ref[...])                          # Linear + folded BN
        emb_ref[...] = emb.astype(emb_ref.dtype)


def encode_image(img, params):
    """img: [Bp, HW, C] f32 -> image embedding [Bp, Ep] bf16."""
    Bp, HW, C = img.shape
    F = params["wconv"].shape[1]
    Ep = params["wlin"].shape[1]
    tb = _pick_batch_tile(Bp, 64)
    hwc = _pick_tile(HW, 8, 512)
    kernel = functools.partial(_encoder_kernel, inv_hw=1.0 / float(HW))
    return pl.pallas_call(
        kernel,
        grid=(Bp // tb, HW // hwc),
        in_specs=[
            pl.BlockSpec((tb, hwc, C), lambda bi, hj: (bi, hj, 0)),
            pl.BlockSpec((C, F), lambda bi, hj: (0, 0)),
            pl.BlockSpec((F, Ep), lambda bi, hj: (0, 0)),
            pl.BlockSpec((1, Ep), lambda bi, hj: (0, 0)),
        ],
        out_specs=pl.BlockSpec((tb, Ep), lambda bi, hj: (bi, 0)),
        out_shape=jax.ShapeDtypeStruct((Bp, Ep), jnp.bfloat16),
        scratch_shapes=[pltpu.VMEM((tb, F), jnp.float32)],
        compiler_params=pltpu.CompilerParams(
            dimension_semantics=("parallel", "arbitrary"),
            vmem_limit_bytes=_VMEM_LIMIT,
        ),
    )(img, params["wconv"], params["wlin"], params["blin"])


# ----------------------------------------------------------------------------
# Fused 2-layer LSTM with an in-kernel time loop.  Grid = (batch_tiles,);
# the [T, tb, Ep] input slab, all weights and the h/c state stay in VMEM.
# PyTorch gate order i, f, g, o; gate slices are Hp(=128k)-aligned.
# ----------------------------------------------------------------------------
def _lstm2_kernel(x_ref, wih0_ref, whh0_ref, b0_ref, wih1_ref, whh1_ref, b1_ref,
                  out_ref, h0_sc, c0_sc, h1_sc, c1_sc):
    T = x_ref.shape[0]
    Hp = whh0_ref.shape[0]

    h0_sc[...] = jnp.zeros_like(h0_sc)
    c0_sc[...] = jnp.zeros_like(c0_sc)
    h1_sc[...] = jnp.zeros_like(h1_sc)
    c1_sc[...] = jnp.zeros_like(c1_sc)

    b0 = b0_ref[...]
    b1 = b1_ref[...]

    def step(t, carry):
        # ---- layer 0 (input projection fused; x and W_ih0 resident in VMEM) ----
        g0 = (jnp.dot(x_ref[t], wih0_ref[...],
                      preferred_element_type=jnp.float32)
              + jnp.dot(h0_sc[...].astype(jnp.bfloat16), whh0_ref[...],
                        preferred_element_type=jnp.float32)
              + b0)
        i0 = jax.nn.sigmoid(g0[:, 0 * Hp:1 * Hp])
        f0 = jax.nn.sigmoid(g0[:, 1 * Hp:2 * Hp])
        gg0 = jnp.tanh(g0[:, 2 * Hp:3 * Hp])
        o0 = jax.nn.sigmoid(g0[:, 3 * Hp:4 * Hp])
        c0 = f0 * c0_sc[...] + i0 * gg0
        h0 = o0 * jnp.tanh(c0)
        c0_sc[...] = c0
        h0_sc[...] = h0

        # ---- layer 1 (inter-layer dropout == identity in eval) ----
        g1 = (jnp.dot(h0.astype(jnp.bfloat16), wih1_ref[...],
                      preferred_element_type=jnp.float32)
              + jnp.dot(h1_sc[...].astype(jnp.bfloat16), whh1_ref[...],
                        preferred_element_type=jnp.float32)
              + b1)
        i1 = jax.nn.sigmoid(g1[:, 0 * Hp:1 * Hp])
        f1 = jax.nn.sigmoid(g1[:, 1 * Hp:2 * Hp])
        gg1 = jnp.tanh(g1[:, 2 * Hp:3 * Hp])
        o1 = jax.nn.sigmoid(g1[:, 3 * Hp:4 * Hp])
        c1 = f1 * c1_sc[...] + i1 * gg1
        h1 = o1 * jnp.tanh(c1)
        c1_sc[...] = c1
        h1_sc[...] = h1

        out_ref[t] = h1.astype(out_ref.dtype)            # bf16 writeback
        return carry

    jax.lax.fori_loop(0, T, step, 0)


def lstm_two_layer(x_tm, params):
    """x_tm: [T, Bp, Ep] bf16 (time-major) -> layer-2 hidden [T, Bp, Hp] bf16."""
    T, Bp, Ep = x_tm.shape
    Hp = params["w_hh_l0"].shape[0]
    tb = _pick_batch_tile(Bp, 128)
    nb = Bp // tb
    return pl.pallas_call(
        _lstm2_kernel,
        grid=(nb,),
        in_specs=[
            pl.BlockSpec((T, tb, Ep), lambda bi: (0, bi, 0)),
            pl.BlockSpec((Ep, 4 * Hp), lambda bi: (0, 0)),
            pl.BlockSpec((Hp, 4 * Hp), lambda bi: (0, 0)),
            pl.BlockSpec((1, 4 * Hp), lambda bi: (0, 0)),
            pl.BlockSpec((Hp, 4 * Hp), lambda bi: (0, 0)),
            pl.BlockSpec((Hp, 4 * Hp), lambda bi: (0, 0)),
            pl.BlockSpec((1, 4 * Hp), lambda bi: (0, 0)),
        ],
        out_specs=pl.BlockSpec((T, tb, Hp), lambda bi: (0, bi, 0)),
        out_shape=jax.ShapeDtypeStruct((T, Bp, Hp), jnp.bfloat16),
        scratch_shapes=[pltpu.VMEM((tb, Hp), jnp.float32)] * 4,
        compiler_params=pltpu.CompilerParams(
            dimension_semantics=("parallel",),
            vmem_limit_bytes=_VMEM_LIMIT,
        ),
    )(x_tm, params["w_ih_l0"], params["w_hh_l0"], params["b_l0"],
      params["w_ih_l1"], params["w_hh_l1"], params["b_l1"])


# ----------------------------------------------------------------------------
# Classifier: tiled matmul that reads time-major bf16 hidden states and writes
# logits directly in [Bp, T, Vp] layout (static per-timestep store) -> no XLA
# transpose of the largest tensor in the model.
# ----------------------------------------------------------------------------
def _classifier_kernel(h_ref, w_ref, b_ref, o_ref):
    T = h_ref.shape[0]
    w = w_ref[...]
    b = b_ref[...]
    for t in range(T):                                   # static unroll
        o_ref[:, t, :] = (
            jnp.dot(h_ref[t], w, preferred_element_type=jnp.float32) + b)


def classifier(h2_tm, w_cls, b_cls):
    """h2_tm: [T, Bp, Hp] bf16 -> logits [Bp, T, Vp] f32."""
    T, Bp, Hp = h2_tm.shape
    Vp = w_cls.shape[1]
    tb = _pick_batch_tile(Bp, 128)
    tn = _pick_tile(Vp, 128, 512)
    return pl.pallas_call(
        _classifier_kernel,
        grid=(Bp // tb, Vp // tn),
        in_specs=[
            pl.BlockSpec((T, tb, Hp), lambda bi, vj: (0, bi, 0)),
            pl.BlockSpec((Hp, tn), lambda bi, vj: (0, vj)),
            pl.BlockSpec((1, tn), lambda bi, vj: (0, vj)),
        ],
        out_specs=pl.BlockSpec((tb, T, tn), lambda bi, vj: (bi, 0, vj)),
        out_shape=jax.ShapeDtypeStruct((Bp, T, Vp), jnp.float32),
        compiler_params=pltpu.CompilerParams(
            dimension_semantics=("parallel", "parallel"),
            vmem_limit_bytes=_VMEM_LIMIT,
        ),
    )(h2_tm, w_cls, b_cls)


# ----------------------------------------------------------------------------
# Full forward (glue in plain JAX; hot paths in Pallas).
# ----------------------------------------------------------------------------
def captioning_lstm_forward(params, images, captions):
    """images: [B, C, H, W] (NCHW), captions: [B, S] int32 -> [B, S+1, V]."""
    B, C, Hi, Wi = images.shape
    S = captions.shape[1]

    # Pad batch to the tiling quantum (padded rows sliced off at the end; zero
    # images / token-0 captions keep everything finite).
    Bp = _round_up(B, _BATCH_QUANTUM)
    if Bp != B:
        images = jnp.concatenate(
            [images, jnp.zeros((Bp - B, C, Hi, Wi), images.dtype)], axis=0)
        captions = jnp.concatenate(
            [captions, jnp.zeros((Bp - B, S), captions.dtype)], axis=0)

    # NCHW -> [Bp, HW, C]: spatial positions on the chunked (grid) axis,
    # channels (tiny) minor.  Single cheap XLA transpose of the raw images.
    hw = Hi * Wi
    img = jnp.transpose(images.reshape(Bp, C, hw), (0, 2, 1))

    # ---- encoder (conv stand-in + pool + Linear + folded BN, one kernel) ----
    emb = encode_image(img, params)                       # [Bp, Ep] bf16

    # ---- decoder input, built directly time-major (no HBM transpose) ----
    tok = jnp.take(params["embedding"], captions.T, axis=0)   # [S, Bp, Ep] bf16
    x_tm = jnp.concatenate([emb[None, :, :], tok], axis=0)    # [T, Bp, Ep] bf16

    # ---- fused 2-layer LSTM recurrence (in-kernel time loop) ----
    h2 = lstm_two_layer(x_tm, params)                     # [T, Bp, Hp] bf16

    # ---- classifier, logits emitted directly as [Bp, T, Vp] ----
    logits = classifier(h2, params["w_cls"], params["b_cls"])

    num_tokens = params["embedding"].shape[0]
    return logits[:B, :, :num_tokens]                     # [B, S+1, V]


# ----------------------------------------------------------------------------
# Parameter init: logical PyTorch-shaped params, zero-padded to 128-lane
# multiples (E, H per-gate, V; V further padded to 512 when large so the
# classifier tile never degenerates).  Padded lanes stay exactly zero through
# the whole network.  MXU weights stored in bf16; eval-mode BatchNorm folded
# into the encoder Linear.
# ----------------------------------------------------------------------------
def init_params(key, *, num_tokens, emb_dim, hidden, feat_dim, in_channels):
    Ep = _round_up(emb_dim, 128)
    Hp = _round_up(hidden, 128)
    Vp = _round_up(num_tokens, 128)
    if Vp >= 512:
        Vp = _round_up(Vp, 512)
    ks = jax.random.split(key, 13)
    s = 0.1

    def pad2(a, r, c):
        return jnp.zeros((r, c), a.dtype).at[:a.shape[0], :a.shape[1]].set(a)

    def pad1(a, n):
        return jnp.zeros((n,), a.dtype).at[:a.shape[0]].set(a)

    def pad_gate_w(a, d_pad):      # [d, 4*hidden] -> [d_pad, 4*Hp], per-gate pad
        out = jnp.zeros((d_pad, 4 * Hp), a.dtype)
        for k in range(4):
            out = out.at[:a.shape[0], k * Hp:k * Hp + hidden].set(
                a[:, k * hidden:(k + 1) * hidden])
        return out

    def pad_gate_b(a):             # [4*hidden] -> [4*Hp]
        out = jnp.zeros((4 * Hp,), a.dtype)
        for k in range(4):
            out = out.at[k * Hp:k * Hp + hidden].set(a[k * hidden:(k + 1) * hidden])
        return out

    wconv = s * jax.random.normal(ks[0], (in_channels, feat_dim), jnp.float32)
    wlin = s * jax.random.normal(ks[1], (feat_dim, emb_dim), jnp.float32)
    blin = s * jax.random.normal(ks[2], (emb_dim,), jnp.float32)
    embedding = s * jax.random.normal(ks[3], (num_tokens, emb_dim), jnp.float32)
    w_ih_l0 = s * jax.random.normal(ks[4], (emb_dim, 4 * hidden), jnp.float32)
    w_hh_l0 = s * jax.random.normal(ks[5], (hidden, 4 * hidden), jnp.float32)
    b_ih_l0 = s * jax.random.normal(ks[6], (4 * hidden,), jnp.float32)
    b_hh_l0 = s * jax.random.normal(ks[7], (4 * hidden,), jnp.float32)
    w_ih_l1 = s * jax.random.normal(ks[8], (hidden, 4 * hidden), jnp.float32)
    w_hh_l1 = s * jax.random.normal(ks[9], (hidden, 4 * hidden), jnp.float32)
    b_ih_l1 = s * jax.random.normal(ks[10], (4 * hidden,), jnp.float32)
    b_hh_l1 = s * jax.random.normal(ks[11], (4 * hidden,), jnp.float32)
    w_cls = s * jax.random.normal(ks[12], (hidden, num_tokens), jnp.float32)
    b_cls = jnp.zeros((num_tokens,), jnp.float32)

    # Fold eval-mode BatchNorm1d into the encoder Linear:
    #   w' = w * gamma * rsqrt(var + eps);  b' = (b - mean) * gamma * rsqrt(var+eps) + beta
    bn_gamma = jnp.ones((emb_dim,), jnp.float32)
    bn_beta = jnp.zeros((emb_dim,), jnp.float32)
    bn_mean = jnp.zeros((emb_dim,), jnp.float32)
    bn_var = jnp.ones((emb_dim,), jnp.float32)
    scale = bn_gamma / jnp.sqrt(bn_var + 1e-5)
    wlin_f = wlin * scale[None, :]
    blin_f = (blin - bn_mean) * scale + bn_beta

    return {
        # encoder (backbone stand-in + Linear with folded BN)
        "wconv": wconv,                                        # f32
        "wlin": pad2(wlin_f, feat_dim, Ep).astype(jnp.bfloat16),
        "blin": pad1(blin_f, Ep)[None, :],
        # decoder
        "embedding": pad2(embedding, num_tokens, Ep).astype(jnp.bfloat16),
        "w_ih_l0": pad_gate_w(w_ih_l0, Ep).astype(jnp.bfloat16),
        "w_hh_l0": pad_gate_w(w_hh_l0, Hp).astype(jnp.bfloat16),
        "b_l0": (pad_gate_b(b_ih_l0) + pad_gate_b(b_hh_l0))[None, :],
        "w_ih_l1": pad_gate_w(w_ih_l1, Hp).astype(jnp.bfloat16),
        "w_hh_l1": pad_gate_w(w_hh_l1, Hp).astype(jnp.bfloat16),
        "b_l1": (pad_gate_b(b_ih_l1) + pad_gate_b(b_hh_l1))[None, :],
        # classifier
        "w_cls": pad2(w_cls, Hp, Vp).astype(jnp.bfloat16),
        "b_cls": pad1(b_cls, Vp)[None, :],
    }


if __name__ == "__main__":
    key = jax.random.PRNGKey(0)
    k_img, k_cap, k_par = jax.random.split(key, 3)

    # small shapes consistent with the module
    B, C, SPATIAL = 2, 4, 16
    NUM_TOKENS, EMB, HIDDEN, FEAT = 50, 16, 32, 64
    SEQ = 8

    params = init_params(k_par, num_tokens=NUM_TOKENS, emb_dim=EMB,
                         hidden=HIDDEN, feat_dim=FEAT, in_channels=C)

    images = jax.random.normal(k_img, (B, C, SPATIAL, SPATIAL), jnp.float32)
    captions = jax.random.randint(k_cap, (B, SEQ), 0, NUM_TOKENS, dtype=jnp.int32)

    out = captioning_lstm_forward(params, images, captions)
    out = jax.block_until_ready(out)
    assert out.shape == (B, SEQ + 1, NUM_TOKENS), out.shape
    assert bool(jnp.all(jnp.isfinite(out)))
    print("KERNEL_OK")
</pallas_src>

<mosaic_0001>
module attributes {stable_mosaic.version = 11 : i64} {
  func.func @_encoder_kernel(%arg0: i32, %arg1: i32, %arg2: memref<16x256x4xf32, #tpu.memory_space<vmem>>, %arg3: memref<4x64xf32, #tpu.memory_space<vmem>>, %arg4: memref<64x128xbf16, #tpu.memory_space<vmem>>, %arg5: memref<1x128xf32, #tpu.memory_space<vmem>>, %arg6: memref<16x128xbf16, #tpu.memory_space<vmem>>, %arg7: memref<16x64xf32, #tpu.memory_space<vmem>>) attributes {dimension_semantics = [#tpu.dimension_semantics<parallel>, #tpu.dimension_semantics<arbitrary>], iteration_bounds = array<i64: 1, 1>, scalar_prefetch = 0 : i64, scratch_operands = 1 : i64, tpu.core_type = #tpu.core_type<tc>, window_params = [{transform_indices = @transform_0, window_bounds = array<i64: 16, 256, 4>}, {pipeline_mode = #tpu.pipeline_mode<synchronous>, transform_indices = @transform_1, window_bounds = array<i64: 4, 64>}, {pipeline_mode = #tpu.pipeline_mode<synchronous>, transform_indices = @transform_2, window_bounds = array<i64: 64, 128>}, {pipeline_mode = #tpu.pipeline_mode<synchronous>, transform_indices = @transform_3, window_bounds = array<i64: 1, 128>}, {transform_indices = @transform_4, window_bounds = array<i64: 16, 128>}]} {
    %c0_i32 = arith.constant 0 : i32
    %0 = arith.cmpi eq, %arg1, %c0_i32 : i32
    %1 = arith.extui %0 : i1 to i32
    %c0_i32_0 = arith.constant 0 : i32
    %2 = arith.cmpi ne, %1, %c0_i32_0 : i32
    scf.if %2 {
      %cst_168 = arith.constant 0.000000e+00 : f32
      %265 = vector.broadcast %cst_168 : f32 to vector<16x64xf32>
      %c0_169 = arith.constant 0 : index
      %c0_170 = arith.constant 0 : index
      %266 = vector.load %arg7[%c0_169, %c0_170] : memref<16x64xf32, #tpu.memory_space<vmem>>, vector<16x64xf32>
      tpu.vector_store %arg7[%c0_169, %c0_170], %265 {strides = array<i32>} : memref<16x64xf32, #tpu.memory_space<vmem>>, vector<16x64xf32>,
    } else {
    }
    %c0 = arith.constant 0 : index
    %c0_1 = arith.constant 0 : index
    %3 = vector.load %arg3[%c0, %c0_1] : memref<4x64xf32, #tpu.memory_space<vmem>>, vector<4x64xf32>
    %c0_2 = arith.constant 0 : index
    %c0_3 = arith.constant 0 : index
    %4 = vector.load %arg7[%c0_2, %c0_3] : memref<16x64xf32, #tpu.memory_space<vmem>>, vector<16x64xf32>
    %c0_4 = arith.constant 0 : index
    %c0_5 = arith.constant 0 : index
    %c0_6 = arith.constant 0 : index
    %5 = vector.load %arg2[%c0_4, %c0_5, %c0_6] : memref<16x256x4xf32, #tpu.memory_space<vmem>>, vector<16x8x4xf32>
    %6 = vector.shape_cast %5 : vector<16x8x4xf32> to vector<128x4xf32>
    %cst = arith.constant dense<0.000000e+00> : vector<128x64xf32>
    %7 = tpu.matmul %6, %3, %cst {dimension_numbers = #tpu.dot_dimension_numbers<[1], [0], [0], [1], [0, 0, 1, 1], [], []>} : vector<128x4xf32>, vector<4x64xf32>, vector<128x64xf32> -> vector<128x64xf32>
    %cst_7 = arith.constant 0.000000e+00 : f32
    %8 = vector.broadcast %cst_7 : f32 to vector<128x64xf32>
    %9 = arith.maximumf %7, %8 : vector<128x64xf32>
    %10 = vector.shape_cast %9 : vector<128x64xf32> to vector<16x8x64xf32>
    %cst_8 = arith.constant dense<0.000000e+00> : vector<16x64xf32>
    %11 = vector.multi_reduction <add>, %10, %cst_8 [1] : vector<16x8x64xf32> to vector<16x64xf32>
    %12 = arith.addf %4, %11 : vector<16x64xf32>
    %c0_9 = arith.constant 0 : index
    %c8 = arith.constant 8 : index
    %c0_10 = arith.constant 0 : index
    %13 = vector.load %arg2[%c0_9, %c8, %c0_10] : memref<16x256x4xf32, #tpu.memory_space<vmem>>, vector<16x8x4xf32>
    %14 = vector.shape_cast %13 : vector<16x8x4xf32> to vector<128x4xf32>
    %cst_11 = arith.constant dense<0.000000e+00> : vector<128x64xf32>
    %15 = tpu.matmul %14, %3, %cst_11 {dimension_numbers = #tpu.dot_dimension_numbers<[1], [0], [0], [1], [0, 0, 1, 1], [], []>} : vector<128x4xf32>, vector<4x64xf32>, vector<128x64xf32> -> vector<128x64xf32>
    %cst_12 = arith.constant 0.000000e+00 : f32
    %16 = vector.broadcast %cst_12 : f32 to vector<128x64xf32>
    %17 = arith.maximumf %15, %16 : vector<128x64xf32>
    %18 = vector.shape_cast %17 : vector<128x64xf32> to vector<16x8x64xf32>
    %cst_13 = arith.constant dense<0.000000e+00> : vector<16x64xf32>
    %19 = vector.multi_reduction <add>, %18, %cst_13 [1] : vector<16x8x64xf32> to vector<16x64xf32>
    %20 = arith.addf %12, %19 : vector<16x64xf32>
    %c0_14 = arith.constant 0 : index
    %c16 = arith.constant 16 : index
    %c0_15 = arith.constant 0 : index
    %21 = vector.load %arg2[%c0_14, %c16, %c0_15] : memref<16x256x4xf32, #tpu.memory_space<vmem>>, vector<16x8x4xf32>
    %22 = vector.shape_cast %21 : vector<16x8x4xf32> to vector<128x4xf32>
    %cst_16 = arith.constant dense<0.000000e+00> : vector<128x64xf32>
    %23 = tpu.matmul %22, %3, %cst_16 {dimension_numbers = #tpu.dot_dimension_numbers<[1], [0], [0], [1], [0, 0, 1, 1], [], []>} : vector<128x4xf32>, vector<4x64xf32>, vector<128x64xf32> -> vector<128x64xf32>
    %cst_17 = arith.constant 0.000000e+00 : f32
    %24 = vector.broadcast %cst_17 : f32 to vector<128x64xf32>
    %25 = arith.maximumf %23, %24 : vector<128x64xf32>
    %26 = vector.shape_cast %25 : vector<128x64xf32> to vector<16x8x64xf32>
    %cst_18 = arith.constant dense<0.000000e+00> : vector<16x64xf32>
    %27 = vector.multi_reduction <add>, %26, %cst_18 [1] : vector<16x8x64xf32> to vector<16x64xf32>
    %28 = arith.addf %20, %27 : vector<16x64xf32>
    %c0_19 = arith.constant 0 : index
    %c24 = arith.constant 24 : index
    %c0_20 = arith.constant 0 : index
    %29 = vector.load %arg2[%c0_19, %c24, %c0_20] : memref<16x256x4xf32, #tpu.memory_space<vmem>>, vector<16x8x4xf32>
    %30 = vector.shape_cast %29 : vector<16x8x4xf32> to vector<128x4xf32>
    %cst_21 = arith.constant dense<0.000000e+00> : vector<128x64xf32>
    %31 = tpu.matmul %30, %3, %cst_21 {dimension_numbers = #tpu.dot_dimension_numbers<[1], [0], [0], [1], [0, 0, 1, 1], [], []>} : vector<128x4xf32>, vector<4x64xf32>, vector<128x64xf32> -> vector<128x64xf32>
    %cst_22 = arith.constant 0.000000e+00 : f32
    %32 = vector.broadcast %cst_22 : f32 to vector<128x64xf32>
    %33 = arith.maximumf %31, %32 : vector<128x64xf32>
    %34 = vector.shape_cast %33 : vector<128x64xf32> to vector<16x8x64xf32>
    %cst_23 = arith.constant dense<0.000000e+00> : vector<16x64xf32>
    %35 = vector.multi_reduction <add>, %34, %cst_23 [1] : vector<16x8x64xf32> to vector<16x64xf32>
    %36 = arith.addf %28, %35 : vector<16x64xf32>
    %c0_24 = arith.constant 0 : index
    %c32 = arith.constant 32 : index
    %c0_25 = arith.constant 0 : index
    %37 = vector.load %arg2[%c0_24, %c32, %c0_25] : memref<16x256x4xf32, #tpu.memory_space<vmem>>, vector<16x8x4xf32>
    %38 = vector.shape_cast %37 : vector<16x8x4xf32> to vector<128x4xf32>
    %cst_26 = arith.constant dense<0.000000e+00> : vector<128x64xf32>
    %39 = tpu.matmul %38, %3, %cst_26 {dimension_numbers = #tpu.dot_dimension_numbers<[1], [0], [0], [1], [0, 0, 1, 1], [], []>} : vector<128x4xf32>, vector<4x64xf32>, vector<128x64xf32> -> vector<128x64xf32>
    %cst_27 = arith.constant 0.000000e+00 : f32
    %40 = vector.broadcast %cst_27 : f32 to vector<128x64xf32>
    %41 = arith.maximumf %39, %40 : vector<128x64xf32>
    %42 = vector.shape_cast %41 : vector<128x64xf32> to vector<16x8x64xf32>
    %cst_28 = arith.constant dense<0.000000e+00> : vector<16x64xf32>
    %43 = vector.multi_reduction <add>, %42, %cst_28 [1] : vector<16x8x64xf32> to vector<16x64xf32>
    %44 = arith.addf %36, %43 : vector<16x64xf32>
    %c0_29 = arith.constant 0 : index
    %c40 = arith.constant 40 : index
    %c0_30 = arith.constant 0 : index
    %45 = vector.load %arg2[%c0_29, %c40, %c0_30] : memref<16x256x4xf32, #tpu.memory_space<vmem>>, vector<16x8x4xf32>
    %46 = vector.shape_cast %45 : vector<16x8x4xf32> to vector<128x4xf32>
    %cst_31 = arith.constant dense<0.000000e+00> : vector<128x64xf32>
    %47 = tpu.matmul %46, %3, %cst_31 {dimension_numbers = #tpu.dot_dimension_numbers<[1], [0], [0], [1], [0, 0, 1, 1], [], []>} : vector<128x4xf32>, vector<4x64xf32>, vector<128x64xf32> -> vector<128x64xf32>
    %cst_32 = arith.constant 0.000000e+00 : f32
    %48 = vector.broadcast %cst_32 : f32 to vector<128x64xf32>
    %49 = arith.maximumf %47, %48 : vector<128x64xf32>
    %50 = vector.shape_cast %49 : vector<128x64xf32> to vector<16x8x64xf32>
    %cst_33 = arith.constant dense<0.000000e+00> : vector<16x64xf32>
    %51 = vector.multi_reduction <add>, %50, %cst_33 [1] : vector<16x8x64xf32> to vector<16x64xf32>
    %52 = arith.addf %44, %51 : vector<16x64xf32>
    %c0_34 = arith.constant 0 : index
    %c48 = arith.constant 48 : index
    %c0_35 = arith.constant 0 : index
    %53 = vector.load %arg2[%c0_34, %c48, %c0_35] : memref<16x256x4xf32, #tpu.memory_space<vmem>>, vector<16x8x4xf32>
    %54 = vector.shape_cast %53 : vector<16x8x4xf32> to vector<128x4xf32>
    %cst_36 = arith.constant dense<0.000000e+00> : vector<128x64xf32>
    %55 = tpu.matmul %54, %3, %cst_36 {dimension_numbers = #tpu.dot_dimension_numbers<[1], [0], [0], [1], [0, 0, 1, 1], [], []>} : vector<128x4xf32>, vector<4x64xf32>, vector<128x64xf32> -> vector<128x64xf32>
    %cst_37 = arith.constant 0.000000e+00 : f32
    %56 = vector.broadcast %cst_37 : f32 to vector<128x64xf32>
    %57 = arith.maximumf %55, %56 : vector<128x64xf32>
    %58 = vector.shape_cast %57 : vector<128x64xf32> to vector<16x8x64xf32>
    %cst_38 = arith.constant dense<0.000000e+00> : vector<16x64xf32>
    %59 = vector.multi_reduction <add>, %58, %cst_38 [1] : vector<16x8x64xf32> to vector<16x64xf32>
    %60 = arith.addf %52, %59 : vector<16x64xf32>
    %c0_39 = arith.constant 0 : index
    %c56 = arith.constant 56 : index
    %c0_40 = arith.constant 0 : index
    %61 = vector.load %arg2[%c0_39, %c56, %c0_40] : memref<16x256x4xf32, #tpu.memory_space<vmem>>, vector<16x8x4xf32>
    %62 = vector.shape_cast %61 : vector<16x8x4xf32> to vector<128x4xf32>
    %cst_41 = arith.constant dense<0.000000e+00> : vector<128x64xf32>
    %63 = tpu.matmul %62, %3, %cst_41 {dimension_numbers = #tpu.dot_dimension_numbers<[1], [0], [0], [1], [0, 0, 1, 1], [], []>} : vector<128x4xf32>, vector<4x64xf32>, vector<128x64xf32> -> vector<128x64xf32>
    %cst_42 = arith.constant 0.000000e+00 : f32
    %64 = vector.broadcast %cst_42 : f32 to vector<128x64xf32>
    %65 = arith.maximumf %63, %64 : vector<128x64xf32>
    %66 = vector.shape_cast %65 : vector<128x64xf32> to vector<16x8x64xf32>
    %cst_43 = arith.constant dense<0.000000e+00> : vector<16x64xf32>
    %67 = vector.multi_reduction <add>, %66, %cst_43 [1] : vector<16x8x64xf32> to vector<16x64xf32>
    %68 = arith.addf %60, %67 : vector<16x64xf32>
    %c0_44 = arith.constant 0 : index
    %c64 = arith.constant 64 : index
    %c0_45 = arith.constant 0 : index
    %69 = vector.load %arg2[%c0_44, %c64, %c0_45] : memref<16x256x4xf32, #tpu.memory_space<vmem>>, vector<16x8x4xf32>
    %70 = vector.shape_cast %69 : vector<16x8x4xf32> to vector<128x4xf32>
    %cst_46 = arith.constant dense<0.000000e+00> : vector<128x64xf32>
    %71 = tpu.matmul %70, %3, %cst_46 {dimension_numbers = #tpu.dot_dimension_numbers<[1], [0], [0], [1], [0, 0, 1, 1], [], []>} : vector<128x4xf32>, vector<4x64xf32>, vector<128x64xf32> -> vector<128x64xf32>
    %cst_47 = arith.constant 0.000000e+00 : f32
    %72 = vector.broadcast %cst_47 : f32 to vector<128x64xf32>
    %73 = arith.maximumf %71, %72 : vector<128x64xf32>
    %74 = vector.shape_cast %73 : vector<128x64xf32> to vector<16x8x64xf32>
    %cst_48 = arith.constant dense<0.000000e+00> : vector<16x64xf32>
    %75 = vector.multi_reduction <add>, %74, %cst_48 [1] : vector<16x8x64xf32> to vector<16x64xf32>
    %76 = arith.addf %68, %75 : vector<16x64xf32>
    %c0_49 = arith.constant 0 : index
    %c72 = arith.constant 72 : index
    %c0_50 = arith.constant 0 : index
    %77 = vector.load %arg2[%c0_49, %c72, %c0_50] : memref<16x256x4xf32, #tpu.memory_space<vmem>>, vector<16x8x4xf32>
    %78 = vector.shape_cast %77 : vector<16x8x4xf32> to vector<128x4xf32>
    %cst_51 = arith.constant dense<0.000000e+00> : vector<128x64xf32>
    %79 = tpu.matmul %78, %3, %cst_51 {dimension_numbers = #tpu.dot_dimension_numbers<[1], [0], [0], [1], [0, 0, 1, 1], [], []>} : vector<128x4xf32>, vector<4x64xf32>, vector<128x64xf32> -> vector<128x64xf32>
    %cst_52 = arith.constant 0.000000e+00 : f32
    %80 = vector.broadcast %cst_52 : f32 to vector<128x64xf32>
    %81 = arith.maximumf %79, %80 : vector<128x64xf32>
    %82 = vector.shape_cast %81 : vector<128x64xf32> to vector<16x8x64xf32>
    %cst_53 = arith.constant dense<0.000000e+00> : vector<16x64xf32>
    %83 = vector.multi_reduction <add>, %82, %cst_53 [1] : vector<16x8x64xf32> to vector<16x64xf32>
    %84 = arith.addf %76, %83 : vector<16x64xf32>
    %c0_54 = arith.constant 0 : index
    %c80 = arith.constant 80 : index
    %c0_55 = arith.constant 0 : index
    %85 = vector.load %arg2[%c0_54, %c80, %c0_55] : memref<16x256x4xf32, #tpu.memory_space<vmem>>, vector<16x8x4xf32>
    %86 = vector.shape_cast %85 : vector<16x8x4xf32> to vector<128x4xf32>
    %cst_56 = arith.constant dense<0.000000e+00> : vector<128x64xf32>
    %87 = tpu.matmul %86, %3, %cst_56 {dimension_numbers = #tpu.dot_dimension_numbers<[1], [0], [0], [1], [0, 0, 1, 1], [], []>} : vector<128x4xf32>, vector<4x64xf32>, vector<128x64xf32> -> vector<128x64xf32>
    %cst_57 = arith.constant 0.000000e+00 : f32
    %88 = vector.broadcast %cst_57 : f32 to vector<128x64xf32>
    %89 = arith.maximumf %87, %88 : vector<128x64xf32>
    %90 = vector.shape_cast %89 : vector<128x64xf32> to vector<16x8x64xf32>
    %cst_58 = arith.constant dense<0.000000e+00> : vector<16x64xf32>
    %91 = vector.multi_reduction <add>, %90, %cst_58 [1] : vector<16x8x64xf32> to vector<16x64xf32>
    %92 = arith.addf %84, %91 : vector<16x64xf32>
    %c0_59 = arith.constant 0 : index
    %c88 = arith.constant 88 : index
    %c0_60 = arith.constant 0 : index
    %93 = vector.load %arg2[%c0_59, %c88, %c0_60] : memref<16x256x4xf32, #tpu.memory_space<vmem>>, vector<16x8x4xf32>
    %94 = vector.shape_cast %93 : vector<16x8x4xf32> to vector<128x4xf32>
    %cst_61 = arith.constant dense<0.000000e+00> : vector<128x64xf32>
    %95 = tpu.matmul %94, %3, %cst_61 {dimension_numbers = #tpu.dot_dimension_numbers<[1], [0], [0], [1], [0, 0, 1, 1], [], []>} : vector<128x4xf32>, vector<4x64xf32>, vector<128x64xf32> -> vector<128x64xf32>
    %cst_62 = arith.constant 0.000000e+00 : f32
    %96 = vector.broadcast %cst_62 : f32 to vector<128x64xf32>
    %97 = arith.maximumf %95, %96 : vector<128x64xf32>
    %98 = vector.shape_cast %97 : vector<128x64xf32> to vector<16x8x64xf32>
    %cst_63 = arith.constant dense<0.000000e+00> : vector<16x64xf32>
    %99 = vector.multi_reduction <add>, %98, %cst_63 [1] : vector<16x8x64xf32> to vector<16x64xf32>
    %100 = arith.addf %92, %99 : vector<16x64xf32>
    %c0_64 = arith.constant 0 : index
    %c96 = arith.constant 96 : index
    %c0_65 = arith.constant 0 : index
    %101 = vector.load %arg2[%c0_64, %c96, %c0_65] : memref<16x256x4xf32, #tpu.memory_space<vmem>>, vector<16x8x4xf32>
    %102 = vector.shape_cast %101 : vector<16x8x4xf32> to vector<128x4xf32>
    %cst_66 = arith.constant dense<0.000000e+00> : vector<128x64xf32>
    %103 = tpu.matmul %102, %3, %cst_66 {dimension_numbers = #tpu.dot_dimension_numbers<[1], [0], [0], [1], [0, 0, 1, 1], [], []>} : vector<128x4xf32>, vector<4x64xf32>, vector<128x64xf32> -> vector<128x64xf32>
    %cst_67 = arith.constant 0.000000e+00 : f32
    %104 = vector.broadcast %cst_67 : f32 to vector<128x64xf32>
    %105 = arith.maximumf %103, %104 : vector<128x64xf32>
    %106 = vector.shape_cast %105 : vector<128x64xf32> to vector<16x8x64xf32>
    %cst_68 = arith.constant dense<0.000000e+00> : vector<16x64xf32>
    %107 = vector.multi_reduction <add>, %106, %cst_68 [1] : vector<16x8x64xf32> to vector<16x64xf32>
    %108 = arith.addf %100, %107 : vector<16x64xf32>
    %c0_69 = arith.constant 0 : index
    %c104 = arith.constant 104 : index
    %c0_70 = arith.constant 0 : index
    %109 = vector.load %arg2[%c0_69, %c104, %c0_70] : memref<16x256x4xf32, #tpu.memory_space<vmem>>, vector<16x8x4xf32>
    %110 = vector.shape_cast %109 : vector<16x8x4xf32> to vector<128x4xf32>
    %cst_71 = arith.constant dense<0.000000e+00> : vector<128x64xf32>
    %111 = tpu.matmul %110, %3, %cst_71 {dimension_numbers = #tpu.dot_dimension_numbers<[1], [0], [0], [1], [0, 0, 1, 1], [], []>} : vector<128x4xf32>, vector<4x64xf32>, vector<128x64xf32> -> vector<128x64xf32>
    %cst_72 = arith.constant 0.000000e+00 : f32
    %112 = vector.broadcast %cst_72 : f32 to vector<128x64xf32>
    %113 = arith.maximumf %111, %112 : vector<128x64xf32>
    %114 = vector.shape_cast %113 : vector<128x64xf32> to vector<16x8x64xf32>
    %cst_73 = arith.constant dense<0.000000e+00> : vector<16x64xf32>
    %115 = vector.multi_reduction <add>, %114, %cst_73 [1] : vector<16x8x64xf32> to vector<16x64xf32>
    %116 = arith.addf %108, %115 : vector<16x64xf32>
    %c0_74 = arith.constant 0 : index
    %c112 = arith.constant 112 : index
    %c0_75 = arith.constant 0 : index
    %117 = vector.load %arg2[%c0_74, %c112, %c0_75] : memref<16x256x4xf32, #tpu.memory_space<vmem>>, vector<16x8x4xf32>
    %118 = vector.shape_cast %117 : vector<16x8x4xf32> to vector<128x4xf32>
    %cst_76 = arith.constant dense<0.000000e+00> : vector<128x64xf32>
    %119 = tpu.matmul %118, %3, %cst_76 {dimension_numbers = #tpu.dot_dimension_numbers<[1], [0], [0], [1], [0, 0, 1, 1], [], []>} : vector<128x4xf32>, vector<4x64xf32>, vector<128x64xf32> -> vector<128x64xf32>
    %cst_77 = arith.constant 0.000000e+00 : f32
    %120 = vector.broadcast %cst_77 : f32 to vector<128x64xf32>
    %121 = arith.maximumf %119, %120 : vector<128x64xf32>
    %122 = vector.shape_cast %121 : vector<128x64xf32> to vector<16x8x64xf32>
    %cst_78 = arith.constant dense<0.000000e+00> : vector<16x64xf32>
    %123 = vector.multi_reduction <add>, %122, %cst_78 [1] : vector<16x8x64xf32> to vector<16x64xf32>
    %124 = arith.addf %116, %123 : vector<16x64xf32>
    %c0_79 = arith.constant 0 : index
    %c120 = arith.constant 120 : index
    %c0_80 = arith.constant 0 : index
    %125 = vector.load %arg2[%c0_79, %c120, %c0_80] : memref<16x256x4xf32, #tpu.memory_space<vmem>>, vector<16x8x4xf32>
    %126 = vector.shape_cast %125 : vector<16x8x4xf32> to vector<128x4xf32>
    %cst_81 = arith.constant dense<0.000000e+00> : vector<128x64xf32>
    %127 = tpu.matmul %126, %3, %cst_81 {dimension_numbers = #tpu.dot_dimension_numbers<[1], [0], [0], [1], [0, 0, 1, 1], [], []>} : vector<128x4xf32>, vector<4x64xf32>, vector<128x64xf32> -> vector<128x64xf32>
    %cst_82 = arith.constant 0.000000e+00 : f32
    %128 = vector.broadcast %cst_82 : f32 to vector<128x64xf32>
    %129 = arith.maximumf %127, %128 : vector<128x64xf32>
    %130 = vector.shape_cast %129 : vector<128x64xf32> to vector<16x8x64xf32>
    %cst_83 = arith.constant dense<0.000000e+00> : vector<16x64xf32>
    %131 = vector.multi_reduction <add>, %130, %cst_83 [1] : vector<16x8x64xf32> to vector<16x64xf32>
    %132 = arith.addf %124, %131 : vector<16x64xf32>
    %c0_84 = arith.constant 0 : index
    %c128 = arith.constant 128 : index
    %c0_85 = arith.constant 0 : index
    %133 = vector.load %arg2[%c0_84, %c128, %c0_85] : memref<16x256x4xf32, #tpu.memory_space<vmem>>, vector<16x8x4xf32>
    %134 = vector.shape_cast %133 : vector<16x8x4xf32> to vector<128x4xf32>
    %cst_86 = arith.constant dense<0.000000e+00> : vector<128x64xf32>
    %135 = tpu.matmul %134, %3, %cst_86 {dimension_numbers = #tpu.dot_dimension_numbers<[1], [0], [0], [1], [0, 0, 1, 1], [], []>} : vector<128x4xf32>, vector<4x64xf32>, vector<128x64xf32> -> vector<128x64xf32>
    %cst_87 = arith.constant 0.000000e+00 : f32
    %136 = vector.broadcast %cst_87 : f32 to vector<128x64xf32>
    %137 = arith.maximumf %135, %136 : vector<128x64xf32>
    %138 = vector.shape_cast %137 : vector<128x64xf32> to vector<16x8x64xf32>
    %cst_88 = arith.constant dense<0.000000e+00> : vector<16x64xf32>
    %139 = vector.multi_reduction <add>, %138, %cst_88 [1] : vector<16x8x64xf32> to vector<16x64xf32>
    %140 = arith.addf %132, %139 : vector<16x64xf32>
    %c0_89 = arith.constant 0 : index
    %c136 = arith.constant 136 : index
    %c0_90 = arith.constant 0 : index
    %141 = vector.load %arg2[%c0_89, %c136, %c0_90] : memref<16x256x4xf32, #tpu.memory_space<vmem>>, vector<16x8x4xf32>
    %142 = vector.shape_cast %141 : vector<16x8x4xf32> to vector<128x4xf32>
    %cst_91 = arith.constant dense<0.000000e+00> : vector<128x64xf32>
    %143 = tpu.matmul %142, %3, %cst_91 {dimension_numbers = #tpu.dot_dimension_numbers<[1], [0], [0], [1], [0, 0, 1, 1], [], []>} : vector<128x4xf32>, vector<4x64xf32>, vector<128x64xf32> -> vector<128x64xf32>
    %cst_92 = arith.constant 0.000000e+00 : f32
    %144 = vector.broadcast %cst_92 : f32 to vector<128x64xf32>
    %145 = arith.maximumf %143, %144 : vector<128x64xf32>
    %146 = vector.shape_cast %145 : vector<128x64xf32> to vector<16x8x64xf32>
    %cst_93 = arith.constant dense<0.000000e+00> : vector<16x64xf32>
    %147 = vector.multi_reduction <add>, %146, %cst_93 [1] : vector<16x8x64xf32> to vector<16x64xf32>
    %148 = arith.addf %140, %147 : vector<16x64xf32>
    %c0_94 = arith.constant 0 : index
    %c144 = arith.constant 144 : index
    %c0_95 = arith.constant 0 : index
    %149 = vector.load %arg2[%c0_94, %c144, %c0_95] : memref<16x256x4xf32, #tpu.memory_space<vmem>>, vector<16x8x4xf32>
    %150 = vector.shape_cast %149 : vector<16x8x4xf32> to vector<128x4xf32>
    %cst_96 = arith.constant dense<0.000000e+00> : vector<128x64xf32>
    %151 = tpu.matmul %150, %3, %cst_96 {dimension_numbers = #tpu.dot_dimension_numbers<[1], [0], [0], [1], [0, 0, 1, 1], [], []>} : vector<128x4xf32>, vector<4x64xf32>, vector<128x64xf32> -> vector<128x64xf32>
    %cst_97 = arith.constant 0.000000e+00 : f32
    %152 = vector.broadcast %cst_97 : f32 to vector<128x64xf32>
    %153 = arith.maximumf %151, %152 : vector<128x64xf32>
    %154 = vector.shape_cast %153 : vector<128x64xf32> to vector<16x8x64xf32>
    %cst_98 = arith.constant dense<0.000000e+00> : vector<16x64xf32>
    %155 = vector.multi_reduction <add>, %154, %cst_98 [1] : vector<16x8x64xf32> to vector<16x64xf32>
    %156 = arith.addf %148, %155 : vector<16x64xf32>
    %c0_99 = arith.constant 0 : index
    %c152 = arith.constant 152 : index
    %c0_100 = arith.constant 0 : index
    %157 = vector.load %arg2[%c0_99, %c152, %c0_100] : memref<16x256x4xf32, #tpu.memory_space<vmem>>, vector<16x8x4xf32>
    %158 = vector.shape_cast %157 : vector<16x8x4xf32> to vector<128x4xf32>
    %cst_101 = arith.constant dense<0.000000e+00> : vector<128x64xf32>
    %159 = tpu.matmul %158, %3, %cst_101 {dimension_numbers = #tpu.dot_dimension_numbers<[1], [0], [0], [1], [0, 0, 1, 1], [], []>} : vector<128x4xf32>, vector<4x64xf32>, vector<128x64xf32> -> vector<128x64xf32>
    %cst_102 = arith.constant 0.000000e+00 : f32
    %160 = vector.broadcast %cst_102 : f32 to vector<128x64xf32>
    %161 = arith.maximumf %159, %160 : vector<128x64xf32>
    %162 = vector.shape_cast %161 : vector<128x64xf32> to vector<16x8x64xf32>
    %cst_103 = arith.constant dense<0.000000e+00> : vector<16x64xf32>
    %163 = vector.multi_reduction <add>, %162, %cst_103 [1] : vector<16x8x64xf32> to vector<16x64xf32>
    %164 = arith.addf %156, %163 : vector<16x64xf32>
    %c0_104 = arith.constant 0 : index
    %c160 = arith.constant 160 : index
    %c0_105 = arith.constant 0 : index
    %165 = vector.load %arg2[%c0_104, %c160, %c0_105] : memref<16x256x4xf32, #tpu.memory_space<vmem>>, vector<16x8x4xf32>
    %166 = vector.shape_cast %165 : vector<16x8x4xf32> to vector<128x4xf32>
    %cst_106 = arith.constant dense<0.000000e+00> : vector<128x64xf32>
    %167 = tpu.matmul %166, %3, %cst_106 {dimension_numbers = #tpu.dot_dimension_numbers<[1], [0], [0], [1], [0, 0, 1, 1], [], []>} : vector<128x4xf32>, vector<4x64xf32>, vector<128x64xf32> -> vector<128x64xf32>
    %cst_107 = arith.constant 0.000000e+00 : f32
    %168 = vector.broadcast %cst_107 : f32 to vector<128x64xf32>
    %169 = arith.maximumf %167, %168 : vector<128x64xf32>
    %170 = vector.shape_cast %169 : vector<128x64xf32> to vector<16x8x64xf32>
    %cst_108 = arith.constant dense<0.000000e+00> : vector<16x64xf32>
    %171 = vector.multi_reduction <add>, %170, %cst_108 [1] : vector<16x8x64xf32> to vector<16x64xf32>
    %172 = arith.addf %164, %171 : vector<16x64xf32>
    %c0_109 = arith.constant 0 : index
    %c168 = arith.constant 168 : index
    %c0_110 = arith.constant 0 : index
    %173 = vector.load %arg2[%c0_109, %c168, %c0_110] : memref<16x256x4xf32, #tpu.memory_space<vmem>>, vector<16x8x4xf32>
    %174 = vector.shape_cast %173 : vector<16x8x4xf32> to vector<128x4xf32>
    %cst_111 = arith.constant dense<0.000000e+00> : vector<128x64xf32>
    %175 = tpu.matmul %174, %3, %cst_111 {dimension_numbers = #tpu.dot_dimension_numbers<[1], [0], [0], [1], [0, 0, 1, 1], [], []>} : vector<128x4xf32>, vector<4x64xf32>, vector<128x64xf32> -> vector<128x64xf32>
    %cst_112 = arith.constant 0.000000e+00 : f32
    %176 = vector.broadcast %cst_112 : f32 to vector<128x64xf32>
    %177 = arith.maximumf %175, %176 : vector<128x64xf32>
    %178 = vector.shape_cast %177 : vector<128x64xf32> to vector<16x8x64xf32>
    %cst_113 = arith.constant dense<0.000000e+00> : vector<16x64xf32>
    %179 = vector.multi_reduction <add>, %178, %cst_113 [1] : vector<16x8x64xf32> to vector<16x64xf32>
    %180 = arith.addf %172, %179 : vector<16x64xf32>
    %c0_114 = arith.constant 0 : index
    %c176 = arith.constant 176 : index
    %c0_115 = arith.constant 0 : index
    %181 = vector.load %arg2[%c0_114, %c176, %c0_115] : memref<16x256x4xf32, #tpu.memory_space<vmem>>, vector<16x8x4xf32>
    %182 = vector.shape_cast %181 : vector<16x8x4xf32> to vector<128x4xf32>
    %cst_116 = arith.constant dense<0.000000e+00> : vector<128x64xf32>
    %183 = tpu.matmul %182, %3, %cst_116 {dimension_numbers = #tpu.dot_dimension_numbers<[1], [0], [0], [1], [0, 0, 1, 1], [], []>} : vector<128x4xf32>, vector<4x64xf32>, vector<128x64xf32> -> vector<128x64xf32>
    %cst_117 = arith.constant 0.000000e+00 : f32
    %184 = vector.broadcast %cst_117 : f32 to vector<128x64xf32>
    %185 = arith.maximumf %183, %184 : vector<128x64xf32>
    %186 = vector.shape_cast %185 : vector<128x64xf32> to vector<16x8x64xf32>
    %cst_118 = arith.constant dense<0.000000e+00> : vector<16x64xf32>
    %187 = vector.multi_reduction <add>, %186, %cst_118 [1] : vector<16x8x64xf32> to vector<16x64xf32>
    %188 = arith.addf %180, %187 : vector<16x64xf32>
    %c0_119 = arith.constant 0 : index
    %c184 = arith.constant 184 : index
    %c0_120 = arith.constant 0 : index
    %189 = vector.load %arg2[%c0_119, %c184, %c0_120] : memref<16x256x4xf32, #tpu.memory_space<vmem>>, vector<16x8x4xf32>
    %190 = vector.shape_cast %189 : vector<16x8x4xf32> to vector<128x4xf32>
    %cst_121 = arith.constant dense<0.000000e+00> : vector<128x64xf32>
    %191 = tpu.matmul %190, %3, %cst_121 {dimension_numbers = #tpu.dot_dimension_numbers<[1], [0], [0], [1], [0, 0, 1, 1], [], []>} : vector<128x4xf32>, vector<4x64xf32>, vector<128x64xf32> -> vector<128x64xf32>
    %cst_122 = arith.constant 0.000000e+00 : f32
    %192 = vector.broadcast %cst_122 : f32 to vector<128x64xf32>
    %193 = arith.maximumf %191, %192 : vector<128x64xf32>
    %194 = vector.shape_cast %193 : vector<128x64xf32> to vector<16x8x64xf32>
    %cst_123 = arith.constant dense<0.000000e+00> : vector<16x64xf32>
    %195 = vector.multi_reduction <add>, %194, %cst_123 [1] : vector<16x8x64xf32> to vector<16x64xf32>
    %196 = arith.addf %188, %195 : vector<16x64xf32>
    %c0_124 = arith.constant 0 : index
    %c192 = arith.constant 192 : index
    %c0_125 = arith.constant 0 : index
    %197 = vector.load %arg2[%c0_124, %c192, %c0_125] : memref<16x256x4xf32, #tpu.memory_space<vmem>>, vector<16x8x4xf32>
    %198 = vector.shape_cast %197 : vector<16x8x4xf32> to vector<128x4xf32>
    %cst_126 = arith.constant dense<0.000000e+00> : vector<128x64xf32>
    %199 = tpu.matmul %198, %3, %cst_126 {dimension_numbers = #tpu.dot_dimension_numbers<[1], [0], [0], [1], [0, 0, 1, 1], [], []>} : vector<128x4xf32>, vector<4x64xf32>, vector<128x64xf32> -> vector<128x64xf32>
    %cst_127 = arith.constant 0.000000e+00 : f32
    %200 = vector.broadcast %cst_127 : f32 to vector<128x64xf32>
    %201 = arith.maximumf %199, %200 : vector<128x64xf32>
    %202 = vector.shape_cast %201 : vector<128x64xf32> to vector<16x8x64xf32>
    %cst_128 = arith.constant dense<0.000000e+00> : vector<16x64xf32>
    %203 = vector.multi_reduction <add>, %202, %cst_128 [1] : vector<16x8x64xf32> to vector<16x64xf32>
    %204 = arith.addf %196, %203 : vector<16x64xf32>
    %c0_129 = arith.constant 0 : index
    %c200 = arith.constant 200 : index
    %c0_130 = arith.constant 0 : index
    %205 = vector.load %arg2[%c0_129, %c200, %c0_130] : memref<16x256x4xf32, #tpu.memory_space<vmem>>, vector<16x8x4xf32>
    %206 = vector.shape_cast %205 : vector<16x8x4xf32> to vector<128x4xf32>
    %cst_131 = arith.constant dense<0.000000e+00> : vector<128x64xf32>
    %207 = tpu.matmul %206, %3, %cst_131 {dimension_numbers = #tpu.dot_dimension_numbers<[1], [0], [0], [1], [0, 0, 1, 1], [], []>} : vector<128x4xf32>, vector<4x64xf32>, vector<128x64xf32> -> vector<128x64xf32>
    %cst_132 = arith.constant 0.000000e+00 : f32
    %208 = vector.broadcast %cst_132 : f32 to vector<128x64xf32>
    %209 = arith.maximumf %207, %208 : vector<128x64xf32>
    %210 = vector.shape_cast %209 : vector<128x64xf32> to vector<16x8x64xf32>
    %cst_133 = arith.constant dense<0.000000e+00> : vector<16x64xf32>
    %211 = vector.multi_reduction <add>, %210, %cst_133 [1] : vector<16x8x64xf32> to vector<16x64xf32>
    %212 = arith.addf %204, %211 : vector<16x64xf32>
    %c0_134 = arith.constant 0 : index
    %c208 = arith.constant 208 : index
    %c0_135 = arith.constant 0 : index
    %213 = vector.load %arg2[%c0_134, %c208, %c0_135] : memref<16x256x4xf32, #tpu.memory_space<vmem>>, vector<16x8x4xf32>
    %214 = vector.shape_cast %213 : vector<16x8x4xf32> to vector<128x4xf32>
    %cst_136 = arith.constant dense<0.000000e+00> : vector<128x64xf32>
    %215 = tpu.matmul %214, %3, %cst_136 {dimension_numbers = #tpu.dot_dimension_numbers<[1], [0], [0], [1], [0, 0, 1, 1], [], []>} : vector<128x4xf32>, vector<4x64xf32>, vector<128x64xf32> -> vector<128x64xf32>
    %cst_137 = arith.constant 0.000000e+00 : f32
    %216 = vector.broadcast %cst_137 : f32 to vector<128x64xf32>
    %217 = arith.maximumf %215, %216 : vector<128x64xf32>
    %218 = vector.shape_cast %217 : vector<128x64xf32> to vector<16x8x64xf32>
    %cst_138 = arith.constant dense<0.000000e+00> : vector<16x64xf32>
    %219 = vector.multi_reduction <add>, %218, %cst_138 [1] : vector<16x8x64xf32> to vector<16x64xf32>
    %220 = arith.addf %212, %219 : vector<16x64xf32>
    %c0_139 = arith.constant 0 : index
    %c216 = arith.constant 216 : index
    %c0_140 = arith.constant 0 : index
    %221 = vector.load %arg2[%c0_139, %c216, %c0_140] : memref<16x256x4xf32, #tpu.memory_space<vmem>>, vector<16x8x4xf32>
    %222 = vector.shape_cast %221 : vector<16x8x4xf32> to vector<128x4xf32>
    %cst_141 = arith.constant dense<0.000000e+00> : vector<128x64xf32>
    %223 = tpu.matmul %222, %3, %cst_141 {dimension_numbers = #tpu.dot_dimension_numbers<[1], [0], [0], [1], [0, 0, 1, 1], [], []>} : vector<128x4xf32>, vector<4x64xf32>, vector<128x64xf32> -> vector<128x64xf32>
    %cst_142 = arith.constant 0.000000e+00 : f32
    %224 = vector.broadcast %cst_142 : f32 to vector<128x64xf32>
    %225 = arith.maximumf %223, %224 : vector<128x64xf32>
    %226 = vector.shape_cast %225 : vector<128x64xf32> to vector<16x8x64xf32>
    %cst_143 = arith.constant dense<0.000000e+00> : vector<16x64xf32>
    %227 = vector.multi_reduction <add>, %226, %cst_143 [1] : vector<16x8x64xf32> to vector<16x64xf32>
    %228 = arith.addf %220, %227 : vector<16x64xf32>
    %c0_144 = arith.constant 0 : index
    %c224 = arith.constant 224 : index
    %c0_145 = arith.constant 0 : index
    %229 = vector.load %arg2[%c0_144, %c224, %c0_145] : memref<16x256x4xf32, #tpu.memory_space<vmem>>, vector<16x8x4xf32>
    %230 = vector.shape_cast %229 : vector<16x8x4xf32> to vector<128x4xf32>
    %cst_146 = arith.constant dense<0.000000e+00> : vector<128x64xf32>
    %231 = tpu.matmul %230, %3, %cst_146 {dimension_numbers = #tpu.dot_dimension_numbers<[1], [0], [0], [1], [0, 0, 1, 1], [], []>} : vector<128x4xf32>, vector<4x64xf32>, vector<128x64xf32> -> vector<128x64xf32>
    %cst_147 = arith.constant 0.000000e+00 : f32
    %232 = vector.broadcast %cst_147 : f32 to vector<128x64xf32>
    %233 = arith.maximumf %231, %232 : vector<128x64xf32>
    %234 = vector.shape_cast %233 : vector<128x64xf32> to vector<16x8x64xf32>
    %cst_148 = arith.constant dense<0.000000e+00> : vector<16x64xf32>
    %235 = vector.multi_reduction <add>, %234, %cst_148 [1] : vector<16x8x64xf32> to vector<16x64xf32>
    %236 = arith.addf %228, %235 : vector<16x64xf32>
    %c0_149 = arith.constant 0 : index
    %c232 = arith.constant 232 : index
    %c0_150 = arith.constant 0 : index
    %237 = vector.load %arg2[%c0_149, %c232, %c0_150] : memref<16x256x4xf32, #tpu.memory_space<vmem>>, vector<16x8x4xf32>
    %238 = vector.shape_cast %237 : vector<16x8x4xf32> to vector<128x4xf32>
    %cst_151 = arith.constant dense<0.000000e+00> : vector<128x64xf32>
    %239 = tpu.matmul %238, %3, %cst_151 {dimension_numbers = #tpu.dot_dimension_numbers<[1], [0], [0], [1], [0, 0, 1, 1], [], []>} : vector<128x4xf32>, vector<4x64xf32>, vector<128x64xf32> -> vector<128x64xf32>
    %cst_152 = arith.constant 0.000000e+00 : f32
    %240 = vector.broadcast %cst_152 : f32 to vector<128x64xf32>
    %241 = arith.maximumf %239, %240 : vector<128x64xf32>
    %242 = vector.shape_cast %241 : vector<128x64xf32> to vector<16x8x64xf32>
    %cst_153 = arith.constant dense<0.000000e+00> : vector<16x64xf32>
    %243 = vector.multi_reduction <add>, %242, %cst_153 [1] : vector<16x8x64xf32> to vector<16x64xf32>
    %244 = arith.addf %236, %243 : vector<16x64xf32>
    %c0_154 = arith.constant 0 : index
    %c240 = arith.constant 240 : index
    %c0_155 = arith.constant 0 : index
    %245 = vector.load %arg2[%c0_154, %c240, %c0_155] : memref<16x256x4xf32, #tpu.memory_space<vmem>>, vector<16x8x4xf32>
    %246 = vector.shape_cast %245 : vector<16x8x4xf32> to vector<128x4xf32>
    %cst_156 = arith.constant dense<0.000000e+00> : vector<128x64xf32>
    %247 = tpu.matmul %246, %3, %cst_156 {dimension_numbers = #tpu.dot_dimension_numbers<[1], [0], [0], [1], [0, 0, 1, 1], [], []>} : vector<128x4xf32>, vector<4x64xf32>, vector<128x64xf32> -> vector<128x64xf32>
    %cst_157 = arith.constant 0.000000e+00 : f32
    %248 = vector.broadcast %cst_157 : f32 to vector<128x64xf32>
    %249 = arith.maximumf %247, %248 : vector<128x64xf32>
    %250 = vector.shape_cast %249 : vector<128x64xf32> to vector<16x8x64xf32>
    %cst_158 = arith.constant dense<0.000000e+00> : vector<16x64xf32>
    %251 = vector.multi_reduction <add>, %250, %cst_158 [1] : vector<16x8x64xf32> to vector<16x64xf32>
    %252 = arith.addf %244, %251 : vector<16x64xf32>
    %c0_159 = arith.constant 0 : index
    %c248 = arith.constant 248 : index
    %c0_160 = arith.constant 0 : index
    %253 = vector.load %arg2[%c0_159, %c248, %c0_160] : memref<16x256x4xf32, #tpu.memory_space<vmem>>, vector<16x8x4xf32>
    %254 = vector.shape_cast %253 : vector<16x8x4xf32> to vector<128x4xf32>
    %cst_161 = arith.constant dense<0.000000e+00> : vector<128x64xf32>
    %255 = tpu.matmul %254, %3, %cst_161 {dimension_numbers = #tpu.dot_dimension_numbers<[1], [0], [0], [1], [0, 0, 1, 1], [], []>} : vector<128x4xf32>, vector<4x64xf32>, vector<128x64xf32> -> vector<128x64xf32>
    %cst_162 = arith.constant 0.000000e+00 : f32
    %256 = vector.broadcast %cst_162 : f32 to vector<128x64xf32>
    %257 = arith.maximumf %255, %256 : vector<128x64xf32>
    %258 = vector.shape_cast %257 : vector<128x64xf32> to vector<16x8x64xf32>
    %cst_163 = arith.constant dense<0.000000e+00> : vector<16x64xf32>
    %259 = vector.multi_reduction <add>, %258, %cst_163 [1] : vector<16x8x64xf32> to vector<16x64xf32>
    %260 = arith.addf %252, %259 : vector<16x64xf32>
    %c0_164 = arith.constant 0 : index
    %c0_165 = arith.constant 0 : index
    %261 = vector.load %arg7[%c0_164, %c0_165] : memref<16x64xf32, #tpu.memory_space<vmem>>, vector<16x64xf32>
    tpu.vector_store %arg7[%c0_164, %c0_165], %260 {strides = array<i32>} : memref<16x64xf32, #tpu.memory_space<vmem>>, vector<16x64xf32>,
    %c0_i32_166 = arith.constant 0 : i32
    %262 = arith.cmpi eq, %arg1, %c0_i32_166 : i32
    %263 = arith.extui %262 : i1 to i32
    %c0_i32_167 = arith.constant 0 : i32
    %264 = arith.cmpi ne, %263, %c0_i32_167 : i32
    scf.if %264 {
      %c0_168 = arith.constant 0 : index
      %c0_169 = arith.constant 0 : index
      %265 = vector.load %arg7[%c0_168, %c0_169] : memref<16x64xf32, #tpu.memory_space<vmem>>, vector<16x64xf32>
      %cst_170 = arith.constant 3.906250e-03 : f32
      %266 = vector.broadcast %cst_170 : f32 to vector<16x64xf32>
      %267 = arith.mulf %265, %266 : vector<16x64xf32>
      %268 = arith.truncf %267 : vector<16x64xf32> to vector<16x64xbf16>
      %c0_171 = arith.constant 0 : index
      %c0_172 = arith.constant 0 : index
      %269 = vector.load %arg4[%c0_171, %c0_172] : memref<64x128xbf16, #tpu.memory_space<vmem>>, vector<64x128xbf16>
      %cst_173 = arith.constant dense<0.000000e+00> : vector<16x128xf32>
      %270 = tpu.matmul %268, %269, %cst_173 {dimension_numbers = #tpu.dot_dimension_numbers<[1], [0], [0], [1], [0, 0, 1, 1], [], []>} : vector<16x64xbf16>, vector<64x128xbf16>, vector<16x128xf32> -> vector<16x128xf32>
      %c0_174 = arith.constant 0 : index
      %c0_175 = arith.constant 0 : index
      %271 = vector.load %arg5[%c0_174, %c0_175] : memref<1x128xf32, #tpu.memory_space<vmem>>, vector<1x128xf32>
      %272 = vector.broadcast %271 : vector<1x128xf32> to vector<16x128xf32>
      %273 = arith.addf %270, %272 : vector<16x128xf32>
      %274 = arith.truncf %273 : vector<16x128xf32> to vector<16x128xbf16>
      %c0_176 = arith.constant 0 : index
      %c0_177 = arith.constant 0 : index
      %275 = vector.load %arg6[%c0_176, %c0_177] : memref<16x128xbf16, #tpu.memory_space<vmem>>, vector<16x128xbf16>
      tpu.vector_store %arg6[%c0_176, %c0_177], %274 {strides = array<i32>} : memref<16x128xbf16, #tpu.memory_space<vmem>>, vector<16x128xbf16>,
    } else {
    }
    return
  }
  func.func @transform_0(%arg0: i32, %arg1: i32) -> (i32, i32, i32) {
    %c0_i32 = arith.constant 0 : i32
    %c0_i32_0 = arith.constant 0 : i32
    return %arg0, %arg1, %c0_i32 : i32, i32, i32
  }
  func.func @transform_1(%arg0: i32, %arg1: i32) -> (i32, i32) {
    %c0_i32 = arith.constant 0 : i32
    %c0_i32_0 = arith.constant 0 : i32
    %c0_i32_1 = arith.constant 0 : i32
    return %c0_i32, %c0_i32_0 : i32, i32
  }
  func.func @transform_2(%arg0: i32, %arg1: i32) -> (i32, i32) {
    %c0_i32 = arith.constant 0 : i32
    %c0_i32_0 = arith.constant 0 : i32
    %c0_i32_1 = arith.constant 0 : i32
    return %c0_i32, %c0_i32_0 : i32, i32
  }
  func.func @transform_3(%arg0: i32, %arg1: i32) -> (i32, i32) {
    %c0_i32 = arith.constant 0 : i32
    %c0_i32_0 = arith.constant 0 : i32
    %c0_i32_1 = arith.constant 0 : i32
    return %c0_i32, %c0_i32_0 : i32, i32
  }
  func.func @transform_4(%arg0: i32, %arg1: i32) -> (i32, i32) {
    %c0_i32 = arith.constant 0 : i32
    %c0_i32_0 = arith.constant 0 : i32
    return %arg0, %c0_i32 : i32, i32
  }
}

</mosaic_0001>

<bundles_post_ra>
// kernel: tpu_custom_call.1
= control target key start
LH: loop header
LB: loop body
LE: loop exit
PB: predicated region body
PF: predicated region fallthrough
CT: control target
= control target key end

     0   :  { %vm94_vm0 = vcmask 1043456   ;;  %vm45_vm1 = vcmask 31744   ;;  %s19048_s0 = inlined_call_operand.vmem [shape: f32[16,256,4], index: 0, kind: input, shape index: {}]   ;;  %s19049_s1 = inlined_call_operand.vmem [shape: f32[4,64], index: 1, kind: input, shape index: {}]   ;;  %s19050_s2 = inlined_call_operand.vmem [shape: bf16[64,128], index: 2, kind: input, shape index: {}]   ;;  %s19051_s3 = inlined_call_operand.vmem [shape: f32[1,128], index: 3, kind: input, shape index: {}]   ;;  %s19052_s4 = inlined_call_operand.hbm [shape: bf16[16,128], index: 4, kind: output, shape index: {}]  }
   0x1   :  { %v14057_v0 = vld [vmem:[%s19049_s1] sm:$0xf]  ;;  %v413_v6 = vld [vmem:[%s19048_s0 + $0x8] sm:$0xff]  ;;  %v784_v30 = vld [vmem:[%s19048_s0 + $0x10] sm:$0xff] }
   0x2   :  { %v29_v1 = vld [vmem:[%s19048_s0] sm:$0xff]  ;;  %13141 = vmatprep.subr.msk.mxu0 %vm94_vm0, %v14057_v0  ;;  %13985 = vmatprep.subr.msk.mxu1 %vm94_vm0, %v14057_v0  ;;  %v414_v8 = vld [vmem:[%s19048_s0 + $0x108] sm:$0xff]  ;;  %v785_v32 = vld [vmem:[%s19048_s0 + $0x110] sm:$0xff] }
   0x3   :  { %v43_v2 = vld [vmem:[%s19048_s0 + $0xe00] sm:$0xff]  ;;  %13142 = vmatpush3.msk.msra.mxu0 %vm94_vm0, %v14057_v0  ;;  %13986 = vmatpush3.msk.msra.mxu1 %vm94_vm0, %v14057_v0  ;;  %v415_v10 = vld [vmem:[%s19048_s0 + $0x208] sm:$0xff]  ;;  %v786_v34 = vld [vmem:[%s19048_s0 + $0x210] sm:$0xff] }
   0x4   :  { %v30_v3 = vld [vmem:[%s19048_s0 + $0x100] sm:$0xff]  ;;  %13143 = vmatprep.mubr.msk.f32.mxu0 %vm45_vm1, %v29_v1  ;;  %13164 = vmatprep.mubr.msk.f32.mxu1 %vm45_vm1, %v43_v2  ;;  %v416_v12 = vld [vmem:[%s19048_s0 + $0x308] sm:$0xff]  ;;  %v787_v36 = vld [vmem:[%s19048_s0 + $0x310] sm:$0xff] }
   0x5   :  { %v44_v4 = vld [vmem:[%s19048_s0 + $0xf00] sm:$0xff]  ;;  %13144 = vmatmul.mubr.msk.f32.vlgmr.msra.gmra.mrb[0].mxu0 %vm45_vm1, %v30_v3  ;;  %13167 = vmatprep.subr.msk.mxu1 %vm94_vm0, %v14057_v0  ;;  %v417_v14 = vld [vmem:[%s19048_s0 + $0x408] sm:$0xff]  ;;  %v788_v37 = vld [vmem:[%s19048_s0 + $0x410] sm:$0xff] }
   0x6   :  { %v31_v5 = vld [vmem:[%s19048_s0 + $0x200] sm:$0xff]  ;;  %13165 = vmatmul.mubr.msk.f32.vlgmr.msra.gmra.mrb[0].mxu1 %vm45_vm1, %v44_v4  ;;  %13193 = vmatprep.subr.msk.mxu0 %vm94_vm0, %v14057_v0  ;;  %v418_v16 = vld [vmem:[%s19048_s0 + $0x508] sm:$0xff]  ;;  %v1155_v38 = vld [vmem:[%s19048_s0 + $0x18] sm:$0xff] }
   0x7   :  { %13146 = vmatprep.mubr.msk.f32.mxu0 %vm45_vm1, %v31_v5  ;;  %v32_v7 = vld [vmem:[%s19048_s0 + $0x300] sm:$0xff]  ;;  %13168 = vmatpush3.msk.msra.mxu1 %vm94_vm0, %v14057_v0  ;;  %v419_v18 = vld [vmem:[%s19048_s0 + $0x608] sm:$0xff]  ;;  %v789_v39 = vld [vmem:[%s19048_s0 + $0x510] sm:$0xff] }
   0x8   :  { %13169 = vmatprep.mubr.msk.f32.mxu1 %vm45_vm1, %v413_v6  ;;  %v33_v9 = vld [vmem:[%s19048_s0 + $0x400] sm:$0xff]  ;;  %13219 = vmatprep.subr.msk.mxu1 %vm94_vm0, %v14057_v0  ;;  %v420_v20 = vld [vmem:[%s19048_s0 + $0x708] sm:$0xff]  ;;  %v1156_v40 = vld [vmem:[%s19048_s0 + $0x118] sm:$0xff] }
   0x9   :  { %13147 = vmatmul.mubr.msk.f32.gmra.mrb[2].mxu0 %vm45_vm1, %v32_v7  ;;  %v34_v11 = vld [vmem:[%s19048_s0 + $0x500] sm:$0xff]  ;;  %v421_v22 = vld [vmem:[%s19048_s0 + $0x808] sm:$0xff]  ;;  %v790_v41 = vld [vmem:[%s19048_s0 + $0x610] sm:$0xff] }
   0xa   :  { %13170 = vmatmul.mubr.msk.f32.vlgmr.msra.gmra.mrb[2].mxu1 %vm45_vm1, %v414_v8  ;;  %13149 = vmatprep.mubr.msk.f32.mxu0 %vm45_vm1, %v33_v9  ;;  %v35_v13 = vld [vmem:[%s19048_s0 + $0x600] sm:$0xff]  ;;  %v422_v24 = vld [vmem:[%s19048_s0 + $0x908] sm:$0xff]  ;;  %v1157_v42 = vld [vmem:[%s19048_s0 + $0x218] sm:$0xff] }
   0xb   :  { %13220 = vmatpush3.msk.msra.mxu1 %vm94_vm0, %v14057_v0  ;;  %13172 = vmatprep.mubr.msk.f32.mxu1 %vm45_vm1, %v415_v10  ;;  %v36_v15 = vld [vmem:[%s19048_s0 + $0x700] sm:$0xff]  ;;  %v423_v26 = vld [vmem:[%s19048_s0 + $0xa08] sm:$0xff]  ;;  %v791_v43 = vld [vmem:[%s19048_s0 + $0x710] sm:$0xff] }
   0xc   :  { %13194 = vmatpush3.msk.msra.mxu0 %vm94_vm0, %v14057_v0  ;;  %13271 = vmatprep.subr.msk.mxu1 %vm94_vm0, %v14057_v0  ;;  %v37_v17 = vld [vmem:[%s19048_s0 + $0x800] sm:$0xff]  ;;  %v424_v28 = vld [vmem:[%s19048_s0 + $0xb08] sm:$0xff]  ;;  %v1158_v44 = vld [vmem:[%s19048_s0 + $0x318] sm:$0xff] }
   0xd   :  { %13245 = vmatprep.subr.msk.mxu0 %vm94_vm0, %v14057_v0  ;;  %13150 = vmatmul.mubr.msk.f32.gmra.mrb[4].mxu0 %vm45_vm1, %v34_v11  ;;  %v38_v19 = vld [vmem:[%s19048_s0 + $0x900] sm:$0xff]  ;;  %v425_v29 = vld [vmem:[%s19048_s0 + $0xc08] sm:$0xff]  ;;  %v792_v45 = vld [vmem:[%s19048_s0 + $0x810] sm:$0xff] }
   0xe   :  { %13173 = vmatmul.mubr.msk.f32.gmra.mrb[4].mxu1 %vm45_vm1, %v416_v12  ;;  %13152 = vmatprep.mubr.msk.f32.mxu0 %vm45_vm1, %v35_v13  ;;  %v39_v21 = vld [vmem:[%s19048_s0 + $0xa00] sm:$0xff]  ;;  %v426_v31 = vld [vmem:[%s19048_s0 + $0xd08] sm:$0xff]  ;;  %v1159_v46 = vld [vmem:[%s19048_s0 + $0x418] sm:$0xff] }
   0xf   :  { %13175 = vmatprep.mubr.msk.f32.mxu1 %vm45_vm1, %v417_v14  ;;  %v40_v23 = vld [vmem:[%s19048_s0 + $0xb00] sm:$0xff]  ;;  %v427_v33 = vld [vmem:[%s19048_s0 + $0xe08] sm:$0xff]  ;;  %v793_v47 = vld [vmem:[%s19048_s0 + $0x910] sm:$0xff] }
  0x10   :  { %v41_v25 = vld [vmem:[%s19048_s0 + $0xc00] sm:$0xff]  ;;  %v428_v35 = vld [vmem:[%s19048_s0 + $0xf08] sm:$0xff]  ;;  %v1160_v48 = vld [vmem:[%s19048_s0 + $0x518] sm:$0xff] }
  0x11   :  { %13153 = vmatmul.mubr.msk.f32.gmra.mrb[6].mxu0 %vm45_vm1, %v36_v15  ;;  %v42_v27 = vld [vmem:[%s19048_s0 + $0xd00] sm:$0xff]  ;;  %v794_v49 = vld [vmem:[%s19048_s0 + $0xa10] sm:$0xff]  ;;  %v1161_v50 = vld [vmem:[%s19048_s0 + $0x618] sm:$0xff] }
  0x12   :  { %13176 = vmatmul.mubr.msk.f32.gmra.mrb[6].mxu1 %vm45_vm1, %v418_v16  ;;  %13155 = vmatprep.mubr.msk.f32.mxu0 %vm45_vm1, %v37_v17  ;;  %v795_v51 = vld [vmem:[%s19048_s0 + $0xb10] sm:$0xff]  ;;  %v1162_v52 = vld [vmem:[%s19048_s0 + $0x718] sm:$0xff]  ;;  %v1526_v62 = vld [vmem:[%s19048_s0 + $0x20] sm:$0xff] }
  0x13   :  { %13178 = vmatprep.mubr.msk.f32.mxu1 %vm45_vm1, %v419_v18  ;;  %v796_v53 = vld [vmem:[%s19048_s0 + $0xc10] sm:$0xff]  ;;  %v1163_v54 = vld [vmem:[%s19048_s0 + $0x818] sm:$0xff]  ;;  %v1527_v1 = vld [vmem:[%s19048_s0 + $0x120] sm:$0xff] }
  0x14   :  { %v797_v55 = vld [vmem:[%s19048_s0 + $0xd10] sm:$0xff]  ;;  %v1164_v56 = vld [vmem:[%s19048_s0 + $0x918] sm:$0xff]  ;;  %v1528_v3 = vld [vmem:[%s19048_s0 + $0x220] sm:$0xff] }
  0x15   :  { %13156 = vmatmul.mubr.msk.f32.gmra.mrb[8].mxu0 %vm45_vm1, %v38_v19  ;;  %v798_v57 = vld [vmem:[%s19048_s0 + $0xe10] sm:$0xff]  ;;  %v1165_v58 = vld [vmem:[%s19048_s0 + $0xa18] sm:$0xff]  ;;  %v1529_v5 = vld [vmem:[%s19048_s0 + $0x320] sm:$0xff] }
  0x16   :  { %13179 = vmatmul.mubr.msk.f32.gmra.mrb[8].mxu1 %vm45_vm1, %v420_v20  ;;  %13158 = vmatprep.mubr.msk.f32.mxu0 %vm45_vm1, %v39_v21  ;;  %v799_v59 = vld [vmem:[%s19048_s0 + $0xf10] sm:$0xff]  ;;  %v1166_v60 = vld [vmem:[%s19048_s0 + $0xb18] sm:$0xff]  ;;  %v1530_v6 = vld [vmem:[%s19048_s0 + $0x420] sm:$0xff] }
  0x17   :  { %13181 = vmatprep.mubr.msk.f32.mxu1 %vm45_vm1, %v421_v22  ;;  %v1167_v61 = vld [vmem:[%s19048_s0 + $0xc18] sm:$0xff]  ;;  %v1897_v7 = vld [vmem:[%s19048_s0 + $0x28] sm:$0xff] }
  0x18   :  { %v1168_v63 = vld [vmem:[%s19048_s0 + $0xd18] sm:$0xff] }
  0x19   :  { %13159 = vmatmul.mubr.msk.f32.gmra.mrb[10].mxu0 %vm45_vm1, %v40_v23  ;;  %v1169_v2 = vld [vmem:[%s19048_s0 + $0xe18] sm:$0xff] }
  0x1a   :  { %13182 = vmatmul.mubr.msk.f32.gmra.mrb[10].mxu1 %vm45_vm1, %v422_v24  ;;  %13161 = vmatprep.mubr.msk.f32.mxu0 %vm45_vm1, %v41_v25  ;;  %v1170_v4 = vld [vmem:[%s19048_s0 + $0xf18] sm:$0xff] }
  0x1b   :  { %13184 = vmatprep.mubr.msk.f32.mxu1 %vm45_vm1, %v423_v26 }
  0x1d   :  { %13162 = vmatmul.mubr.msk.f32.gmra.mrb[12].mxu0 %vm45_vm1, %v42_v27 }
  0x1e   :  { %13185 = vmatmul.mubr.msk.f32.gmra.mrb[12].mxu1 %vm45_vm1, %v424_v28  ;;  %13195 = vmatprep.mubr.msk.f32.mxu0 %vm45_vm1, %v784_v30 }
  0x1f   :  { %13187 = vmatprep.mubr.msk.f32.mxu1 %vm45_vm1, %v425_v29 }
  0x21   :  { %13196 = vmatmul.mubr.msk.f32.vlgmr.msra.gmra.mrb[14].mxu0 %vm45_vm1, %v785_v32 }
  0x22   :  { %13188 = vmatmul.mubr.msk.f32.gmra.mrb[14].mxu1 %vm45_vm1, %v426_v31  ;;  %13198 = vmatprep.mubr.msk.f32.mxu0 %vm45_vm1, %v786_v34 }
  0x23   :  { %13190 = vmatprep.mubr.msk.f32.mxu1 %vm45_vm1, %v427_v33  ;;  %13246 = vmatpush3.msk.msra.mxu0 %vm94_vm0, %v14057_v0 }
  0x24   :  { %13297 = vmatprep.subr.msk.mxu0 %vm94_vm0, %v14057_v0 }
  0x25   :  { %13199 = vmatmul.mubr.msk.f32.gmra.mrb[16].mxu0 %vm45_vm1, %v787_v36 }
  0x26   :  { %13191 = vmatmul.mubr.msk.f32.gmra.mrb[16].mxu1 %vm45_vm1, %v428_v35  ;;  %13201 = vmatprep.mubr.msk.f32.mxu0 %vm45_vm1, %v788_v37 }
  0x27   :  { %13221 = vmatprep.mubr.msk.f32.mxu1 %vm45_vm1, %v1155_v38 }
  0x29   :  { %13202 = vmatmul.mubr.msk.f32.gmra.mrb[18].mxu0 %vm45_vm1, %v789_v39 }
  0x2a   :  { %13222 = vmatmul.mubr.msk.f32.vlgmr.msra.gmra.mrb[18].mxu1 %vm45_vm1, %v1156_v40  ;;  %13204 = vmatprep.mubr.msk.f32.mxu0 %vm45_vm1, %v790_v41 }
  0x2b   :  { %13272 = vmatpush3.msk.msra.mxu1 %vm94_vm0, %v14057_v0  ;;  %13224 = vmatprep.mubr.msk.f32.mxu1 %vm45_vm1, %v1157_v42 }
  0x2c   :  { %13323 = vmatprep.subr.msk.mxu1 %vm94_vm0, %v14057_v0 }
  0x2d   :  { %13205 = vmatmul.mubr.msk.f32.gmra.mrb[20].mxu0 %vm45_vm1, %v791_v43 }
  0x2e   :  { %13225 = vmatmul.mubr.msk.f32.gmra.mrb[20].mxu1 %vm45_vm1, %v1158_v44  ;;  %13207 = vmatprep.mubr.msk.f32.mxu0 %vm45_vm1, %v792_v45 }
  0x2f   :  { %13227 = vmatprep.mubr.msk.f32.mxu1 %vm45_vm1, %v1159_v46 }
  0x31   :  { %13208 = vmatmul.mubr.msk.f32.gmra.mrb[22].mxu0 %vm45_vm1, %v793_v47 }
  0x32   :  { %13228 = vmatmul.mubr.msk.f32.gmra.mrb[22].mxu1 %vm45_vm1, %v1160_v48  ;;  %13210 = vmatprep.mubr.msk.f32.mxu0 %vm45_vm1, %v794_v49 }
  0x33   :  { %13230 = vmatprep.mubr.msk.f32.mxu1 %vm45_vm1, %v1161_v50 }
  0x35   :  { %13211 = vmatmul.mubr.msk.f32.gmra.mrb[24].mxu0 %vm45_vm1, %v795_v51 }
  0x36   :  { %13231 = vmatmul.mubr.msk.f32.gmra.mrb[24].mxu1 %vm45_vm1, %v1162_v52  ;;  %13213 = vmatprep.mubr.msk.f32.mxu0 %vm45_vm1, %v796_v53 }
  0x37   :  { %13233 = vmatprep.mubr.msk.f32.mxu1 %vm45_vm1, %v1163_v54 }
  0x39   :  { %13214 = vmatmul.mubr.msk.f32.gmra.mrb[26].mxu0 %vm45_vm1, %v797_v55 }
  0x3a   :  { %13234 = vmatmul.mubr.msk.f32.gmra.mrb[26].mxu1 %vm45_vm1, %v1164_v56  ;;  %13216 = vmatprep.mubr.msk.f32.mxu0 %vm45_vm1, %v798_v57 }
  0x3b   :  { %13236 = vmatprep.mubr.msk.f32.mxu1 %vm45_vm1, %v1165_v58 }
  0x3d   :  { %13217 = vmatmul.mubr.msk.f32.gmra.mrb[28].mxu0 %vm45_vm1, %v799_v59 }
  0x3e   :  { %13237 = vmatmul.mubr.msk.f32.gmra.mrb[28].mxu1 %vm45_vm1, %v1166_v60  ;;  %13247 = vmatprep.mubr.msk.f32.mxu0 %vm45_vm1, %v1526_v62 }
  0x3f   :  { %13239 = vmatprep.mubr.msk.f32.mxu1 %vm45_vm1, %v1167_v61 }
  0x41   :  { %13248 = vmatmul.mubr.msk.f32.vlgmr.msra.gmra.mrb[30].mxu0 %vm45_vm1, %v1527_v1 }
  0x42   :  { %13240 = vmatmul.mubr.msk.f32.gmra.mrb[30].mxu1 %vm45_vm1, %v1168_v63  ;;  %13250 = vmatprep.mubr.msk.f32.mxu0 %vm45_vm1, %v1528_v3 }
  0x43   :  { %13242 = vmatprep.mubr.msk.f32.mxu1 %vm45_vm1, %v1169_v2  ;;  %13298 = vmatpush3.msk.msra.mxu0 %vm94_vm0, %v14057_v0 }
  0x44   :  { %13349 = vmatprep.subr.msk.mxu0 %vm94_vm0, %v14057_v0 }
  0x45   :  { %13251 = vmatmul.mubr.msk.f32.gmra.mrb[32].mxu0 %vm45_vm1, %v1529_v5 }
  0x46   :  { %13243 = vmatmul.mubr.msk.f32.gmra.mrb[32].mxu1 %vm45_vm1, %v1170_v4 }
  0x47   :  { %9 = vsyncpa [#allocation4], 0  ;;  %13253 = vmatprep.mubr.msk.f32.mxu0 %vm45_vm1, %v1530_v6  ;;  %13273 = vmatprep.mubr.msk.f32.mxu1 %vm45_vm1, %v1897_v7  ;;  %v1531_v8 = vld [vmem:[%s19048_s0 + $0x520] sm:$0xff]  ;;  %v1898_v9 = vld [vmem:[%s19048_s0 + $0x128] sm:$0xff]  ;;  %vm23_vm2 = vcmask 523264   ;;  %vm388_vm3 = vcmask 1041409  }
  0x48   :  { %v1532_v10 = vld [vmem:[%s19048_s0 + $0x620] sm:$0xff]  ;;  %v1899_v11 = vld [vmem:[%s19048_s0 + $0x228] sm:$0xff]  ;;  %v2268_v31 = vld [vmem:[%s19048_s0 + $0x30] sm:$0xff]  ;;  %vm390_vm4 = vcmask 1042434   ;;  %vm392_vm5 = vcmask 1043459   ;;  %vm394_vm6 = vcmask 1044484  }
  0x49   :  { %13254 = vmatmul.mubr.msk.f32.gmra.mrb[34].mxu0 %vm45_vm1, %v1531_v8  ;;  %v1533_v12 = vld [vmem:[%s19048_s0 + $0x720] sm:$0xff]  ;;  %v1900_v13 = vld [vmem:[%s19048_s0 + $0x328] sm:$0xff]  ;;  %v2269_v33 = vld [vmem:[%s19048_s0 + $0x130] sm:$0xff]  ;;  %vm396_vm7 = vcmask 1045509   ;;  %vm398_vm8 = vcmask 1046534   ;;  %vm400_vm9 = vcmask 1047559  }
  0x4a   :  { %13274 = vmatmul.mubr.msk.f32.vlgmr.msra.gmra.mrb[34].mxu1 %vm45_vm1, %v1898_v9  ;;  %13256 = vmatprep.mubr.msk.f32.mxu0 %vm45_vm1, %v1532_v10  ;;  %v1534_v14 = vld [vmem:[%s19048_s0 + $0x820] sm:$0xff]  ;;  %v1901_v15 = vld [vmem:[%s19048_s0 + $0x428] sm:$0xff]  ;;  %v2270_v35 = vld [vmem:[%s19048_s0 + $0x230] sm:$0xff]  ;;  %vm14025_vm10 = vmmov 0   ;;  %s14026_s9 = smov [#allocation3]  }
  0x4b   :  { %13324 = vmatpush3.msk.msra.mxu1 %vm94_vm0, %v14057_v0  ;;  %13276 = vmatprep.mubr.msk.f32.mxu1 %vm45_vm1, %v1899_v11  ;;  %v1535_v16 = vld [vmem:[%s19048_s0 + $0x920] sm:$0xff]  ;;  %v1902_v17 = vld [vmem:[%s19048_s0 + $0x528] sm:$0xff]  ;;  %v2271_v37 = vld [vmem:[%s19048_s0 + $0x330] sm:$0xff]  ;;  %s12022_s10 = sshll.u32 %s14026_s9, 4  ;;  %s12023_s10 = int_to_ptr.vmem [resolvable:$true] %s12022_s10 }
  0x4c   :  { %13375 = vmatprep.subr.msk.mxu1 %vm94_vm0, %v14057_v0  ;;  %v1536_v18 = vld [vmem:[%s19048_s0 + $0xa20] sm:$0xff]  ;;  %v1903_v19 = vld [vmem:[%s19048_s0 + $0x628] sm:$0xff]  ;;  %v2272_v38 = vld [vmem:[%s19048_s0 + $0x430] sm:$0xff]  ;;  %s14000_s11 = scalar_lea.vmem %s12023_s10, 128  ;;  %p14005_p1 = scmp.lt.s32.totalorder %s12023_s10, %s12023_s10 }
  0x4d   :  { %13257 = vmatmul.mubr.msk.f32.gmra.mrb[36].mxu0 %vm45_vm1, %v1533_v12  ;;  %v1537_v20 = vld [vmem:[%s19048_s0 + $0xb20] sm:$0xff]  ;;  %v1904_v21 = vld [vmem:[%s19048_s0 + $0x728] sm:$0xff]  ;;  %v2639_v39 = vld [vmem:[%s19048_s0 + $0x38] sm:$0xff]  ;;  %p14001_p0 = scmp.ne.s32.totalorder %s12023_s10, %s14000_s11  ;;  %p14006_p2 = scmp.lt.s32.totalorder %s14000_s11, %s14000_s11 }
  0x4e   :  { %13277 = vmatmul.mubr.msk.f32.gmra.mrb[36].mxu1 %vm45_vm1, %v1900_v13  ;;  %13259 = vmatprep.mubr.msk.f32.mxu0 %vm45_vm1, %v1534_v14  ;;  %v1538_v22 = vld [vmem:[%s19048_s0 + $0xc20] sm:$0xff]  ;;  %v1905_v23 = vld [vmem:[%s19048_s0 + $0x828] sm:$0xff]  ;;  %v2273_v40 = vld [vmem:[%s19048_s0 + $0x530] sm:$0xff] }
  0x4f   :  { %13279 = vmatprep.mubr.msk.f32.mxu1 %vm45_vm1, %v1901_v15  ;;  %v1539_v24 = vld [vmem:[%s19048_s0 + $0xd20] sm:$0xff]  ;;  %v1906_v25 = vld [vmem:[%s19048_s0 + $0x928] sm:$0xff]  ;;  %v2640_v41 = vld [vmem:[%s19048_s0 + $0x138] sm:$0xff]  ;;  %p14007_p3 = por %p14006_p2, %p14005_p1 }
  0x50   :  { %v1540_v26 = vld [vmem:[%s19048_s0 + $0xe20] sm:$0xff]  ;;  %v1907_v27 = vld [vmem:[%s19048_s0 + $0xa28] sm:$0xff]  ;;  %v2274_v42 = vld [vmem:[%s19048_s0 + $0x630] sm:$0xff] }
  0x51   :  { %13260 = vmatmul.mubr.msk.f32.gmra.mrb[38].mxu0 %vm45_vm1, %v1535_v16  ;;  %v1541_v28 = vld [vmem:[%s19048_s0 + $0xf20] sm:$0xff]  ;;  %v1908_v29 = vld [vmem:[%s19048_s0 + $0xb28] sm:$0xff]  ;;  %v2641_v43 = vld [vmem:[%s19048_s0 + $0x238] sm:$0xff]  ;;  %p14008_p4 = pnand %p14007_p3, %p14001_p0 }
  0x52   :  { %13280 = vmatmul.mubr.msk.f32.gmra.mrb[38].mxu1 %vm45_vm1, %v1902_v17  ;;  %13262 = vmatprep.mubr.msk.f32.mxu0 %vm45_vm1, %v1536_v18  ;;  %v1909_v30 = vld [vmem:[%s19048_s0 + $0xc28] sm:$0xff]  ;;  %v2275_v44 = vld [vmem:[%s19048_s0 + $0x730] sm:$0xff]  ;;  %v2642_v45 = vld [vmem:[%s19048_s0 + $0x338] sm:$0xff] }
  0x53   :  { %13282 = vmatprep.mubr.msk.f32.mxu1 %vm45_vm1, %v1903_v19  ;;  %v1910_v32 = vld [vmem:[%s19048_s0 + $0xd28] sm:$0xff]  ;;  %v2276_v46 = vld [vmem:[%s19048_s0 + $0x830] sm:$0xff]  ;;  %v2643_v47 = vld [vmem:[%s19048_s0 + $0x438] sm:$0xff] }
  0x54   :  { %v1911_v34 = vld [vmem:[%s19048_s0 + $0xe28] sm:$0xff]  ;;  %v2277_v48 = vld [vmem:[%s19048_s0 + $0x930] sm:$0xff]  ;;  %v2644_v49 = vld [vmem:[%s19048_s0 + $0x538] sm:$0xff] }
  0x55   :  { %13263 = vmatmul.mubr.msk.f32.gmra.mrb[40].mxu0 %vm45_vm1, %v1537_v20  ;;  %v1912_v36 = vld [vmem:[%s19048_s0 + $0xf28] sm:$0xff]  ;;  %v2278_v50 = vld [vmem:[%s19048_s0 + $0xa30] sm:$0xff]  ;;  %v2645_v51 = vld [vmem:[%s19048_s0 + $0x638] sm:$0xff] }
  0x56   :  { %13283 = vmatmul.mubr.msk.f32.gmra.mrb[40].mxu1 %vm45_vm1, %v1904_v21  ;;  %13265 = vmatprep.mubr.msk.f32.mxu0 %vm45_vm1, %v1538_v22  ;;  %v2279_v52 = vld [vmem:[%s19048_s0 + $0xb30] sm:$0xff]  ;;  %v2646_v53 = vld [vmem:[%s19048_s0 + $0x738] sm:$0xff]  ;;  %v3010_v63 = vld [vmem:[%s19048_s0 + $0x40] sm:$0xff] }
  0x57   :  { %13285 = vmatprep.mubr.msk.f32.mxu1 %vm45_vm1, %v1905_v23  ;;  %v2280_v54 = vld [vmem:[%s19048_s0 + $0xc30] sm:$0xff]  ;;  %v2647_v55 = vld [vmem:[%s19048_s0 + $0x838] sm:$0xff]  ;;  %v3011_v2 = vld [vmem:[%s19048_s0 + $0x140] sm:$0xff] }
  0x58   :  { %v2281_v56 = vld [vmem:[%s19048_s0 + $0xd30] sm:$0xff]  ;;  %v2648_v57 = vld [vmem:[%s19048_s0 + $0x938] sm:$0xff]  ;;  %v3012_v4 = vld [vmem:[%s19048_s0 + $0x240] sm:$0xff] }
  0x59   :  { %13266 = vmatmul.mubr.msk.f32.gmra.mrb[42].mxu0 %vm45_vm1, %v1539_v24  ;;  %v2282_v58 = vld [vmem:[%s19048_s0 + $0xe30] sm:$0xff]  ;;  %v2649_v59 = vld [vmem:[%s19048_s0 + $0xa38] sm:$0xff]  ;;  %v3013_v6 = vld [vmem:[%s19048_s0 + $0x340] sm:$0xff] }
  0x5a   :  { %13286 = vmatmul.mubr.msk.f32.gmra.mrb[42].mxu1 %vm45_vm1, %v1906_v25  ;;  %13268 = vmatprep.mubr.msk.f32.mxu0 %vm45_vm1, %v1540_v26  ;;  %v2283_v60 = vld [vmem:[%s19048_s0 + $0xf30] sm:$0xff]  ;;  %v2650_v61 = vld [vmem:[%s19048_s0 + $0xb38] sm:$0xff]  ;;  %v3014_v7 = vld [vmem:[%s19048_s0 + $0x440] sm:$0xff] }
  0x5b   :  { %13288 = vmatprep.mubr.msk.f32.mxu1 %vm45_vm1, %v1907_v27  ;;  %v2651_v62 = vld [vmem:[%s19048_s0 + $0xc38] sm:$0xff]  ;;  %v3381_v8 = vld [vmem:[%s19048_s0 + $0x48] sm:$0xff]  ;;  %v3015_v9 = vld [vmem:[%s19048_s0 + $0x540] sm:$0xff] }
  0x5c   :  { %v2652_v1 = vld [vmem:[%s19048_s0 + $0xd38] sm:$0xff]  ;;  %v3382_v10 = vld [vmem:[%s19048_s0 + $0x148] sm:$0xff]  ;;  %v3016_v11 = vld [vmem:[%s19048_s0 + $0x640] sm:$0xff] }
  0x5d   :  { %13269 = vmatmul.mubr.msk.f32.gmra.mrb[44].mxu0 %vm45_vm1, %v1541_v28  ;;  %v2653_v3 = vld [vmem:[%s19048_s0 + $0xe38] sm:$0xff]  ;;  %v3383_v12 = vld [vmem:[%s19048_s0 + $0x248] sm:$0xff]  ;;  %v3017_v13 = vld [vmem:[%s19048_s0 + $0x740] sm:$0xff] }
  0x5e   :  { %13289 = vmatmul.mubr.msk.f32.gmra.mrb[44].mxu1 %vm45_vm1, %v1908_v29  ;;  %13299 = vmatprep.mubr.msk.f32.mxu0 %vm45_vm1, %v2268_v31  ;;  %v2654_v5 = vld [vmem:[%s19048_s0 + $0xf38] sm:$0xff]  ;;  %v3384_v14 = vld [vmem:[%s19048_s0 + $0x348] sm:$0xff]  ;;  %v3018_v15 = vld [vmem:[%s19048_s0 + $0x840] sm:$0xff] }
  0x5f   :  { %13291 = vmatprep.mubr.msk.f32.mxu1 %vm45_vm1, %v1909_v30  ;;  %v3385_v16 = vld [vmem:[%s19048_s0 + $0x448] sm:$0xff]  ;;  %v3019_v17 = vld [vmem:[%s19048_s0 + $0x940] sm:$0xff] }
  0x60   :  { %v3386_v18 = vld [vmem:[%s19048_s0 + $0x548] sm:$0xff]  ;;  %v3020_v19 = vld [vmem:[%s19048_s0 + $0xa40] sm:$0xff] }
  0x61   :  { %13300 = vmatmul.mubr.msk.f32.vlgmr.msra.gmra.mrb[46].mxu0 %vm45_vm1, %v2269_v33  ;;  %v3387_v20 = vld [vmem:[%s19048_s0 + $0x648] sm:$0xff]  ;;  %v3021_v21 = vld [vmem:[%s19048_s0 + $0xb40] sm:$0xff] }
  0x62   :  { %13292 = vmatmul.mubr.msk.f32.gmra.mrb[46].mxu1 %vm45_vm1, %v1910_v32  ;;  %13302 = vmatprep.mubr.msk.f32.mxu0 %vm45_vm1, %v2270_v35  ;;  %v3388_v22 = vld [vmem:[%s19048_s0 + $0x748] sm:$0xff]  ;;  %v3022_v23 = vld [vmem:[%s19048_s0 + $0xc40] sm:$0xff]  ;;  %v3752_v32 = vld [vmem:[%s19048_s0 + $0x50] sm:$0xff] }
  0x63   :  { %13294 = vmatprep.mubr.msk.f32.mxu1 %vm45_vm1, %v1911_v34  ;;  %13350 = vmatpush3.msk.msra.mxu0 %vm94_vm0, %v14057_v0  ;;  %v3389_v24 = vld [vmem:[%s19048_s0 + $0x848] sm:$0xff]  ;;  %v3023_v25 = vld [vmem:[%s19048_s0 + $0xd40] sm:$0xff]  ;;  %v3753_v34 = vld [vmem:[%s19048_s0 + $0x150] sm:$0xff] }
  0x64   :  { %13401 = vmatprep.subr.msk.mxu0 %vm94_vm0, %v14057_v0  ;;  %v3390_v26 = vld [vmem:[%s19048_s0 + $0x948] sm:$0xff]  ;;  %v3024_v27 = vld [vmem:[%s19048_s0 + $0xe40] sm:$0xff] }
  0x65   :  { %13303 = vmatmul.mubr.msk.f32.gmra.mrb[48].mxu0 %vm45_vm1, %v2271_v37  ;;  %v3391_v28 = vld [vmem:[%s19048_s0 + $0xa48] sm:$0xff]  ;;  %v3025_v29 = vld [vmem:[%s19048_s0 + $0xf40] sm:$0xff] }
  0x66   :  { %13295 = vmatmul.mubr.msk.f32.gmra.mrb[48].mxu1 %vm45_vm1, %v1912_v36  ;;  %13305 = vmatprep.mubr.msk.f32.mxu0 %vm45_vm1, %v2272_v38  ;;  %v3392_v30 = vld [vmem:[%s19048_s0 + $0xb48] sm:$0xff]  ;;  %v3754_v36 = vld [vmem:[%s19048_s0 + $0x250] sm:$0xff] }
  0x67   :  { %13325 = vmatprep.mubr.msk.f32.mxu1 %vm45_vm1, %v2639_v39  ;;  %v3393_v31 = vld [vmem:[%s19048_s0 + $0xc48] sm:$0xff]  ;;  %v3755_v38 = vld [vmem:[%s19048_s0 + $0x350] sm:$0xff] }
  0x68   :  { %v3394_v33 = vld [vmem:[%s19048_s0 + $0xd48] sm:$0xff]  ;;  %v3756_v39 = vld [vmem:[%s19048_s0 + $0x450] sm:$0xff] }
  0x69   :  { %13306 = vmatmul.mubr.msk.f32.gmra.mrb[50].mxu0 %vm45_vm1, %v2273_v40  ;;  %v3395_v35 = vld [vmem:[%s19048_s0 + $0xe48] sm:$0xff]  ;;  %v4123_v40 = vld [vmem:[%s19048_s0 + $0x58] sm:$0xff] }
  0x6a   :  { %13326 = vmatmul.mubr.msk.f32.vlgmr.msra.gmra.mrb[50].mxu1 %vm45_vm1, %v2640_v41  ;;  %13308 = vmatprep.mubr.msk.f32.mxu0 %vm45_vm1, %v2274_v42  ;;  %v3396_v37 = vld [vmem:[%s19048_s0 + $0xf48] sm:$0xff]  ;;  %v3757_v41 = vld [vmem:[%s19048_s0 + $0x550] sm:$0xff]  ;;  %v4124_v42 = vld [vmem:[%s19048_s0 + $0x158] sm:$0xff] }
  0x6b   :  { %13376 = vmatpush3.msk.msra.mxu1 %vm94_vm0, %v14057_v0  ;;  %13328 = vmatprep.mubr.msk.f32.mxu1 %vm45_vm1, %v2641_v43  ;;  %v3758_v43 = vld [vmem:[%s19048_s0 + $0x650] sm:$0xff] }
  0x6c   :  { %13427 = vmatprep.subr.msk.mxu1 %vm94_vm0, %v14057_v0 }
  0x6d   :  { %13309 = vmatmul.mubr.msk.f32.gmra.mrb[52].mxu0 %vm45_vm1, %v2275_v44  ;;  %v4125_v44 = vld [vmem:[%s19048_s0 + $0x258] sm:$0xff] }
  0x6e   :  { %13329 = vmatmul.mubr.msk.f32.gmra.mrb[52].mxu1 %vm45_vm1, %v2642_v45  ;;  %13311 = vmatprep.mubr.msk.f32.mxu0 %vm45_vm1, %v2276_v46  ;;  %v3759_v45 = vld [vmem:[%s19048_s0 + $0x750] sm:$0xff]  ;;  %v4126_v46 = vld [vmem:[%s19048_s0 + $0x358] sm:$0xff] }
  0x6f   :  { %13331 = vmatprep.mubr.msk.f32.mxu1 %vm45_vm1, %v2643_v47  ;;  %v3760_v47 = vld [vmem:[%s19048_s0 + $0x850] sm:$0xff] }
  0x71   :  { %13312 = vmatmul.mubr.msk.f32.gmra.mrb[54].mxu0 %vm45_vm1, %v2277_v48  ;;  %v4127_v48 = vld [vmem:[%s19048_s0 + $0x458] sm:$0xff] }
  0x72   :  { %13332 = vmatmul.mubr.msk.f32.gmra.mrb[54].mxu1 %vm45_vm1, %v2644_v49  ;;  %13314 = vmatprep.mubr.msk.f32.mxu0 %vm45_vm1, %v2278_v50  ;;  %v3761_v49 = vld [vmem:[%s19048_s0 + $0x950] sm:$0xff]  ;;  %v4128_v50 = vld [vmem:[%s19048_s0 + $0x558] sm:$0xff] }
  0x73   :  { %13334 = vmatprep.mubr.msk.f32.mxu1 %vm45_vm1, %v2645_v51  ;;  %v3762_v51 = vld [vmem:[%s19048_s0 + $0xa50] sm:$0xff] }
  0x75   :  { %13315 = vmatmul.mubr.msk.f32.gmra.mrb[56].mxu0 %vm45_vm1, %v2279_v52  ;;  %v4129_v52 = vld [vmem:[%s19048_s0 + $0x658] sm:$0xff] }
  0x76   :  { %13335 = vmatmul.mubr.msk.f32.gmra.mrb[56].mxu1 %vm45_vm1, %v2646_v53  ;;  %13317 = vmatprep.mubr.msk.f32.mxu0 %vm45_vm1, %v2280_v54  ;;  %v3763_v53 = vld [vmem:[%s19048_s0 + $0xb50] sm:$0xff]  ;;  %v4130_v54 = vld [vmem:[%s19048_s0 + $0x758] sm:$0xff] }
  0x77   :  { %13337 = vmatprep.mubr.msk.f32.mxu1 %vm45_vm1, %v2647_v55  ;;  %v3764_v55 = vld [vmem:[%s19048_s0 + $0xc50] sm:$0xff] }
  0x79   :  { %13318 = vmatmul.mubr.msk.f32.gmra.mrb[58].mxu0 %vm45_vm1, %v2281_v56  ;;  %v4131_v56 = vld [vmem:[%s19048_s0 + $0x858] sm:$0xff] }
  0x7a   :  { %13338 = vmatmul.mubr.msk.f32.gmra.mrb[58].mxu1 %vm45_vm1, %v2648_v57  ;;  %13320 = vmatprep.mubr.msk.f32.mxu0 %vm45_vm1, %v2282_v58  ;;  %v3765_v57 = vld [vmem:[%s19048_s0 + $0xd50] sm:$0xff]  ;;  %v4132_v58 = vld [vmem:[%s19048_s0 + $0x958] sm:$0xff] }
  0x7b   :  { %13340 = vmatprep.mubr.msk.f32.mxu1 %vm45_vm1, %v2649_v59  ;;  %v3766_v59 = vld [vmem:[%s19048_s0 + $0xe50] sm:$0xff] }
  0x7d   :  { %13321 = vmatmul.mubr.msk.f32.gmra.mrb[60].mxu0 %vm45_vm1, %v2283_v60  ;;  %v4133_v60 = vld [vmem:[%s19048_s0 + $0xa58] sm:$0xff] }
  0x7e   :  { %13341 = vmatmul.mubr.msk.f32.gmra.mrb[60].mxu1 %vm45_vm1, %v2650_v61  ;;  %13351 = vmatprep.mubr.msk.f32.mxu0 %vm45_vm1, %v3010_v63  ;;  %v3767_v61 = vld [vmem:[%s19048_s0 + $0xf50] sm:$0xff]  ;;  %v4135_v63 = vld [vmem:[%s19048_s0 + $0xc58] sm:$0xff] }
  0x7f   :  { %13343 = vmatprep.mubr.msk.f32.mxu1 %vm45_vm1, %v2651_v62  ;;  %v4134_v62 = vld [vmem:[%s19048_s0 + $0xb58] sm:$0xff] }
  0x81   :  { %13352 = vmatmul.mubr.msk.f32.vlgmr.msra.gmra.mrb[62].mxu0 %vm45_vm1, %v3011_v2  ;;  %v4136_v2 = vld [vmem:[%s19048_s0 + $0xd58] sm:$0xff] }
  0x82   :  { %13344 = vmatmul.mubr.msk.f32.gmra.mrb[62].mxu1 %vm45_vm1, %v2652_v1  ;;  %13354 = vmatprep.mubr.msk.f32.mxu0 %vm45_vm1, %v3012_v4  ;;  %v4494_v1 = vld [vmem:[%s19048_s0 + $0x60] sm:$0xff]  ;;  %v4137_v4 = vld [vmem:[%s19048_s0 + $0xe58] sm:$0xff] }
  0x83   :  { %13346 = vmatprep.mubr.msk.f32.mxu1 %vm45_vm1, %v2653_v3  ;;  %13402 = vmatpush3.msk.msra.mxu0 %vm94_vm0, %v14057_v0  ;;  %v4495_v3 = vld [vmem:[%s19048_s0 + $0x160] sm:$0xff] }
  0x84   :  { %13453 = vmatprep.subr.msk.mxu0 %vm94_vm0, %v14057_v0 }
  0x85   :  { %13355 = vmatmul.mubr.msk.f32.gmra.mrb[64].mxu0 %vm45_vm1, %v3013_v6  ;;  %v4138_v6 = vld [vmem:[%s19048_s0 + $0xf58] sm:$0xff] }
  0x86   :  { %13347 = vmatmul.mubr.msk.f32.gmra.mrb[64].mxu1 %vm45_vm1, %v2654_v5  ;;  %13357 = vmatprep.mubr.msk.f32.mxu0 %vm45_vm1, %v3014_v7  ;;  %v4496_v5 = vld [vmem:[%s19048_s0 + $0x260] sm:$0xff] }
  0x87   :  { %13377 = vmatprep.mubr.msk.f32.mxu1 %vm45_vm1, %v3381_v8  ;;  %v4497_v7 = vld [vmem:[%s19048_s0 + $0x360] sm:$0xff] }
  0x88   :  { %v4498_v8 = vld [vmem:[%s19048_s0 + $0x460] sm:$0xff] }
  0x89   :  { %13358 = vmatmul.mubr.msk.f32.gmra.mrb[66].mxu0 %vm45_vm1, %v3015_v9  ;;  %v4865_v9 = vld [vmem:[%s19048_s0 + $0x68] sm:$0xff] }
  0x8a   :  { %13378 = vmatmul.mubr.msk.f32.vlgmr.msra.gmra.mrb[66].mxu1 %vm45_vm1, %v3382_v10  ;;  %13360 = vmatprep.mubr.msk.f32.mxu0 %vm45_vm1, %v3016_v11  ;;  %v4499_v10 = vld [vmem:[%s19048_s0 + $0x560] sm:$0xff]  ;;  %v4866_v11 = vld [vmem:[%s19048_s0 + $0x168] sm:$0xff] }
  0x8b   :  { %13428 = vmatpush3.msk.msra.mxu1 %vm94_vm0, %v14057_v0  ;;  %13380 = vmatprep.mubr.msk.f32.mxu1 %vm45_vm1, %v3383_v12  ;;  %v4500_v12 = vld [vmem:[%s19048_s0 + $0x660] sm:$0xff] }
  0x8c   :  { %13479 = vmatprep.subr.msk.mxu1 %vm94_vm0, %v14057_v0 }
  0x8d   :  { %13361 = vmatmul.mubr.msk.f32.gmra.mrb[68].mxu0 %vm45_vm1, %v3017_v13  ;;  %v4867_v13 = vld [vmem:[%s19048_s0 + $0x268] sm:$0xff] }
  0x8e   :  { %13381 = vmatmul.mubr.msk.f32.gmra.mrb[68].mxu1 %vm45_vm1, %v3384_v14  ;;  %13363 = vmatprep.mubr.msk.f32.mxu0 %vm45_vm1, %v3018_v15  ;;  %v4501_v14 = vld [vmem:[%s19048_s0 + $0x760] sm:$0xff]  ;;  %v4868_v15 = vld [vmem:[%s19048_s0 + $0x368] sm:$0xff] }
  0x8f   :  { %13383 = vmatprep.mubr.msk.f32.mxu1 %vm45_vm1, %v3385_v16  ;;  %v4502_v16 = vld [vmem:[%s19048_s0 + $0x860] sm:$0xff] }
  0x91   :  { %13364 = vmatmul.mubr.msk.f32.gmra.mrb[70].mxu0 %vm45_vm1, %v3019_v17  ;;  %v4869_v17 = vld [vmem:[%s19048_s0 + $0x468] sm:$0xff] }
  0x92   :  { %13384 = vmatmul.mubr.msk.f32.gmra.mrb[70].mxu1 %vm45_vm1, %v3386_v18  ;;  %13366 = vmatprep.mubr.msk.f32.mxu0 %vm45_vm1, %v3020_v19  ;;  %v4503_v18 = vld [vmem:[%s19048_s0 + $0x960] sm:$0xff]  ;;  %v4870_v19 = vld [vmem:[%s19048_s0 + $0x568] sm:$0xff] }
  0x93   :  { %13386 = vmatprep.mubr.msk.f32.mxu1 %vm45_vm1, %v3387_v20  ;;  %v4871_v20 = vld [vmem:[%s19048_s0 + $0x668] sm:$0xff] }
  0x95   :  { %13367 = vmatmul.mubr.msk.f32.gmra.mrb[72].mxu0 %vm45_vm1, %v3021_v21  ;;  %v4505_v21 = vld [vmem:[%s19048_s0 + $0xb60] sm:$0xff] }
  0x96   :  { %13387 = vmatmul.mubr.msk.f32.gmra.mrb[72].mxu1 %vm45_vm1, %v3388_v22  ;;  %13369 = vmatprep.mubr.msk.f32.mxu0 %vm45_vm1, %v3022_v23  ;;  %v4872_v22 = vld [vmem:[%s19048_s0 + $0x768] sm:$0xff]  ;;  %v4506_v23 = vld [vmem:[%s19048_s0 + $0xc60] sm:$0xff] }
  0x97   :  { %13389 = vmatprep.mubr.msk.f32.mxu1 %vm45_vm1, %v3389_v24  ;;  %v4873_v24 = vld [vmem:[%s19048_s0 + $0x868] sm:$0xff] }
  0x99   :  { %13370 = vmatmul.mubr.msk.f32.gmra.mrb[74].mxu0 %vm45_vm1, %v3023_v25  ;;  %v4507_v25 = vld [vmem:[%s19048_s0 + $0xd60] sm:$0xff] }
  0x9a   :  { %13390 = vmatmul.mubr.msk.f32.gmra.mrb[74].mxu1 %vm45_vm1, %v3390_v26  ;;  %13372 = vmatprep.mubr.msk.f32.mxu0 %vm45_vm1, %v3024_v27  ;;  %v4874_v26 = vld [vmem:[%s19048_s0 + $0x968] sm:$0xff]  ;;  %v4508_v27 = vld [vmem:[%s19048_s0 + $0xe60] sm:$0xff] }
  0x9b   :  { %13392 = vmatprep.mubr.msk.f32.mxu1 %vm45_vm1, %v3391_v28  ;;  %v4875_v28 = vld [vmem:[%s19048_s0 + $0xa68] sm:$0xff] }
  0x9d   :  { %13373 = vmatmul.mubr.msk.f32.gmra.mrb[76].mxu0 %vm45_vm1, %v3025_v29 }
  0x9e   :  { %13393 = vmatmul.mubr.msk.f32.gmra.mrb[76].mxu1 %vm45_vm1, %v3392_v30  ;;  %13403 = vmatprep.mubr.msk.f32.mxu0 %vm45_vm1, %v3752_v32 }
  0x9f   :  { %13395 = vmatprep.mubr.msk.f32.mxu1 %vm45_vm1, %v3393_v31 }
  0xa1   :  { %13404 = vmatmul.mubr.msk.f32.vlgmr.msra.gmra.mrb[78].mxu0 %vm45_vm1, %v3753_v34 }
  0xa2   :  { %13396 = vmatmul.mubr.msk.f32.gmra.mrb[78].mxu1 %vm45_vm1, %v3394_v33  ;;  %13406 = vmatprep.mubr.msk.f32.mxu0 %vm45_vm1, %v3754_v36 }
  0xa3   :  { %13398 = vmatprep.mubr.msk.f32.mxu1 %vm45_vm1, %v3395_v35  ;;  %13454 = vmatpush3.msk.msra.mxu0 %vm94_vm0, %v14057_v0 }
  0xa4   :  { %13505 = vmatprep.subr.msk.mxu0 %vm94_vm0, %v14057_v0 }
  0xa5   :  { %13407 = vmatmul.mubr.msk.f32.gmra.mrb[80].mxu0 %vm45_vm1, %v3755_v38  ;;  %v4876_v38 = vld [vmem:[%s19048_s0 + $0xb68] sm:$0xff] }
  0xa6   :  { %13399 = vmatmul.mubr.msk.f32.gmra.mrb[80].mxu1 %vm45_vm1, %v3396_v37  ;;  %13409 = vmatprep.mubr.msk.f32.mxu0 %vm45_vm1, %v3756_v39  ;;  %v4509_v37 = vld [vmem:[%s19048_s0 + $0xf60] sm:$0xff] }
  0xa7   :  { %13429 = vmatprep.mubr.msk.f32.mxu1 %vm45_vm1, %v4123_v40 }
  0xa9   :  { %13410 = vmatmul.mubr.msk.f32.gmra.mrb[82].mxu0 %vm45_vm1, %v3757_v41  ;;  %v4877_v41 = vld [vmem:[%s19048_s0 + $0xc68] sm:$0xff] }
  0xaa   :  { %13430 = vmatmul.mubr.msk.f32.vlgmr.msra.gmra.mrb[82].mxu1 %vm45_vm1, %v4124_v42  ;;  %13412 = vmatprep.mubr.msk.f32.mxu0 %vm45_vm1, %v3758_v43  ;;  %v5236_v42 = vld [vmem:[%s19048_s0 + $0x70] sm:$0xff] }
  0xab   :  { %13480 = vmatpush3.msk.msra.mxu1 %vm94_vm0, %v14057_v0  ;;  %13432 = vmatprep.mubr.msk.f32.mxu1 %vm45_vm1, %v4125_v44 }
  0xac   :  { %13531 = vmatprep.subr.msk.mxu1 %vm94_vm0, %v14057_v0 }
  0xad   :  { %13413 = vmatmul.mubr.msk.f32.gmra.mrb[84].mxu0 %vm45_vm1, %v3759_v45 }
  0xae   :  { %13433 = vmatmul.mubr.msk.f32.gmra.mrb[84].mxu1 %vm45_vm1, %v4126_v46  ;;  %13415 = vmatprep.mubr.msk.f32.mxu0 %vm45_vm1, %v3760_v47 }
  0xaf   :  { %13435 = vmatprep.mubr.msk.f32.mxu1 %vm45_vm1, %v4127_v48 }
  0xb1   :  { %13416 = vmatmul.mubr.msk.f32.gmra.mrb[86].mxu0 %vm45_vm1, %v3761_v49 }
  0xb2   :  { %13436 = vmatmul.mubr.msk.f32.gmra.mrb[86].mxu1 %vm45_vm1, %v4128_v50  ;;  %13418 = vmatprep.mubr.msk.f32.mxu0 %vm45_vm1, %v3762_v51 }
  0xb3   :  { %13438 = vmatprep.mubr.msk.f32.mxu1 %vm45_vm1, %v4129_v52 }
  0xb5   :  { %13419 = vmatmul.mubr.msk.f32.gmra.mrb[88].mxu0 %vm45_vm1, %v3763_v53 }
  0xb6   :  { %13439 = vmatmul.mubr.msk.f32.gmra.mrb[88].mxu1 %vm45_vm1, %v4130_v54  ;;  %13421 = vmatprep.mubr.msk.f32.mxu0 %vm45_vm1, %v3764_v55 }
  0xb7   :  { %13441 = vmatprep.mubr.msk.f32.mxu1 %vm45_vm1, %v4131_v56 }
  0xb9   :  { %13422 = vmatmul.mubr.msk.f32.gmra.mrb[90].mxu0 %vm45_vm1, %v3765_v57 }
  0xba   :  { %13442 = vmatmul.mubr.msk.f32.gmra.mrb[90].mxu1 %vm45_vm1, %v4132_v58  ;;  %13424 = vmatprep.mubr.msk.f32.mxu0 %vm45_vm1, %v3766_v59  ;;  %v4878_v59 = vld [vmem:[%s19048_s0 + $0xd68] sm:$0xff] }
  0xbb   :  { %13444 = vmatprep.mubr.msk.f32.mxu1 %vm45_vm1, %v4133_v60  ;;  %v5237_v60 = vld [vmem:[%s19048_s0 + $0x170] sm:$0xff] }
  0xbd   :  { %13425 = vmatmul.mubr.msk.f32.gmra.mrb[92].mxu0 %vm45_vm1, %v3767_v61 }
  0xbe   :  { %13445 = vmatmul.mubr.msk.f32.gmra.mrb[92].mxu1 %vm45_vm1, %v4134_v62  ;;  %13455 = vmatprep.mubr.msk.f32.mxu0 %vm45_vm1, %v4494_v1 }
  0xbf   :  { %13447 = vmatprep.mubr.msk.f32.mxu1 %vm45_vm1, %v4135_v63 }
  0xc1   :  { %13456 = vmatmul.mubr.msk.f32.vlgmr.msra.gmra.mrb[94].mxu0 %vm45_vm1, %v4495_v3  ;;  %v5238_v3 = vld [vmem:[%s19048_s0 + $0x270] sm:$0xff] }
  0xc2   :  { %13448 = vmatmul.mubr.msk.f32.gmra.mrb[94].mxu1 %vm45_vm1, %v4136_v2  ;;  %13458 = vmatprep.mubr.msk.f32.mxu0 %vm45_vm1, %v4496_v5  ;;  %v4879_v2 = vld [vmem:[%s19048_s0 + $0xe68] sm:$0xff] }
  0xc3   :  { %13450 = vmatprep.mubr.msk.f32.mxu1 %vm45_vm1, %v4137_v4  ;;  %13506 = vmatpush3.msk.msra.mxu0 %vm94_vm0, %v14057_v0 }
  0xc4   :  { %13557 = vmatprep.subr.msk.mxu0 %vm94_vm0, %v14057_v0 }
  0xc5   :  { %13459 = vmatmul.mubr.msk.f32.gmra.mrb[96].mxu0 %vm45_vm1, %v4497_v7 }
  0xc6   :  { %13451 = vmatmul.mubr.msk.f32.gmra.mrb[96].mxu1 %vm45_vm1, %v4138_v6  ;;  %13461 = vmatprep.mubr.msk.f32.mxu0 %vm45_vm1, %v4498_v8 }
  0xc7   :  { %13481 = vmatprep.mubr.msk.f32.mxu1 %vm45_vm1, %v4865_v9 }
  0xc9   :  { %13462 = vmatmul.mubr.msk.f32.gmra.mrb[98].mxu0 %vm45_vm1, %v4499_v10 }
  0xca   :  { %13482 = vmatmul.mubr.msk.f32.vlgmr.msra.gmra.mrb[98].mxu1 %vm45_vm1, %v4866_v11  ;;  %13464 = vmatprep.mubr.msk.f32.mxu0 %vm45_vm1, %v4500_v12 }
  0xcb   :  { %13532 = vmatpush3.msk.msra.mxu1 %vm94_vm0, %v14057_v0  ;;  %13484 = vmatprep.mubr.msk.f32.mxu1 %vm45_vm1, %v4867_v13 }
  0xcc   :  { %13583 = vmatprep.subr.msk.mxu1 %vm94_vm0, %v14057_v0  ;;  %v4504_v0 = vld [vmem:[%s19048_s0 + $0xa60] sm:$0xff] }
  0xcd   :  { %13465 = vmatmul.mubr.msk.f32.gmra.mrb[100].mxu0 %vm45_vm1, %v4501_v14 }
  0xce   :  { %13485 = vmatmul.mubr.msk.f32.gmra.mrb[100].mxu1 %vm45_vm1, %v4868_v15  ;;  %13467 = vmatprep.mubr.msk.f32.mxu0 %vm45_vm1, %v4502_v16 }
  0xcf   :  { %13487 = vmatprep.mubr.msk.f32.mxu1 %vm45_vm1, %v4869_v17 }
  0xd1   :  { %13468 = vmatmul.mubr.msk.f32.gmra.mrb[102].mxu0 %vm45_vm1, %v4503_v18 }
  0xd2   :  { %13488 = vmatmul.mubr.msk.f32.gmra.mrb[102].mxu1 %vm45_vm1, %v4870_v19  ;;  %13470 = vmatprep.mubr.msk.f32.mxu0 %vm45_vm1, %v4504_v0  ;;  %v4880_v0 = vld [vmem:[%s19048_s0 + $0xf68] sm:$0xff] }
  0xd3   :  { %13490 = vmatprep.mubr.msk.f32.mxu1 %vm45_vm1, %v4871_v20  ;;  %v5239_v20 = vld [vmem:[%s19048_s0 + $0x370] sm:$0xff] }
  0xd5   :  { %13471 = vmatmul.mubr.msk.f32.gmra.mrb[104].mxu0 %vm45_vm1, %v4505_v21 }
  0xd6   :  { %13491 = vmatmul.mubr.msk.f32.gmra.mrb[104].mxu1 %vm45_vm1, %v4872_v22  ;;  %13473 = vmatprep.mubr.msk.f32.mxu0 %vm45_vm1, %v4506_v23 }
  0xd7   :  { %13493 = vmatprep.mubr.msk.f32.mxu1 %vm45_vm1, %v4873_v24 }
  0xd8   :  { %v13145_v29 = vpop.f32.mrb[0].mxu0 }
  0xd9   :  { %v13166_v30 = vpop.f32.mrb[0].mxu1  ;;  %v244_v31 = vmax.f32 %v13145_v29, 0.0  ;;  %v164_v33 = vpop.f32.mrb[1].mxu0  ;;  %13474 = vmatmul.mubr.msk.f32.gmra.mrb[106].mxu0 %vm45_vm1, %v4507_v25  ;;  %v5240_v25 = vld [vmem:[%s19048_s0 + $0x470] sm:$0xff] }
  0xda   :  { %v258_v32 = vmax.f32 %v13166_v30, 0.0  ;;  %v234_v34 = vpop.f32.mrb[1].mxu1  ;;  %13494 = vmatmul.mubr.msk.f32.gmra.mrb[106].mxu1 %vm45_vm1, %v4874_v26  ;;  %v243_v35 = vmax.f32 %v164_v33, 0.0  ;;  %13476 = vmatprep.mubr.msk.f32.mxu0 %vm45_vm1, %v4508_v27  ;;  %v5607_v26 = vld [vmem:[%s19048_s0 + $0x78] sm:$0xff]  ;;  %v15066_v27 = vld [vmem:[%s19049_s1] sm:$0xf] }
  0xdb   :  { %v257_v36 = vmax.f32 %v234_v34, 0.0  ;;  %13496 = vmatprep.mubr.msk.f32.mxu1 %vm45_vm1, %v4875_v28  ;;  %v267_v39 = vsel %vm23_vm2, %v244_v31, 0.0 }
  0xdc   :  { %v365_v40 = vsel %vm23_vm2, %v258_v32, 0.0  ;;  %v268_v43 = vrot.slane %v267_v39, 4  ;;  %v260_v45 = vsel %vm23_vm2, %v243_v35, 0.0  ;;  %v13148_v47 = vpop.f32.mrb[2].mxu0 }
  0xdd   :  { %v366_v44 = vrot.slane %v365_v40, 4  ;;  %v358_v46 = vsel %vm23_vm2, %v257_v36, 0.0  ;;  %v13171_v48 = vpop.f32.mrb[2].mxu1  ;;  %v261_v49 = vrot.slane %v260_v45, 4  ;;  %v246_v51 = vmax.f32 %v13148_v47, 0.0  ;;  %v174_v53 = vpop.f32.mrb[3].mxu0  ;;  %13477 = vmatmul.mubr.msk.f32.gmra.mrb[108].mxu0 %vm45_vm1, %v4509_v37 }
  0xde   :  { %v359_v50 = vrot.slane %v358_v46, 4  ;;  %v623_v52 = vmax.f32 %v13171_v48, 0.0  ;;  %v543_v54 = vpop.f32.mrb[3].mxu1  ;;  %13497 = vmatmul.mubr.msk.f32.gmra.mrb[108].mxu1 %vm45_vm1, %v4876_v38  ;;  %v269_v55 = vadd.f32 %v268_v43, %v267_v39  ;;  %v245_v57 = vmax.f32 %v174_v53, 0.0  ;;  %13507 = vmatprep.mubr.msk.f32.mxu0 %vm45_vm1, %v5236_v42 }
  0xdf   :  { %v367_v56 = vadd.f32 %v366_v44, %v365_v40  ;;  %v622_v58 = vmax.f32 %v543_v54, 0.0  ;;  %13499 = vmatprep.mubr.msk.f32.mxu1 %vm45_vm1, %v4877_v41  ;;  %v262_v61 = vadd.f32 %v261_v49, %v260_v45  ;;  %v281_v63 = vsel %vm23_vm2, %v246_v51, 0.0  ;;  %v5241_v44 = vld [vmem:[%s19048_s0 + $0x570] sm:$0xff]  ;;  %v5608_v45 = vld [vmem:[%s19048_s0 + $0x178] sm:$0xff] }
  0xe0   :  { %v360_v62 = vadd.f32 %v359_v50, %v358_v46  ;;  %v645_v1 = vsel %vm23_vm2, %v623_v52, 0.0  ;;  %v270_v4 = vrot.slane %v269_v55, 2  ;;  %v282_v6 = vrot.slane %v281_v63, 4  ;;  %v15037_v8 = vpop.f32.mrb[4].mxu0  ;;  %v5242_v50 = vld [vmem:[%s19048_s0 + $0x670] sm:$0xff]  ;;  %v5609_v51 = vld [vmem:[%s19048_s0 + $0x278] sm:$0xff] }
  0xe1   :  { %v368_v5 = vrot.slane %v367_v56, 2  ;;  %v646_v7 = vrot.slane %v645_v1, 4  ;;  %v15039_v9 = vpop.f32.mrb[4].mxu1  ;;  %v263_v10 = vrot.slane %v262_v61, 2  ;;  %v274_v12 = vsel %vm23_vm2, %v245_v57, 0.0  ;;  %v15043_v14 = vpop.f32.mrb[5].mxu0  ;;  %13508 = vmatmul.mubr.msk.f32.vlgmr.msra.gmra.mrb[110].mxu0 %vm45_vm1, %v5237_v60 }
  0xe2   :  { %v361_v11 = vrot.slane %v360_v62, 2  ;;  %v638_v13 = vsel %vm23_vm2, %v622_v58, 0.0  ;;  %v15045_v15 = vpop.f32.mrb[5].mxu1  ;;  %13500 = vmatmul.mubr.msk.f32.gmra.mrb[110].mxu1 %vm45_vm1, %v4878_v59  ;;  %v271_v16 = vadd.f32 %v270_v4, %v269_v55  ;;  %v283_v18 = vadd.f32 %v282_v6, %v281_v63  ;;  %13510 = vmatprep.mubr.msk.f32.mxu0 %vm45_vm1, %v5238_v3  ;;  %v5610_v6 = vld [vmem:[%s19048_s0 + $0x378] sm:$0xff] }
  0xe3   :  { %v369_v17 = vadd.f32 %v368_v5, %v367_v56  ;;  %v647_v19 = vadd.f32 %v646_v7, %v645_v1  ;;  %13502 = vmatprep.mubr.msk.f32.mxu1 %vm45_vm1, %v4879_v2  ;;  %v264_v21 = vadd.f32 %v263_v10, %v262_v61  ;;  %v275_v23 = vrot.slane %v274_v12, 4  ;;  %13558 = vmatpush3.msk.msra.mxu0 %vm94_vm0, %v15066_v27  ;;  %v5243_v5 = vld [vmem:[%s19048_s0 + $0x770] sm:$0xff] }
  0xe4   :  { %v362_v22 = vadd.f32 %v361_v11, %v360_v62  ;;  %v639_v24 = vrot.slane %v638_v13, 4  ;;  %v272_v28 = vrot.slane %v271_v16, 1  ;;  %v284_v30 = vrot.slane %v283_v18, 2  ;;  %v15070_v32 = vpop.f32.mrb[6].mxu0  ;;  %13609 = vmatprep.subr.msk.mxu0 %vm94_vm0, %v15066_v27  ;;  %v5244_v11 = vld [vmem:[%s19048_s0 + $0x870] sm:$0xff] }
  0xe5   :  { %v370_v29 = vrot.slane %v369_v17, 1  ;;  %v648_v31 = vrot.slane %v647_v19, 2  ;;  %v15072_v33 = vpop.f32.mrb[6].mxu1  ;;  %v265_v34 = vrot.slane %v264_v21, 1  ;;  %v276_v36 = vadd.f32 %v275_v23, %v274_v12  ;;  %v15076_v38 = vpop.f32.mrb[7].mxu0  ;;  %13511 = vmatmul.mubr.msk.f32.gmra.mrb[112].mxu0 %vm45_vm1, %v5239_v20  ;;  %v5611_v12 = vld [vmem:[%s19048_s0 + $0x478] sm:$0xff] }
  0xe6   :  { %v363_v35 = vrot.slane %v362_v22, 1  ;;  %v640_v37 = vadd.f32 %v639_v24, %v638_v13  ;;  %v15078_v39 = vpop.f32.mrb[7].mxu1  ;;  %13503 = vmatmul.mubr.msk.f32.gmra.mrb[112].mxu1 %vm45_vm1, %v4880_v0  ;;  %v273_v40 = vadd.f32 %v272_v28, %v271_v16  ;;  %v285_v42 = vadd.f32 %v284_v30, %v283_v18  ;;  %13513 = vmatprep.mubr.msk.f32.mxu0 %vm45_vm1, %v5240_v25 }
  0xe7   :  { %v15082_v41 = vadd.f32 %v370_v29, %v369_v17  ;;  %v649_v43 = vadd.f32 %v648_v31, %v647_v19  ;;  %v266_v46 = vadd.f32 %v265_v34, %v264_v21  ;;  %v277_v48 = vrot.slane %v276_v36, 2  ;;  %13533 = vmatprep.mubr.msk.f32.mxu1 %vm45_vm1, %v5607_v26  ;;  %v5245_v29 = vld [vmem:[%s19048_s0 + $0x970] sm:$0xff]  ;;  %v5612_v34 = vld [vmem:[%s19048_s0 + $0x578] sm:$0xff] }
  0xe8   :  { %v15091_v47 = vadd.f32 %v363_v35, %v362_v22  ;;  %v641_v49 = vrot.slane %v640_v37, 2  ;;  %v286_v52 = vrot.slane %v285_v42, 1  ;;  %v248_v54 = vmax.f32 %v15037_v8, 0.0  ;;  %v15102_v56 = vpop.f32.mrb[8].mxu0  ;;  %v5246_v35 = vld [vmem:[%s19048_s0 + $0xa70] sm:$0xff] }
  0xe9   :  { %v650_v53 = vrot.slane %v649_v43, 1  ;;  %v625_v55 = vmax.f32 %v15039_v9, 0.0  ;;  %v15104_v57 = vpop.f32.mrb[8].mxu1  ;;  %v389_v58 = vsel %vm388_vm3, %v273_v40, %v266_v46  ;;  %v278_v59 = vadd.f32 %v277_v48, %v276_v36  ;;  %v15108_v62 = vpop.f32.mrb[9].mxu0  ;;  %13514 = vmatmul.mubr.msk.f32.gmra.mrb[114].mxu0 %vm45_vm1, %v5241_v44 }
  0xea   :  { %v642_v60 = vadd.f32 %v641_v49, %v640_v37  ;;  %v247_v61 = vmax.f32 %v15043_v14, 0.0  ;;  %v15110_v63 = vpop.f32.mrb[9].mxu1  ;;  %13534 = vmatmul.mubr.msk.f32.vlgmr.msra.gmra.mrb[114].mxu1 %vm45_vm1, %v5608_v45  ;;  %v287_v1 = vadd.f32 %v286_v52, %v285_v42  ;;  %v295_v3 = vsel %vm23_vm2, %v248_v54, 0.0  ;;  %13516 = vmatprep.mubr.msk.f32.mxu0 %vm45_vm1, %v5242_v50  ;;  %v5613_v45 = vld [vmem:[%s19048_s0 + $0x678] sm:$0xff] }
  0xeb   :  { %v651_v2 = vadd.f32 %v650_v53, %v649_v43  ;;  %v659_v4 = vsel %vm23_vm2, %v625_v55, 0.0  ;;  %13584 = vmatpush3.msk.msra.mxu1 %vm94_vm0, %v15066_v27  ;;  %v279_v7 = vrot.slane %v278_v59, 1  ;;  %v296_v9 = vrot.slane %v295_v3, 4  ;;  %13536 = vmatprep.mubr.msk.f32.mxu1 %vm45_vm1, %v5609_v51 }
  0xec   :  { %v643_v8 = vrot.slane %v642_v60, 1  ;;  %v660_v10 = vrot.slane %v659_v4, 4  ;;  %13635 = vmatprep.subr.msk.mxu1 %vm94_vm0, %v15066_v27  ;;  %v288_v13 = vsel %vm23_vm2, %v247_v61, 0.0  ;;  %v624_v14 = vmax.f32 %v15045_v15, 0.0  ;;  %v15138_v18 = vpop.f32.mrb[10].mxu0 }
  0xed   :  { %v250_v16 = vmax.f32 %v15070_v32, 0.0  ;;  %v627_v17 = vmax.f32 %v15072_v33, 0.0  ;;  %v15140_v19 = vpop.f32.mrb[10].mxu1  ;;  %v280_v0 = vadd.f32 %v279_v7, %v278_v59  ;;  %v297_v21 = vadd.f32 %v296_v9, %v295_v3  ;;  %v15142_v23 = vpop.f32.mrb[11].mxu0  ;;  %13517 = vmatmul.mubr.msk.f32.gmra.mrb[116].mxu0 %vm45_vm1, %v5243_v5  ;;  %v5247_v59 = vld [vmem:[%s19048_s0 + $0xb70] sm:$0xff]  ;;  %v5615_v9 = vld [vmem:[%s19048_s0 + $0x878] sm:$0xff] }
  0xee   :  { %v644_v20 = vadd.f32 %v643_v8, %v642_v60  ;;  %v661_v22 = vadd.f32 %v660_v10, %v659_v4  ;;  %v15144_v24 = vpop.f32.mrb[11].mxu1  ;;  %v289_v25 = vrot.slane %v288_v13, 4  ;;  %v652_v15 = vsel %vm23_vm2, %v624_v14, 0.0  ;;  %13537 = vmatmul.mubr.msk.f32.gmra.mrb[116].mxu1 %vm45_vm1, %v5610_v6  ;;  %13519 = vmatprep.mubr.msk.f32.mxu0 %vm45_vm1, %v5244_v11 }
  0xef   :  { %v309_v26 = vsel %vm23_vm2, %v250_v16, 0.0  ;;  %v673_v28 = vsel %vm23_vm2, %v627_v17, 0.0  ;;  %v391_v30 = vsel %vm390_vm4, %v280_v0, %v389_v58  ;;  %v298_v32 = vrot.slane %v297_v21, 2  ;;  %13539 = vmatprep.mubr.msk.f32.mxu1 %vm45_vm1, %v5611_v12 }
  0xf0   :  { %v15157_v31 = vsel %vm388_vm3, %v651_v2, %v644_v20  ;;  %v662_v33 = vrot.slane %v661_v22, 2  ;;  %v290_v36 = vadd.f32 %v289_v25, %v288_v13  ;;  %v15167_v37 = vsel %vm392_vm5, %v287_v1, %v391_v30  ;;  %v15169_v43 = vpop.f32.mrb[12].mxu0  ;;  %v5614_v2 = vld [vmem:[%s19048_s0 + $0x778] sm:$0xff]  ;;  %v5250_v30 = vld [vmem:[%s19048_s0 + $0xe70] sm:$0xff] }
  0xf1   :  { %v653_v40 = vrot.slane %v652_v15, 4  ;;  %v310_v42 = vrot.slane %v309_v26, 4  ;;  %v15171_v44 = vpop.f32.mrb[12].mxu1  ;;  %v299_v46 = vadd.f32 %v298_v32, %v297_v21  ;;  %v674_v49 = vrot.slane %v673_v28, 4  ;;  %v15177_v51 = vpop.f32.mrb[13].mxu0  ;;  %13520 = vmatmul.mubr.msk.f32.gmra.mrb[118].mxu0 %vm45_vm1, %v5245_v29  ;;  %v5616_v29 = vld [vmem:[%s19048_s0 + $0x978] sm:$0xff] }
  0xf2   :  { %v663_v48 = vadd.f32 %v662_v33, %v661_v22  ;;  %v249_v50 = vmax.f32 %v15076_v38, 0.0  ;;  %v15179_v52 = vpop.f32.mrb[13].mxu1  ;;  %v291_v53 = vrot.slane %v290_v36, 2  ;;  %v626_v58 = vmax.f32 %v15078_v39, 0.0  ;;  %13540 = vmatmul.mubr.msk.f32.gmra.mrb[118].mxu1 %vm45_vm1, %v5612_v34  ;;  %13522 = vmatprep.mubr.msk.f32.mxu0 %vm45_vm1, %v5246_v35  ;;  %v5248_v39 = vld [vmem:[%s19048_s0 + $0xc70] sm:$0xff] }
  0xf3   :  { %v654_v54 = vadd.f32 %v653_v40, %v652_v15  ;;  %v311_v55 = vadd.f32 %v310_v42, %v309_v26  ;;  %v300_v38 = vrot.slane %v299_v46, 1  ;;  %v675_v61 = vadd.f32 %v674_v49, %v673_v28  ;;  %13542 = vmatprep.mubr.msk.f32.mxu1 %vm45_vm1, %v5613_v45  ;;  %v5249_v22 = vld [vmem:[%s19048_s0 + $0xd70] sm:$0xff] }
  0xf4   :  { %v664_v60 = vrot.slane %v663_v48, 1  ;;  %v302_v1 = vsel %vm23_vm2, %v249_v50, 0.0  ;;  %v292_v3 = vadd.f32 %v291_v53, %v290_v36  ;;  %v15198_v8 = vpop.f32.mrb[14].mxu0  ;;  %v666_v13 = vsel %vm23_vm2, %v626_v58, 0.0  ;;  %v5251_v58 = vld [vmem:[%s19048_s0 + $0xf70] sm:$0xff] }
  0xf5   :  { %v655_v4 = vrot.slane %v654_v54, 2  ;;  %v312_v5 = vrot.slane %v311_v55, 2  ;;  %v303_v6 = vrot.slane %v302_v1, 4  ;;  %v15196_v7 = vpop.f32.mrb[14].mxu1  ;;  %v301_v10 = vadd.f32 %v300_v38, %v299_v46  ;;  %v15206_v16 = vpop.f32.mrb[15].mxu0  ;;  %13523 = vmatmul.mubr.msk.f32.gmra.mrb[120].mxu0 %vm45_vm1, %v5247_v59 }
  0xf6   :  { %v665_v11 = vadd.f32 %v664_v60, %v663_v48  ;;  %v676_v12 = vrot.slane %v675_v61, 2  ;;  %v15204_v14 = vpop.f32.mrb[15].mxu1  ;;  %v293_v17 = vrot.slane %v292_v3, 1  ;;  %13543 = vmatmul.mubr.msk.f32.gmra.mrb[120].mxu1 %vm45_vm1, %v5614_v2  ;;  %13525 = vmatprep.mubr.msk.f32.mxu0 %vm45_vm1, %v5248_v39  ;;  %v667_v15 = vrot.slane %v666_v13, 4 }
  0xf7   :  { %v656_v0 = vadd.f32 %v655_v4, %v654_v54  ;;  %v313_v20 = vadd.f32 %v312_v5, %v311_v55  ;;  %v304_v21 = vadd.f32 %v303_v6, %v302_v1  ;;  %v252_v26 = vmax.f32 %v15102_v56, 0.0  ;;  %13545 = vmatprep.mubr.msk.f32.mxu1 %vm45_vm1, %v5615_v9  ;;  %v5617_v56 = vld [vmem:[%s19048_s0 + $0xa78] sm:$0xff]  ;;  %v5978_v1 = vld [vmem:[%s19048_s0 + $0x80] sm:$0xff] }
  0xf8   :  { %v677_v25 = vadd.f32 %v676_v12, %v675_v61  ;;  %v629_v28 = vmax.f32 %v15104_v57, 0.0  ;;  %v294_v32 = vadd.f32 %v293_v17, %v292_v3  ;;  %v15225_v40 = vpop.f32.mrb[16].mxu0  ;;  %v668_v42 = vadd.f32 %v667_v15, %v666_v13  ;;  %v5619_v9 = vld [vmem:[%s19048_s0 + $0xc78] sm:$0xff] }
  0xf9   :  { %v657_v33 = vrot.slane %v656_v0, 1  ;;  %v314_v34 = vrot.slane %v313_v20, 1  ;;  %v305_v35 = vrot.slane %v304_v21, 2  ;;  %v15223_v36 = vpop.f32.mrb[16].mxu1  ;;  %v323_v45 = vsel %vm23_vm2, %v252_v26, 0.0  ;;  %v15234_v49 = vpop.f32.mrb[17].mxu0  ;;  %13526 = vmatmul.mubr.msk.f32.gmra.mrb[122].mxu0 %vm45_vm1, %v5249_v22 }
  0xfa   :  { %v678_v57 = vrot.slane %v677_v25, 1  ;;  %v687_v46 = vsel %vm23_vm2, %v629_v28, 0.0  ;;  %v15232_v48 = vpop.f32.mrb[17].mxu1  ;;  %v395_v50 = vsel %vm394_vm6, %v294_v32, %v15167_v37  ;;  %13546 = vmatmul.mubr.msk.f32.gmra.mrb[122].mxu1 %vm45_vm1, %v5616_v29  ;;  %v669_v60 = vrot.slane %v668_v42, 2  ;;  %13528 = vmatprep.mubr.msk.f32.mxu0 %vm45_vm1, %v5250_v30  ;;  %v5618_v37 = vld [vmem:[%s19048_s0 + $0xb78] sm:$0xff] }
  0xfb   :  { %v658_v53 = vadd.f32 %v657_v33, %v656_v0  ;;  %v315_v54 = vadd.f32 %v314_v34, %v313_v20  ;;  %v306_v55 = vadd.f32 %v305_v35, %v304_v21  ;;  %v397_v38 = vsel %vm396_vm7, %v301_v10, %v395_v50  ;;  %13548 = vmatprep.mubr.msk.f32.mxu1 %vm45_vm1, %v5617_v56  ;;  %v5620_v28 = vld [vmem:[%s19048_s0 + $0xd78] sm:$0xff] }
  0xfc   :  { %v15243_v59 = vadd.f32 %v678_v57, %v677_v25  ;;  %v324_v61 = vrot.slane %v323_v45, 4  ;;  %v688_v3 = vrot.slane %v687_v46, 4  ;;  %v251_v4 = vmax.f32 %v15108_v62, 0.0  ;;  %v15257_v5 = vpop.f32.mrb[18].mxu0  ;;  %v5621_v56 = vld [vmem:[%s19048_s0 + $0xe78] sm:$0xff] }
  0xfd   :  { %v767_v2 = vsel %vm390_vm4, %v658_v53, %v15157_v31  ;;  %v307_v39 = vrot.slane %v306_v55, 1  ;;  %v15259_v6 = vpop.f32.mrb[18].mxu1  ;;  %v670_v10 = vadd.f32 %v669_v60, %v668_v42  ;;  %v628_v17 = vmax.f32 %v15110_v63, 0.0  ;;  %v15266_v0 = vpop.f32.mrb[19].mxu0  ;;  %13529 = vmatmul.mubr.msk.f32.gmra.mrb[124].mxu0 %vm45_vm1, %v5251_v58  ;;  %v5979_v63 = vld [vmem:[%s19048_s0 + $0x180] sm:$0xff] }
  0xfe   :  { %v768_v12 = vsel %vm392_vm5, %v665_v11, %v767_v2  ;;  %v325_v13 = vadd.f32 %v324_v61, %v323_v45  ;;  %v15268_v31 = vpop.f32.mrb[19].mxu1  ;;  %v689_v20 = vadd.f32 %v688_v3, %v687_v46  ;;  %v316_v21 = vsel %vm23_vm2, %v251_v4, 0.0  ;;  %13549 = vmatmul.mubr.msk.f32.gmra.mrb[124].mxu1 %vm45_vm1, %v5618_v37  ;;  %13559 = vmatprep.mubr.msk.f32.mxu0 %vm45_vm1, %v5978_v1 }
  0xff   :  { %v308_v62 = vadd.f32 %v307_v39, %v306_v55  ;;  %v254_v22 = vmax.f32 %v15138_v18, 0.0  ;;  %v671_v11 = vrot.slane %v670_v10, 1  ;;  %v317_v15 = vrot.slane %v316_v21, 4  ;;  %13551 = vmatprep.mubr.msk.f32.mxu1 %vm45_vm1, %v5619_v9  ;;  %v5980_v18 = vld [vmem:[%s19048_s0 + $0x280] sm:$0xff] }
 0x100   :  { %v326_v25 = vrot.slane %v325_v13, 2  ;;  %v680_v26 = vsel %vm23_vm2, %v628_v17, 0.0  ;;  %v690_v30 = vrot.slane %v689_v20, 2  ;;  %v15288_v34 = vpop.f32.mrb[20].mxu0  ;;  %v631_v60 = vmax.f32 %v15140_v19, 0.0  ;;  %v5622_v19 = vld [vmem:[%s19048_s0 + $0xf78] sm:$0xff] }
 0x101   :  { %v399_v29 = vsel %vm398_vm8, %v308_v62, %v397_v38  ;;  %v681_v32 = vrot.slane %v680_v26, 4  ;;  %v337_v33 = vsel %vm23_vm2, %v254_v22, 0.0  ;;  %v15290_v35 = vpop.f32.mrb[20].mxu1  ;;  %v672_v42 = vadd.f32 %v671_v11, %v670_v10  ;;  %v15298_v50 = vpop.f32.mrb[21].mxu0  ;;  %13560 = vmatmul.mubr.msk.f32.vlgmr.msra.gmra.mrb[126].mxu0 %vm45_vm1, %v5979_v63  ;;  %v5982_v39 = vld [vmem:[%s19048_s0 + $0x480] sm:$0xff] }
 0x102   :  { %v15296_v57 = vsel %vm400_vm9, %v315_v54, %v399_v29  ;;  %v327_v45 = vadd.f32 %v326_v25, %v325_v13  ;;  %v318_v46 = vadd.f32 %v317_v15, %v316_v21  ;;  %v15300_v53 = vpop.f32.mrb[21].mxu1  ;;  %v691_v55 = vadd.f32 %v690_v30, %v689_v20  ;;  %13552 = vmatmul.mubr.msk.f32.gmra.mrb[126].mxu1 %vm45_vm1, %v5620_v28  ;;  %v5981_v54 = vld [vmem:[%s19048_s0 + $0x380] sm:$0xff]  ;;  %v6349_v13 = vld [vmem:[%s19048_s0 + $0x88] sm:$0xff] }
 0x103   :  { %19053 = vst [vmem:[#allocation6_spill] sm:$0xff] %v15296_v57  ;;  %v682_v58 = vadd.f32 %v681_v32, %v680_v26  ;;  %v338_v38 = vrot.slane %v337_v33, 4  ;;  %13562 = vmatprep.mubr.msk.f32.mxu0 %vm45_vm1, %v5980_v18  ;;  %v769_v61 = vsel %vm394_vm6, %v672_v42, %v768_v12  ;;  %v253_v2 = vmax.f32 %v15142_v23, 0.0  ;;  %13554 = vmatprep.mubr.msk.f32.mxu1 %vm45_vm1, %v5621_v56  ;;  %v5983_v26 = vld [vmem:[%s19048_s0 + $0x580] sm:$0xff]  ;;  %v6350_v32 = vld [vmem:[%s19048_s0 + $0x188] sm:$0xff] }
 0x104   :  { %v328_v37 = vrot.slane %v327_v45, 1  ;;  %v319_v1 = vrot.slane %v318_v46, 2  ;;  %13610 = vmatpush3.msk.msra.mxu0 %vm94_vm0, %v15066_v27  ;;  %v692_v3 = vrot.slane %v691_v55, 1  ;;  %v770_v9 = vsel %vm396_vm7, %v15243_v59, %v769_v61  ;;  %v15322_v23 = vpop.f32.mrb[22].mxu0 }
 0x105   :  { %v683_v4 = vrot.slane %v682_v58, 2  ;;  %v339_v10 = vadd.f32 %v338_v38, %v337_v33  ;;  %v15324_v12 = vpop.f32.mrb[22].mxu1  ;;  %13661 = vmatprep.subr.msk.mxu0 %vm94_vm0, %v15066_v27  ;;  %v701_v20 = vsel %vm23_vm2, %v631_v60, 0.0  ;;  %v330_v21 = vsel %vm23_vm2, %v253_v2, 0.0  ;;  %v15333_v22 = vpop.f32.mrb[23].mxu0  ;;  %13563 = vmatmul.mubr.msk.f32.gmra.mrb[128].mxu0 %vm45_vm1, %v5981_v54  ;;  %v5984_v33 = vld [vmem:[%s19048_s0 + $0x680] sm:$0xff] }
 0x106   :  { %v329_v17 = vadd.f32 %v328_v37, %v327_v45  ;;  %v320_v62 = vadd.f32 %v319_v1, %v318_v46  ;;  %v15335_v59 = vpop.f32.mrb[23].mxu1  ;;  %v693_v63 = vadd.f32 %v692_v3, %v691_v55  ;;  %v702_v15 = vrot.slane %v701_v20, 4  ;;  %13555 = vmatmul.mubr.msk.f32.gmra.mrb[128].mxu1 %vm45_vm1, %v5622_v19  ;;  %13565 = vmatprep.mubr.msk.f32.mxu0 %vm45_vm1, %v5982_v39  ;;  %v5985_v39 = vld [vmem:[%s19048_s0 + $0x780] sm:$0xff] }
 0x107   :  { %v684_v11 = vadd.f32 %v683_v4, %v682_v58  ;;  %v340_v25 = vrot.slane %v339_v10, 2  ;;  %v331_v18 = vrot.slane %v330_v21, 4  ;;  %v630_v29 = vmax.f32 %v15144_v24, 0.0  ;;  %13585 = vmatprep.mubr.msk.f32.mxu1 %vm45_vm1, %v6349_v13 }
 0x108   :  { %v321_v28 = vrot.slane %v320_v62, 1  ;;  %v256_v30 = vmax.f32 %v15169_v43, 0.0  ;;  %v703_v45 = vadd.f32 %v702_v15, %v701_v20  ;;  %v633_v46 = vmax.f32 %v15171_v44, 0.0  ;;  %v15353_v55 = vpop.f32.mrb[24].mxu0  ;;  %v6351_v43 = vld [vmem:[%s19048_s0 + $0x288] sm:$0xff]  ;;  %v5986_v20 = vld [vmem:[%s19048_s0 + $0x880] sm:$0xff] }
 0x109   :  { %v685_v56 = vrot.slane %v684_v11, 1  ;;  %v341_v42 = vadd.f32 %v340_v25, %v339_v10  ;;  %v15355_v24 = vpop.f32.mrb[24].mxu1  ;;  %v332_v38 = vadd.f32 %v331_v18, %v330_v21  ;;  %v694_v60 = vsel %vm23_vm2, %v630_v29, 0.0  ;;  %v15362_v61 = vpop.f32.mrb[25].mxu0  ;;  %13566 = vmatmul.mubr.msk.f32.gmra.mrb[130].mxu0 %vm45_vm1, %v5983_v26 }
 0x10a   :  { %v322_v58 = vadd.f32 %v321_v28, %v320_v62  ;;  %v351_v54 = vsel %vm23_vm2, %v256_v30, 0.0  ;;  %v15364_v37 = vpop.f32.mrb[25].mxu1  ;;  %v704_v2 = vrot.slane %v703_v45, 2  ;;  %v695_v19 = vrot.slane %v694_v60, 4  ;;  %13586 = vmatmul.mubr.msk.f32.vlgmr.msra.gmra.mrb[130].mxu1 %vm45_vm1, %v6350_v32  ;;  %13568 = vmatprep.mubr.msk.f32.mxu0 %vm45_vm1, %v5984_v33  ;;  %v6352_v62 = vld [vmem:[%s19048_s0 + $0x388] sm:$0xff] }
 0x10b   :  { %v686_v44 = vadd.f32 %v685_v56, %v684_v11  ;;  %v342_v1 = vrot.slane %v341_v42, 1  ;;  %v333_v4 = vrot.slane %v332_v38, 2  ;;  %v352_v10 = vrot.slane %v351_v54, 4  ;;  %13636 = vmatpush3.msk.msra.mxu1 %vm94_vm0, %v15066_v27  ;;  %13588 = vmatprep.mubr.msk.f32.mxu1 %vm45_vm1, %v6351_v43  ;;  %v6353_v28 = vld [vmem:[%s19048_s0 + $0x488] sm:$0xff] }
 0x10c   :  { %v402_v3 = vsel %vm388_vm3, %v329_v17, %v322_v58  ;;  %v715_v13 = vsel %vm23_vm2, %v633_v46, 0.0  ;;  %v705_v11 = vadd.f32 %v704_v2, %v703_v45  ;;  %v696_v25 = vadd.f32 %v695_v19, %v694_v60  ;;  %v15384_v15 = vpop.f32.mrb[26].mxu0  ;;  %13687 = vmatprep.subr.msk.mxu1 %vm94_vm0, %v15066_v27 }
 0x10d   :  { %v771_v21 = vsel %vm398_vm8, %v686_v44, %v770_v9  ;;  %v343_v17 = vadd.f32 %v342_v1, %v341_v42  ;;  %v15386_v26 = vpop.f32.mrb[26].mxu1  ;;  %v334_v29 = vadd.f32 %v333_v4, %v332_v38  ;;  %v353_v30 = vadd.f32 %v352_v10, %v351_v54  ;;  %v15396_v32 = vpop.f32.mrb[27].mxu0  ;;  %13569 = vmatmul.mubr.msk.f32.gmra.mrb[132].mxu0 %vm45_vm1, %v5985_v39 }
 0x10e   :  { %v15394_v18 = vsel %vm400_vm9, %v693_v63, %v771_v21  ;;  %v716_v9 = vrot.slane %v715_v13, 4  ;;  %v15398_v33 = vpop.f32.mrb[27].mxu1  ;;  %v706_v56 = vrot.slane %v705_v11, 1  ;;  %v697_v42 = vrot.slane %v696_v25, 2  ;;  %13589 = vmatmul.mubr.msk.f32.gmra.mrb[132].mxu1 %vm45_vm1, %v6352_v62  ;;  %13571 = vmatprep.mubr.msk.f32.mxu0 %vm45_vm1, %v5986_v20  ;;  %v5987_v63 = vld [vmem:[%s19048_s0 + $0x980] sm:$0xff] }
 0x10f   :  { %19054 = vst [vmem:[#allocation7_spill] sm:$0xff] %v15394_v18  ;;  %v255_v45 = vmax.f32 %v15177_v51, 0.0  ;;  %v632_v46 = vmax.f32 %v15179_v52, 0.0  ;;  %v335_v43 = vrot.slane %v334_v29, 1  ;;  %v354_v58 = vrot.slane %v353_v30, 2  ;;  %13591 = vmatprep.mubr.msk.f32.mxu1 %vm45_vm1, %v6353_v28  ;;  %v6354_v51 = vld [vmem:[%s19048_s0 + $0x588] sm:$0xff] }
 0x110   :  { %v717_v38 = vadd.f32 %v716_v9, %v715_v13  ;;  %v635_v60 = vmax.f32 %v15196_v7, 0.0  ;;  %v5988_v52 = vld [vmem:[%s19048_s0 + $0xa80] sm:$0xff]  ;;  %v707_v54 = vadd.f32 %v706_v56, %v705_v11  ;;  %v698_v44 = vadd.f32 %v697_v42, %v696_v25  ;;  %v15418_v19 = vpop.f32.mrb[28].mxu0  ;;  %v6355_v7 = vld [vmem:[%s19048_s0 + $0x688] sm:$0xff] }
 0x111   :  { %v344_v1 = vsel %vm23_vm2, %v255_v45, 0.0  ;;  %v708_v2 = vsel %vm23_vm2, %v632_v46, 0.0  ;;  %v15420_v39 = vpop.f32.mrb[28].mxu1  ;;  %v336_v4 = vadd.f32 %v335_v43, %v334_v29  ;;  %v355_v10 = vadd.f32 %v354_v58, %v353_v30  ;;  %v15425_v20 = vpop.f32.mrb[29].mxu0  ;;  %13572 = vmatmul.mubr.msk.f32.gmra.mrb[134].mxu0 %vm45_vm1, %v5987_v63  ;;  %v5989_v29 = vld [vmem:[%s19048_s0 + $0xb80] sm:$0xff]  ;;  %v6356_v46 = vld [vmem:[%s19048_s0 + $0x788] sm:$0xff] }
 0x112   :  { %v718_v13 = vrot.slane %v717_v38, 2  ;;  %v345_v62 = vrot.slane %v344_v1, 4  ;;  %v15427_v21 = vpop.f32.mrb[29].mxu1  ;;  %v699_v11 = vrot.slane %v698_v44, 1  ;;  %v709_v25 = vrot.slane %v708_v2, 4  ;;  %13592 = vmatmul.mubr.msk.f32.gmra.mrb[134].mxu1 %vm45_vm1, %v6354_v51  ;;  %13574 = vmatprep.mubr.msk.f32.mxu0 %vm45_vm1, %v5988_v52  ;;  %v6357_v51 = vld [vmem:[%s19048_s0 + $0x888] sm:$0xff] }
 0x113   :  { %v729_v28 = vsel %vm23_vm2, %v635_v60, 0.0  ;;  %v994_v9 = vmax.f32 %v15198_v8, 0.0  ;;  %v403_v30 = vsel %vm390_vm4, %v336_v4, %v402_v3  ;;  %v356_v56 = vrot.slane %v355_v10, 1  ;;  %13594 = vmatprep.mubr.msk.f32.mxu1 %vm45_vm1, %v6355_v7  ;;  %v5990_v8 = vld [vmem:[%s19048_s0 + $0xc80] sm:$0xff] }
 0x114   :  { %v719_v42 = vadd.f32 %v718_v13, %v717_v38  ;;  %v346_v45 = vadd.f32 %v345_v62, %v344_v1  ;;  %v700_v63 = vadd.f32 %v699_v11, %v698_v44  ;;  %v15446_v43 = vsel %vm392_vm5, %v343_v17, %v403_v30  ;;  %v15450_v38 = vpop.f32.mrb[30].mxu0 }
 0x115   :  { %v710_v58 = vadd.f32 %v709_v25, %v708_v2  ;;  %v730_v60 = vrot.slane %v729_v28, 4  ;;  %v15448_v3 = vpop.f32.mrb[30].mxu1  ;;  %v15455_v52 = vadd.f32 %v356_v56, %v355_v10  ;;  %v1016_v4 = vsel %vm23_vm2, %v994_v9, 0.0  ;;  %v15460_v17 = vpop.f32.mrb[31].mxu0  ;;  %13575 = vmatmul.mubr.msk.f32.gmra.mrb[136].mxu0 %vm45_vm1, %v5989_v29  ;;  %v5991_v10 = vld [vmem:[%s19048_s0 + $0xd80] sm:$0xff] }
 0x116   :  { %v720_v1 = vrot.slane %v719_v42, 1  ;;  %v347_v7 = vrot.slane %v346_v45, 2  ;;  %v15458_v44 = vpop.f32.mrb[31].mxu1  ;;  %v773_v2 = vsel %vm388_vm3, %v707_v54, %v700_v63  ;;  %v1017_v11 = vrot.slane %v1016_v4, 4  ;;  %13595 = vmatmul.mubr.msk.f32.gmra.mrb[136].mxu1 %vm45_vm1, %v6356_v46  ;;  %13577 = vmatprep.mubr.msk.f32.mxu0 %vm45_vm1, %v5990_v8  ;;  %v6358_v54 = vld [vmem:[%s19048_s0 + $0x988] sm:$0xff] }
 0x117   :  { %v711_v13 = vrot.slane %v710_v58, 2  ;;  %v731_v62 = vadd.f32 %v730_v60, %v729_v28  ;;  %v634_v30 = vmax.f32 %v15204_v14, 0.0  ;;  %v993_v56 = vmax.f32 %v15206_v16, 0.0  ;;  %13597 = vmatprep.mubr.msk.f32.mxu1 %vm45_vm1, %v6357_v51  ;;  %v5992_v28 = vld [vmem:[%s19048_s0 + $0xe80] sm:$0xff]  ;;  %v6359_v16 = vld [vmem:[%s19048_s0 + $0xa88] sm:$0xff] }
 0x118   :  { %v721_v25 = vadd.f32 %v720_v1, %v719_v42  ;;  %v348_v9 = vadd.f32 %v347_v7, %v346_v45  ;;  %v1018_v8 = vadd.f32 %v1017_v11, %v1016_v4  ;;  %v637_v42 = vmax.f32 %v15223_v36, 0.0  ;;  %v15481_v14 = vpop.f32.mrb[32].mxu0 }
 0x119   :  { %v712_v29 = vadd.f32 %v711_v13, %v710_v58  ;;  %v732_v46 = vrot.slane %v731_v62, 2  ;;  %v15479_v45 = vpop.f32.mrb[32].mxu1  ;;  %19056 = vst [vmem:[#allocation9_spill] sm:$0xff] %v15481_v14  ;;  %v722_v60 = vsel %vm23_vm2, %v634_v30, 0.0  ;;  %v1009_v51 = vsel %vm23_vm2, %v993_v56, 0.0  ;;  %v15491_v7 = vpop.f32.mrb[33].mxu0  ;;  %13578 = vmatmul.mubr.msk.f32.gmra.mrb[138].mxu0 %vm45_vm1, %v5991_v10 }
 0x11a   :  { %19055 = vst [vmem:[#allocation8_spill] sm:$0xff] %v15479_v45  ;;  %v349_v63 = vrot.slane %v348_v9, 1  ;;  %v996_v1 = vmax.f32 %v15225_v40, 0.0  ;;  %v15489_v58 = vpop.f32.mrb[33].mxu1  ;;  %19058 = vst [vmem:[#allocation11_spill] sm:$0xff] %v15491_v7  ;;  %v1019_v13 = vrot.slane %v1018_v8, 2  ;;  %13598 = vmatmul.mubr.msk.f32.gmra.mrb[138].mxu1 %vm45_vm1, %v6358_v54  ;;  %13580 = vmatprep.mubr.msk.f32.mxu0 %vm45_vm1, %v5992_v28 }
 0x11b   :  { %19057 = vst [vmem:[#allocation10_spill] sm:$0xff] %v15489_v58  ;;  %v713_v36 = vrot.slane %v712_v29, 1  ;;  %v733_v4 = vadd.f32 %v732_v46, %v731_v62  ;;  %v723_v11 = vrot.slane %v722_v60, 4  ;;  %v5993_v30 = vld [vmem:[%s19048_s0 + $0xf80] sm:$0xff]  ;;  %v1010_v40 = vrot.slane %v1009_v51, 4  ;;  %13600 = vmatprep.mubr.msk.f32.mxu1 %vm45_vm1, %v6359_v16  ;;  %v6360_v62 = vld [vmem:[%s19048_s0 + $0xb88] sm:$0xff] }
 0x11c   :  { %v350_v56 = vadd.f32 %v349_v63, %v348_v9  ;;  %v743_v18 = vsel %vm23_vm2, %v637_v42, 0.0  ;;  %v1030_v57 = vsel %vm23_vm2, %v996_v1, 0.0  ;;  %v6720_v10 = vld [vmem:[%s19048_s0 + $0x90] sm:$0xff]  ;;  %v1020_v46 = vadd.f32 %v1019_v13, %v1018_v8  ;;  %v15508_v9 = vpop.f32.mrb[34].mxu0  ;;  %v6361_v42 = vld [vmem:[%s19048_s0 + $0xc88] sm:$0xff] }
 0x11d   :  { %v714_v54 = vadd.f32 %v713_v36, %v712_v29  ;;  %v734_v28 = vrot.slane %v733_v4, 1  ;;  %v724_v7 = vadd.f32 %v723_v11, %v722_v60  ;;  %v15510_v63 = vpop.f32.mrb[34].mxu1  ;;  %v1011_v1 = vadd.f32 %v1010_v40, %v1009_v51  ;;  %v15517_v45 = vpop.f32.mrb[35].mxu0  ;;  %13581 = vmatmul.mubr.msk.f32.gmra.mrb[140].mxu0 %vm45_vm1, %v5993_v30 }
 0x11e   :  { %v405_v16 = vsel %vm394_vm6, %v350_v56, %v15446_v43  ;;  %v744_v58 = vrot.slane %v743_v18, 4  ;;  %v1031_v14 = vrot.slane %v1030_v57, 4  ;;  %v15519_v29 = vpop.f32.mrb[35].mxu1  ;;  %v1021_v13 = vrot.slane %v1020_v46, 1  ;;  %13601 = vmatmul.mubr.msk.f32.gmra.mrb[140].mxu1 %vm45_vm1, %v6360_v62  ;;  %13611 = vmatprep.mubr.msk.f32.mxu0 %vm45_vm1, %v6720_v10  ;;  %v6721_v43 = vld [vmem:[%s19048_s0 + $0x190] sm:$0xff] }
 0x11f   :  { %v406_v8 = vsel %vm396_vm7, %v15455_v52, %v405_v16  ;;  %v774_v60 = vsel %vm390_vm4, %v714_v54, %v773_v2  ;;  %v15525_v36 = vadd.f32 %v734_v28, %v733_v4  ;;  %v725_v11 = vrot.slane %v724_v7, 2  ;;  %13603 = vmatprep.mubr.msk.f32.mxu1 %vm45_vm1, %v6361_v42  ;;  %v6362_v2 = vld [vmem:[%s19048_s0 + $0xd88] sm:$0xff]  ;;  %v6722_v4 = vld [vmem:[%s19048_s0 + $0x290] sm:$0xff] }
 0x120   :  { %v407_v51 = vsel %vm398_vm8, %v15091_v47, %v406_v8  ;;  %v775_v30 = vsel %vm392_vm5, %v721_v25, %v774_v60  ;;  %v1012_v52 = vrot.slane %v1011_v1, 2  ;;  %v1022_v40 = vadd.f32 %v1021_v13, %v1020_v46  ;;  %v15546_v10 = vpop.f32.mrb[36].mxu0  ;;  %v6363_v54 = vld [vmem:[%s19048_s0 + $0xe88] sm:$0xff] }
 0x121   :  { %v15544_v56 = vsel %vm400_vm9, %v15082_v41, %v407_v51  ;;  %v745_v47 = vadd.f32 %v744_v58, %v743_v18  ;;  %v1032_v62 = vadd.f32 %v1031_v14, %v1030_v57  ;;  %v15548_v25 = vpop.f32.mrb[36].mxu1  ;;  %v726_v28 = vadd.f32 %v725_v11, %v724_v7  ;;  %v15555_v60 = vpop.f32.mrb[37].mxu0  ;;  %13612 = vmatmul.mubr.msk.f32.vlgmr.msra.gmra.mrb[142].mxu0 %vm45_vm1, %v6721_v43 }
 0x122   :  { %19059 = vst [vmem:[#allocation12_spill] sm:$0xff] %v15544_v56  ;;  %v1013_v42 = vadd.f32 %v1012_v52, %v1011_v1  ;;  %v636_v16 = vmax.f32 %v15232_v48, 0.0  ;;  %v995_v8 = vmax.f32 %v15234_v49, 0.0  ;;  %v15557_v41 = vpop.f32.mrb[37].mxu1  ;;  %v998_v14 = vmax.f32 %v15257_v5, 0.0  ;;  %13604 = vmatmul.mubr.msk.f32.gmra.mrb[142].mxu1 %vm45_vm1, %v6362_v2  ;;  %13614 = vmatprep.mubr.msk.f32.mxu0 %vm45_vm1, %v6722_v4  ;;  %v6723_v48 = vld [vmem:[%s19048_s0 + $0x390] sm:$0xff] }
 0x123   :  { %v746_v57 = vrot.slane %v745_v47, 2  ;;  %v1033_v18 = vrot.slane %v1032_v62, 2  ;;  %v1365_v58 = vmax.f32 %v15259_v6, 0.0  ;;  %v727_v49 = vrot.slane %v726_v28, 1  ;;  %13606 = vmatprep.mubr.msk.f32.mxu1 %vm45_vm1, %v6363_v54  ;;  %v6364_v5 = vld [vmem:[%s19048_s0 + $0xf88] sm:$0xff]  ;;  %v6724_v6 = vld [vmem:[%s19048_s0 + $0x490] sm:$0xff]  ;;  %13662 = vmatpush3.msk.msra.mxu0 %vm94_vm0, %v15066_v27 }
 0x124   :  { %v1014_v7 = vrot.slane %v1013_v42, 1  ;;  %v736_v46 = vsel %vm23_vm2, %v636_v16, 0.0  ;;  %v1023_v1 = vsel %vm23_vm2, %v995_v8, 0.0  ;;  %v15578_v52 = vpop.f32.mrb[38].mxu0  ;;  %v7091_v4 = vld [vmem:[%s19048_s0 + $0x98] sm:$0xff]  ;;  %13713 = vmatprep.subr.msk.mxu0 %vm94_vm0, %v15066_v27  ;;  %v1044_v8 = vsel %vm23_vm2, %v998_v14, 0.0 }
 0x125   :  { %v747_v13 = vadd.f32 %v746_v57, %v745_v47  ;;  %v1034_v43 = vadd.f32 %v1033_v18, %v1032_v62  ;;  %v737_v51 = vrot.slane %v736_v46, 4  ;;  %v1024_v11 = vrot.slane %v1023_v1, 4  ;;  %19060 = vst [vmem:[#allocation13_spill] sm:$0xff] %v15578_v52  ;;  %v15580_v2 = vpop.f32.mrb[38].mxu1  ;;  %v15589_v62 = vpop.f32.mrb[39].mxu0  ;;  %13615 = vmatmul.mubr.msk.f32.gmra.mrb[144].mxu0 %vm45_vm1, %v6723_v48  ;;  %v6725_v27 = vld [vmem:[%s19048_s0 + $0x590] sm:$0xff] }
 0x126   :  { %19061 = vst [vmem:[#allocation14_spill] sm:$0xff] %v15580_v2  ;;  %v728_v54 = vadd.f32 %v727_v49, %v726_v28  ;;  %v1015_v16 = vadd.f32 %v1014_v7, %v1013_v42  ;;  %v1387_v47 = vsel %vm23_vm2, %v1365_v58, 0.0  ;;  %v15591_v57 = vpop.f32.mrb[39].mxu1  ;;  %13607 = vmatmul.mubr.msk.f32.gmra.mrb[144].mxu1 %vm45_vm1, %v6364_v5  ;;  %13617 = vmatprep.mubr.msk.f32.mxu0 %vm45_vm1, %v6724_v6  ;;  %v1045_v14 = vrot.slane %v1044_v8, 4  ;;  %v7092_v48 = vld [vmem:[%s19048_s0 + $0x198] sm:$0xff]  ;;  %v6726_v49 = vld [vmem:[%s19048_s0 + $0x690] sm:$0xff] }
 0x127   :  { %v748_v18 = vrot.slane %v747_v13, 1  ;;  %v1035_v56 = vrot.slane %v1034_v43, 1  ;;  %v738_v2 = vadd.f32 %v737_v51, %v736_v46  ;;  %v1025_v52 = vadd.f32 %v1024_v11, %v1023_v1  ;;  %13637 = vmatprep.mubr.msk.f32.mxu1 %vm45_vm1, %v7091_v4  ;;  %v7093_v6 = vld [vmem:[%s19048_s0 + $0x298] sm:$0xff] }
 0x128   :  { %v776_v28 = vsel %vm394_vm6, %v728_v54, %v775_v30  ;;  %v15601_v42 = vsel %vm388_vm3, %v1022_v40, %v1015_v16  ;;  %v1388_v58 = vrot.slane %v1387_v47, 4  ;;  %v15616_v1 = vpop.f32.mrb[40].mxu0  ;;  %v1046_v11 = vadd.f32 %v1045_v14, %v1044_v8 }
 0x129   :  { %v15610_v7 = vadd.f32 %v748_v18, %v747_v13  ;;  %v15612_v46 = vadd.f32 %v1035_v56, %v1034_v43  ;;  %v739_v30 = vrot.slane %v738_v2, 2  ;;  %v777_v40 = vsel %vm396_vm7, %v15525_v36, %v776_v28  ;;  %19062 = vst [vmem:[#allocation15_spill] sm:$0xff] %v15616_v1  ;;  %v15618_v5 = vpop.f32.mrb[40].mxu1  ;;  %v15624_v54 = vpop.f32.mrb[41].mxu0  ;;  %13618 = vmatmul.mubr.msk.f32.gmra.mrb[146].mxu0 %vm45_vm1, %v6725_v27 }
 0x12a   :  { %19063 = vst [vmem:[#allocation16_spill] sm:$0xff] %v15618_v5  ;;  %v1026_v51 = vrot.slane %v1025_v52, 2  ;;  %v1389_v4 = vadd.f32 %v1388_v58, %v1387_v47  ;;  %v997_v13 = vmax.f32 %v15266_v0, 0.0  ;;  %19064 = vst [vmem:[#allocation17_spill] sm:$0xff] %v15624_v54  ;;  %v15626_v56 = vpop.f32.mrb[41].mxu1  ;;  %v1364_v43 = vmax.f32 %v15268_v31, 0.0  ;;  %13638 = vmatmul.mubr.msk.f32.vlgmr.msra.gmra.mrb[146].mxu1 %vm45_vm1, %v7092_v48  ;;  %13620 = vmatprep.mubr.msk.f32.mxu0 %vm45_vm1, %v6726_v49 }
 0x12b   :  { %19065 = vst [vmem:[#allocation18_spill] sm:$0xff] %v15626_v56  ;;  %v740_v36 = vadd.f32 %v739_v30, %v738_v2  ;;  %v1000_v16 = vmax.f32 %v15288_v34, 0.0  ;;  %v1367_v18 = vmax.f32 %v15290_v35, 0.0  ;;  %v6727_v0 = vld [vmem:[%s19048_s0 + $0x790] sm:$0xff]  ;;  %v1047_v47 = vrot.slane %v1046_v11, 2  ;;  %13640 = vmatprep.mubr.msk.f32.mxu1 %vm45_vm1, %v7093_v6  ;;  %v7094_v34 = vld [vmem:[%s19048_s0 + $0x398] sm:$0xff] }
 0x12c   :  { %v1027_v8 = vadd.f32 %v1026_v51, %v1025_v52  ;;  %v1390_v28 = vrot.slane %v1389_v4, 2  ;;  %v1037_v27 = vsel %vm23_vm2, %v997_v13, 0.0  ;;  %v15641_v31 = vld [vmem:[%s19049_s1] sm:$0xf]  ;;  %v6728_v35 = vld [vmem:[%s19048_s0 + $0x890] sm:$0xff]  ;;  %v7095_v52 = vld [vmem:[%s19048_s0 + $0x498] sm:$0xff] }
 0x12d   :  { %13688 = vmatpush3.msk.msra.mxu1 %vm94_vm0, %v15641_v31  ;;  %v741_v2 = vrot.slane %v740_v36, 1  ;;  %v1038_v14 = vrot.slane %v1037_v27, 4  ;;  %v1380_v58 = vsel %vm23_vm2, %v1364_v43, 0.0  ;;  %v1058_v48 = vsel %vm23_vm2, %v1000_v16, 0.0  ;;  %v15657_v49 = vpop.f32.mrb[42].mxu0  ;;  %v15659_v30 = vpop.f32.mrb[42].mxu1  ;;  %13621 = vmatmul.mubr.msk.f32.gmra.mrb[148].mxu0 %vm45_vm1, %v6727_v0 }
 0x12e   :  { %19066 = vst [vmem:[#allocation19_spill] sm:$0xff] %v15657_v49  ;;  %13739 = vmatprep.subr.msk.mxu1 %vm94_vm0, %v15641_v31  ;;  %v1028_v6 = vrot.slane %v1027_v8, 1  ;;  %v1048_v51 = vadd.f32 %v1047_v47, %v1046_v11  ;;  %v1391_v13 = vadd.f32 %v1390_v28, %v1389_v4  ;;  %v1381_v56 = vrot.slane %v1380_v58, 4  ;;  %v15663_v54 = vpop.f32.mrb[43].mxu0  ;;  %v15665_v5 = vpop.f32.mrb[43].mxu1  ;;  %13641 = vmatmul.mubr.msk.f32.gmra.mrb[148].mxu1 %vm45_vm1, %v7094_v34  ;;  %v6729_v11 = vld [vmem:[%s19048_s0 + $0x990] sm:$0xff] }
 0x12f   :  { %19067 = vst [vmem:[#allocation20_spill] sm:$0xff] %v15663_v54  ;;  %v742_v43 = vadd.f32 %v741_v2, %v740_v36  ;;  %v1039_v1 = vadd.f32 %v1038_v14, %v1037_v27  ;;  %v1059_v16 = vrot.slane %v1058_v48, 4  ;;  %v1401_v49 = vsel %vm23_vm2, %v1367_v18, 0.0  ;;  %13623 = vmatprep.mubr.msk.f32.mxu0 %vm45_vm1, %v6728_v35  ;;  %13643 = vmatprep.mubr.msk.f32.mxu1 %vm45_vm1, %v7095_v52  ;;  %v7096_v36 = vld [vmem:[%s19048_s0 + $0x598] sm:$0xff]  ;;  %v6730_v18 = vld [vmem:[%s19048_s0 + $0xa90] sm:$0xff] }
 0x130   :  { %v1029_v4 = vadd.f32 %v1028_v6, %v1027_v8  ;;  %v1049_v47 = vrot.slane %v1048_v51, 1  ;;  %v1392_v28 = vrot.slane %v1391_v13, 1  ;;  %v1382_v54 = vadd.f32 %v1381_v56, %v1380_v58  ;;  %v15682_v2 = vpop.f32.mrb[44].mxu0  ;;  %v7097_v56 = vld [vmem:[%s19048_s0 + $0x698] sm:$0xff] }
 0x131   :  { %v778_v0 = vsel %vm398_vm8, %v742_v43, %v777_v40  ;;  %v1040_v27 = vrot.slane %v1039_v1, 2  ;;  %v1060_v34 = vadd.f32 %v1059_v16, %v1058_v48  ;;  %v1402_v35 = vrot.slane %v1401_v49, 4  ;;  %19068 = vst [vmem:[#allocation21_spill] sm:$0xff] %v15682_v2  ;;  %v15684_v8 = vpop.f32.mrb[44].mxu1  ;;  %v15695_v6 = vpop.f32.mrb[45].mxu0  ;;  %13624 = vmatmul.mubr.msk.f32.gmra.mrb[150].mxu0 %vm45_vm1, %v6729_v11  ;;  %v6732_v11 = vld [vmem:[%s19048_s0 + $0xc90] sm:$0xff] }
 0x132   :  { %19069 = vst [vmem:[#allocation22_spill] sm:$0xff] %v15684_v8  ;;  %v15691_v52 = vsel %vm400_vm9, %v15610_v7, %v778_v0  ;;  %v1138_v14 = vsel %vm390_vm4, %v1029_v4, %v15601_v42  ;;  %v1050_v58 = vadd.f32 %v1049_v47, %v1048_v51  ;;  %v1393_v40 = vadd.f32 %v1392_v28, %v1391_v13  ;;  %v15697_v48 = vpop.f32.mrb[45].mxu1  ;;  %v6731_v42 = vld [vmem:[%s19048_s0 + $0xb90] sm:$0xff] }
 0x133   :  { %19070 = vst [vmem:[#allocation23_spill] sm:$0xff] %v15691_v52  ;;  %v1041_v43 = vadd.f32 %v1040_v27, %v1039_v1  ;;  %v1139_v16 = vsel %vm392_vm5, %v15612_v46, %v1138_v14  ;;  %v1383_v8 = vrot.slane %v1382_v54, 2  ;;  %v1061_v2 = vrot.slane %v1060_v34, 2  ;;  %13644 = vmatmul.mubr.msk.f32.gmra.mrb[150].mxu1 %vm45_vm1, %v7096_v36  ;;  %13626 = vmatprep.mubr.msk.f32.mxu0 %vm45_vm1, %v6730_v18  ;;  %v7098_v46 = vld [vmem:[%s19048_s0 + $0x798] sm:$0xff] }
 0x134   :  { %v1403_v7 = vadd.f32 %v1402_v35, %v1401_v49  ;;  %v999_v51 = vmax.f32 %v15298_v50, 0.0  ;;  %v1366_v13 = vmax.f32 %v15300_v53, 0.0  ;;  %v1002_v1 = vmax.f32 %v15322_v23, 0.0  ;;  %13646 = vmatprep.mubr.msk.f32.mxu1 %vm45_vm1, %v7097_v56  ;;  %v15720_v53 = vpop.f32.mrb[46].mxu0  ;;  %v7099_v23 = vld [vmem:[%s19048_s0 + $0x898] sm:$0xff]  ;;  %v6733_v56 = vld [vmem:[%s19048_s0 + $0xd90] sm:$0xff] }
 0x135   :  { %v1042_v4 = vrot.slane %v1041_v43, 1  ;;  %v1384_v47 = vadd.f32 %v1383_v8, %v1382_v54  ;;  %v1062_v28 = vadd.f32 %v1061_v2, %v1060_v34  ;;  %v1369_v49 = vmax.f32 %v15324_v12, 0.0  ;;  %v15718_v50 = vpop.f32.mrb[46].mxu1  ;;  %19072 = vst [vmem:[#allocation25_spill] sm:$0xff] %v15720_v53  ;;  %v15730_v54 = vpop.f32.mrb[47].mxu0  ;;  %13627 = vmatmul.mubr.msk.f32.gmra.mrb[152].mxu0 %vm45_vm1, %v6731_v42  ;;  %v6734_v42 = vld [vmem:[%s19048_s0 + $0xe90] sm:$0xff] }
 0x136   :  { %19071 = vst [vmem:[#allocation24_spill] sm:$0xff] %v15718_v50  ;;  %v1404_v36 = vrot.slane %v1403_v7, 2  ;;  %v1051_v18 = vsel %vm23_vm2, %v999_v51, 0.0  ;;  %v1394_v0 = vsel %vm23_vm2, %v1366_v13, 0.0  ;;  %v1072_v27 = vsel %vm23_vm2, %v1002_v1, 0.0  ;;  %v15728_v35 = vpop.f32.mrb[47].mxu1  ;;  %13629 = vmatprep.mubr.msk.f32.mxu0 %vm45_vm1, %v6732_v11 }
 0x137   :  { %19073 = vst [vmem:[#allocation26_spill] sm:$0xff] %v15728_v35  ;;  %19074 = vst [vmem:[#allocation27_spill] sm:$0xff] %v15730_v54  ;;  %v1043_v12 = vadd.f32 %v1042_v4, %v1041_v43  ;;  %v1385_v34 = vrot.slane %v1384_v47, 1  ;;  %v1063_v2 = vrot.slane %v1062_v28, 1  ;;  %v1052_v8 = vrot.slane %v1051_v18, 4  ;;  %13647 = vmatmul.mubr.msk.f32.gmra.mrb[152].mxu1 %vm45_vm1, %v7098_v46  ;;  %v7100_v43 = vld [vmem:[%s19048_s0 + $0x998] sm:$0xff] }
 0x138   :  { %v1405_v14 = vadd.f32 %v1404_v36, %v1403_v7  ;;  %v1395_v51 = vrot.slane %v1394_v0, 4  ;;  %v1073_v13 = vrot.slane %v1072_v27, 4  ;;  %v1415_v1 = vsel %vm23_vm2, %v1369_v49, 0.0  ;;  %13649 = vmatprep.mubr.msk.f32.mxu1 %vm45_vm1, %v7099_v23  ;;  %v15751_v52 = vpop.f32.mrb[48].mxu0  ;;  %v7101_v49 = vld [vmem:[%s19048_s0 + $0xa98] sm:$0xff] }
 0x139   :  { %v1140_v46 = vsel %vm394_vm6, %v1043_v12, %v1139_v16  ;;  %v1386_v11 = vadd.f32 %v1385_v34, %v1384_v47  ;;  %v15747_v4 = vadd.f32 %v1063_v2, %v1062_v28  ;;  %v1053_v7 = vadd.f32 %v1052_v8, %v1051_v18  ;;  %v15749_v36 = vpop.f32.mrb[48].mxu1  ;;  %v15759_v16 = vpop.f32.mrb[49].mxu0  ;;  %13630 = vmatmul.mubr.msk.f32.gmra.mrb[154].mxu0 %vm45_vm1, %v6733_v56 }
 0x13a   :  { %v1406_v23 = vrot.slane %v1405_v14, 1  ;;  %v1141_v54 = vsel %vm396_vm7, %v1050_v58, %v1140_v46  ;;  %v1396_v35 = vadd.f32 %v1395_v51, %v1394_v0  ;;  %v1074_v53 = vadd.f32 %v1073_v13, %v1072_v27  ;;  %v15757_v50 = vpop.f32.mrb[49].mxu1  ;;  %19076 = vst [vmem:[#allocation29_spill] sm:$0xff] %v15759_v16  ;;  %13632 = vmatprep.mubr.msk.f32.mxu0 %vm45_vm1, %v6734_v42  ;;  %v6735_v58 = vld [vmem:[%s19048_s0 + $0xf90] sm:$0xff] }
 0x13b   :  { %19075 = vst [vmem:[#allocation28_spill] sm:$0xff] %v15757_v50  ;;  %v1508_v47 = vsel %vm388_vm3, %v1393_v40, %v1386_v11  ;;  %v1054_v28 = vrot.slane %v1053_v7, 2  ;;  %v1416_v18 = vrot.slane %v1415_v1, 4  ;;  %v1001_v12 = vmax.f32 %v15333_v22, 0.0  ;;  %13650 = vmatmul.mubr.msk.f32.gmra.mrb[154].mxu1 %vm45_vm1, %v7100_v43  ;;  %v7102_v40 = vld [vmem:[%s19048_s0 + $0xb98] sm:$0xff]  ;;  %v7462_v22 = vld [vmem:[%s19048_s0 + $0xa0] sm:$0xff] }
 0x13c   :  { %v1407_v0 = vadd.f32 %v1406_v23, %v1405_v14  ;;  %v1397_v27 = vrot.slane %v1396_v35, 2  ;;  %v1075_v34 = vrot.slane %v1074_v53, 2  ;;  %v1368_v2 = vmax.f32 %v15335_v59, 0.0  ;;  %13652 = vmatprep.mubr.msk.f32.mxu1 %vm45_vm1, %v7101_v49  ;;  %v15779_v13 = vpop.f32.mrb[50].mxu0  ;;  %v7103_v59 = vld [vmem:[%s19048_s0 + $0xc98] sm:$0xff] }
 0x13d   :  { %v1055_v8 = vadd.f32 %v1054_v28, %v1053_v7  ;;  %v1417_v56 = vadd.f32 %v1416_v18, %v1415_v1  ;;  %v1065_v51 = vsel %vm23_vm2, %v1001_v12, 0.0  ;;  %v1004_v14 = vmax.f32 %v15353_v55, 0.0  ;;  %19077 = vst [vmem:[#allocation30_spill] sm:$0xff] %v15779_v13  ;;  %v15781_v43 = vpop.f32.mrb[50].mxu1  ;;  %v15787_v23 = vpop.f32.mrb[51].mxu0  ;;  %13633 = vmatmul.mubr.msk.f32.gmra.mrb[156].mxu0 %vm45_vm1, %v6735_v58 }
 0x13e   :  { %19078 = vst [vmem:[#allocation31_spill] sm:$0xff] %v15781_v43  ;;  %v1398_v42 = vadd.f32 %v1397_v27, %v1396_v35  ;;  %v1076_v46 = vadd.f32 %v1075_v34, %v1074_v53  ;;  %v1066_v11 = vrot.slane %v1065_v51, 4  ;;  %v1408_v49 = vsel %vm23_vm2, %v1368_v2, 0.0  ;;  %19079 = vst [vmem:[#allocation32_spill] sm:$0xff] %v15787_v23  ;;  %v15789_v1 = vpop.f32.mrb[51].mxu1  ;;  %13663 = vmatprep.mubr.msk.f32.mxu0 %vm45_vm1, %v7462_v22 }
 0x13f   :  { %19080 = vst [vmem:[#allocation33_spill] sm:$0xff] %v15789_v1  ;;  %v1056_v55 = vrot.slane %v1055_v8, 1  ;;  %v1418_v7 = vrot.slane %v1417_v56, 2  ;;  %v1409_v28 = vrot.slane %v1408_v49, 4  ;;  %v1086_v18 = vsel %vm23_vm2, %v1004_v14, 0.0  ;;  %13653 = vmatmul.mubr.msk.f32.gmra.mrb[156].mxu1 %vm45_vm1, %v7102_v40 }
 0x140   :  { %v1399_v35 = vrot.slane %v1398_v42, 1  ;;  %v1077_v53 = vrot.slane %v1076_v46, 1  ;;  %v1067_v12 = vadd.f32 %v1066_v11, %v1065_v51  ;;  %v1087_v27 = vrot.slane %v1086_v18, 4  ;;  %13655 = vmatprep.mubr.msk.f32.mxu1 %vm45_vm1, %v7103_v59  ;;  %v15797_v23 = vpop.f32.mrb[52].mxu0 }
 0x141   :  { %v1057_v34 = vadd.f32 %v1056_v55, %v1055_v8  ;;  %v1419_v2 = vadd.f32 %v1418_v7, %v1417_v56  ;;  %v1410_v1 = vadd.f32 %v1409_v28, %v1408_v49  ;;  %v1371_v58 = vmax.f32 %v15355_v24, 0.0  ;;  %v15799_v43 = vpop.f32.mrb[52].mxu1  ;;  %v15801_v22 = vpop.f32.mrb[53].mxu0  ;;  %v7104_v8 = vld [vmem:[%s19048_s0 + $0xd98] sm:$0xff]  ;;  %v7463_v24 = vld [vmem:[%s19048_s0 + $0x1a0] sm:$0xff] }
 0x142   :  { %v1400_v14 = vadd.f32 %v1399_v35, %v1398_v42  ;;  %v1078_v13 = vadd.f32 %v1077_v53, %v1076_v46  ;;  %v1068_v40 = vrot.slane %v1067_v12, 2  ;;  %v1088_v16 = vadd.f32 %v1087_v27, %v1086_v18  ;;  %v15803_v50 = vpop.f32.mrb[53].mxu1  ;;  %13664 = vmatmul.mubr.msk.f32.vlgmr.msra.gmra.mrb[158].mxu0 %vm45_vm1, %v7463_v24  ;;  %v7105_v35 = vld [vmem:[%s19048_s0 + $0xe98] sm:$0xff] }
 0x143   :  { %v1142_v56 = vsel %vm398_vm8, %v1057_v34, %v1141_v54  ;;  %v1420_v51 = vrot.slane %v1419_v2, 1  ;;  %v1411_v59 = vrot.slane %v1410_v1, 2  ;;  %v1429_v42 = vsel %vm23_vm2, %v1371_v58, 0.0  ;;  %13656 = vmatmul.mubr.msk.f32.gmra.mrb[158].mxu1 %vm45_vm1, %v7104_v8  ;;  %13714 = vmatpush3.msk.msra.mxu0 %vm94_vm0, %v15641_v31 }
 0x144   :  { %v15817_v46 = vsel %vm400_vm9, %v15747_v4, %v1142_v56  ;;  %v1509_v11 = vsel %vm390_vm4, %v1400_v14, %v1508_v47  ;;  %v1069_v49 = vadd.f32 %v1068_v40, %v1067_v12  ;;  %v1089_v55 = vrot.slane %v1088_v16, 2  ;;  %v7464_v4 = vld [vmem:[%s19048_s0 + $0x2a0] sm:$0xff]  ;;  %13765 = vmatprep.subr.msk.mxu0 %vm94_vm0, %v15641_v31  ;;  %v15833_v27 = vpop.f32.mrb[54].mxu0  ;;  %13658 = vmatprep.mubr.msk.f32.mxu1 %vm45_vm1, %v7105_v35  ;;  %v7106_v56 = vld [vmem:[%s19048_s0 + $0xf98] sm:$0xff] }
 0x145   :  { %19081 = vst [vmem:[#allocation34_spill] sm:$0xff] %v15817_v46  ;;  %v1421_v54 = vadd.f32 %v1420_v51, %v1419_v2  ;;  %v1412_v7 = vadd.f32 %v1411_v59, %v1410_v1  ;;  %v1510_v28 = vsel %vm392_vm5, %v1407_v0, %v1509_v11  ;;  %v1430_v18 = vrot.slane %v1429_v42, 4  ;;  %v15835_v0 = vpop.f32.mrb[54].mxu1  ;;  %13666 = vmatprep.mubr.msk.f32.mxu0 %vm45_vm1, %v7464_v4  ;;  %v15841_v40 = vpop.f32.mrb[55].mxu0 }
 0x146   :  { %v1070_v47 = vrot.slane %v1069_v49, 1  ;;  %v1090_v53 = vadd.f32 %v1089_v55, %v1088_v16  ;;  %v1003_v12 = vmax.f32 %v15362_v61, 0.0  ;;  %v1370_v1 = vmax.f32 %v15364_v37, 0.0  ;;  %v15845_v24 = vpop.f32.mrb[55].mxu1 }
 0x147   :  { %v1413_v34 = vrot.slane %v1412_v7, 1  ;;  %v1431_v2 = vadd.f32 %v1430_v18, %v1429_v42  ;;  %v1006_v58 = vmax.f32 %v15384_v15, 0.0  ;;  %v1373_v14 = vmax.f32 %v15386_v26, 0.0  ;;  %v7465_v15 = vld [vmem:[%s19048_s0 + $0x3a0] sm:$0xff]  ;;  %13659 = vmatmul.mubr.msk.f32.gmra.mrb[160].mxu1 %vm45_vm1, %v7106_v56 }
 0x148   :  { %v1071_v16 = vadd.f32 %v1070_v47, %v1069_v49  ;;  %v1091_v61 = vrot.slane %v1090_v53, 1  ;;  %v1079_v37 = vsel %vm23_vm2, %v1003_v12, 0.0  ;;  %v1422_v8 = vsel %vm23_vm2, %v1370_v1, 0.0  ;;  %13667 = vmatmul.mubr.msk.f32.gmra.mrb[160].mxu0 %vm45_vm1, %v7465_v15  ;;  %v7466_v12 = vld [vmem:[%s19048_s0 + $0x4a0] sm:$0xff]  ;;  %v7833_v1 = vld [vmem:[%s19048_s0 + $0xa8] sm:$0xff] }
 0x149   :  { %v1414_v51 = vadd.f32 %v1413_v34, %v1412_v7  ;;  %v1432_v26 = vrot.slane %v1431_v2, 2  ;;  %v1080_v59 = vrot.slane %v1079_v37, 4  ;;  %v1423_v42 = vrot.slane %v1422_v8, 4  ;;  %13669 = vmatprep.mubr.msk.f32.mxu0 %vm45_vm1, %v7466_v12  ;;  %13689 = vmatprep.mubr.msk.f32.mxu1 %vm45_vm1, %v7833_v1 }
 0x14a   :  { %v1144_v11 = vsel %vm388_vm3, %v1078_v13, %v1071_v16  ;;  %v15856_v49 = vadd.f32 %v1091_v61, %v1090_v53  ;;  %v1100_v55 = vsel %vm23_vm2, %v1006_v58, 0.0  ;;  %v1443_v18 = vsel %vm23_vm2, %v1373_v14, 0.0  ;;  %v15869_v14 = vpop.f32.mrb[56].mxu0 }
 0x14b   :  { %v1511_v35 = vsel %vm394_vm6, %v1414_v51, %v1510_v28  ;;  %v1433_v4 = vadd.f32 %v1432_v26, %v1431_v2  ;;  %v1081_v47 = vadd.f32 %v1080_v59, %v1079_v37  ;;  %v1424_v7 = vadd.f32 %v1423_v42, %v1422_v8  ;;  %19082 = vst [vmem:[#allocation35_spill] sm:$0xff] %v15869_v14  ;;  %v15871_v28 = vpop.f32.mrb[56].mxu1  ;;  %v15876_v8 = vpop.f32.mrb[57].mxu0 }
 0x14c   :  { %v1512_v13 = vsel %vm396_vm7, %v1421_v54, %v1511_v35  ;;  %v1101_v53 = vrot.slane %v1100_v55, 4  ;;  %v1444_v34 = vrot.slane %v1443_v18, 4  ;;  %v1005_v58 = vmax.f32 %v15396_v32, 0.0  ;;  %19083 = vst [vmem:[#allocation36_spill] sm:$0xff] %v15871_v28  ;;  %19084 = vst [vmem:[#allocation37_spill] sm:$0xff] %v15876_v8 }
 0x14d   :  { %v1434_v2 = vrot.slane %v1433_v4, 1  ;;  %v1082_v16 = vrot.slane %v1081_v47, 2  ;;  %v1425_v61 = vrot.slane %v1424_v7, 2  ;;  %v1372_v37 = vmax.f32 %v15398_v33, 0.0 }
 0x14e   :  { %v1102_v54 = vadd.f32 %v1101_v53, %v1100_v55  ;;  %v1445_v56 = vadd.f32 %v1444_v34, %v1443_v18  ;;  %v1093_v15 = vsel %vm23_vm2, %v1005_v58, 0.0  ;;  %v1008_v32 = vmax.f32 %v15418_v19, 0.0 }
 0x14f   :  { %v1435_v51 = vadd.f32 %v1434_v2, %v1433_v4  ;;  %v1083_v26 = vadd.f32 %v1082_v16, %v1081_v47  ;;  %v1426_v59 = vadd.f32 %v1425_v61, %v1424_v7  ;;  %v1094_v42 = vrot.slane %v1093_v15, 4 }
 0x150   :  { %v1103_v35 = vrot.slane %v1102_v54, 2  ;;  %v1446_v12 = vrot.slane %v1445_v56, 2  ;;  %v1436_v1 = vsel %vm23_vm2, %v1372_v37, 0.0  ;;  %v1114_v46 = vsel %vm23_vm2, %v1008_v32, 0.0  ;;  %v15884_v37 = vpop.f32.mrb[57].mxu1 }
 0x151   :  { %v1084_v28 = vrot.slane %v1083_v26, 1  ;;  %v1427_v33 = vrot.slane %v1426_v59, 1  ;;  %v1095_v14 = vadd.f32 %v1094_v42, %v1093_v15  ;;  %v1437_v8 = vrot.slane %v1436_v1, 4  ;;  %v7467_v15 = vld [vmem:[%s19048_s0 + $0x5a0] sm:$0xff] }
 0x152   :  { %v1104_v55 = vadd.f32 %v1103_v35, %v1102_v54  ;;  %v1447_v18 = vadd.f32 %v1446_v12, %v1445_v56  ;;  %v1115_v53 = vrot.slane %v1114_v46, 4  ;;  %v1375_v34 = vmax.f32 %v15420_v39, 0.0  ;;  %v7834_v54 = vld [vmem:[%s19048_s0 + $0x1a8] sm:$0xff]  ;;  %13670 = vmatmul.mubr.msk.f32.gmra.mrb[162].mxu0 %vm45_vm1, %v7467_v15  ;;  %v7468_v35 = vld [vmem:[%s19048_s0 + $0x6a0] sm:$0xff] }
 0x153   :  { %v1085_v19 = vadd.f32 %v1084_v28, %v1083_v26  ;;  %v1428_v4 = vadd.f32 %v1427_v33, %v1426_v59  ;;  %v1096_v47 = vrot.slane %v1095_v14, 2  ;;  %v1438_v7 = vadd.f32 %v1437_v8, %v1436_v1  ;;  %13690 = vmatmul.mubr.msk.f32.vlgmr.msra.gmra.mrb[162].mxu1 %vm45_vm1, %v7834_v54  ;;  %13672 = vmatprep.mubr.msk.f32.mxu0 %vm45_vm1, %v7468_v35 }
 0x154   :  { %v1105_v58 = vrot.slane %v1104_v55, 1  ;;  %v1448_v2 = vrot.slane %v1447_v18, 1  ;;  %v1116_v16 = vadd.f32 %v1115_v53, %v1114_v46  ;;  %v1457_v61 = vsel %vm23_vm2, %v1375_v34, 0.0  ;;  %13740 = vmatpush3.msk.msra.mxu1 %vm94_vm0, %v15641_v31 }
 0x155   :  { %v1145_v39 = vsel %vm390_vm4, %v1085_v19, %v1144_v11  ;;  %v1513_v28 = vsel %vm398_vm8, %v1428_v4, %v1512_v13  ;;  %v1097_v8 = vadd.f32 %v1096_v47, %v1095_v14  ;;  %v1439_v56 = vrot.slane %v1438_v7, 2  ;;  %13791 = vmatprep.subr.msk.mxu1 %vm94_vm0, %v15641_v31 }
 0x156   :  { %v15897_v46 = vsel %vm400_vm9, %v1435_v51, %v1513_v28  ;;  %v1106_v32 = vadd.f32 %v1105_v58, %v1104_v55  ;;  %v1449_v26 = vadd.f32 %v1448_v2, %v1447_v18  ;;  %v1146_v59 = vsel %vm392_vm5, %v15856_v49, %v1145_v39  ;;  %v7835_v51 = vld [vmem:[%s19048_s0 + $0x2a8] sm:$0xff]  ;;  %v15915_v55 = vpop.f32.mrb[58].mxu0  ;;  %v15917_v18 = vpop.f32.mrb[58].mxu1 }
 0x157   :  { %19085 = vst [vmem:[#allocation38_spill] sm:$0xff] %v15897_v46  ;;  %v1098_v11 = vrot.slane %v1097_v8, 1  ;;  %v1440_v42 = vadd.f32 %v1439_v56, %v1438_v7  ;;  %v1117_v13 = vrot.slane %v1116_v16, 2  ;;  %v1458_v14 = vrot.slane %v1457_v61, 4  ;;  %13692 = vmatprep.mubr.msk.f32.mxu1 %vm45_vm1, %v7835_v51  ;;  %v15921_v4 = vpop.f32.mrb[59].mxu0  ;;  %v15933_v58 = vpop.f32.mrb[59].mxu1 }
 0x158   :  { %v1007_v49 = vmax.f32 %v15425_v20, 0.0  ;;  %v1374_v12 = vmax.f32 %v15427_v21, 0.0  ;;  %v1377_v1 = vmax.f32 %v15448_v3, 0.0  ;;  %v1736_v33 = vmax.f32 %v15450_v38, 0.0  ;;  %v7469_v20 = vld [vmem:[%s19048_s0 + $0x7a0] sm:$0xff]  ;;  %v7836_v21 = vld [vmem:[%s19048_s0 + $0x3a8] sm:$0xff] }
 0x159   :  { %v1099_v53 = vadd.f32 %v1098_v11, %v1097_v8  ;;  %v1441_v34 = vrot.slane %v1440_v42, 1  ;;  %v1118_v19 = vadd.f32 %v1117_v13, %v1116_v16  ;;  %v1459_v31 = vadd.f32 %v1458_v14, %v1457_v61  ;;  %13673 = vmatmul.mubr.msk.f32.gmra.mrb[164].mxu0 %vm45_vm1, %v7469_v20  ;;  %13693 = vmatmul.mubr.msk.f32.gmra.mrb[164].mxu1 %vm45_vm1, %v7836_v21  ;;  %v7470_v56 = vld [vmem:[%s19048_s0 + $0x8a0] sm:$0xff]  ;;  %v7837_v11 = vld [vmem:[%s19048_s0 + $0x4a8] sm:$0xff]  ;;  %v15946_v35 = vpop.f32.mrb[60].mxu0  ;;  %v15948_v51 = vpop.f32.mrb[60].mxu1 }
 0x15a   :  { %v1107_v3 = vsel %vm23_vm2, %v1007_v49, 0.0  ;;  %v1450_v38 = vsel %vm23_vm2, %v1374_v12, 0.0  ;;  %v1471_v47 = vsel %vm23_vm2, %v1377_v1, 0.0  ;;  %v1758_v7 = vsel %vm23_vm2, %v1736_v33, 0.0  ;;  %19086 = vst [vmem:[#allocation39_spill] sm:$0xff] %v15948_v51  ;;  %13675 = vmatprep.mubr.msk.f32.mxu0 %vm45_vm1, %v7470_v56  ;;  %13695 = vmatprep.mubr.msk.f32.mxu1 %vm45_vm1, %v7837_v11  ;;  %v15953_v33 = vpop.f32.mrb[61].mxu0 }
 0x15b   :  { %v1147_v2 = vsel %vm394_vm6, %v1099_v53, %v1146_v59  ;;  %v1442_v16 = vadd.f32 %v1441_v34, %v1440_v42  ;;  %v1119_v61 = vrot.slane %v1118_v19, 1  ;;  %v1460_v15 = vrot.slane %v1459_v31, 2  ;;  %19087 = vst [vmem:[#allocation40_spill] sm:$0xff] %v15953_v33  ;;  %v19089_v56 = vld [vmem:[#allocation9_spill] sm:$0xff] }
 0x15c   :  { %v1108_v54 = vrot.slane %v1107_v3, 4  ;;  %v1148_v39 = vsel %vm396_vm7, %v1106_v32, %v1147_v2  ;;  %v1451_v28 = vrot.slane %v1450_v38, 4  ;;  %v1472_v8 = vrot.slane %v1471_v47, 4 }
 0x15d   :  { %v1515_v13 = vsel %vm388_vm3, %v1449_v26, %v1442_v16  ;;  %v1120_v14 = vadd.f32 %v1119_v61, %v1118_v19  ;;  %v1461_v59 = vadd.f32 %v1460_v15, %v1459_v31  ;;  %v1759_v42 = vrot.slane %v1758_v7, 4  ;;  %v19088_v19 = vld [vmem:[#allocation8_spill] sm:$0xff] }
 0x15e   :  { %v1109_v32 = vadd.f32 %v1108_v54, %v1107_v3  ;;  %v1452_v49 = vadd.f32 %v1451_v28, %v1450_v38  ;;  %v1473_v12 = vadd.f32 %v1472_v8, %v1471_v47  ;;  %v1376_v1 = vmax.f32 %v15458_v44, 0.0 }
 0x15f   :  { %v1462_v53 = vrot.slane %v1461_v59, 1  ;;  %v1760_v26 = vadd.f32 %v1759_v42, %v1758_v7  ;;  %v1735_v34 = vmax.f32 %v15460_v17, 0.0  ;;  %v1379_v31 = vmax.f32 %v19088_v19, 0.0 }
 0x160   :  { %v1110_v20 = vrot.slane %v1109_v32, 2  ;;  %v1453_v21 = vrot.slane %v1452_v49, 2  ;;  %v1474_v2 = vrot.slane %v1473_v12, 2  ;;  %v1464_v16 = vsel %vm23_vm2, %v1376_v1, 0.0 }
 0x161   :  { %v1463_v61 = vadd.f32 %v1462_v53, %v1461_v59  ;;  %v1761_v15 = vrot.slane %v1760_v26, 2  ;;  %v1465_v3 = vrot.slane %v1464_v16, 4  ;;  %v1751_v38 = vsel %vm23_vm2, %v1735_v34, 0.0  ;;  %v15962_v34 = vpop.f32.mrb[61].mxu1 }
 0x162   :  { %v1111_v47 = vadd.f32 %v1110_v20, %v1109_v32  ;;  %v1454_v44 = vadd.f32 %v1453_v21, %v1452_v49  ;;  %v1475_v54 = vadd.f32 %v1474_v2, %v1473_v12  ;;  %v1752_v28 = vrot.slane %v1751_v38, 4  ;;  %v7471_v32 = vld [vmem:[%s19048_s0 + $0x9a0] sm:$0xff]  ;;  %v7838_v20 = vld [vmem:[%s19048_s0 + $0x5a8] sm:$0xff] }
 0x163   :  { %v1762_v8 = vadd.f32 %v1761_v15, %v1760_v26  ;;  %v1466_v7 = vadd.f32 %v1465_v3, %v1464_v16  ;;  %v1485_v17 = vsel %vm23_vm2, %v1379_v31, 0.0  ;;  %v1738_v11 = vmax.f32 %v19089_v56, 0.0  ;;  %13676 = vmatmul.mubr.msk.f32.gmra.mrb[166].mxu0 %vm45_vm1, %v7471_v32  ;;  %13696 = vmatmul.mubr.msk.f32.gmra.mrb[166].mxu1 %vm45_vm1, %v7838_v20  ;;  %v15985_v56 = vpop.f32.mrb[62].mxu1 }
 0x164   :  { %v1112_v42 = vrot.slane %v1111_v47, 1  ;;  %v1455_v19 = vrot.slane %v1454_v44, 1  ;;  %v1476_v46 = vrot.slane %v1475_v54, 1  ;;  %v1753_v33 = vadd.f32 %v1752_v28, %v1751_v38  ;;  %v7839_v28 = vld [vmem:[%s19048_s0 + $0x6a8] sm:$0xff] }
 0x165   :  { %v1763_v1 = vrot.slane %v1762_v8, 1  ;;  %v1467_v59 = vrot.slane %v1466_v7, 2  ;;  %v1486_v53 = vrot.slane %v1485_v17, 4  ;;  %v1772_v51 = vsel %vm23_vm2, %v1738_v11, 0.0  ;;  %13698 = vmatprep.mubr.msk.f32.mxu1 %vm45_vm1, %v7839_v28 }
 0x166   :  { %v1113_v49 = vadd.f32 %v1112_v42, %v1111_v47  ;;  %v1456_v12 = vadd.f32 %v1455_v19, %v1454_v44  ;;  %v1477_v26 = vadd.f32 %v1476_v46, %v1475_v54  ;;  %v1754_v31 = vrot.slane %v1753_v33, 2  ;;  %v19090_v44 = vld [vmem:[#allocation10_spill] sm:$0xff]  ;;  %v7472_v54 = vld [vmem:[%s19048_s0 + $0xaa0] sm:$0xff] }
 0x167   :  { %v1764_v21 = vadd.f32 %v1763_v1, %v1762_v8  ;;  %v1468_v2 = vadd.f32 %v1467_v59, %v1466_v7  ;;  %v1487_v16 = vadd.f32 %v1486_v53, %v1485_v17  ;;  %v1773_v15 = vrot.slane %v1772_v51, 4  ;;  %13678 = vmatprep.mubr.msk.f32.mxu0 %vm45_vm1, %v7472_v54  ;;  %v19092_v19 = vld [vmem:[#allocation11_spill] sm:$0xff] }
 0x168   :  { %v1149_v3 = vsel %vm398_vm8, %v1113_v49, %v1148_v39  ;;  %v1516_v38 = vsel %vm390_vm4, %v1456_v12, %v1515_v13  ;;  %v1755_v47 = vadd.f32 %v1754_v31, %v1753_v33  ;;  %v1378_v46 = vmax.f32 %v19090_v44, 0.0  ;;  %v15987_v13 = vpop.f32.mrb[62].mxu0  ;;  %v7473_v12 = vld [vmem:[%s19048_s0 + $0xba0] sm:$0xff] }
 0x169   :  { %v15982_v8 = vsel %vm400_vm9, %v1120_v14, %v1149_v3  ;;  %v1469_v7 = vrot.slane %v1468_v2, 1  ;;  %v1517_v17 = vsel %vm392_vm5, %v1463_v61, %v1516_v38  ;;  %v1488_v39 = vrot.slane %v1487_v16, 2  ;;  %v15993_v14 = vpop.f32.mrb[63].mxu1  ;;  %v15996_v49 = vpop.f32.mrb[63].mxu0  ;;  %13679 = vmatmul.mubr.msk.f32.gmra.mrb[168].mxu0 %vm45_vm1, %v7473_v12 }
 0x16a   :  { %19091 = vst [vmem:[#allocation8_spill] sm:$0xff] %v15982_v8  ;;  %v1756_v33 = vrot.slane %v1755_v47, 1  ;;  %v1774_v11 = vadd.f32 %v1773_v15, %v1772_v51  ;;  %v1478_v42 = vsel %vm23_vm2, %v1378_v46, 0.0  ;;  %v1737_v1 = vmax.f32 %v19092_v19, 0.0  ;;  %v7840_v51 = vld [vmem:[%s19048_s0 + $0x7a8] sm:$0xff]  ;;  %v16014_v19 = vpop.f32.mrb[64].mxu0 }
 0x16b   :  { %v1470_v59 = vadd.f32 %v1469_v7, %v1468_v2  ;;  %v1489_v53 = vadd.f32 %v1488_v39, %v1487_v16  ;;  %v1479_v61 = vrot.slane %v1478_v42, 4  ;;  %v1740_v32 = vmax.f32 %v15508_v9, 0.0  ;;  %13699 = vmatmul.mubr.msk.f32.gmra.mrb[168].mxu1 %vm45_vm1, %v7840_v51 }
 0x16c   :  { %v1757_v31 = vadd.f32 %v1756_v33, %v1755_v47  ;;  %v1775_v20 = vrot.slane %v1774_v11, 2  ;;  %v1765_v15 = vsel %vm23_vm2, %v1737_v1, 0.0  ;;  %v2107_v2 = vmax.f32 %v15510_v63, 0.0  ;;  %v16012_v33 = vpop.f32.mrb[64].mxu1 }
 0x16d   :  { %v1518_v9 = vsel %vm394_vm6, %v1470_v59, %v1517_v17  ;;  %v1490_v16 = vrot.slane %v1489_v53, 1  ;;  %v1480_v3 = vadd.f32 %v1479_v61, %v1478_v42  ;;  %v1766_v38 = vrot.slane %v1765_v15, 4 }
 0x16e   :  { %v1879_v44 = vsel %vm388_vm3, %v1764_v21, %v1757_v31  ;;  %v1776_v46 = vadd.f32 %v1775_v20, %v1774_v11  ;;  %v1519_v54 = vsel %vm396_vm7, %v1477_v26, %v1518_v9  ;;  %v1786_v47 = vsel %vm23_vm2, %v1740_v32, 0.0  ;;  %v7841_v32 = vld [vmem:[%s19048_s0 + $0x8a8] sm:$0xff]  ;;  %v16030_v9 = vpop.f32.mrb[65].mxu1 }
 0x16f   :  { %v1491_v28 = vadd.f32 %v1490_v16, %v1489_v53  ;;  %v1481_v7 = vrot.slane %v1480_v3, 2  ;;  %v1767_v39 = vadd.f32 %v1766_v38, %v1765_v15  ;;  %v1787_v63 = vrot.slane %v1786_v47, 4  ;;  %v7474_v53 = vld [vmem:[%s19048_s0 + $0xca0] sm:$0xff]  ;;  %13701 = vmatprep.mubr.msk.f32.mxu1 %vm45_vm1, %v7841_v32 }
 0x170   :  { %v1777_v1 = vrot.slane %v1776_v46, 1  ;;  %v2129_v17 = vsel %vm23_vm2, %v2107_v2, 0.0  ;;  %v1739_v42 = vmax.f32 %v15517_v45, 0.0  ;;  %v2106_v21 = vmax.f32 %v15519_v29, 0.0  ;;  %13681 = vmatprep.mubr.msk.f32.mxu0 %vm45_vm1, %v7474_v53 }
 0x171   :  { %v1482_v11 = vadd.f32 %v1481_v7, %v1480_v3  ;;  %v1768_v59 = vrot.slane %v1767_v39, 2  ;;  %v1788_v26 = vadd.f32 %v1787_v63, %v1786_v47  ;;  %v2130_v61 = vrot.slane %v2129_v17, 4 }
 0x172   :  { %v1778_v12 = vadd.f32 %v1777_v1, %v1776_v46  ;;  %v1779_v51 = vsel %vm23_vm2, %v1739_v42, 0.0  ;;  %v2122_v31 = vsel %vm23_vm2, %v2106_v21, 0.0  ;;  %v1742_v45 = vmax.f32 %v15546_v10, 0.0 }
 0x173   :  { %v1483_v29 = vrot.slane %v1482_v11, 1  ;;  %v1769_v20 = vadd.f32 %v1768_v59, %v1767_v39  ;;  %v1789_v15 = vrot.slane %v1788_v26, 2  ;;  %v2131_v2 = vadd.f32 %v2130_v61, %v2129_v17  ;;  %v7475_v39 = vld [vmem:[%s19048_s0 + $0xda0] sm:$0xff]  ;;  %v7842_v17 = vld [vmem:[%s19048_s0 + $0x9a8] sm:$0xff] }
 0x174   :  { %v1780_v16 = vrot.slane %v1779_v51, 4  ;;  %v2123_v3 = vrot.slane %v2122_v31, 4  ;;  %v1800_v38 = vsel %vm23_vm2, %v1742_v45, 0.0  ;;  %v2109_v46 = vmax.f32 %v15548_v25, 0.0  ;;  %13682 = vmatmul.mubr.msk.f32.gmra.mrb[170].mxu0 %vm45_vm1, %v7475_v39  ;;  %13702 = vmatmul.mubr.msk.f32.gmra.mrb[170].mxu1 %vm45_vm1, %v7842_v17  ;;  %v19094_v17 = vld [vmem:[#allocation13_spill] sm:$0xff] }
 0x175   :  { %v1484_v47 = vadd.f32 %v1483_v29, %v1482_v11  ;;  %v1770_v7 = vrot.slane %v1769_v20, 1  ;;  %v1790_v63 = vadd.f32 %v1789_v15, %v1788_v26  ;;  %v2132_v10 = vrot.slane %v2131_v2, 2  ;;  %v16042_v26 = vpop.f32.mrb[65].mxu0 }
 0x176   :  { %v1781_v1 = vadd.f32 %v1780_v16, %v1779_v51  ;;  %v2124_v42 = vadd.f32 %v2123_v3, %v2122_v31  ;;  %v1801_v21 = vrot.slane %v1800_v38, 4  ;;  %v2143_v53 = vsel %vm23_vm2, %v2109_v46, 0.0 }
 0x177   :  { %v1520_v59 = vsel %vm398_vm8, %v1484_v47, %v1519_v54  ;;  %v1771_v25 = vadd.f32 %v1770_v7, %v1769_v20  ;;  %v1791_v11 = vrot.slane %v1790_v63, 1  ;;  %v2133_v61 = vadd.f32 %v2132_v10, %v2131_v2  ;;  %v7476_v20 = vld [vmem:[%s19048_s0 + $0xea0] sm:$0xff]  ;;  %v7843_v2 = vld [vmem:[%s19048_s0 + $0xaa8] sm:$0xff]  ;;  %v16057_v7 = vpop.f32.mrb[66].mxu0 }
 0x178   :  { %v16047_v32 = vsel %vm400_vm9, %v1491_v28, %v1520_v59  ;;  %v1782_v51 = vrot.slane %v1781_v1, 2  ;;  %v2125_v31 = vrot.slane %v2124_v42, 2  ;;  %v1802_v45 = vadd.f32 %v1801_v21, %v1800_v38  ;;  %v16059_v38 = vpop.f32.mrb[66].mxu1  ;;  %13684 = vmatprep.mubr.msk.f32.mxu0 %vm45_vm1, %v7476_v20  ;;  %13704 = vmatprep.mubr.msk.f32.mxu1 %vm45_vm1, %v7843_v2  ;;  %v16065_v39 = vpop.f32.mrb[67].mxu0 }
 0x179   :  { %19093 = vst [vmem:[#allocation9_spill] sm:$0xff] %v16047_v32  ;;  %v1880_v29 = vsel %vm390_vm4, %v1771_v25, %v1879_v44  ;;  %v1792_v15 = vadd.f32 %v1791_v11, %v1790_v63  ;;  %v2134_v16 = vrot.slane %v2133_v61, 1  ;;  %v2144_v54 = vrot.slane %v2143_v53, 4  ;;  %v16086_v32 = vpop.f32.mrb[68].mxu0 }
 0x17a   :  { %v1783_v3 = vadd.f32 %v1782_v51, %v1781_v1  ;;  %v1881_v28 = vsel %vm392_vm5, %v1778_v12, %v1880_v29  ;;  %v2126_v46 = vadd.f32 %v2125_v31, %v2124_v42  ;;  %v1803_v47 = vrot.slane %v1802_v45, 2  ;;  %v19095_v31 = vld [vmem:[#allocation14_spill] sm:$0xff] }
 0x17b   :  { %v2135_v44 = vadd.f32 %v2134_v16, %v2133_v61  ;;  %v2145_v63 = vadd.f32 %v2144_v54, %v2143_v53  ;;  %v1741_v10 = vmax.f32 %v15555_v60, 0.0  ;;  %v2108_v21 = vmax.f32 %v15557_v41, 0.0  ;;  %v16071_v61 = vpop.f32.mrb[67].mxu1  ;;  %v7477_v60 = vld [vmem:[%s19048_s0 + $0xfa0] sm:$0xff] }
 0x17c   :  { %v1784_v1 = vrot.slane %v1783_v3, 1  ;;  %v2127_v12 = vrot.slane %v2126_v46, 1  ;;  %v1804_v42 = vadd.f32 %v1803_v47, %v1802_v45  ;;  %v1744_v59 = vmax.f32 %v19094_v17, 0.0  ;;  %13685 = vmatmul.mubr.msk.f32.gmra.mrb[172].mxu0 %vm45_vm1, %v7477_v60  ;;  %v7844_v45 = vld [vmem:[%s19048_s0 + $0xba8] sm:$0xff] }
 0x17d   :  { %v2146_v25 = vrot.slane %v2145_v63, 2  ;;  %v1793_v11 = vsel %vm23_vm2, %v1741_v10, 0.0  ;;  %v2136_v51 = vsel %vm23_vm2, %v2108_v21, 0.0  ;;  %v2111_v29 = vmax.f32 %v19095_v31, 0.0  ;;  %13705 = vmatmul.mubr.msk.f32.gmra.mrb[172].mxu1 %vm45_vm1, %v7844_v45 }
 0x17e   :  { %v1785_v41 = vadd.f32 %v1784_v1, %v1783_v3  ;;  %v2128_v53 = vadd.f32 %v2127_v12, %v2126_v46  ;;  %v1805_v16 = vrot.slane %v1804_v42, 1  ;;  %v1794_v54 = vrot.slane %v1793_v11, 4 }
 0x17f   :  { %v2147_v20 = vadd.f32 %v2146_v25, %v2145_v63  ;;  %v2137_v2 = vrot.slane %v2136_v51, 4  ;;  %v1814_v47 = vsel %vm23_vm2, %v1744_v59, 0.0  ;;  %v2157_v10 = vsel %vm23_vm2, %v2111_v29, 0.0  ;;  %v16088_v63 = vpop.f32.mrb[68].mxu1 }
 0x180   :  { %v1882_v21 = vsel %vm394_vm6, %v1785_v41, %v1881_v28  ;;  %v2250_v3 = vsel %vm388_vm3, %v2135_v44, %v2128_v53  ;;  %v1806_v46 = vadd.f32 %v1805_v16, %v1804_v42  ;;  %v1795_v1 = vadd.f32 %v1794_v54, %v1793_v11  ;;  %19096 = vst [vmem:[#allocation10_spill] sm:$0xff] %v16088_v63  ;;  %v7845_v28 = vld [vmem:[%s19048_s0 + $0xca8] sm:$0xff]  ;;  %v16103_v54 = vpop.f32.mrb[69].mxu0 }
 0x181   :  { %v2148_v12 = vrot.slane %v2147_v20, 1  ;;  %v1883_v17 = vsel %vm396_vm7, %v1792_v15, %v1882_v21  ;;  %v2138_v31 = vadd.f32 %v2137_v2, %v2136_v51  ;;  %v1815_v60 = vrot.slane %v1814_v47, 4  ;;  %v8204_v15 = vld [vmem:[%s19048_s0 + $0xb0] sm:$0xff]  ;;  %v19097_v51 = vld [vmem:[#allocation15_spill] sm:$0xff]  ;;  %13707 = vmatprep.mubr.msk.f32.mxu1 %vm45_vm1, %v7845_v28  ;;  %19098 = vst [vmem:[#allocation11_spill] sm:$0xff] %v16103_v54  ;;  %v16108_v54 = vpop.f32.mrb[69].mxu1 }
 0x182   :  { %v1796_v59 = vrot.slane %v1795_v1, 2  ;;  %v2158_v25 = vrot.slane %v2157_v10, 4  ;;  %v1743_v29 = vmax.f32 %v15589_v62, 0.0  ;;  %v2110_v45 = vmax.f32 %v15591_v57, 0.0  ;;  %13715 = vmatprep.mubr.msk.f32.mxu0 %vm45_vm1, %v8204_v15 }
 0x183   :  { %v2149_v44 = vadd.f32 %v2148_v12, %v2147_v20  ;;  %v2139_v42 = vrot.slane %v2138_v31, 2  ;;  %v1816_v11 = vadd.f32 %v1815_v60, %v1814_v47  ;;  %v1746_v41 = vmax.f32 %v19097_v51, 0.0  ;;  %v19099_v51 = vld [vmem:[#allocation16_spill] sm:$0xff] }
 0x184   :  { %v1797_v62 = vadd.f32 %v1796_v59, %v1795_v1  ;;  %v2159_v53 = vadd.f32 %v2158_v25, %v2157_v10  ;;  %v1807_v57 = vsel %vm23_vm2, %v1743_v29, 0.0  ;;  %v2150_v16 = vsel %vm23_vm2, %v2110_v45, 0.0 }
 0x185   :  { %v2140_v2 = vadd.f32 %v2139_v42, %v2138_v31  ;;  %v1817_v21 = vrot.slane %v1816_v11, 2  ;;  %v1808_v8 = vrot.slane %v1807_v57, 4  ;;  %v2151_v20 = vrot.slane %v2150_v16, 4  ;;  %v7846_v31 = vld [vmem:[%s19048_s0 + $0xda8] sm:$0xff]  ;;  %v8205_v42 = vld [vmem:[%s19048_s0 + $0x1b0] sm:$0xff] }
 0x186   :  { %v1798_v12 = vrot.slane %v1797_v62, 1  ;;  %v2160_v47 = vrot.slane %v2159_v53, 2  ;;  %v1828_v60 = vsel %vm23_vm2, %v1746_v41, 0.0  ;;  %v2113_v28 = vmax.f32 %v19099_v51, 0.0  ;;  %13708 = vmatmul.mubr.msk.f32.gmra.mrb[174].mxu1 %vm45_vm1, %v7846_v31  ;;  %13716 = vmatmul.mubr.msk.f32.vlgmr.msra.gmra.mrb[174].mxu0 %vm45_vm1, %v8205_v42  ;;  %v19103_v31 = vld [vmem:[#allocation17_spill] sm:$0xff] }
 0x187   :  { %v2141_v63 = vrot.slane %v2140_v2, 1  ;;  %v1818_v15 = vadd.f32 %v1817_v21, %v1816_v11  ;;  %v1809_v1 = vadd.f32 %v1808_v8, %v1807_v57  ;;  %v2152_v10 = vadd.f32 %v2151_v20, %v2150_v16  ;;  %v16122_v21 = vld [vmem:[%s19049_s1] sm:$0xf] }
 0x188   :  { %v1799_v59 = vadd.f32 %v1798_v12, %v1797_v62  ;;  %v2161_v25 = vadd.f32 %v2160_v47, %v2159_v53  ;;  %v1829_v29 = vrot.slane %v1828_v60, 4  ;;  %v2171_v45 = vsel %vm23_vm2, %v2113_v28, 0.0  ;;  %13766 = vmatpush3.msk.msra.mxu0 %vm94_vm0, %v16122_v21  ;;  %v8206_v47 = vld [vmem:[%s19048_s0 + $0x2b0] sm:$0xff] }
 0x189   :  { %v2142_v41 = vadd.f32 %v2141_v63, %v2140_v2  ;;  %v1819_v51 = vrot.slane %v1818_v15, 1  ;;  %v1810_v11 = vrot.slane %v1809_v1, 2  ;;  %v2153_v8 = vrot.slane %v2152_v10, 2  ;;  %13817 = vmatprep.subr.msk.mxu0 %vm94_vm0, %v16122_v21  ;;  %13718 = vmatprep.mubr.msk.f32.mxu0 %vm45_vm1, %v8206_v47 }
 0x18a   :  { %v1884_v62 = vsel %vm398_vm8, %v1799_v59, %v1883_v17  ;;  %v2162_v53 = vrot.slane %v2161_v25, 1  ;;  %v1830_v57 = vadd.f32 %v1829_v29, %v1828_v60  ;;  %v2172_v16 = vrot.slane %v2171_v45, 4  ;;  %v7847_v17 = vld [vmem:[%s19048_s0 + $0xea8] sm:$0xff]  ;;  %v16139_v29 = vpop.f32.mrb[70].mxu0 }
 0x18b   :  { %v16127_v63 = vsel %vm400_vm9, %v1806_v46, %v1884_v62  ;;  %v2251_v2 = vsel %vm390_vm4, %v2142_v41, %v2250_v3  ;;  %v1820_v20 = vadd.f32 %v1819_v51, %v1818_v15  ;;  %v1811_v12 = vadd.f32 %v1810_v11, %v1809_v1  ;;  %19101 = vst [vmem:[#allocation14_spill] sm:$0xff] %v16139_v29  ;;  %v16141_v3 = vpop.f32.mrb[70].mxu1  ;;  %v19104_v41 = vld [vmem:[#allocation18_spill] sm:$0xff]  ;;  %v16147_v11 = vpop.f32.mrb[71].mxu0 }
 0x18c   :  { %19100 = vst [vmem:[#allocation13_spill] sm:$0xff] %v16127_v63  ;;  %v2163_v60 = vadd.f32 %v2162_v53, %v2161_v25  ;;  %v2154_v28 = vadd.f32 %v2153_v8, %v2152_v10  ;;  %v2252_v46 = vsel %vm392_vm5, %v2149_v44, %v2251_v2  ;;  %v1831_v59 = vrot.slane %v1830_v57, 2  ;;  %19102 = vst [vmem:[#allocation15_spill] sm:$0xff] %v16141_v3  ;;  %v19106_v44 = vld [vmem:[#allocation19_spill] sm:$0xff]  ;;  %v16153_v63 = vpop.f32.mrb[71].mxu1  ;;  %v16170_v29 = vpop.f32.mrb[72].mxu0 }
 0x18d   :  { %13710 = vmatprep.mubr.msk.f32.mxu1 %vm45_vm1, %v7847_v17  ;;  %v1812_v15 = vrot.slane %v1811_v12, 1  ;;  %v2173_v1 = vadd.f32 %v2172_v16, %v2171_v45  ;;  %v1745_v42 = vmax.f32 %v19103_v31, 0.0  ;;  %v2112_v51 = vmax.f32 %v19104_v41, 0.0  ;;  %19105 = vst [vmem:[#allocation16_spill] sm:$0xff] %v16147_v11  ;;  %19107 = vst [vmem:[#allocation17_spill] sm:$0xff] %v16153_v63  ;;  %v7848_v45 = vld [vmem:[%s19048_s0 + $0xfa8] sm:$0xff] }
 0x18e   :  { %v2155_v10 = vrot.slane %v2154_v28, 1  ;;  %v1832_v25 = vadd.f32 %v1831_v59, %v1830_v57  ;;  %v1748_v8 = vmax.f32 %v19106_v44, 0.0  ;;  %v2115_v62 = vmax.f32 %v15659_v30, 0.0  ;;  %v8207_v57 = vld [vmem:[%s19048_s0 + $0x3b0] sm:$0xff]  ;;  %13711 = vmatmul.mubr.msk.f32.gmra.mrb[176].mxu1 %vm45_vm1, %v7848_v45  ;;  %19108 = vst [vmem:[#allocation18_spill] sm:$0xff] %v16170_v29 }
 0x18f   :  { %v1813_v53 = vadd.f32 %v1812_v15, %v1811_v12  ;;  %v2174_v2 = vrot.slane %v2173_v1, 2  ;;  %v1821_v17 = vsel %vm23_vm2, %v1745_v42, 0.0  ;;  %v2164_v47 = vsel %vm23_vm2, %v2112_v51, 0.0  ;;  %13719 = vmatmul.mubr.msk.f32.gmra.mrb[176].mxu0 %vm45_vm1, %v8207_v57  ;;  %v16172_v57 = vpop.f32.mrb[72].mxu1 }
 0x190   :  { %v2156_v16 = vadd.f32 %v2155_v10, %v2154_v28  ;;  %v1833_v59 = vrot.slane %v1832_v25, 1  ;;  %v1822_v31 = vrot.slane %v1821_v17, 4  ;;  %v2165_v30 = vrot.slane %v2164_v47, 4  ;;  %19109 = vst [vmem:[#allocation19_spill] sm:$0xff] %v16172_v57 }
 0x191   :  { %v1886_v12 = vsel %vm388_vm3, %v1820_v20, %v1813_v53  ;;  %v2175_v15 = vadd.f32 %v2174_v2, %v2173_v1  ;;  %v1842_v42 = vsel %vm23_vm2, %v1748_v8, 0.0  ;;  %v2185_v41 = vsel %vm23_vm2, %v2115_v62, 0.0  ;;  %v19110_v8 = vld [vmem:[#allocation20_spill] sm:$0xff] }
 0x192   :  { %v2253_v51 = vsel %vm394_vm6, %v2156_v16, %v2252_v46  ;;  %v16167_v44 = vadd.f32 %v1833_v59, %v1832_v25  ;;  %v1823_v63 = vadd.f32 %v1822_v31, %v1821_v17  ;;  %v2166_v28 = vadd.f32 %v2165_v30, %v2164_v47  ;;  %v19111_v17 = vld [vmem:[#allocation21_spill] sm:$0xff]  ;;  %v8575_v16 = vld [vmem:[%s19048_s0 + $0xb8] sm:$0xff] }
 0x193   :  { %v2176_v10 = vrot.slane %v2175_v15, 1  ;;  %v2254_v11 = vsel %vm396_vm7, %v2163_v60, %v2253_v51  ;;  %v1843_v3 = vrot.slane %v1842_v42, 4  ;;  %v2186_v45 = vrot.slane %v2185_v41, 4  ;;  %v8208_v60 = vld [vmem:[%s19048_s0 + $0x4b0] sm:$0xff]  ;;  %13741 = vmatprep.mubr.msk.f32.mxu1 %vm45_vm1, %v8575_v16 }
 0x194   :  { %v1824_v20 = vrot.slane %v1823_v63, 2  ;;  %v2167_v1 = vrot.slane %v2166_v28, 2  ;;  %v1747_v53 = vmax.f32 %v19110_v8, 0.0  ;;  %v2114_v62 = vmax.f32 %v15665_v5, 0.0  ;;  %13721 = vmatprep.mubr.msk.f32.mxu0 %vm45_vm1, %v8208_v60  ;;  %v8576_v60 = vld [vmem:[%s19048_s0 + $0x1b8] sm:$0xff] }
 0x195   :  { %v2177_v46 = vadd.f32 %v2176_v10, %v2175_v15  ;;  %v1844_v25 = vadd.f32 %v1843_v3, %v1842_v42  ;;  %v2187_v2 = vadd.f32 %v2186_v45, %v2185_v41  ;;  %v1750_v47 = vmax.f32 %v19111_v17, 0.0  ;;  %v16187_v41 = vpop.f32.mrb[73].mxu0  ;;  %v8209_v17 = vld [vmem:[%s19048_s0 + $0x5b0] sm:$0xff]  ;;  %13742 = vmatmul.mubr.msk.f32.vlgmr.msra.gmra.mrb[178].mxu1 %vm45_vm1, %v8576_v60 }
 0x196   :  { %v1825_v59 = vadd.f32 %v1824_v20, %v1823_v63  ;;  %v2168_v31 = vadd.f32 %v2167_v1, %v2166_v28  ;;  %v1835_v30 = vsel %vm23_vm2, %v1747_v53, 0.0  ;;  %v2178_v51 = vsel %vm23_vm2, %v2114_v62, 0.0  ;;  %19112 = vst [vmem:[#allocation20_spill] sm:$0xff] %v16187_v41  ;;  %v19113_v63 = vld [vmem:[#allocation22_spill] sm:$0xff]  ;;  %13722 = vmatmul.mubr.msk.f32.gmra.mrb[178].mxu0 %vm45_vm1, %v8209_v17  ;;  %13792 = vmatpush3.msk.msra.mxu1 %vm94_vm0, %v16122_v21 }
 0x197   :  { %v1845_v5 = vrot.slane %v1844_v25, 2  ;;  %v2188_v3 = vrot.slane %v2187_v2, 2  ;;  %v1836_v15 = vrot.slane %v1835_v30, 4  ;;  %v2179_v42 = vrot.slane %v2178_v51, 4  ;;  %13843 = vmatprep.subr.msk.mxu1 %vm94_vm0, %v16122_v21 }
 0x198   :  { %v1826_v10 = vrot.slane %v1825_v59, 1  ;;  %v2169_v45 = vrot.slane %v2168_v31, 1  ;;  %v1856_v8 = vsel %vm23_vm2, %v1750_v47, 0.0  ;;  %v2117_v28 = vmax.f32 %v19113_v63, 0.0  ;;  %v16198_v47 = vpop.f32.mrb[73].mxu1 }
 0x199   :  { %v1846_v20 = vadd.f32 %v1845_v5, %v1844_v25  ;;  %v2189_v1 = vadd.f32 %v2188_v3, %v2187_v2  ;;  %v1837_v53 = vadd.f32 %v1836_v15, %v1835_v30  ;;  %v2180_v62 = vadd.f32 %v2179_v42, %v2178_v51  ;;  %v8210_v15 = vld [vmem:[%s19048_s0 + $0x6b0] sm:$0xff]  ;;  %v8577_v42 = vld [vmem:[%s19048_s0 + $0x2b8] sm:$0xff] }
 0x19a   :  { %v1827_v16 = vadd.f32 %v1826_v10, %v1825_v59  ;;  %v2170_v41 = vadd.f32 %v2169_v45, %v2168_v31  ;;  %v1857_v57 = vrot.slane %v1856_v8, 4  ;;  %v2199_v29 = vsel %vm23_vm2, %v2117_v28, 0.0  ;;  %13724 = vmatprep.mubr.msk.f32.mxu0 %vm45_vm1, %v8210_v15  ;;  %13744 = vmatprep.mubr.msk.f32.mxu1 %vm45_vm1, %v8577_v42 }
 0x19b   :  { %v1847_v25 = vrot.slane %v1846_v20, 1  ;;  %v2190_v2 = vrot.slane %v2189_v1, 1  ;;  %v1838_v30 = vrot.slane %v1837_v53, 2  ;;  %v2181_v51 = vrot.slane %v2180_v62, 2 }
 0x19c   :  { %v1887_v5 = vsel %vm390_vm4, %v1827_v16, %v1886_v12  ;;  %v2255_v59 = vsel %vm398_vm8, %v2170_v41, %v2254_v11  ;;  %v1858_v31 = vadd.f32 %v1857_v57, %v1856_v8  ;;  %v2200_v3 = vrot.slane %v2199_v29, 4  ;;  %v16217_v11 = vpop.f32.mrb[74].mxu0  ;;  %v16219_v57 = vpop.f32.mrb[74].mxu1 }
 0x19d   :  { %v16215_v10 = vsel %vm400_vm9, %v2177_v46, %v2255_v59  ;;  %v1848_v45 = vadd.f32 %v1847_v25, %v1846_v20  ;;  %v2191_v12 = vadd.f32 %v2190_v2, %v2189_v1  ;;  %v1839_v63 = vadd.f32 %v1838_v30, %v1837_v53  ;;  %19115 = vst [vmem:[#allocation22_spill] sm:$0xff] %v16217_v11  ;;  %v16225_v60 = vpop.f32.mrb[75].mxu0  ;;  %v19118_v53 = vld [vmem:[#allocation24_spill] sm:$0xff]  ;;  %v19119_v59 = vld [vmem:[#allocation25_spill] sm:$0xff] }
 0x19e   :  { %19114 = vst [vmem:[#allocation21_spill] sm:$0xff] %v16215_v10  ;;  %19116 = vst [vmem:[#allocation41_spill] sm:$0xff] %v16219_v57  ;;  %v1888_v41 = vsel %vm392_vm5, %v16167_v44, %v1887_v5  ;;  %v2182_v8 = vadd.f32 %v2181_v51, %v2180_v62  ;;  %v1859_v28 = vrot.slane %v1858_v31, 2  ;;  %v2201_v17 = vadd.f32 %v2200_v3, %v2199_v29  ;;  %v16231_v44 = vpop.f32.mrb[75].mxu1  ;;  %v19122_v57 = vld [vmem:[#allocation27_spill] sm:$0xff] }
 0x19f   :  { %19117 = vst [vmem:[#allocation42_spill] sm:$0xff] %v16225_v60  ;;  %v1840_v46 = vrot.slane %v1839_v63, 1  ;;  %v1749_v20 = vmax.f32 %v15695_v6, 0.0  ;;  %v2116_v1 = vmax.f32 %v15697_v48, 0.0  ;;  %v2119_v16 = vmax.f32 %v19118_v53, 0.0  ;;  %19120 = vst [vmem:[#allocation24_spill] sm:$0xff] %v16231_v44 }
 0x1a0   :  { %v2183_v25 = vrot.slane %v2182_v8, 1  ;;  %v1860_v2 = vadd.f32 %v1859_v28, %v1858_v31  ;;  %v2202_v30 = vrot.slane %v2201_v17, 2  ;;  %v2478_v15 = vmax.f32 %v19119_v59, 0.0  ;;  %v8211_v6 = vld [vmem:[%s19048_s0 + $0x7b0] sm:$0xff]  ;;  %v8578_v48 = vld [vmem:[%s19048_s0 + $0x3b8] sm:$0xff]  ;;  %v16248_v44 = vpop.f32.mrb[76].mxu0 }
 0x1a1   :  { %v1841_v62 = vadd.f32 %v1840_v46, %v1839_v63  ;;  %v1849_v29 = vsel %vm23_vm2, %v1749_v20, 0.0  ;;  %v2192_v51 = vsel %vm23_vm2, %v2116_v1, 0.0  ;;  %v2213_v5 = vsel %vm23_vm2, %v2119_v16, 0.0  ;;  %13725 = vmatmul.mubr.msk.f32.gmra.mrb[180].mxu0 %vm45_vm1, %v8211_v6  ;;  %13745 = vmatmul.mubr.msk.f32.gmra.mrb[180].mxu1 %vm45_vm1, %v8578_v48  ;;  %v16250_v6 = vpop.f32.mrb[76].mxu1 }
 0x1a2   :  { %v2184_v31 = vadd.f32 %v2183_v25, %v2182_v8  ;;  %v1861_v3 = vrot.slane %v1860_v2, 1  ;;  %v2203_v42 = vadd.f32 %v2202_v30, %v2201_v17  ;;  %v1850_v28 = vrot.slane %v1849_v29, 4 }
 0x1a3   :  { %v1889_v63 = vsel %vm394_vm6, %v1841_v62, %v1888_v41  ;;  %v2193_v46 = vrot.slane %v2192_v51, 4  ;;  %v2214_v20 = vrot.slane %v2213_v5, 4  ;;  %v2500_v1 = vsel %vm23_vm2, %v2478_v15, 0.0  ;;  %v19121_v62 = vld [vmem:[#allocation26_spill] sm:$0xff] }
 0x1a4   :  { %v2257_v53 = vsel %vm388_vm3, %v2191_v12, %v2184_v31  ;;  %v1862_v16 = vadd.f32 %v1861_v3, %v1860_v2  ;;  %v2204_v59 = vrot.slane %v2203_v42, 1  ;;  %v1851_v10 = vadd.f32 %v1850_v28, %v1849_v29 }
 0x1a5   :  { %v1890_v8 = vsel %vm396_vm7, %v1848_v45, %v1889_v63  ;;  %v2194_v25 = vadd.f32 %v2193_v46, %v2192_v51  ;;  %v2215_v17 = vadd.f32 %v2214_v20, %v2213_v5  ;;  %v2501_v30 = vrot.slane %v2500_v1, 4  ;;  %v8212_v45 = vld [vmem:[%s19048_s0 + $0x8b0] sm:$0xff]  ;;  %v8579_v51 = vld [vmem:[%s19048_s0 + $0x4b8] sm:$0xff]  ;;  %v16266_v46 = vpop.f32.mrb[77].mxu0 }
 0x1a6   :  { %v2205_v48 = vadd.f32 %v2204_v59, %v2203_v42  ;;  %v1852_v41 = vrot.slane %v1851_v10, 2  ;;  %v2118_v60 = vmax.f32 %v19121_v62, 0.0  ;;  %v2477_v15 = vmax.f32 %v19122_v57, 0.0  ;;  %13727 = vmatprep.mubr.msk.f32.mxu0 %vm45_vm1, %v8212_v45  ;;  %13747 = vmatprep.mubr.msk.f32.mxu1 %vm45_vm1, %v8579_v51  ;;  %19123 = vst [vmem:[#allocation25_spill] sm:$0xff] %v16266_v46  ;;  %v16276_v46 = vpop.f32.mrb[77].mxu1 }
 0x1a7   :  { %v2195_v11 = vrot.slane %v2194_v25, 2  ;;  %v2216_v12 = vrot.slane %v2215_v17, 2  ;;  %v2502_v2 = vadd.f32 %v2501_v30, %v2500_v1  ;;  %v2121_v29 = vmax.f32 %v15749_v36, 0.0 }
 0x1a8   :  { %v1853_v5 = vadd.f32 %v1852_v41, %v1851_v10  ;;  %v2206_v31 = vsel %vm23_vm2, %v2118_v60, 0.0  ;;  %v2493_v3 = vsel %vm23_vm2, %v2477_v15, 0.0  ;;  %v2480_v57 = vmax.f32 %v15751_v52, 0.0 }
 0x1a9   :  { %v2196_v36 = vadd.f32 %v2195_v11, %v2194_v25  ;;  %v2217_v42 = vadd.f32 %v2216_v12, %v2215_v17  ;;  %v2503_v28 = vrot.slane %v2502_v2, 2  ;;  %v2207_v63 = vrot.slane %v2206_v31, 4  ;;  %v8213_v11 = vld [vmem:[%s19048_s0 + $0x9b0] sm:$0xff]  ;;  %v8580_v25 = vld [vmem:[%s19048_s0 + $0x5b8] sm:$0xff] }
 0x1aa   :  { %v1854_v20 = vrot.slane %v1853_v5, 1  ;;  %v2494_v1 = vrot.slane %v2493_v3, 4  ;;  %v2227_v10 = vsel %vm23_vm2, %v2121_v29, 0.0  ;;  %v2514_v60 = vsel %vm23_vm2, %v2480_v57, 0.0  ;;  %13728 = vmatmul.mubr.msk.f32.gmra.mrb[182].mxu0 %vm45_vm1, %v8213_v11  ;;  %13748 = vmatmul.mubr.msk.f32.gmra.mrb[182].mxu1 %vm45_vm1, %v8580_v25 }
 0x1ab   :  { %v2197_v59 = vrot.slane %v2196_v36, 1  ;;  %v2218_v30 = vrot.slane %v2217_v42, 1  ;;  %v2504_v41 = vadd.f32 %v2503_v28, %v2502_v2  ;;  %v2208_v52 = vadd.f32 %v2207_v63, %v2206_v31 }
 0x1ac   :  { %v1855_v62 = vadd.f32 %v1854_v20, %v1853_v5  ;;  %v2495_v15 = vadd.f32 %v2494_v1, %v2493_v3  ;;  %v2228_v45 = vrot.slane %v2227_v10, 4  ;;  %v2515_v51 = vrot.slane %v2514_v60, 4  ;;  %v8214_v20 = vld [vmem:[%s19048_s0 + $0xab0] sm:$0xff]  ;;  %v8581_v1 = vld [vmem:[%s19048_s0 + $0x6b8] sm:$0xff] }
 0x1ad   :  { %v2198_v17 = vadd.f32 %v2197_v59, %v2196_v36  ;;  %v2219_v12 = vadd.f32 %v2218_v30, %v2217_v42  ;;  %v2505_v29 = vrot.slane %v2504_v41, 1  ;;  %v2209_v57 = vrot.slane %v2208_v52, 2  ;;  %v16292_v30 = vpop.f32.mrb[78].mxu1  ;;  %13730 = vmatprep.mubr.msk.f32.mxu0 %vm45_vm1, %v8214_v20  ;;  %13750 = vmatprep.mubr.msk.f32.mxu1 %vm45_vm1, %v8581_v1 }
 0x1ae   :  { %v1891_v2 = vsel %vm398_vm8, %v1855_v62, %v1890_v8  ;;  %v2496_v5 = vrot.slane %v2495_v15, 2  ;;  %v2229_v31 = vadd.f32 %v2228_v45, %v2227_v10  ;;  %v2516_v3 = vadd.f32 %v2515_v51, %v2514_v60  ;;  %19125 = vst [vmem:[#allocation27_spill] sm:$0xff] %v16292_v30  ;;  %v19128_v62 = vld [vmem:[#allocation29_spill] sm:$0xff]  ;;  %v19129_v51 = vld [vmem:[#allocation30_spill] sm:$0xff]  ;;  %v16301_v25 = vpop.f32.mrb[79].mxu1 }
 0x1af   :  { %v16282_v28 = vsel %vm400_vm9, %v1862_v16, %v1891_v2  ;;  %v2258_v63 = vsel %vm390_vm4, %v2198_v17, %v2257_v53  ;;  %v2506_v36 = vadd.f32 %v2505_v29, %v2504_v41  ;;  %v2210_v42 = vadd.f32 %v2209_v57, %v2208_v52  ;;  %v16294_v16 = vpop.f32.mrb[78].mxu0  ;;  %v19127_v41 = vld [vmem:[#allocation28_spill] sm:$0xff]  ;;  %v19131_v29 = vld [vmem:[#allocation31_spill] sm:$0xff]  ;;  %v19136_v30 = vld [vmem:[#allocation33_spill] sm:$0xff] }
 0x1b0   :  { %19124 = vst [vmem:[#allocation26_spill] sm:$0xff] %v16282_v28  ;;  %v2259_v8 = vsel %vm392_vm5, %v2205_v48, %v2258_v63  ;;  %v2497_v59 = vadd.f32 %v2496_v5, %v2495_v15  ;;  %v2230_v10 = vrot.slane %v2229_v31, 2  ;;  %v2517_v60 = vrot.slane %v2516_v3, 2  ;;  %19126 = vst [vmem:[#allocation43_spill] sm:$0xff] %v16294_v16  ;;  %v16304_v2 = vpop.f32.mrb[79].mxu0  ;;  %v8215_v5 = vld [vmem:[%s19048_s0 + $0xbb0] sm:$0xff] }
 0x1b1   :  { %v2211_v53 = vrot.slane %v2210_v42, 1  ;;  %v2120_v52 = vmax.f32 %v19127_v41, 0.0  ;;  %v2479_v45 = vmax.f32 %v19128_v62, 0.0  ;;  %v2482_v11 = vmax.f32 %v19129_v51, 0.0  ;;  %19130 = vst [vmem:[#allocation28_spill] sm:$0xff] %v16301_v25  ;;  %19132 = vst [vmem:[#allocation29_spill] sm:$0xff] %v16304_v2  ;;  %13731 = vmatmul.mubr.msk.f32.gmra.mrb[184].mxu0 %vm45_vm1, %v8215_v5 }
 0x1b2   :  { %v2498_v48 = vrot.slane %v2497_v59, 1  ;;  %v2231_v15 = vadd.f32 %v2230_v10, %v2229_v31  ;;  %v2518_v17 = vadd.f32 %v2517_v60, %v2516_v3  ;;  %v2849_v57 = vmax.f32 %v19131_v29, 0.0  ;;  %v8582_v63 = vld [vmem:[%s19048_s0 + $0x7b8] sm:$0xff]  ;;  %v16322_v2 = vpop.f32.mrb[80].mxu1  ;;  %v16324_v5 = vpop.f32.mrb[80].mxu0 }
 0x1b3   :  { %v2212_v20 = vadd.f32 %v2211_v53, %v2210_v42  ;;  %v2220_v1 = vsel %vm23_vm2, %v2120_v52, 0.0  ;;  %v2507_v41 = vsel %vm23_vm2, %v2479_v45, 0.0  ;;  %v2528_v31 = vsel %vm23_vm2, %v2482_v11, 0.0  ;;  %13751 = vmatmul.mubr.msk.f32.gmra.mrb[184].mxu1 %vm45_vm1, %v8582_v63  ;;  %19133 = vst [vmem:[#allocation30_spill] sm:$0xff] %v16322_v2  ;;  %19134 = vst [vmem:[#allocation31_spill] sm:$0xff] %v16324_v5 }
 0x1b4   :  { %v2499_v3 = vadd.f32 %v2498_v48, %v2497_v59  ;;  %v2232_v10 = vrot.slane %v2231_v15, 1  ;;  %v2519_v60 = vrot.slane %v2518_v17, 1  ;;  %v2221_v62 = vrot.slane %v2220_v1, 4 }
 0x1b5   :  { %v2260_v51 = vsel %vm394_vm6, %v2212_v20, %v2259_v8  ;;  %v2508_v29 = vrot.slane %v2507_v41, 4  ;;  %v2529_v28 = vrot.slane %v2528_v31, 4  ;;  %v2871_v42 = vsel %vm23_vm2, %v2849_v57, 0.0  ;;  %v19135_v20 = vld [vmem:[#allocation32_spill] sm:$0xff] }
 0x1b6   :  { %v2621_v53 = vsel %vm388_vm3, %v2506_v36, %v2499_v3  ;;  %v2233_v52 = vadd.f32 %v2232_v10, %v2231_v15  ;;  %v16320_v45 = vadd.f32 %v2519_v60, %v2518_v17  ;;  %v2222_v11 = vadd.f32 %v2221_v62, %v2220_v1  ;;  %v8216_v15 = vld [vmem:[%s19048_s0 + $0xcb0] sm:$0xff]  ;;  %v8583_v17 = vld [vmem:[%s19048_s0 + $0x8b8] sm:$0xff]  ;;  %v16342_v10 = vpop.f32.mrb[81].mxu1 }
 0x1b7   :  { %v2261_v59 = vsel %vm396_vm7, %v2219_v12, %v2260_v51  ;;  %v2509_v48 = vadd.f32 %v2508_v29, %v2507_v41  ;;  %v2530_v63 = vadd.f32 %v2529_v28, %v2528_v31  ;;  %v2872_v25 = vrot.slane %v2871_v42, 4  ;;  %13733 = vmatprep.mubr.msk.f32.mxu0 %vm45_vm1, %v8216_v15  ;;  %13753 = vmatprep.mubr.msk.f32.mxu1 %vm45_vm1, %v8583_v17  ;;  %v16345_v15 = vpop.f32.mrb[81].mxu0 }
 0x1b8   :  { %v2223_v8 = vrot.slane %v2222_v11, 2  ;;  %v2481_v16 = vmax.f32 %v19135_v20, 0.0  ;;  %v2848_v57 = vmax.f32 %v19136_v30, 0.0  ;;  %v2484_v36 = vmax.f32 %v15797_v23, 0.0  ;;  %19137 = vst [vmem:[#allocation32_spill] sm:$0xff] %v16342_v10  ;;  %19138 = vst [vmem:[#allocation33_spill] sm:$0xff] %v16345_v15 }
 0x1b9   :  { %v2510_v1 = vrot.slane %v2509_v48, 2  ;;  %v2531_v12 = vrot.slane %v2530_v63, 2  ;;  %v2873_v41 = vadd.f32 %v2872_v25, %v2871_v42  ;;  %v2851_v28 = vmax.f32 %v15799_v43, 0.0 }
 0x1ba   :  { %v2224_v30 = vadd.f32 %v2223_v8, %v2222_v11  ;;  %v2521_v23 = vsel %vm23_vm2, %v2481_v16, 0.0  ;;  %v2864_v31 = vsel %vm23_vm2, %v2848_v57, 0.0  ;;  %v2542_v3 = vsel %vm23_vm2, %v2484_v36, 0.0  ;;  %v8217_v57 = vld [vmem:[%s19048_s0 + $0xdb0] sm:$0xff] }
 0x1bb   :  { %v2511_v60 = vadd.f32 %v2510_v1, %v2509_v48  ;;  %v2532_v62 = vadd.f32 %v2531_v12, %v2530_v63  ;;  %v2874_v51 = vrot.slane %v2873_v41, 2  ;;  %v2522_v29 = vrot.slane %v2521_v23, 4  ;;  %v8584_v48 = vld [vmem:[%s19048_s0 + $0x9b8] sm:$0xff]  ;;  %13734 = vmatmul.mubr.msk.f32.gmra.mrb[186].mxu0 %vm45_vm1, %v8217_v57 }
 0x1bc   :  { %v2225_v25 = vrot.slane %v2224_v30, 1  ;;  %v2865_v42 = vrot.slane %v2864_v31, 4  ;;  %v2543_v43 = vrot.slane %v2542_v3, 4  ;;  %v2885_v20 = vsel %vm23_vm2, %v2851_v28, 0.0  ;;  %13754 = vmatmul.mubr.msk.f32.gmra.mrb[186].mxu1 %vm45_vm1, %v8584_v48 }
 0x1bd   :  { %v2512_v11 = vrot.slane %v2511_v60, 1  ;;  %v2533_v8 = vrot.slane %v2532_v62, 1  ;;  %v2875_v16 = vadd.f32 %v2874_v51, %v2873_v41  ;;  %v2523_v17 = vadd.f32 %v2522_v29, %v2521_v23 }
 0x1be   :  { %v2226_v63 = vadd.f32 %v2225_v25, %v2224_v30  ;;  %v2866_v36 = vadd.f32 %v2865_v42, %v2864_v31  ;;  %v2544_v1 = vadd.f32 %v2543_v43, %v2542_v3  ;;  %v2886_v12 = vrot.slane %v2885_v20, 4  ;;  %v16360_v25 = vpop.f32.mrb[82].mxu0  ;;  %v16362_v42 = vpop.f32.mrb[82].mxu1 }
 0x1bf   :  { %v2513_v28 = vadd.f32 %v2512_v11, %v2511_v60  ;;  %v2534_v15 = vadd.f32 %v2533_v8, %v2532_v62  ;;  %v2876_v41 = vrot.slane %v2875_v16, 1  ;;  %v2524_v23 = vrot.slane %v2523_v17, 2  ;;  %v8218_v60 = vld [vmem:[%s19048_s0 + $0xeb0] sm:$0xff] }
 0x1c0   :  { %v2262_v51 = vsel %vm398_vm8, %v2226_v63, %v2261_v59  ;;  %v2867_v29 = vrot.slane %v2866_v36, 2  ;;  %v2545_v10 = vrot.slane %v2544_v1, 2  ;;  %v2887_v5 = vadd.f32 %v2886_v12, %v2885_v20  ;;  %v8585_v59 = vld [vmem:[%s19048_s0 + $0xab8] sm:$0xff]  ;;  %13736 = vmatprep.mubr.msk.f32.mxu0 %vm45_vm1, %v8218_v60  ;;  %v16389_v12 = vpop.f32.mrb[83].mxu1 }
 0x1c1   :  { %v16357_v2 = vsel %vm400_vm9, %v2233_v52, %v2262_v51  ;;  %v2622_v30 = vsel %vm390_vm4, %v2513_v28, %v2621_v53  ;;  %v2877_v31 = vadd.f32 %v2876_v41, %v2875_v16  ;;  %v2525_v3 = vadd.f32 %v2524_v23, %v2523_v17  ;;  %13756 = vmatprep.mubr.msk.f32.mxu1 %vm45_vm1, %v8585_v59  ;;  %v16377_v17 = vpop.f32.mrb[83].mxu0 }
 0x1c2   :  { %19139 = vst [vmem:[#allocation44_spill] sm:$0xff] %v16357_v2  ;;  %v2623_v52 = vsel %vm392_vm5, %v16320_v45, %v2622_v30  ;;  %v2868_v62 = vadd.f32 %v2867_v29, %v2866_v36  ;;  %v2546_v43 = vadd.f32 %v2545_v10, %v2544_v1  ;;  %v2888_v53 = vrot.slane %v2887_v5, 2  ;;  %v8219_v10 = vld [vmem:[%s19048_s0 + $0xfb0] sm:$0xff]  ;;  %v8586_v36 = vld [vmem:[%s19048_s0 + $0xbb8] sm:$0xff] }
 0x1c3   :  { %v2526_v20 = vrot.slane %v2525_v3, 1  ;;  %v2483_v11 = vmax.f32 %v15801_v22, 0.0  ;;  %v2850_v8 = vmax.f32 %v15803_v50, 0.0  ;;  %v2486_v16 = vmax.f32 %v15833_v27, 0.0  ;;  %13737 = vmatmul.mubr.msk.f32.gmra.mrb[188].mxu0 %vm45_vm1, %v8219_v10  ;;  %13757 = vmatmul.mubr.msk.f32.gmra.mrb[188].mxu1 %vm45_vm1, %v8586_v36 }
 0x1c4   :  { %v2869_v57 = vrot.slane %v2868_v62, 1  ;;  %v2547_v48 = vrot.slane %v2546_v43, 1  ;;  %v2889_v63 = vadd.f32 %v2888_v53, %v2887_v5  ;;  %v2853_v45 = vmax.f32 %v15835_v0, 0.0 }
 0x1c5   :  { %v2527_v22 = vadd.f32 %v2526_v20, %v2525_v3  ;;  %v2535_v50 = vsel %vm23_vm2, %v2483_v11, 0.0  ;;  %v2878_v27 = vsel %vm23_vm2, %v2850_v8, 0.0  ;;  %v2556_v1 = vsel %vm23_vm2, %v2486_v16, 0.0  ;;  %v16401_v20 = vpop.f32.mrb[84].mxu0  ;;  %v8587_v16 = vld [vmem:[%s19048_s0 + $0xcb8] sm:$0xff] }
 0x1c6   :  { %v2870_v0 = vadd.f32 %v2869_v57, %v2868_v62  ;;  %v16393_v5 = vadd.f32 %v2547_v48, %v2546_v43  ;;  %v2890_v28 = vrot.slane %v2889_v63, 1  ;;  %v2536_v41 = vrot.slane %v2535_v50, 4  ;;  %v16403_v62 = vpop.f32.mrb[84].mxu1  ;;  %v19140_v48 = vld [vmem:[#allocation35_spill] sm:$0xff]  ;;  %13759 = vmatprep.mubr.msk.f32.mxu1 %vm45_vm1, %v8587_v16 }
 0x1c7   :  { %v2624_v23 = vsel %vm394_vm6, %v2527_v22, %v2623_v52  ;;  %v2879_v51 = vrot.slane %v2878_v27, 4  ;;  %v2557_v29 = vrot.slane %v2556_v1, 4  ;;  %v2899_v30 = vsel %vm23_vm2, %v2853_v45, 0.0  ;;  %v19141_v45 = vld [vmem:[#allocation36_spill] sm:$0xff] }
 0x1c8   :  { %v2992_v3 = vsel %vm388_vm3, %v2877_v31, %v2870_v0  ;;  %v16398_v60 = vadd.f32 %v2890_v28, %v2889_v63  ;;  %v2537_v59 = vadd.f32 %v2536_v41, %v2535_v50  ;;  %v2625_v53 = vsel %vm396_vm7, %v2534_v15, %v2624_v23  ;;  %v8946_v31 = vld [vmem:[%s19048_s0 + $0xc0] sm:$0xff] }
 0x1c9   :  { %v2880_v43 = vadd.f32 %v2879_v51, %v2878_v27  ;;  %v2558_v11 = vadd.f32 %v2557_v29, %v2556_v1  ;;  %v2900_v8 = vrot.slane %v2899_v30, 4  ;;  %v2485_v52 = vmax.f32 %v15841_v40, 0.0  ;;  %13767 = vmatprep.mubr.msk.f32.mxu0 %vm45_vm1, %v8946_v31  ;;  %v16418_v27 = vpop.f32.mrb[85].mxu0 }
 0x1ca   :  { %v2538_v57 = vrot.slane %v2537_v59, 2  ;;  %v2852_v15 = vmax.f32 %v15845_v24, 0.0  ;;  %v2488_v63 = vmax.f32 %v19140_v48, 0.0  ;;  %v2855_v10 = vmax.f32 %v19141_v45, 0.0  ;;  %19142 = vst [vmem:[#allocation35_spill] sm:$0xff] %v16418_v27  ;;  %v16423_v27 = vpop.f32.mrb[85].mxu1 }
 0x1cb   :  { %v2881_v40 = vrot.slane %v2880_v43, 2  ;;  %v2559_v36 = vrot.slane %v2558_v11, 2  ;;  %v2901_v22 = vadd.f32 %v2900_v8, %v2899_v30  ;;  %v2549_v50 = vsel %vm23_vm2, %v2485_v52, 0.0 }
 0x1cc   :  { %v2539_v1 = vadd.f32 %v2538_v57, %v2537_v59  ;;  %v2550_v0 = vrot.slane %v2549_v50, 4  ;;  %v2892_v28 = vsel %vm23_vm2, %v2852_v15, 0.0  ;;  %v2570_v24 = vsel %vm23_vm2, %v2488_v63, 0.0  ;;  %v8588_v59 = vld [vmem:[%s19048_s0 + $0xdb8] sm:$0xff] }
 0x1cd   :  { %v2882_v41 = vadd.f32 %v2881_v40, %v2880_v43  ;;  %v2560_v23 = vadd.f32 %v2559_v36, %v2558_v11  ;;  %v2902_v51 = vrot.slane %v2901_v22, 2  ;;  %v2893_v29 = vrot.slane %v2892_v28, 4  ;;  %v8947_v43 = vld [vmem:[%s19048_s0 + $0x1c0] sm:$0xff]  ;;  %13760 = vmatmul.mubr.msk.f32.gmra.mrb[190].mxu1 %vm45_vm1, %v8588_v59 }
 0x1ce   :  { %v2540_v16 = vrot.slane %v2539_v1, 1  ;;  %v2551_v48 = vadd.f32 %v2550_v0, %v2549_v50  ;;  %v2571_v31 = vrot.slane %v2570_v24, 4  ;;  %v2913_v45 = vsel %vm23_vm2, %v2855_v10, 0.0  ;;  %13768 = vmatmul.mubr.msk.f32.vlgmr.msra.gmra.mrb[190].mxu0 %vm45_vm1, %v8947_v43 }
 0x1cf   :  { %v2883_v30 = vrot.slane %v2882_v41, 1  ;;  %v2561_v8 = vrot.slane %v2560_v23, 1  ;;  %v2903_v52 = vadd.f32 %v2902_v51, %v2901_v22  ;;  %v2894_v2 = vadd.f32 %v2893_v29, %v2892_v28  ;;  %13818 = vmatpush3.msk.msra.mxu0 %vm94_vm0, %v16122_v21 }
 0x1d0   :  { %v2541_v11 = vadd.f32 %v2540_v16, %v2539_v1  ;;  %v2552_v57 = vrot.slane %v2551_v48, 2  ;;  %v2572_v15 = vadd.f32 %v2571_v31, %v2570_v24  ;;  %v2914_v63 = vrot.slane %v2913_v45, 4  ;;  %v8589_v1 = vld [vmem:[%s19048_s0 + $0xeb8] sm:$0xff]  ;;  %v8948_v24 = vld [vmem:[%s19048_s0 + $0x2c0] sm:$0xff]  ;;  %13869 = vmatprep.subr.msk.mxu0 %vm94_vm0, %v16122_v21  ;;  %v16449_v16 = vpop.f32.mrb[86].mxu0 }
 0x1d1   :  { %v2884_v10 = vadd.f32 %v2883_v30, %v2882_v41  ;;  %v2562_v40 = vadd.f32 %v2561_v8, %v2560_v23  ;;  %v2904_v36 = vrot.slane %v2903_v52, 1  ;;  %v2895_v22 = vrot.slane %v2894_v2, 2  ;;  %13762 = vmatprep.mubr.msk.f32.mxu1 %vm45_vm1, %v8589_v1  ;;  %13770 = vmatprep.mubr.msk.f32.mxu0 %vm45_vm1, %v8948_v24 }
 0x1d2   :  { %v2626_v50 = vsel %vm398_vm8, %v2541_v11, %v2625_v53  ;;  %v2553_v0 = vadd.f32 %v2552_v57, %v2551_v48  ;;  %v2573_v28 = vrot.slane %v2572_v15, 2  ;;  %v2915_v51 = vadd.f32 %v2914_v63, %v2913_v45  ;;  %v16451_v48 = vpop.f32.mrb[86].mxu1 }
 0x1d3   :  { %v16446_v41 = vsel %vm400_vm9, %v16393_v5, %v2626_v50  ;;  %v2993_v53 = vsel %vm390_vm4, %v2884_v10, %v2992_v3  ;;  %v2905_v23 = vadd.f32 %v2904_v36, %v2903_v52  ;;  %v2896_v29 = vadd.f32 %v2895_v22, %v2894_v2  ;;  %v16457_v5 = vpop.f32.mrb[87].mxu0  ;;  %v19144_v3 = vld [vmem:[#allocation37_spill] sm:$0xff]  ;;  %v16463_v36 = vpop.f32.mrb[87].mxu1 }
 0x1d4   :  { %19143 = vst [vmem:[#allocation36_spill] sm:$0xff] %v16446_v41  ;;  %v2554_v31 = vrot.slane %v2553_v0, 1  ;;  %v2994_v45 = vsel %vm392_vm5, %v16398_v60, %v2993_v53  ;;  %v2574_v30 = vadd.f32 %v2573_v28, %v2572_v15  ;;  %v2916_v8 = vrot.slane %v2915_v51, 2  ;;  %v8590_v60 = vld [vmem:[%s19048_s0 + $0xfb8] sm:$0xff]  ;;  %v8949_v15 = vld [vmem:[%s19048_s0 + $0x3c0] sm:$0xff] }
 0x1d5   :  { %v2897_v59 = vrot.slane %v2896_v29, 1  ;;  %v2487_v52 = vmax.f32 %v19144_v3, 0.0  ;;  %v2854_v2 = vmax.f32 %v15884_v37, 0.0  ;;  %v2490_v43 = vmax.f32 %v15915_v55, 0.0  ;;  %13763 = vmatmul.mubr.msk.f32.gmra.mrb[192].mxu1 %vm45_vm1, %v8590_v60  ;;  %13771 = vmatmul.mubr.msk.f32.gmra.mrb[192].mxu0 %vm45_vm1, %v8949_v15  ;;  %v19145_v60 = vld [vmem:[#allocation39_spill] sm:$0xff] }
 0x1d6   :  { %v2555_v11 = vadd.f32 %v2554_v31, %v2553_v0  ;;  %v2575_v57 = vrot.slane %v2574_v30, 1  ;;  %v2917_v63 = vadd.f32 %v2916_v8, %v2915_v51  ;;  %v2857_v10 = vmax.f32 %v15917_v18, 0.0 }
 0x1d7   :  { %v2898_v22 = vadd.f32 %v2897_v59, %v2896_v29  ;;  %v2563_v37 = vsel %vm23_vm2, %v2487_v52, 0.0  ;;  %v2906_v55 = vsel %vm23_vm2, %v2854_v2, 0.0  ;;  %v2584_v50 = vsel %vm23_vm2, %v2490_v43, 0.0  ;;  %v16486_v52 = vpop.f32.mrb[88].mxu0 }
 0x1d8   :  { %v16477_v18 = vsel %vm388_vm3, %v2562_v40, %v2555_v11  ;;  %v16479_v0 = vadd.f32 %v2575_v57, %v2574_v30  ;;  %v2918_v28 = vrot.slane %v2917_v63, 1  ;;  %v2564_v51 = vrot.slane %v2563_v37, 4  ;;  %v16488_v40 = vpop.f32.mrb[88].mxu1  ;;  %v8950_v11 = vld [vmem:[%s19048_s0 + $0x4c0] sm:$0xff]  ;;  %v9317_v57 = vld [vmem:[%s19048_s0 + $0xc8] sm:$0xff] }
 0x1d9   :  { %v2995_v1 = vsel %vm394_vm6, %v2898_v22, %v2994_v45  ;;  %v2907_v24 = vrot.slane %v2906_v55, 4  ;;  %v2585_v53 = vrot.slane %v2584_v50, 4  ;;  %v2927_v29 = vsel %vm23_vm2, %v2857_v10, 0.0  ;;  %13773 = vmatprep.mubr.msk.f32.mxu0 %vm45_vm1, %v8950_v11  ;;  %13793 = vmatprep.mubr.msk.f32.mxu1 %vm45_vm1, %v9317_v57 }
 0x1da   :  { %v16483_v31 = vadd.f32 %v2918_v28, %v2917_v63  ;;  %v2565_v8 = vadd.f32 %v2564_v51, %v2563_v37  ;;  %v2996_v59 = vsel %vm396_vm7, %v2905_v23, %v2995_v1  ;;  %v2928_v3 = vrot.slane %v2927_v29, 4 }
 0x1db   :  { %v2908_v30 = vadd.f32 %v2907_v24, %v2906_v55  ;;  %v2586_v2 = vadd.f32 %v2585_v53, %v2584_v50  ;;  %v2489_v43 = vmax.f32 %v15921_v4, 0.0  ;;  %v2856_v45 = vmax.f32 %v15933_v58, 0.0  ;;  %v16504_v55 = vpop.f32.mrb[89].mxu0 }
 0x1dc   :  { %v2566_v23 = vrot.slane %v2565_v8, 2  ;;  %v2929_v63 = vadd.f32 %v2928_v3, %v2927_v29  ;;  %v2492_v10 = vmax.f32 %v15946_v35, 0.0  ;;  %v2859_v15 = vmax.f32 %v19145_v60, 0.0 }
 0x1dd   :  { %v2909_v4 = vrot.slane %v2908_v30, 2  ;;  %v2587_v58 = vrot.slane %v2586_v2, 2  ;;  %v2577_v22 = vsel %vm23_vm2, %v2489_v43, 0.0  ;;  %v2920_v37 = vsel %vm23_vm2, %v2856_v45, 0.0  ;;  %v8951_v43 = vld [vmem:[%s19048_s0 + $0x5c0] sm:$0xff] }
 0x1de   :  { %v2567_v50 = vadd.f32 %v2566_v23, %v2565_v8  ;;  %v2930_v28 = vrot.slane %v2929_v63, 2  ;;  %v2578_v51 = vrot.slane %v2577_v22, 4  ;;  %v2921_v1 = vrot.slane %v2920_v37, 4  ;;  %v9318_v8 = vld [vmem:[%s19048_s0 + $0x1c8] sm:$0xff]  ;;  %13774 = vmatmul.mubr.msk.f32.gmra.mrb[194].mxu0 %vm45_vm1, %v8951_v43 }
 0x1df   :  { %v2910_v24 = vadd.f32 %v2909_v4, %v2908_v30  ;;  %v2588_v35 = vadd.f32 %v2587_v58, %v2586_v2  ;;  %v2598_v53 = vsel %vm23_vm2, %v2492_v10, 0.0  ;;  %v2941_v29 = vsel %vm23_vm2, %v2859_v15, 0.0  ;;  %v16514_v4 = vpop.f32.mrb[89].mxu1  ;;  %13794 = vmatmul.mubr.msk.f32.vlgmr.msra.gmra.mrb[194].mxu1 %vm45_vm1, %v9318_v8  ;;  %v9319_v43 = vld [vmem:[%s19048_s0 + $0x2c8] sm:$0xff] }
 0x1e0   :  { %v2568_v3 = vrot.slane %v2567_v50, 1  ;;  %v2931_v11 = vadd.f32 %v2930_v28, %v2929_v63  ;;  %v2579_v57 = vadd.f32 %v2578_v51, %v2577_v22  ;;  %v2922_v60 = vadd.f32 %v2921_v1, %v2920_v37  ;;  %13844 = vmatpush3.msk.msra.mxu1 %vm94_vm0, %v16122_v21  ;;  %v8952_v1 = vld [vmem:[%s19048_s0 + $0x6c0] sm:$0xff]  ;;  %13796 = vmatprep.mubr.msk.f32.mxu1 %vm45_vm1, %v9319_v43 }
 0x1e1   :  { %v2911_v45 = vrot.slane %v2910_v24, 1  ;;  %v2589_v23 = vrot.slane %v2588_v35, 1  ;;  %v2599_v30 = vrot.slane %v2598_v53, 4  ;;  %v2942_v2 = vrot.slane %v2941_v29, 4  ;;  %13895 = vmatprep.subr.msk.mxu1 %vm94_vm0, %v16122_v21  ;;  %13776 = vmatprep.mubr.msk.f32.mxu0 %vm45_vm1, %v8952_v1 }
 0x1e2   :  { %v2569_v63 = vadd.f32 %v2568_v3, %v2567_v50  ;;  %v2932_v10 = vrot.slane %v2931_v11, 1  ;;  %v2580_v15 = vrot.slane %v2579_v57, 2  ;;  %v2923_v58 = vrot.slane %v2922_v60, 2 }
 0x1e3   :  { %v2912_v22 = vadd.f32 %v2911_v45, %v2910_v24  ;;  %v2590_v37 = vadd.f32 %v2589_v23, %v2588_v35  ;;  %v2600_v28 = vadd.f32 %v2599_v30, %v2598_v53  ;;  %v2943_v51 = vadd.f32 %v2942_v2, %v2941_v29  ;;  %v16530_v35 = vpop.f32.mrb[90].mxu0  ;;  %v16532_v53 = vpop.f32.mrb[90].mxu1 }
 0x1e4   :  { %v2629_v50 = vsel %vm390_vm4, %v2569_v63, %v16477_v18  ;;  %v2933_v3 = vadd.f32 %v2932_v10, %v2931_v11  ;;  %v2581_v8 = vadd.f32 %v2580_v15, %v2579_v57  ;;  %v2924_v24 = vadd.f32 %v2923_v58, %v2922_v60  ;;  %v16539_v21 = vpop.f32.mrb[91].mxu0  ;;  %v19147_v60 = vld [vmem:[#allocation40_spill] sm:$0xff]  ;;  %v16550_v43 = vpop.f32.mrb[91].mxu1 }
 0x1e5   :  { %v2997_v29 = vsel %vm398_vm8, %v2912_v22, %v2996_v59  ;;  %v2630_v45 = vsel %vm392_vm5, %v16479_v0, %v2629_v50  ;;  %v2601_v23 = vrot.slane %v2600_v28, 2  ;;  %v2944_v30 = vrot.slane %v2943_v51, 2 }
 0x1e6   :  { %v16543_v18 = vsel %vm400_vm9, %v16483_v31, %v2997_v29  ;;  %v2582_v11 = vrot.slane %v2581_v8, 1  ;;  %v2925_v57 = vrot.slane %v2924_v24, 1  ;;  %v2491_v2 = vmax.f32 %v19147_v60, 0.0  ;;  %v8953_v31 = vld [vmem:[%s19048_s0 + $0x7c0] sm:$0xff] }
 0x1e7   :  { %19146 = vst [vmem:[#allocation37_spill] sm:$0xff] %v16543_v18  ;;  %v2602_v63 = vadd.f32 %v2601_v23, %v2600_v28  ;;  %v2945_v10 = vadd.f32 %v2944_v30, %v2943_v51  ;;  %v2858_v59 = vmax.f32 %v15962_v34, 0.0  ;;  %v2861_v0 = vmax.f32 %v15985_v56, 0.0  ;;  %v9320_v28 = vld [vmem:[%s19048_s0 + $0x3c8] sm:$0xff]  ;;  %13777 = vmatmul.mubr.msk.f32.gmra.mrb[196].mxu0 %vm45_vm1, %v8953_v31 }
 0x1e8   :  { %v2583_v15 = vadd.f32 %v2582_v11, %v2581_v8  ;;  %v2926_v58 = vadd.f32 %v2925_v57, %v2924_v24  ;;  %v2591_v22 = vsel %vm23_vm2, %v2491_v2, 0.0  ;;  %v3220_v1 = vmax.f32 %v15987_v13, 0.0  ;;  %13797 = vmatmul.mubr.msk.f32.gmra.mrb[196].mxu1 %vm45_vm1, %v9320_v28  ;;  %v16569_v28 = vpop.f32.mrb[92].mxu0 }
 0x1e9   :  { %v2603_v51 = vrot.slane %v2602_v63, 1  ;;  %v2946_v34 = vrot.slane %v2945_v10, 1  ;;  %v2592_v50 = vrot.slane %v2591_v22, 4  ;;  %v2934_v56 = vsel %vm23_vm2, %v2858_v59, 0.0 }
 0x1ea   :  { %v2631_v13 = vsel %vm394_vm6, %v2583_v15, %v2630_v45  ;;  %v2999_v8 = vsel %vm388_vm3, %v2933_v3, %v2926_v58  ;;  %v2935_v24 = vrot.slane %v2934_v56, 4  ;;  %v2955_v29 = vsel %vm23_vm2, %v2861_v0, 0.0  ;;  %v16571_v45 = vpop.f32.mrb[92].mxu1  ;;  %v8954_v3 = vld [vmem:[%s19048_s0 + $0x8c0] sm:$0xff] }
 0x1eb   :  { %v2604_v23 = vadd.f32 %v2603_v51, %v2602_v63  ;;  %v16564_v30 = vadd.f32 %v2946_v34, %v2945_v10  ;;  %v2593_v11 = vadd.f32 %v2592_v50, %v2591_v22  ;;  %v2632_v57 = vsel %vm396_vm7, %v2590_v37, %v2631_v13  ;;  %19148 = vst [vmem:[#allocation39_spill] sm:$0xff] %v16571_v45  ;;  %v16585_v51 = vpop.f32.mrb[93].mxu0 }
 0x1ec   :  { %v2936_v60 = vadd.f32 %v2935_v24, %v2934_v56  ;;  %v2956_v2 = vrot.slane %v2955_v29, 4  ;;  %v3242_v59 = vsel %vm23_vm2, %v3220_v1, 0.0  ;;  %v2860_v31 = vmax.f32 %v15993_v14, 0.0  ;;  %13779 = vmatprep.mubr.msk.f32.mxu0 %vm45_vm1, %v8954_v3  ;;  %v9321_v14 = vld [vmem:[%s19048_s0 + $0x4c8] sm:$0xff]  ;;  %19149 = vst [vmem:[#allocation40_spill] sm:$0xff] %v16585_v51 }
 0x1ed   :  { %v2594_v63 = vrot.slane %v2593_v11, 2  ;;  %v3243_v10 = vrot.slane %v3242_v59, 4  ;;  %v3219_v0 = vmax.f32 %v15996_v49, 0.0  ;;  %v2863_v37 = vmax.f32 %v16012_v33, 0.0  ;;  %13799 = vmatprep.mubr.msk.f32.mxu1 %vm45_vm1, %v9321_v14 }
 0x1ee   :  { %v2937_v15 = vrot.slane %v2936_v60, 2  ;;  %v2957_v58 = vadd.f32 %v2956_v2, %v2955_v29  ;;  %v2948_v22 = vsel %vm23_vm2, %v2860_v31, 0.0  ;;  %v3222_v1 = vmax.f32 %v16014_v19, 0.0 }
 0x1ef   :  { %v2595_v34 = vadd.f32 %v2594_v63, %v2593_v11  ;;  %v3244_v49 = vadd.f32 %v3243_v10, %v3242_v59  ;;  %v2949_v50 = vrot.slane %v2948_v22, 4  ;;  %v3235_v33 = vsel %vm23_vm2, %v3219_v0, 0.0  ;;  %v16590_v10 = vpop.f32.mrb[93].mxu1  ;;  %v9322_v0 = vld [vmem:[%s19048_s0 + $0x5c8] sm:$0xff] }
 0x1f0   :  { %v2938_v56 = vadd.f32 %v2937_v15, %v2936_v60  ;;  %v2958_v13 = vrot.slane %v2957_v58, 2  ;;  %v3236_v24 = vrot.slane %v3235_v33, 4  ;;  %v2969_v3 = vsel %vm23_vm2, %v2863_v37, 0.0  ;;  %v8955_v60 = vld [vmem:[%s19048_s0 + $0x9c0] sm:$0xff]  ;;  %13800 = vmatmul.mubr.msk.f32.gmra.mrb[198].mxu1 %vm45_vm1, %v9322_v0 }
 0x1f1   :  { %v2596_v18 = vrot.slane %v2595_v34, 1  ;;  %v3245_v29 = vrot.slane %v3244_v49, 2  ;;  %v2950_v2 = vadd.f32 %v2949_v50, %v2948_v22  ;;  %v2970_v31 = vrot.slane %v2969_v3, 4  ;;  %13780 = vmatmul.mubr.msk.f32.gmra.mrb[198].mxu0 %vm45_vm1, %v8955_v60 }
 0x1f2   :  { %v2939_v41 = vrot.slane %v2938_v56, 1  ;;  %v2959_v19 = vadd.f32 %v2958_v13, %v2957_v58  ;;  %v3237_v45 = vadd.f32 %v3236_v24, %v3235_v33  ;;  %v3256_v14 = vsel %vm23_vm2, %v3222_v1, 0.0 }
 0x1f3   :  { %v2597_v51 = vadd.f32 %v2596_v18, %v2595_v34  ;;  %v3246_v11 = vadd.f32 %v3245_v29, %v3244_v49  ;;  %v2951_v59 = vrot.slane %v2950_v2, 2  ;;  %v2971_v63 = vadd.f32 %v2970_v31, %v2969_v3 }
 0x1f4   :  { %v2940_v37 = vadd.f32 %v2939_v41, %v2938_v56  ;;  %v2960_v15 = vrot.slane %v2959_v19, 1  ;;  %v3238_v58 = vrot.slane %v3237_v45, 2  ;;  %v3257_v22 = vrot.slane %v3256_v14, 4  ;;  %v8956_v41 = vld [vmem:[%s19048_s0 + $0xac0] sm:$0xff]  ;;  %v9323_v56 = vld [vmem:[%s19048_s0 + $0x6c8] sm:$0xff] }
 0x1f5   :  { %v2633_v18 = vsel %vm398_vm8, %v2597_v51, %v2632_v57  ;;  %v3247_v1 = vrot.slane %v3246_v11, 1  ;;  %v2952_v34 = vadd.f32 %v2951_v59, %v2950_v2  ;;  %v2972_v49 = vrot.slane %v2971_v63, 2  ;;  %v16615_v2 = vpop.f32.mrb[94].mxu0  ;;  %13782 = vmatprep.mubr.msk.f32.mxu0 %vm45_vm1, %v8956_v41  ;;  %13802 = vmatprep.mubr.msk.f32.mxu1 %vm45_vm1, %v9323_v56 }
 0x1f6   :  { %v16602_v50 = vsel %vm400_vm9, %v2604_v23, %v2633_v18  ;;  %v3000_v33 = vsel %vm390_vm4, %v2940_v37, %v2999_v8  ;;  %v2961_v13 = vadd.f32 %v2960_v15, %v2959_v19  ;;  %v3239_v24 = vadd.f32 %v3238_v58, %v3237_v45  ;;  %v16613_v23 = vpop.f32.mrb[94].mxu1  ;;  %v16627_v18 = vpop.f32.mrb[95].mxu0 }
 0x1f7   :  { %19150 = vst [vmem:[#allocation45_spill] sm:$0xff] %v16602_v50  ;;  %v3248_v3 = vadd.f32 %v3247_v1, %v3246_v11  ;;  %v2953_v57 = vrot.slane %v2952_v34, 1  ;;  %v3001_v51 = vsel %vm392_vm5, %v16564_v30, %v3000_v33  ;;  %v2973_v29 = vadd.f32 %v2972_v49, %v2971_v63  ;;  %v16621_v11 = vpop.f32.mrb[95].mxu1 }
 0x1f8   :  { %v3240_v8 = vrot.slane %v3239_v24, 1  ;;  %v3258_v45 = vadd.f32 %v3257_v22, %v3256_v14  ;;  %v2862_v31 = vmax.f32 %v16030_v9, 0.0  ;;  %v3221_v19 = vmax.f32 %v16042_v26, 0.0  ;;  %v8957_v9 = vld [vmem:[%s19048_s0 + $0xbc0] sm:$0xff]  ;;  %v9324_v26 = vld [vmem:[%s19048_s0 + $0x7c8] sm:$0xff] }
 0x1f9   :  { %v2954_v59 = vadd.f32 %v2953_v57, %v2952_v34  ;;  %v2974_v60 = vrot.slane %v2973_v29, 1  ;;  %v3224_v30 = vmax.f32 %v16057_v7, 0.0  ;;  %v3591_v63 = vmax.f32 %v16059_v38, 0.0  ;;  %13783 = vmatmul.mubr.msk.f32.gmra.mrb[200].mxu0 %vm45_vm1, %v8957_v9  ;;  %13803 = vmatmul.mubr.msk.f32.gmra.mrb[200].mxu1 %vm45_vm1, %v9324_v26 }
 0x1fa   :  { %v3241_v0 = vadd.f32 %v3240_v8, %v3239_v24  ;;  %v3259_v37 = vrot.slane %v3258_v45, 2  ;;  %v2962_v15 = vsel %vm23_vm2, %v2862_v31, 0.0  ;;  %v3249_v58 = vsel %vm23_vm2, %v3221_v19, 0.0  ;;  %v16652_v31 = vpop.f32.mrb[96].mxu1  ;;  %v16654_v19 = vpop.f32.mrb[96].mxu0 }
 0x1fb   :  { %v3002_v7 = vsel %vm394_vm6, %v2954_v59, %v3001_v51  ;;  %v16636_v14 = vadd.f32 %v2974_v60, %v2973_v29  ;;  %v2963_v38 = vrot.slane %v2962_v15, 4  ;;  %v3250_v22 = vrot.slane %v3249_v58, 4  ;;  %v8958_v51 = vld [vmem:[%s19048_s0 + $0xcc0] sm:$0xff]  ;;  %v9325_v29 = vld [vmem:[%s19048_s0 + $0x8c8] sm:$0xff] }
 0x1fc   :  { %v3363_v1 = vsel %vm388_vm3, %v3248_v3, %v3241_v0  ;;  %v3260_v34 = vadd.f32 %v3259_v37, %v3258_v45  ;;  %v3003_v49 = vsel %vm396_vm7, %v2961_v13, %v3002_v7  ;;  %v3270_v33 = vsel %vm23_vm2, %v3224_v30, 0.0  ;;  %13785 = vmatprep.mubr.msk.f32.mxu0 %vm45_vm1, %v8958_v51  ;;  %13805 = vmatprep.mubr.msk.f32.mxu1 %vm45_vm1, %v9325_v29  ;;  %v16659_v0 = vpop.f32.mrb[97].mxu1  ;;  %v19152_v29 = vld [vmem:[#allocation10_spill] sm:$0xff] }
 0x1fd   :  { %v2964_v24 = vadd.f32 %v2963_v38, %v2962_v15  ;;  %v3251_v41 = vadd.f32 %v3250_v22, %v3249_v58  ;;  %v3271_v56 = vrot.slane %v3270_v33, 4  ;;  %v3613_v57 = vsel %vm23_vm2, %v3591_v63, 0.0  ;;  %19151 = vst [vmem:[#allocation46_spill] sm:$0xff] %v16659_v0 }
 0x1fe   :  { %v3261_v8 = vrot.slane %v3260_v34, 1  ;;  %v3614_v3 = vrot.slane %v3613_v57, 4  ;;  %v3223_v45 = vmax.f32 %v16065_v39, 0.0  ;;  %v3590_v13 = vmax.f32 %v16071_v61, 0.0 }
 0x1ff   :  { %v2965_v59 = vrot.slane %v2964_v24, 2  ;;  %v3252_v60 = vrot.slane %v3251_v41, 2  ;;  %v3272_v30 = vadd.f32 %v3271_v56, %v3270_v33  ;;  %v3226_v63 = vmax.f32 %v16086_v32, 0.0 }
 0x200   :  { %v3262_v37 = vadd.f32 %v3261_v8, %v3260_v34  ;;  %v3615_v15 = vadd.f32 %v3614_v3, %v3613_v57  ;;  %v3263_v39 = vsel %vm23_vm2, %v3223_v45, 0.0  ;;  %v3606_v61 = vsel %vm23_vm2, %v3590_v13, 0.0 }
 0x201   :  { %v2966_v58 = vadd.f32 %v2965_v59, %v2964_v24  ;;  %v3253_v9 = vadd.f32 %v3252_v60, %v3251_v41  ;;  %v3273_v26 = vrot.slane %v3272_v30, 2  ;;  %v3264_v7 = vrot.slane %v3263_v39, 4  ;;  %v16666_v59 = vpop.f32.mrb[97].mxu0  ;;  %v8959_v60 = vld [vmem:[%s19048_s0 + $0xdc0] sm:$0xff] }
 0x202   :  { %v3616_v38 = vrot.slane %v3615_v15, 2  ;;  %v3607_v22 = vrot.slane %v3606_v61, 4  ;;  %v3284_v51 = vsel %vm23_vm2, %v3226_v63, 0.0  ;;  %v3593_v33 = vmax.f32 %v19152_v29, 0.0  ;;  %13786 = vmatmul.mubr.msk.f32.gmra.mrb[202].mxu0 %vm45_vm1, %v8959_v60 }
 0x203   :  { %v2967_v56 = vrot.slane %v2966_v58, 1  ;;  %v3254_v32 = vrot.slane %v3253_v9, 1  ;;  %v3274_v50 = vadd.f32 %v3273_v26, %v3272_v30  ;;  %v3265_v0 = vadd.f32 %v3264_v7, %v3263_v39  ;;  %v9326_v30 = vld [vmem:[%s19048_s0 + $0x9c8] sm:$0xff] }
 0x204   :  { %v3617_v34 = vadd.f32 %v3616_v38, %v3615_v15  ;;  %v3608_v57 = vadd.f32 %v3607_v22, %v3606_v61  ;;  %v3285_v8 = vrot.slane %v3284_v51, 4  ;;  %v3627_v3 = vsel %vm23_vm2, %v3593_v33, 0.0  ;;  %13806 = vmatmul.mubr.msk.f32.gmra.mrb[202].mxu1 %vm45_vm1, %v9326_v30 }
 0x205   :  { %v2968_v45 = vadd.f32 %v2967_v56, %v2966_v58  ;;  %v3255_v24 = vadd.f32 %v3254_v32, %v3253_v9  ;;  %v3275_v41 = vrot.slane %v3274_v50, 1  ;;  %v3266_v13 = vrot.slane %v3265_v0, 2 }
 0x206   :  { %v3618_v63 = vrot.slane %v3617_v34, 1  ;;  %v3609_v15 = vrot.slane %v3608_v57, 2  ;;  %v3286_v39 = vadd.f32 %v3285_v8, %v3284_v51  ;;  %v3628_v61 = vrot.slane %v3627_v3, 4  ;;  %v8960_v51 = vld [vmem:[%s19048_s0 + $0xec0] sm:$0xff]  ;;  %v16690_v8 = vpop.f32.mrb[98].mxu0 }
 0x207   :  { %v3004_v58 = vsel %vm398_vm8, %v2968_v45, %v3003_v49  ;;  %v3364_v9 = vsel %vm390_vm4, %v3255_v24, %v3363_v1  ;;  %v3276_v26 = vadd.f32 %v3275_v41, %v3274_v50  ;;  %v3267_v7 = vadd.f32 %v3266_v13, %v3265_v0  ;;  %v9327_v49 = vld [vmem:[%s19048_s0 + $0xac8] sm:$0xff]  ;;  %v19154_v0 = vld [vmem:[#allocation11_spill] sm:$0xff]  ;;  %13788 = vmatprep.mubr.msk.f32.mxu0 %vm45_vm1, %v8960_v51  ;;  %v16699_v13 = vpop.f32.mrb[99].mxu0 }
 0x208   :  { %v16680_v38 = vsel %vm400_vm9, %v16636_v14, %v3004_v58  ;;  %v3619_v22 = vadd.f32 %v3618_v63, %v3617_v34  ;;  %v3365_v29 = vsel %vm392_vm5, %v3262_v37, %v3364_v9  ;;  %v3610_v33 = vadd.f32 %v3609_v15, %v3608_v57  ;;  %19155 = vst [vmem:[#allocation11_spill] sm:$0xff] %v16690_v8  ;;  %v16692_v14 = vpop.f32.mrb[98].mxu1  ;;  %v19157_v57 = vld [vmem:[#allocation14_spill] sm:$0xff]  ;;  %v19158_v24 = vld [vmem:[#allocation15_spill] sm:$0xff] }
 0x209   :  { %19153 = vst [vmem:[#allocation10_spill] sm:$0xff] %v16680_v38  ;;  %v3268_v56 = vrot.slane %v3267_v7, 1  ;;  %v3287_v1 = vrot.slane %v3286_v39, 2  ;;  %v3629_v50 = vadd.f32 %v3628_v61, %v3627_v3  ;;  %v3225_v32 = vmax.f32 %v19154_v0, 0.0  ;;  %19156 = vst [vmem:[#allocation47_spill] sm:$0xff] %v16692_v14  ;;  %13808 = vmatprep.mubr.msk.f32.mxu1 %vm45_vm1, %v9327_v49  ;;  %v16704_v51 = vpop.f32.mrb[99].mxu1 }
 0x20a   :  { %v3611_v37 = vrot.slane %v3610_v33, 1  ;;  %v3592_v34 = vmax.f32 %v16108_v54, 0.0  ;;  %v3228_v45 = vmax.f32 %v19157_v57, 0.0  ;;  %v3595_v41 = vmax.f32 %v19158_v24, 0.0  ;;  %19159 = vst [vmem:[#allocation14_spill] sm:$0xff] %v16699_v13  ;;  %19160 = vst [vmem:[#allocation15_spill] sm:$0xff] %v16704_v51 }
 0x20b   :  { %v3269_v3 = vadd.f32 %v3268_v56, %v3267_v7  ;;  %v3288_v60 = vadd.f32 %v3287_v1, %v3286_v39  ;;  %v3630_v30 = vrot.slane %v3629_v50, 2  ;;  %v3277_v63 = vsel %vm23_vm2, %v3225_v32, 0.0  ;;  %v8961_v54 = vld [vmem:[%s19048_s0 + $0xfc0] sm:$0xff]  ;;  %v9328_v7 = vld [vmem:[%s19048_s0 + $0xbc8] sm:$0xff] }
 0x20c   :  { %v3612_v15 = vadd.f32 %v3611_v37, %v3610_v33  ;;  %v3278_v61 = vrot.slane %v3277_v63, 4  ;;  %v3620_v58 = vsel %vm23_vm2, %v3592_v34, 0.0  ;;  %v3298_v9 = vsel %vm23_vm2, %v3228_v45, 0.0  ;;  %13789 = vmatmul.mubr.msk.f32.gmra.mrb[204].mxu0 %vm45_vm1, %v8961_v54  ;;  %13809 = vmatmul.mubr.msk.f32.gmra.mrb[204].mxu1 %vm45_vm1, %v9328_v7  ;;  %v19165_v7 = vld [vmem:[#allocation18_spill] sm:$0xff]  ;;  %v19167_v14 = vld [vmem:[#allocation19_spill] sm:$0xff] }
 0x20d   :  { %v3366_v39 = vsel %vm394_vm6, %v3269_v3, %v3365_v29  ;;  %v3289_v49 = vrot.slane %v3288_v60, 1  ;;  %v3631_v56 = vadd.f32 %v3630_v30, %v3629_v50  ;;  %v3621_v33 = vrot.slane %v3620_v58, 4  ;;  %v9329_v29 = vld [vmem:[%s19048_s0 + $0xcc8] sm:$0xff]  ;;  %v9688_v50 = vld [vmem:[%s19048_s0 + $0xd0] sm:$0xff] }
 0x20e   :  { %v3734_v1 = vsel %vm388_vm3, %v3619_v22, %v3612_v15  ;;  %v3279_v0 = vadd.f32 %v3278_v61, %v3277_v63  ;;  %v3367_v32 = vsel %vm396_vm7, %v3276_v26, %v3366_v39  ;;  %v3299_v37 = vrot.slane %v3298_v9, 4  ;;  %v19161_v63 = vld [vmem:[#allocation16_spill] sm:$0xff]  ;;  %v16725_v26 = vpop.f32.mrb[100].mxu0  ;;  %13811 = vmatprep.mubr.msk.f32.mxu1 %vm45_vm1, %v9329_v29  ;;  %13819 = vmatprep.mubr.msk.f32.mxu0 %vm45_vm1, %v9688_v50 }
 0x20f   :  { %v3290_v34 = vadd.f32 %v3289_v49, %v3288_v60  ;;  %v3632_v57 = vrot.slane %v3631_v56, 1  ;;  %v3622_v45 = vadd.f32 %v3621_v33, %v3620_v58  ;;  %v3641_v24 = vsel %vm23_vm2, %v3595_v41, 0.0  ;;  %19162 = vst [vmem:[#allocation16_spill] sm:$0xff] %v16725_v26  ;;  %v16727_v60 = vpop.f32.mrb[100].mxu1  ;;  %v19164_v58 = vld [vmem:[#allocation17_spill] sm:$0xff]  ;;  %v16733_v49 = vpop.f32.mrb[101].mxu0 }
 0x210   :  { %v3280_v3 = vrot.slane %v3279_v0, 2  ;;  %v3300_v30 = vadd.f32 %v3299_v37, %v3298_v9  ;;  %v3642_v22 = vrot.slane %v3641_v24, 4  ;;  %v3227_v15 = vmax.f32 %v19161_v63, 0.0  ;;  %19163 = vst [vmem:[#allocation48_spill] sm:$0xff] %v16727_v60  ;;  %19166 = vst [vmem:[#allocation17_spill] sm:$0xff] %v16733_v49  ;;  %v16740_v8 = vpop.f32.mrb[101].mxu1 }
 0x211   :  { %v3633_v41 = vadd.f32 %v3632_v57, %v3631_v56  ;;  %v3623_v61 = vrot.slane %v3622_v45, 2  ;;  %v3594_v54 = vmax.f32 %v19164_v58, 0.0  ;;  %v3230_v39 = vmax.f32 %v19165_v7, 0.0 }
 0x212   :  { %v3281_v9 = vadd.f32 %v3280_v3, %v3279_v0  ;;  %v3301_v33 = vrot.slane %v3300_v30, 2  ;;  %v3643_v37 = vadd.f32 %v3642_v22, %v3641_v24  ;;  %v3291_v63 = vsel %vm23_vm2, %v3227_v15, 0.0 }
 0x213   :  { %v3624_v38 = vadd.f32 %v3623_v61, %v3622_v45  ;;  %v3292_v26 = vrot.slane %v3291_v63, 4  ;;  %v3634_v60 = vsel %vm23_vm2, %v3594_v54, 0.0  ;;  %v3312_v29 = vsel %vm23_vm2, %v3230_v39, 0.0 }
 0x214   :  { %v3282_v50 = vrot.slane %v3281_v9, 1  ;;  %v3302_v56 = vadd.f32 %v3301_v33, %v3300_v30  ;;  %v3644_v57 = vrot.slane %v3643_v37, 2  ;;  %v3635_v51 = vrot.slane %v3634_v60, 4  ;;  %v9330_v30 = vld [vmem:[%s19048_s0 + $0xdc8] sm:$0xff] }
 0x215   :  { %v3625_v58 = vrot.slane %v3624_v38, 1  ;;  %v3293_v13 = vadd.f32 %v3292_v26, %v3291_v63  ;;  %v3313_v7 = vrot.slane %v3312_v29, 4  ;;  %v3597_v49 = vmax.f32 %v19167_v14, 0.0  ;;  %v9689_v26 = vld [vmem:[%s19048_s0 + $0x1d0] sm:$0xff]  ;;  %13812 = vmatmul.mubr.msk.f32.gmra.mrb[206].mxu1 %vm45_vm1, %v9330_v30 }
 0x216   :  { %v3283_v0 = vadd.f32 %v3282_v50, %v3281_v9  ;;  %v3303_v3 = vrot.slane %v3302_v56, 1  ;;  %v3645_v24 = vadd.f32 %v3644_v57, %v3643_v37  ;;  %v3636_v22 = vadd.f32 %v3635_v51, %v3634_v60  ;;  %13820 = vmatmul.mubr.msk.f32.vlgmr.msra.gmra.mrb[206].mxu0 %vm45_vm1, %v9689_v26  ;;  %v16758_v37 = vld [vmem:[%s19049_s1] sm:$0xf]  ;;  %v19169_v57 = vld [vmem:[#allocation20_spill] sm:$0xff] }
 0x217   :  { %v3626_v15 = vadd.f32 %v3625_v58, %v3624_v38  ;;  %v3294_v45 = vrot.slane %v3293_v13, 2  ;;  %v3314_v61 = vadd.f32 %v3313_v7, %v3312_v29  ;;  %v3655_v54 = vsel %vm23_vm2, %v3597_v49, 0.0  ;;  %13870 = vmatpush3.msk.msra.mxu0 %vm94_vm0, %v16758_v37 }
 0x218   :  { %v3368_v14 = vsel %vm398_vm8, %v3283_v0, %v3367_v32  ;;  %v3304_v39 = vadd.f32 %v3303_v3, %v3302_v56  ;;  %v3646_v9 = vrot.slane %v3645_v24, 1  ;;  %v3637_v51 = vrot.slane %v3636_v22, 2  ;;  %13921 = vmatprep.subr.msk.mxu0 %vm94_vm0, %v16758_v37  ;;  %v16773_v0 = vpop.f32.mrb[102].mxu0 }
 0x219   :  { %v16752_v38 = vsel %vm400_vm9, %v3290_v34, %v3368_v14  ;;  %v3735_v60 = vsel %vm390_vm4, %v3626_v15, %v3734_v1  ;;  %v3295_v49 = vadd.f32 %v3294_v45, %v3293_v13  ;;  %v3315_v33 = vrot.slane %v3314_v61, 2  ;;  %v9331_v34 = vld [vmem:[%s19048_s0 + $0xec8] sm:$0xff]  ;;  %v9690_v13 = vld [vmem:[%s19048_s0 + $0x2d0] sm:$0xff]  ;;  %19170 = vst [vmem:[#allocation19_spill] sm:$0xff] %v16773_v0  ;;  %v16781_v26 = vpop.f32.mrb[103].mxu0 }
 0x21a   :  { %19168 = vst [vmem:[#allocation18_spill] sm:$0xff] %v16752_v38  ;;  %v3647_v32 = vadd.f32 %v3646_v9, %v3645_v24  ;;  %v3638_v63 = vadd.f32 %v3637_v51, %v3636_v22  ;;  %v3736_v29 = vsel %vm392_vm5, %v3633_v41, %v3735_v60  ;;  %v3656_v50 = vrot.slane %v3655_v54, 4  ;;  %v16775_v41 = vpop.f32.mrb[102].mxu1  ;;  %13814 = vmatprep.mubr.msk.f32.mxu1 %vm45_vm1, %v9331_v34  ;;  %v19172_v22 = vld [vmem:[#allocation22_spill] sm:$0xff]  ;;  %v19173_v45 = vld [vmem:[#allocation41_spill] sm:$0xff]  ;;  %v9332_v60 = vld [vmem:[%s19048_s0 + $0xfc8] sm:$0xff] }
 0x21b   :  { %v3296_v1 = vrot.slane %v3295_v49, 1  ;;  %v3316_v56 = vadd.f32 %v3315_v33, %v3314_v61  ;;  %v3229_v58 = vmax.f32 %v19169_v57, 0.0  ;;  %v3596_v7 = vmax.f32 %v16198_v47, 0.0  ;;  %19171 = vst [vmem:[#allocation20_spill] sm:$0xff] %v16775_v41  ;;  %13822 = vmatprep.mubr.msk.f32.mxu0 %vm45_vm1, %v9690_v13  ;;  %19174 = vst [vmem:[#allocation22_spill] sm:$0xff] %v16781_v26  ;;  %v16785_v51 = vpop.f32.mrb[103].mxu1  ;;  %13815 = vmatmul.mubr.msk.f32.gmra.mrb[208].mxu1 %vm45_vm1, %v9332_v60 }
 0x21c   :  { %v3639_v3 = vrot.slane %v3638_v63, 1  ;;  %v3657_v24 = vadd.f32 %v3656_v50, %v3655_v54  ;;  %v3232_v15 = vmax.f32 %v19172_v22, 0.0  ;;  %v3599_v30 = vmax.f32 %v19173_v45, 0.0  ;;  %19175 = vst [vmem:[#allocation41_spill] sm:$0xff] %v16785_v51  ;;  %v9691_v54 = vld [vmem:[%s19048_s0 + $0x3d0] sm:$0xff]  ;;  %v10059_v60 = vld [vmem:[%s19048_s0 + $0xd8] sm:$0xff] }
 0x21d   :  { %v3297_v61 = vadd.f32 %v3296_v1, %v3295_v49  ;;  %v3317_v14 = vrot.slane %v3316_v56, 1  ;;  %v3305_v47 = vsel %vm23_vm2, %v3229_v58, 0.0  ;;  %v3648_v9 = vsel %vm23_vm2, %v3596_v7, 0.0  ;;  %13823 = vmatmul.mubr.msk.f32.gmra.mrb[208].mxu0 %vm45_vm1, %v9691_v54  ;;  %13845 = vmatprep.mubr.msk.f32.mxu1 %vm45_vm1, %v10059_v60  ;;  %v19179_v54 = vld [vmem:[#allocation24_spill] sm:$0xff] }
 0x21e   :  { %v3640_v33 = vadd.f32 %v3639_v3, %v3638_v63  ;;  %v3658_v50 = vrot.slane %v3657_v24, 2  ;;  %v3306_v34 = vrot.slane %v3305_v47, 4  ;;  %v3649_v13 = vrot.slane %v3648_v9, 4  ;;  %v9692_v3 = vld [vmem:[%s19048_s0 + $0x4d0] sm:$0xff] }
 0x21f   :  { %v3370_v49 = vsel %vm388_vm3, %v3304_v39, %v3297_v61  ;;  %v16796_v1 = vadd.f32 %v3317_v14, %v3316_v56  ;;  %v3326_v57 = vsel %vm23_vm2, %v3232_v15, 0.0  ;;  %v3669_v58 = vsel %vm23_vm2, %v3599_v30, 0.0  ;;  %v19176_v15 = vld [vmem:[#allocation42_spill] sm:$0xff]  ;;  %v16809_v30 = vpop.f32.mrb[104].mxu0  ;;  %13825 = vmatprep.mubr.msk.f32.mxu0 %vm45_vm1, %v9692_v3 }
 0x220   :  { %v3737_v7 = vsel %vm394_vm6, %v3640_v33, %v3736_v29  ;;  %v3659_v22 = vadd.f32 %v3658_v50, %v3657_v24  ;;  %v3307_v45 = vadd.f32 %v3306_v34, %v3305_v47  ;;  %v3650_v63 = vadd.f32 %v3649_v13, %v3648_v9  ;;  %19177 = vst [vmem:[#allocation42_spill] sm:$0xff] %v16809_v30  ;;  %v16811_v29 = vpop.f32.mrb[104].mxu1  ;;  %v16816_v50 = vpop.f32.mrb[105].mxu0 }
 0x221   :  { %v3738_v39 = vsel %vm396_vm7, %v3647_v32, %v3737_v7  ;;  %v3327_v56 = vrot.slane %v3326_v57, 4  ;;  %v3670_v61 = vrot.slane %v3669_v58, 4  ;;  %v3231_v14 = vmax.f32 %v19176_v15, 0.0  ;;  %19178 = vst [vmem:[#allocation49_spill] sm:$0xff] %v16811_v29  ;;  %19180 = vst [vmem:[#allocation24_spill] sm:$0xff] %v16816_v50 }
 0x222   :  { %v3660_v24 = vrot.slane %v3659_v22, 1  ;;  %v3308_v47 = vrot.slane %v3307_v45, 2  ;;  %v3651_v9 = vrot.slane %v3650_v63, 2  ;;  %v3598_v33 = vmax.f32 %v19179_v54, 0.0 }
 0x223   :  { %v3328_v32 = vadd.f32 %v3327_v56, %v3326_v57  ;;  %v3671_v34 = vadd.f32 %v3670_v61, %v3669_v58  ;;  %v3319_v13 = vsel %vm23_vm2, %v3231_v14, 0.0  ;;  %v3234_v7 = vmax.f32 %v16248_v44, 0.0 }
 0x224   :  { %v3661_v15 = vadd.f32 %v3660_v24, %v3659_v22  ;;  %v3309_v38 = vadd.f32 %v3308_v47, %v3307_v45  ;;  %v3652_v29 = vadd.f32 %v3651_v9, %v3650_v63  ;;  %v3320_v30 = vrot.slane %v3319_v13, 4 }
 0x225   :  { %v3329_v3 = vrot.slane %v3328_v32, 2  ;;  %v3672_v51 = vrot.slane %v3671_v34, 2  ;;  %v3662_v60 = vsel %vm23_vm2, %v3598_v33, 0.0  ;;  %v3340_v26 = vsel %vm23_vm2, %v3234_v7, 0.0  ;;  %v16824_v33 = vpop.f32.mrb[105].mxu1  ;;  %v9694_v7 = vld [vmem:[%s19048_s0 + $0x6d0] sm:$0xff] }
 0x226   :  { %v3310_v41 = vrot.slane %v3309_v38, 1  ;;  %v3653_v54 = vrot.slane %v3652_v29, 1  ;;  %v3321_v0 = vadd.f32 %v3320_v30, %v3319_v13  ;;  %v3663_v50 = vrot.slane %v3662_v60, 4  ;;  %19181 = vst [vmem:[#allocation50_spill] sm:$0xff] %v16824_v33  ;;  %v9693_v30 = vld [vmem:[%s19048_s0 + $0x5d0] sm:$0xff] }
 0x227   :  { %v3330_v57 = vadd.f32 %v3329_v3, %v3328_v32  ;;  %v3673_v58 = vadd.f32 %v3672_v51, %v3671_v34  ;;  %v3341_v56 = vrot.slane %v3340_v26, 4  ;;  %v3601_v61 = vmax.f32 %v16250_v6, 0.0  ;;  %v10060_v51 = vld [vmem:[%s19048_s0 + $0x1d8] sm:$0xff]  ;;  %13826 = vmatmul.mubr.msk.f32.gmra.mrb[210].mxu0 %vm45_vm1, %v9693_v30  ;;  %v19183_v3 = vld [vmem:[#allocation25_spill] sm:$0xff] }
 0x228   :  { %v3311_v44 = vadd.f32 %v3310_v41, %v3309_v38  ;;  %v3654_v22 = vadd.f32 %v3653_v54, %v3652_v29  ;;  %v3322_v45 = vrot.slane %v3321_v0, 2  ;;  %v3664_v63 = vadd.f32 %v3663_v50, %v3662_v60  ;;  %13846 = vmatmul.mubr.msk.f32.vlgmr.msra.gmra.mrb[210].mxu1 %vm45_vm1, %v10060_v51  ;;  %v19184_v54 = vld [vmem:[#allocation27_spill] sm:$0xff]  ;;  %13828 = vmatprep.mubr.msk.f32.mxu0 %vm45_vm1, %v9694_v7  ;;  %v10062_v30 = vld [vmem:[%s19048_s0 + $0x3d8] sm:$0xff] }
 0x229   :  { %v3331_v14 = vrot.slane %v3330_v57, 1  ;;  %v3674_v24 = vrot.slane %v3673_v58, 1  ;;  %v3342_v47 = vadd.f32 %v3341_v56, %v3340_v26  ;;  %v3683_v9 = vsel %vm23_vm2, %v3601_v61, 0.0  ;;  %13896 = vmatpush3.msk.msra.mxu1 %vm94_vm0, %v16758_v37  ;;  %v16855_v61 = vpop.f32.mrb[106].mxu0 }
 0x22a   :  { %v3371_v6 = vsel %vm390_vm4, %v3311_v44, %v3370_v49  ;;  %v3739_v38 = vsel %vm398_vm8, %v3654_v22, %v3738_v39  ;;  %v3323_v41 = vadd.f32 %v3322_v45, %v3321_v0  ;;  %v3665_v29 = vrot.slane %v3664_v63, 2  ;;  %13947 = vmatprep.subr.msk.mxu1 %vm94_vm0, %v16758_v37  ;;  %19186 = vst [vmem:[#allocation25_spill] sm:$0xff] %v16855_v61  ;;  %v16857_v44 = vpop.f32.mrb[106].mxu1 }
 0x22b   :  { %v16837_v26 = vsel %vm400_vm9, %v3661_v15, %v3739_v38  ;;  %v3332_v50 = vadd.f32 %v3331_v14, %v3330_v57  ;;  %v3675_v32 = vadd.f32 %v3674_v24, %v3673_v58  ;;  %v3372_v34 = vsel %vm392_vm5, %v16796_v1, %v3371_v6  ;;  %v10061_v15 = vld [vmem:[%s19048_s0 + $0x2d8] sm:$0xff]  ;;  %v19185_v58 = vld [vmem:[#allocation43_spill] sm:$0xff]  ;;  %19187 = vst [vmem:[#allocation27_spill] sm:$0xff] %v16857_v44  ;;  %v16861_v24 = vpop.f32.mrb[107].mxu0 }
 0x22c   :  { %19182 = vst [vmem:[#allocation51_spill] sm:$0xff] %v16837_v26  ;;  %v3324_v49 = vrot.slane %v3323_v41, 1  ;;  %v3666_v13 = vadd.f32 %v3665_v29, %v3664_v63  ;;  %v3343_v39 = vrot.slane %v3342_v47, 2  ;;  %v3684_v0 = vrot.slane %v3683_v9, 4  ;;  %13848 = vmatprep.mubr.msk.f32.mxu1 %vm45_vm1, %v10061_v15  ;;  %19188 = vst [vmem:[#allocation43_spill] sm:$0xff] %v16861_v24 }
 0x22d   :  { %v3233_v1 = vmax.f32 %v19183_v3, 0.0  ;;  %v3600_v60 = vmax.f32 %v16276_v46, 0.0  ;;  %v3603_v57 = vmax.f32 %v19184_v54, 0.0  ;;  %v3962_v56 = vmax.f32 %v19185_v58, 0.0  ;;  %v9695_v46 = vld [vmem:[%s19048_s0 + $0x7d0] sm:$0xff]  ;;  %13849 = vmatmul.mubr.msk.f32.gmra.mrb[212].mxu1 %vm45_vm1, %v10062_v30  ;;  %v16886_v58 = vpop.f32.mrb[108].mxu0 }
 0x22e   :  { %v3325_v22 = vadd.f32 %v3324_v49, %v3323_v41  ;;  %v3667_v45 = vrot.slane %v3666_v13, 1  ;;  %v3344_v63 = vadd.f32 %v3343_v39, %v3342_v47  ;;  %v3685_v14 = vadd.f32 %v3684_v0, %v3683_v9  ;;  %v16873_v47 = vpop.f32.mrb[107].mxu1  ;;  %13829 = vmatmul.mubr.msk.f32.gmra.mrb[212].mxu0 %vm45_vm1, %v9695_v46  ;;  %19190 = vst [vmem:[#allocation53_spill] sm:$0xff] %v16886_v58  ;;  %v19192_v46 = vld [vmem:[#allocation28_spill] sm:$0xff] }
 0x22f   :  { %v3333_v51 = vsel %vm23_vm2, %v3233_v1, 0.0  ;;  %v3676_v6 = vsel %vm23_vm2, %v3600_v60, 0.0  ;;  %v3697_v38 = vsel %vm23_vm2, %v3603_v57, 0.0  ;;  %v3984_v41 = vsel %vm23_vm2, %v3962_v56, 0.0  ;;  %19189 = vst [vmem:[#allocation52_spill] sm:$0xff] %v16873_v47  ;;  %v9696_v1 = vld [vmem:[%s19048_s0 + $0x8d0] sm:$0xff] }
 0x230   :  { %v3373_v9 = vsel %vm394_vm6, %v3325_v22, %v3372_v34  ;;  %v3668_v29 = vadd.f32 %v3667_v45, %v3666_v13  ;;  %v3345_v49 = vrot.slane %v3344_v63, 1  ;;  %v3686_v39 = vrot.slane %v3685_v14, 2  ;;  %v10063_v60 = vld [vmem:[%s19048_s0 + $0x4d8] sm:$0xff]  ;;  %v16888_v56 = vpop.f32.mrb[108].mxu1  ;;  %13831 = vmatprep.mubr.msk.f32.mxu0 %vm45_vm1, %v9696_v1 }
 0x231   :  { %v3334_v0 = vrot.slane %v3333_v51, 4  ;;  %v3374_v7 = vsel %vm396_vm7, %v3332_v50, %v3373_v9  ;;  %v3677_v15 = vrot.slane %v3676_v6, 4  ;;  %v3698_v3 = vrot.slane %v3697_v38, 4  ;;  %19191 = vst [vmem:[#allocation54_spill] sm:$0xff] %v16888_v56  ;;  %13851 = vmatprep.mubr.msk.f32.mxu1 %vm45_vm1, %v10063_v60  ;;  %v16893_v9 = vpop.f32.mrb[109].mxu0 }
 0x232   :  { %v3741_v54 = vsel %vm388_vm3, %v3675_v32, %v3668_v29  ;;  %v3346_v57 = vadd.f32 %v3345_v49, %v3344_v63  ;;  %v3687_v34 = vadd.f32 %v3686_v39, %v3685_v14  ;;  %v3985_v13 = vrot.slane %v3984_v41, 4  ;;  %19193 = vst [vmem:[#allocation28_spill] sm:$0xff] %v16893_v9  ;;  %v19194_v63 = vld [vmem:[#allocation29_spill] sm:$0xff]  ;;  %v19195_v29 = vld [vmem:[#allocation30_spill] sm:$0xff] }
 0x233   :  { %v3335_v50 = vadd.f32 %v3334_v0, %v3333_v51  ;;  %v3678_v22 = vadd.f32 %v3677_v15, %v3676_v6  ;;  %v3699_v45 = vadd.f32 %v3698_v3, %v3697_v38  ;;  %v3602_v30 = vmax.f32 %v19192_v46, 0.0 }
 0x234   :  { %v3688_v26 = vrot.slane %v3687_v34, 1  ;;  %v3986_v32 = vadd.f32 %v3985_v13, %v3984_v41  ;;  %v3961_v14 = vmax.f32 %v19194_v63, 0.0  ;;  %v3605_v49 = vmax.f32 %v19195_v29, 0.0  ;;  %v19196_v63 = vld [vmem:[#allocation31_spill] sm:$0xff] }
 0x235   :  { %v3336_v39 = vrot.slane %v3335_v50, 2  ;;  %v3679_v58 = vrot.slane %v3678_v22, 2  ;;  %v3700_v56 = vrot.slane %v3699_v45, 2  ;;  %v3690_v1 = vsel %vm23_vm2, %v3602_v30, 0.0 }
 0x236   :  { %v3689_v47 = vadd.f32 %v3688_v26, %v3687_v34  ;;  %v3987_v60 = vrot.slane %v3986_v32, 2  ;;  %v3691_v51 = vrot.slane %v3690_v1, 4  ;;  %v3977_v6 = vsel %vm23_vm2, %v3961_v14, 0.0  ;;  %v16902_v14 = vpop.f32.mrb[109].mxu1 }
 0x237   :  { %v3337_v38 = vadd.f32 %v3336_v39, %v3335_v50  ;;  %v3680_v0 = vadd.f32 %v3679_v58, %v3678_v22  ;;  %v3701_v15 = vadd.f32 %v3700_v56, %v3699_v45  ;;  %v3978_v3 = vrot.slane %v3977_v6, 4  ;;  %v9697_v58 = vld [vmem:[%s19048_s0 + $0x9d0] sm:$0xff] }
 0x238   :  { %v3988_v46 = vadd.f32 %v3987_v60, %v3986_v32  ;;  %v3692_v41 = vadd.f32 %v3691_v51, %v3690_v1  ;;  %v3711_v13 = vsel %vm23_vm2, %v3605_v49, 0.0  ;;  %v3964_v29 = vmax.f32 %v19196_v63, 0.0  ;;  %13832 = vmatmul.mubr.msk.f32.gmra.mrb[214].mxu0 %vm45_vm1, %v9697_v58  ;;  %v10064_v32 = vld [vmem:[%s19048_s0 + $0x5d8] sm:$0xff] }
 0x239   :  { %v3338_v9 = vrot.slane %v3337_v38, 1  ;;  %v3681_v24 = vrot.slane %v3680_v0, 1  ;;  %v3702_v44 = vrot.slane %v3701_v15, 1  ;;  %v3979_v61 = vadd.f32 %v3978_v3, %v3977_v6  ;;  %13852 = vmatmul.mubr.msk.f32.gmra.mrb[214].mxu1 %vm45_vm1, %v10064_v32 }
 0x23a   :  { %v3989_v30 = vrot.slane %v3988_v46, 1  ;;  %v3693_v26 = vrot.slane %v3692_v41, 2  ;;  %v3712_v34 = vrot.slane %v3711_v13, 4  ;;  %v3998_v33 = vsel %vm23_vm2, %v3964_v29, 0.0  ;;  %v19199_v29 = vld [vmem:[#allocation33_spill] sm:$0xff] }
 0x23b   :  { %v3339_v56 = vadd.f32 %v3338_v9, %v3337_v38  ;;  %v3682_v50 = vadd.f32 %v3681_v24, %v3680_v0  ;;  %v3703_v22 = vadd.f32 %v3702_v44, %v3701_v15  ;;  %v3980_v45 = vrot.slane %v3979_v61, 2  ;;  %v19197_v24 = vld [vmem:[#allocation32_spill] sm:$0xff]  ;;  %v9698_v38 = vld [vmem:[%s19048_s0 + $0xad0] sm:$0xff]  ;;  %v10065_v0 = vld [vmem:[%s19048_s0 + $0x6d8] sm:$0xff] }
 0x23c   :  { %v3990_v49 = vadd.f32 %v3989_v30, %v3988_v46  ;;  %v3694_v39 = vadd.f32 %v3693_v26, %v3692_v41  ;;  %v3713_v1 = vadd.f32 %v3712_v34, %v3711_v13  ;;  %v3999_v60 = vrot.slane %v3998_v33, 4  ;;  %v16925_v41 = vpop.f32.mrb[110].mxu1  ;;  %13834 = vmatprep.mubr.msk.f32.mxu0 %vm45_vm1, %v9698_v38  ;;  %13854 = vmatprep.mubr.msk.f32.mxu1 %vm45_vm1, %v10065_v0 }
 0x23d   :  { %v3375_v51 = vsel %vm398_vm8, %v3339_v56, %v3374_v7  ;;  %v3742_v6 = vsel %vm390_vm4, %v3682_v50, %v3741_v54  ;;  %v3981_v9 = vadd.f32 %v3980_v45, %v3979_v61  ;;  %v3604_v44 = vmax.f32 %v19197_v24, 0.0  ;;  %v16927_v61 = vpop.f32.mrb[110].mxu0  ;;  %v9699_v50 = vld [vmem:[%s19048_s0 + $0xbd0] sm:$0xff] }
 0x23e   :  { %v16922_v15 = vsel %vm400_vm9, %v3346_v57, %v3375_v51  ;;  %v3695_v3 = vrot.slane %v3694_v39, 1  ;;  %v3743_v46 = vsel %vm392_vm5, %v3689_v47, %v3742_v6  ;;  %v3714_v7 = vrot.slane %v3713_v1, 2  ;;  %v16933_v57 = vpop.f32.mrb[111].mxu1  ;;  %v16936_v56 = vpop.f32.mrb[111].mxu0  ;;  %13835 = vmatmul.mubr.msk.f32.gmra.mrb[216].mxu0 %vm45_vm1, %v9699_v50 }
 0x23f   :  { %19198 = vst [vmem:[#allocation29_spill] sm:$0xff] %v16922_v15  ;;  %v3982_v54 = vrot.slane %v3981_v9, 1  ;;  %v4000_v13 = vadd.f32 %v3999_v60, %v3998_v33  ;;  %v3704_v63 = vsel %vm23_vm2, %v3604_v44, 0.0  ;;  %v3963_v30 = vmax.f32 %v19199_v29, 0.0  ;;  %v10066_v33 = vld [vmem:[%s19048_s0 + $0x7d8] sm:$0xff]  ;;  %v16954_v29 = vpop.f32.mrb[112].mxu0 }
 0x240   :  { %v3696_v26 = vadd.f32 %v3695_v3, %v3694_v39  ;;  %v3715_v34 = vadd.f32 %v3714_v7, %v3713_v1  ;;  %v3705_v47 = vrot.slane %v3704_v63, 4  ;;  %v3966_v58 = vmax.f32 %v16360_v25, 0.0  ;;  %13855 = vmatmul.mubr.msk.f32.gmra.mrb[216].mxu1 %vm45_vm1, %v10066_v33 }
 0x241   :  { %v3983_v45 = vadd.f32 %v3982_v54, %v3981_v9  ;;  %v4001_v32 = vrot.slane %v4000_v13, 2  ;;  %v3991_v60 = vsel %vm23_vm2, %v3963_v30, 0.0  ;;  %v4333_v39 = vmax.f32 %v16362_v42, 0.0  ;;  %v16952_v54 = vpop.f32.mrb[112].mxu1 }
 0x242   :  { %v3744_v25 = vsel %vm394_vm6, %v3696_v26, %v3743_v46  ;;  %v3716_v1 = vrot.slane %v3715_v34, 1  ;;  %v3706_v51 = vadd.f32 %v3705_v47, %v3704_v63  ;;  %v3992_v6 = vrot.slane %v3991_v60, 4 }
 0x243   :  { %v4105_v24 = vsel %vm388_vm3, %v3990_v49, %v3983_v45  ;;  %v4002_v44 = vadd.f32 %v4001_v32, %v4000_v13  ;;  %v3745_v38 = vsel %vm396_vm7, %v3703_v22, %v3744_v25  ;;  %v4012_v9 = vsel %vm23_vm2, %v3966_v58, 0.0  ;;  %v10067_v58 = vld [vmem:[%s19048_s0 + $0x8d8] sm:$0xff]  ;;  %v16970_v25 = vpop.f32.mrb[113].mxu1 }
 0x244   :  { %v3717_v0 = vadd.f32 %v3716_v1, %v3715_v34  ;;  %v3707_v3 = vrot.slane %v3706_v51, 2  ;;  %v3993_v7 = vadd.f32 %v3992_v6, %v3991_v60  ;;  %v4013_v42 = vrot.slane %v4012_v9, 4  ;;  %v9700_v34 = vld [vmem:[%s19048_s0 + $0xcd0] sm:$0xff]  ;;  %13857 = vmatprep.mubr.msk.f32.mxu1 %vm45_vm1, %v10067_v58 }
 0x245   :  { %v4003_v30 = vrot.slane %v4002_v44, 1  ;;  %v4355_v46 = vsel %vm23_vm2, %v4333_v39, 0.0  ;;  %v3965_v63 = vmax.f32 %v16377_v17, 0.0  ;;  %v4332_v49 = vmax.f32 %v16389_v12, 0.0  ;;  %13837 = vmatprep.mubr.msk.f32.mxu0 %vm45_vm1, %v9700_v34 }
 0x246   :  { %v3708_v13 = vadd.f32 %v3707_v3, %v3706_v51  ;;  %v3994_v26 = vrot.slane %v3993_v7, 2  ;;  %v4014_v22 = vadd.f32 %v4013_v42, %v4012_v9  ;;  %v4356_v47 = vrot.slane %v4355_v46, 4 }
 0x247   :  { %v4004_v50 = vadd.f32 %v4003_v30, %v4002_v44  ;;  %v4005_v33 = vsel %vm23_vm2, %v3965_v63, 0.0  ;;  %v4348_v45 = vsel %vm23_vm2, %v4332_v49, 0.0  ;;  %v3968_v17 = vmax.f32 %v16401_v20, 0.0 }
 0x248   :  { %v3709_v12 = vrot.slane %v3708_v13, 1  ;;  %v3995_v32 = vadd.f32 %v3994_v26, %v3993_v7  ;;  %v4015_v60 = vrot.slane %v4014_v22, 2  ;;  %v4357_v39 = vadd.f32 %v4356_v47, %v4355_v46  ;;  %v9701_v7 = vld [vmem:[%s19048_s0 + $0xdd0] sm:$0xff]  ;;  %v10068_v46 = vld [vmem:[%s19048_s0 + $0x9d8] sm:$0xff] }
 0x249   :  { %v4006_v1 = vrot.slane %v4005_v33, 4  ;;  %v4349_v51 = vrot.slane %v4348_v45, 4  ;;  %v4026_v6 = vsel %vm23_vm2, %v3968_v17, 0.0  ;;  %v4335_v44 = vmax.f32 %v16403_v62, 0.0  ;;  %13838 = vmatmul.mubr.msk.f32.gmra.mrb[218].mxu0 %vm45_vm1, %v9701_v7  ;;  %13858 = vmatmul.mubr.msk.f32.gmra.mrb[218].mxu1 %vm45_vm1, %v10068_v46 }
 0x24a   :  { %v3710_v9 = vadd.f32 %v3709_v12, %v3708_v13  ;;  %v3996_v3 = vrot.slane %v3995_v32, 1  ;;  %v4016_v42 = vadd.f32 %v4015_v60, %v4014_v22  ;;  %v4358_v20 = vrot.slane %v4357_v39, 2  ;;  %v16982_v22 = vpop.f32.mrb[113].mxu0 }
 0x24b   :  { %v4007_v30 = vadd.f32 %v4006_v1, %v4005_v33  ;;  %v4350_v63 = vadd.f32 %v4349_v51, %v4348_v45  ;;  %v4027_v49 = vrot.slane %v4026_v6, 4  ;;  %v4369_v34 = vsel %vm23_vm2, %v4335_v44, 0.0 }
 0x24c   :  { %v3746_v26 = vsel %vm398_vm8, %v3710_v9, %v3745_v38  ;;  %v3997_v62 = vadd.f32 %v3996_v3, %v3995_v32  ;;  %v4017_v13 = vrot.slane %v4016_v42, 1  ;;  %v4359_v47 = vadd.f32 %v4358_v20, %v4357_v39  ;;  %v9702_v32 = vld [vmem:[%s19048_s0 + $0xed0] sm:$0xff]  ;;  %v10069_v39 = vld [vmem:[%s19048_s0 + $0xad8] sm:$0xff]  ;;  %v16997_v3 = vpop.f32.mrb[114].mxu0  ;;  %v19201_v20 = vld [vmem:[#allocation35_spill] sm:$0xff] }
 0x24d   :  { %v16987_v58 = vsel %vm400_vm9, %v3717_v0, %v3746_v26  ;;  %v4008_v33 = vrot.slane %v4007_v30, 2  ;;  %v4351_v45 = vrot.slane %v4350_v63, 2  ;;  %v4028_v17 = vadd.f32 %v4027_v49, %v4026_v6  ;;  %v16999_v6 = vpop.f32.mrb[114].mxu1  ;;  %13840 = vmatprep.mubr.msk.f32.mxu0 %vm45_vm1, %v9702_v32  ;;  %13860 = vmatprep.mubr.msk.f32.mxu1 %vm45_vm1, %v10069_v39  ;;  %v17005_v46 = vpop.f32.mrb[115].mxu0 }
 0x24e   :  { %19200 = vst [vmem:[#allocation30_spill] sm:$0xff] %v16987_v58  ;;  %v4106_v12 = vsel %vm390_vm4, %v3997_v62, %v4105_v24  ;;  %v4018_v60 = vadd.f32 %v4017_v13, %v4016_v42  ;;  %v4360_v1 = vrot.slane %v4359_v47, 1  ;;  %v4370_v38 = vrot.slane %v4369_v34, 4 }
 0x24f   :  { %v4009_v51 = vadd.f32 %v4008_v33, %v4007_v30  ;;  %v4107_v0 = vsel %vm392_vm5, %v4004_v50, %v4106_v12  ;;  %v4352_v44 = vadd.f32 %v4351_v45, %v4350_v63  ;;  %v4029_v9 = vrot.slane %v4028_v17, 2 }
 0x250   :  { %v4361_v24 = vadd.f32 %v4360_v1, %v4359_v47  ;;  %v4371_v42 = vadd.f32 %v4370_v38, %v4369_v34  ;;  %v3967_v49 = vmax.f32 %v19201_v20, 0.0  ;;  %v4334_v7 = vmax.f32 %v16423_v27, 0.0  ;;  %v17011_v47 = vpop.f32.mrb[115].mxu1  ;;  %v9703_v27 = vld [vmem:[%s19048_s0 + $0xfd0] sm:$0xff] }
 0x251   :  { %v4010_v30 = vrot.slane %v4009_v51, 1  ;;  %v4353_v50 = vrot.slane %v4352_v44, 1  ;;  %v4030_v63 = vadd.f32 %v4029_v9, %v4028_v17  ;;  %v3970_v26 = vmax.f32 %v16449_v16, 0.0  ;;  %13841 = vmatmul.mubr.msk.f32.gmra.mrb[220].mxu0 %vm45_vm1, %v9703_v27  ;;  %v10070_v16 = vld [vmem:[%s19048_s0 + $0xbd8] sm:$0xff]  ;;  %v17026_v27 = vpop.f32.mrb[116].mxu0 }
 0x252   :  { %v4372_v62 = vrot.slane %v4371_v42, 2  ;;  %v4019_v13 = vsel %vm23_vm2, %v3967_v49, 0.0  ;;  %v4362_v33 = vsel %vm23_vm2, %v4334_v7, 0.0  ;;  %v4337_v45 = vmax.f32 %v16451_v48, 0.0  ;;  %13861 = vmatmul.mubr.msk.f32.gmra.mrb[220].mxu1 %vm45_vm1, %v10070_v16 }
 0x253   :  { %v4011_v34 = vadd.f32 %v4010_v30, %v4009_v51  ;;  %v4354_v12 = vadd.f32 %v4353_v50, %v4352_v44  ;;  %v4031_v1 = vrot.slane %v4030_v63, 1  ;;  %v4020_v38 = vrot.slane %v4019_v13, 4 }
 0x254   :  { %v4373_v17 = vadd.f32 %v4372_v62, %v4371_v42  ;;  %v4363_v32 = vrot.slane %v4362_v33, 4  ;;  %v4040_v48 = vsel %vm23_vm2, %v3970_v26, 0.0  ;;  %v4383_v39 = vsel %vm23_vm2, %v4337_v45, 0.0  ;;  %v17028_v42 = vpop.f32.mrb[116].mxu1 }
 0x255   :  { %v4108_v9 = vsel %vm394_vm6, %v4011_v34, %v4107_v0  ;;  %v4476_v51 = vsel %vm388_vm3, %v4361_v24, %v4354_v12  ;;  %v4032_v44 = vadd.f32 %v4031_v1, %v4030_v63  ;;  %v4021_v20 = vadd.f32 %v4020_v38, %v4019_v13  ;;  %v10071_v0 = vld [vmem:[%s19048_s0 + $0xcd8] sm:$0xff]  ;;  %v17043_v1 = vpop.f32.mrb[117].mxu0  ;;  %v17048_v58 = vpop.f32.mrb[117].mxu1 }
 0x256   :  { %v4374_v49 = vrot.slane %v4373_v17, 1  ;;  %v4109_v7 = vsel %vm396_vm7, %v4018_v60, %v4108_v9  ;;  %v4364_v30 = vadd.f32 %v4363_v32, %v4362_v33  ;;  %v4041_v50 = vrot.slane %v4040_v48, 4  ;;  %v10430_v60 = vld [vmem:[%s19048_s0 + $0xe0] sm:$0xff]  ;;  %13863 = vmatprep.mubr.msk.f32.mxu1 %vm45_vm1, %v10071_v0 }
 0x257   :  { %v4022_v26 = vrot.slane %v4021_v20, 2  ;;  %v4384_v62 = vrot.slane %v4383_v39, 4  ;;  %v3969_v45 = vmax.f32 %v16457_v5, 0.0  ;;  %v4336_v16 = vmax.f32 %v16463_v36, 0.0  ;;  %13871 = vmatprep.mubr.msk.f32.mxu0 %vm45_vm1, %v10430_v60 }
 0x258   :  { %v4375_v24 = vadd.f32 %v4374_v49, %v4373_v17  ;;  %v4365_v63 = vrot.slane %v4364_v30, 2  ;;  %v4042_v13 = vadd.f32 %v4041_v50, %v4040_v48  ;;  %v3972_v33 = vmax.f32 %v16486_v52, 0.0 }
 0x259   :  { %v4023_v5 = vadd.f32 %v4022_v26, %v4021_v20  ;;  %v4385_v34 = vadd.f32 %v4384_v62, %v4383_v39  ;;  %v4033_v36 = vsel %vm23_vm2, %v3969_v45, 0.0  ;;  %v4376_v12 = vsel %vm23_vm2, %v4336_v16, 0.0 }
 0x25a   :  { %v4366_v38 = vadd.f32 %v4365_v63, %v4364_v30  ;;  %v4043_v32 = vrot.slane %v4042_v13, 2  ;;  %v4034_v9 = vrot.slane %v4033_v36, 4  ;;  %v4377_v17 = vrot.slane %v4376_v12, 4  ;;  %v10072_v30 = vld [vmem:[%s19048_s0 + $0xdd8] sm:$0xff]  ;;  %v10431_v63 = vld [vmem:[%s19048_s0 + $0x1e0] sm:$0xff] }
 0x25b   :  { %v4024_v49 = vrot.slane %v4023_v5, 1  ;;  %v4386_v48 = vrot.slane %v4385_v34, 2  ;;  %v4054_v52 = vsel %vm23_vm2, %v3972_v33, 0.0  ;;  %v4339_v50 = vmax.f32 %v16488_v40, 0.0  ;;  %13864 = vmatmul.mubr.msk.f32.gmra.mrb[222].mxu1 %vm45_vm1, %v10072_v30  ;;  %13872 = vmatmul.mubr.msk.f32.vlgmr.msra.gmra.mrb[222].mxu0 %vm45_vm1, %v10431_v63 }
 0x25c   :  { %v4367_v0 = vrot.slane %v4366_v38, 1  ;;  %v4044_v60 = vadd.f32 %v4043_v32, %v4042_v13  ;;  %v4035_v20 = vadd.f32 %v4034_v9, %v4033_v36  ;;  %v4378_v39 = vadd.f32 %v4377_v17, %v4376_v12  ;;  %13922 = vmatpush3.msk.msra.mxu0 %vm94_vm0, %v16758_v37 }
 0x25d   :  { %v4025_v26 = vadd.f32 %v4024_v49, %v4023_v5  ;;  %v4387_v62 = vadd.f32 %v4386_v48, %v4385_v34  ;;  %v4055_v45 = vrot.slane %v4054_v52, 4  ;;  %v4397_v16 = vsel %vm23_vm2, %v4339_v50, 0.0  ;;  %v10073_v48 = vld [vmem:[%s19048_s0 + $0xed8] sm:$0xff] }
 0x25e   :  { %v4368_v40 = vadd.f32 %v4367_v0, %v4366_v38  ;;  %v4045_v33 = vrot.slane %v4044_v60, 1  ;;  %v4036_v13 = vrot.slane %v4035_v20, 2  ;;  %v4379_v36 = vrot.slane %v4378_v39, 2  ;;  %13866 = vmatprep.mubr.msk.f32.mxu1 %vm45_vm1, %v10073_v48 }
 0x25f   :  { %v4110_v5 = vsel %vm398_vm8, %v4025_v26, %v4109_v7  ;;  %v4388_v34 = vrot.slane %v4387_v62, 1  ;;  %v4056_v12 = vadd.f32 %v4055_v45, %v4054_v52  ;;  %v4398_v32 = vrot.slane %v4397_v16, 4  ;;  %v10432_v7 = vld [vmem:[%s19048_s0 + $0x2e0] sm:$0xff]  ;;  %v17072_v45 = vpop.f32.mrb[118].mxu0 }
 0x260   :  { %v17062_v9 = vsel %vm400_vm9, %v4032_v44, %v4110_v5  ;;  %v4477_v38 = vsel %vm390_vm4, %v4368_v40, %v4476_v51  ;;  %v4046_v17 = vadd.f32 %v4045_v33, %v4044_v60  ;;  %v4037_v49 = vadd.f32 %v4036_v13, %v4035_v20  ;;  %v17074_v44 = vpop.f32.mrb[118].mxu1  ;;  %13874 = vmatprep.mubr.msk.f32.mxu0 %vm45_vm1, %v10432_v7  ;;  %v17080_v63 = vpop.f32.mrb[119].mxu0 }
 0x261   :  { %19202 = vst [vmem:[#allocation31_spill] sm:$0xff] %v17062_v9  ;;  %v4389_v52 = vadd.f32 %v4388_v34, %v4387_v62  ;;  %v4380_v50 = vadd.f32 %v4379_v36, %v4378_v39  ;;  %v4478_v0 = vsel %vm392_vm5, %v4375_v24, %v4477_v38  ;;  %v4057_v26 = vrot.slane %v4056_v12, 2  ;;  %v17086_v34 = vpop.f32.mrb[119].mxu1  ;;  %v17103_v9 = vpop.f32.mrb[120].mxu0 }
 0x262   :  { %v4038_v51 = vrot.slane %v4037_v49, 1  ;;  %v4399_v60 = vadd.f32 %v4398_v32, %v4397_v16  ;;  %v3971_v20 = vmax.f32 %v16504_v55, 0.0  ;;  %v4338_v30 = vmax.f32 %v16514_v4, 0.0  ;;  %v10074_v55 = vld [vmem:[%s19048_s0 + $0xfd8] sm:$0xff]  ;;  %v10433_v4 = vld [vmem:[%s19048_s0 + $0x3e0] sm:$0xff] }
 0x263   :  { %v4381_v39 = vrot.slane %v4380_v50, 1  ;;  %v4058_v62 = vadd.f32 %v4057_v26, %v4056_v12  ;;  %v3974_v24 = vmax.f32 %v16530_v35, 0.0  ;;  %v4341_v40 = vmax.f32 %v16532_v53, 0.0  ;;  %13867 = vmatmul.mubr.msk.f32.gmra.mrb[224].mxu1 %vm45_vm1, %v10074_v55  ;;  %13875 = vmatmul.mubr.msk.f32.gmra.mrb[224].mxu0 %vm45_vm1, %v10433_v4  ;;  %v17105_v4 = vpop.f32.mrb[120].mxu1 }
 0x264   :  { %v4039_v33 = vadd.f32 %v4038_v51, %v4037_v49  ;;  %v4400_v13 = vrot.slane %v4399_v60, 2  ;;  %v4047_v36 = vsel %vm23_vm2, %v3971_v20, 0.0  ;;  %v4390_v5 = vsel %vm23_vm2, %v4338_v30, 0.0 }
 0x265   :  { %v4382_v16 = vadd.f32 %v4381_v39, %v4380_v50  ;;  %v4059_v35 = vrot.slane %v4058_v62, 1  ;;  %v4048_v12 = vrot.slane %v4047_v36, 4  ;;  %v4391_v53 = vrot.slane %v4390_v5, 4 }
 0x266   :  { %v4112_v32 = vsel %vm388_vm3, %v4046_v17, %v4039_v33  ;;  %v4401_v38 = vadd.f32 %v4400_v13, %v4399_v60  ;;  %v4068_v49 = vsel %vm23_vm2, %v3974_v24, 0.0  ;;  %v4411_v48 = vsel %vm23_vm2, %v4341_v40, 0.0 }
 0x267   :  { %v4479_v7 = vsel %vm394_vm6, %v4382_v16, %v4478_v0  ;;  %v17100_v26 = vadd.f32 %v4059_v35, %v4058_v62  ;;  %v4049_v51 = vadd.f32 %v4048_v12, %v4047_v36  ;;  %v4392_v50 = vadd.f32 %v4391_v53, %v4390_v5  ;;  %v10801_v36 = vld [vmem:[%s19048_s0 + $0xe8] sm:$0xff] }
 0x268   :  { %v4402_v20 = vrot.slane %v4401_v38, 1  ;;  %v4480_v30 = vsel %vm396_vm7, %v4389_v52, %v4479_v7  ;;  %v4069_v39 = vrot.slane %v4068_v49, 4  ;;  %v4412_v55 = vrot.slane %v4411_v48, 4  ;;  %v10434_v52 = vld [vmem:[%s19048_s0 + $0x4e0] sm:$0xff]  ;;  %13897 = vmatprep.mubr.msk.f32.mxu1 %vm45_vm1, %v10801_v36 }
 0x269   :  { %v4050_v17 = vrot.slane %v4049_v51, 2  ;;  %v4393_v60 = vrot.slane %v4392_v50, 2  ;;  %v3973_v24 = vmax.f32 %v16539_v21, 0.0  ;;  %v4340_v40 = vmax.f32 %v16550_v43, 0.0  ;;  %13877 = vmatprep.mubr.msk.f32.mxu0 %vm45_vm1, %v10434_v52 }
 0x26a   :  { %v4403_v0 = vadd.f32 %v4402_v20, %v4401_v38  ;;  %v4070_v62 = vadd.f32 %v4069_v39, %v4068_v49  ;;  %v4413_v33 = vadd.f32 %v4412_v55, %v4411_v48  ;;  %v3976_v13 = vmax.f32 %v16569_v28, 0.0  ;;  %v17120_v38 = vpop.f32.mrb[121].mxu0 }
 0x26b   :  { %v4051_v5 = vadd.f32 %v4050_v17, %v4049_v51  ;;  %v4394_v16 = vadd.f32 %v4393_v60, %v4392_v50  ;;  %v4061_v35 = vsel %vm23_vm2, %v3973_v24, 0.0  ;;  %v4404_v21 = vsel %vm23_vm2, %v4340_v40, 0.0  ;;  %v19203_v51 = vld [vmem:[#allocation39_spill] sm:$0xff]  ;;  %v10802_v24 = vld [vmem:[%s19048_s0 + $0x1e8] sm:$0xff] }
 0x26c   :  { %v4071_v43 = vrot.slane %v4070_v62, 2  ;;  %v4414_v28 = vrot.slane %v4413_v33, 2  ;;  %v4062_v12 = vrot.slane %v4061_v35, 4  ;;  %v4405_v53 = vrot.slane %v4404_v21, 4  ;;  %v10435_v60 = vld [vmem:[%s19048_s0 + $0x5e0] sm:$0xff]  ;;  %13898 = vmatmul.mubr.msk.f32.vlgmr.msra.gmra.mrb[226].mxu1 %vm45_vm1, %v10802_v24 }
 0x26d   :  { %v4052_v49 = vrot.slane %v4051_v5, 1  ;;  %v4395_v48 = vrot.slane %v4394_v16, 1  ;;  %v4082_v7 = vsel %vm23_vm2, %v3976_v13, 0.0  ;;  %v4343_v50 = vmax.f32 %v19203_v51, 0.0  ;;  %v17131_v13 = vpop.f32.mrb[121].mxu1  ;;  %13878 = vmatmul.mubr.msk.f32.gmra.mrb[226].mxu0 %vm45_vm1, %v10435_v60  ;;  %13948 = vmatpush3.msk.msra.mxu1 %vm94_vm0, %v16758_v37 }
 0x26e   :  { %v4072_v20 = vadd.f32 %v4071_v43, %v4070_v62  ;;  %v4415_v39 = vadd.f32 %v4414_v28, %v4413_v33  ;;  %v4063_v55 = vadd.f32 %v4062_v12, %v4061_v35  ;;  %v4406_v17 = vadd.f32 %v4405_v53, %v4404_v21  ;;  %v10436_v12 = vld [vmem:[%s19048_s0 + $0x6e0] sm:$0xff]  ;;  %v10803_v53 = vld [vmem:[%s19048_s0 + $0x2e8] sm:$0xff] }
 0x26f   :  { %v4053_v40 = vadd.f32 %v4052_v49, %v4051_v5  ;;  %v4396_v52 = vadd.f32 %v4395_v48, %v4394_v16  ;;  %v4083_v36 = vrot.slane %v4082_v7, 4  ;;  %v4425_v15 = vsel %vm23_vm2, %v4343_v50, 0.0  ;;  %v17148_v50 = vpop.f32.mrb[122].mxu0  ;;  %13880 = vmatprep.mubr.msk.f32.mxu0 %vm45_vm1, %v10436_v12  ;;  %13900 = vmatprep.mubr.msk.f32.mxu1 %vm45_vm1, %v10803_v53 }
 0x270   :  { %v4073_v62 = vrot.slane %v4072_v20, 1  ;;  %v4416_v33 = vrot.slane %v4415_v39, 1  ;;  %v4064_v35 = vrot.slane %v4063_v55, 2  ;;  %v4407_v21 = vrot.slane %v4406_v17, 2 }
 0x271   :  { %v4113_v43 = vsel %vm390_vm4, %v4053_v40, %v4112_v32  ;;  %v4481_v5 = vsel %vm398_vm8, %v4396_v52, %v4480_v30  ;;  %v4084_v16 = vadd.f32 %v4083_v36, %v4082_v7  ;;  %v4426_v28 = vrot.slane %v4425_v15, 4  ;;  %v17150_v32 = vpop.f32.mrb[122].mxu1  ;;  %v17156_v40 = vpop.f32.mrb[123].mxu0 }
 0x272   :  { %v17146_v49 = vsel %vm400_vm9, %v4403_v0, %v4481_v5  ;;  %v4074_v48 = vadd.f32 %v4073_v62, %v4072_v20  ;;  %v4417_v51 = vadd.f32 %v4416_v33, %v4415_v39  ;;  %v4065_v37 = vadd.f32 %v4064_v35, %v4063_v55  ;;  %v19205_v20 = vld [vmem:[#allocation40_spill] sm:$0xff] }
 0x273   :  { %19204 = vst [vmem:[#allocation32_spill] sm:$0xff] %v17146_v49  ;;  %v4114_v30 = vsel %vm392_vm5, %v17100_v26, %v4113_v43  ;;  %v4408_v7 = vadd.f32 %v4407_v21, %v4406_v17  ;;  %v4085_v60 = vrot.slane %v4084_v16, 2  ;;  %v4427_v24 = vadd.f32 %v4426_v28, %v4425_v15  ;;  %v17162_v26 = vpop.f32.mrb[123].mxu1 }
 0x274   :  { %v4066_v0 = vrot.slane %v4065_v37, 1  ;;  %v3975_v39 = vmax.f32 %v19205_v20, 0.0  ;;  %v4342_v55 = vmax.f32 %v16590_v10, 0.0  ;;  %v4345_v52 = vmax.f32 %v16613_v23, 0.0  ;;  %v10437_v10 = vld [vmem:[%s19048_s0 + $0x7e0] sm:$0xff]  ;;  %v10804_v23 = vld [vmem:[%s19048_s0 + $0x3e8] sm:$0xff] }
 0x275   :  { %v4409_v36 = vrot.slane %v4408_v7, 1  ;;  %v4086_v62 = vadd.f32 %v4085_v60, %v4084_v16  ;;  %v4428_v33 = vrot.slane %v4427_v24, 2  ;;  %v4704_v35 = vmax.f32 %v16615_v2, 0.0  ;;  %13881 = vmatmul.mubr.msk.f32.gmra.mrb[228].mxu0 %vm45_vm1, %v10437_v10  ;;  %13901 = vmatmul.mubr.msk.f32.gmra.mrb[228].mxu1 %vm45_vm1, %v10804_v23  ;;  %v17181_v10 = vpop.f32.mrb[124].mxu1 }
 0x276   :  { %v4067_v17 = vadd.f32 %v4066_v0, %v4065_v37  ;;  %v4075_v15 = vsel %vm23_vm2, %v3975_v39, 0.0  ;;  %v4418_v21 = vsel %vm23_vm2, %v4342_v55, 0.0  ;;  %v4439_v43 = vsel %vm23_vm2, %v4345_v52, 0.0 }
 0x277   :  { %v4410_v5 = vadd.f32 %v4409_v36, %v4408_v7  ;;  %v4087_v16 = vrot.slane %v4086_v62, 1  ;;  %v4429_v2 = vadd.f32 %v4428_v33, %v4427_v24  ;;  %v4076_v28 = vrot.slane %v4075_v15, 4  ;;  %v17179_v33 = vpop.f32.mrb[124].mxu0 }
 0x278   :  { %v4115_v12 = vsel %vm394_vm6, %v4067_v17, %v4114_v30  ;;  %v4419_v53 = vrot.slane %v4418_v21, 4  ;;  %v4440_v37 = vrot.slane %v4439_v43, 4  ;;  %v4726_v60 = vsel %vm23_vm2, %v4704_v35, 0.0 }
 0x279   :  { %v4483_v0 = vsel %vm388_vm3, %v4417_v51, %v4410_v5  ;;  %v4088_v20 = vadd.f32 %v4087_v16, %v4086_v62  ;;  %v4430_v39 = vrot.slane %v4429_v2, 1  ;;  %v4077_v55 = vadd.f32 %v4076_v28, %v4075_v15 }
 0x27a   :  { %v4116_v7 = vsel %vm396_vm7, %v4074_v48, %v4115_v12  ;;  %v4420_v52 = vadd.f32 %v4419_v53, %v4418_v21  ;;  %v4441_v24 = vadd.f32 %v4440_v37, %v4439_v43  ;;  %v4727_v36 = vrot.slane %v4726_v60, 4  ;;  %v10438_v48 = vld [vmem:[%s19048_s0 + $0x8e0] sm:$0xff]  ;;  %v10805_v21 = vld [vmem:[%s19048_s0 + $0x4e8] sm:$0xff]  ;;  %v17197_v12 = vpop.f32.mrb[125].mxu0 }
 0x27b   :  { %v4431_v23 = vadd.f32 %v4430_v39, %v4429_v2  ;;  %v4078_v30 = vrot.slane %v4077_v55, 2  ;;  %v4344_v17 = vmax.f32 %v16621_v11, 0.0  ;;  %v4703_v35 = vmax.f32 %v16627_v18, 0.0  ;;  %13883 = vmatprep.mubr.msk.f32.mxu0 %vm45_vm1, %v10438_v48  ;;  %13903 = vmatprep.mubr.msk.f32.mxu1 %vm45_vm1, %v10805_v21  ;;  %19206 = vst [vmem:[#allocation33_spill] sm:$0xff] %v17197_v12  ;;  %v17207_v12 = vpop.f32.mrb[125].mxu1 }
 0x27c   :  { %v4421_v49 = vrot.slane %v4420_v52, 2  ;;  %v4442_v51 = vrot.slane %v4441_v24, 2  ;;  %v4728_v62 = vadd.f32 %v4727_v36, %v4726_v60  ;;  %v4347_v15 = vmax.f32 %v16652_v31, 0.0  ;;  %19207 = vst [vmem:[#allocation35_spill] sm:$0xff] %v17207_v12 }
 0x27d   :  { %v4079_v43 = vadd.f32 %v4078_v30, %v4077_v55  ;;  %v4432_v5 = vsel %vm23_vm2, %v4344_v17, 0.0  ;;  %v4719_v11 = vsel %vm23_vm2, %v4703_v35, 0.0  ;;  %v4706_v18 = vmax.f32 %v16654_v19, 0.0 }
 0x27e   :  { %v4422_v31 = vadd.f32 %v4421_v49, %v4420_v52  ;;  %v4443_v16 = vadd.f32 %v4442_v51, %v4441_v24  ;;  %v4729_v2 = vrot.slane %v4728_v62, 2  ;;  %v4433_v28 = vrot.slane %v4432_v5, 4  ;;  %v10439_v49 = vld [vmem:[%s19048_s0 + $0x9e0] sm:$0xff]  ;;  %v10806_v52 = vld [vmem:[%s19048_s0 + $0x5e8] sm:$0xff] }
 0x27f   :  { %v4080_v53 = vrot.slane %v4079_v43, 1  ;;  %v4720_v37 = vrot.slane %v4719_v11, 4  ;;  %v4453_v60 = vsel %vm23_vm2, %v4347_v15, 0.0  ;;  %v4740_v39 = vsel %vm23_vm2, %v4706_v18, 0.0  ;;  %13884 = vmatmul.mubr.msk.f32.gmra.mrb[230].mxu0 %vm45_vm1, %v10439_v49  ;;  %13904 = vmatmul.mubr.msk.f32.gmra.mrb[230].mxu1 %vm45_vm1, %v10806_v52 }
 0x280   :  { %v4423_v55 = vrot.slane %v4422_v31, 1  ;;  %v4444_v36 = vrot.slane %v4443_v16, 1  ;;  %v4730_v30 = vadd.f32 %v4729_v2, %v4728_v62  ;;  %v4434_v19 = vadd.f32 %v4433_v28, %v4432_v5 }
 0x281   :  { %v4081_v17 = vadd.f32 %v4080_v53, %v4079_v43  ;;  %v4721_v35 = vadd.f32 %v4720_v37, %v4719_v11  ;;  %v4454_v48 = vrot.slane %v4453_v60, 4  ;;  %v4741_v21 = vrot.slane %v4740_v39, 4  ;;  %v10440_v53 = vld [vmem:[%s19048_s0 + $0xae0] sm:$0xff]  ;;  %v10807_v37 = vld [vmem:[%s19048_s0 + $0x6e8] sm:$0xff] }
 0x282   :  { %v4424_v24 = vadd.f32 %v4423_v55, %v4422_v31  ;;  %v4445_v51 = vadd.f32 %v4444_v36, %v4443_v16  ;;  %v4731_v15 = vrot.slane %v4730_v30, 1  ;;  %v4435_v18 = vrot.slane %v4434_v19, 2  ;;  %v17223_v36 = vpop.f32.mrb[126].mxu1  ;;  %13886 = vmatprep.mubr.msk.f32.mxu0 %vm45_vm1, %v10440_v53  ;;  %13906 = vmatprep.mubr.msk.f32.mxu1 %vm45_vm1, %v10807_v37 }
 0x283   :  { %v4117_v62 = vsel %vm398_vm8, %v4081_v17, %v4116_v7  ;;  %v4722_v43 = vrot.slane %v4721_v35, 2  ;;  %v4455_v5 = vadd.f32 %v4454_v48, %v4453_v60  ;;  %v4742_v11 = vadd.f32 %v4741_v21, %v4740_v39  ;;  %19209 = vst [vmem:[#allocation40_spill] sm:$0xff] %v17223_v36  ;;  %v19212_v48 = vld [vmem:[#allocation11_spill] sm:$0xff]  ;;  %v17232_v49 = vpop.f32.mrb[127].mxu1  ;;  %v19220_v36 = vld [vmem:[#allocation16_spill] sm:$0xff] }
 0x284   :  { %v17213_v2 = vsel %vm400_vm9, %v4088_v20, %v4117_v62  ;;  %v4484_v28 = vsel %vm390_vm4, %v4424_v24, %v4483_v0  ;;  %v4732_v31 = vadd.f32 %v4731_v15, %v4730_v30  ;;  %v4436_v16 = vadd.f32 %v4435_v18, %v4434_v19  ;;  %v17225_v20 = vpop.f32.mrb[126].mxu0  ;;  %v19211_v30 = vld [vmem:[#allocation46_spill] sm:$0xff]  ;;  %v19214_v24 = vld [vmem:[#allocation47_spill] sm:$0xff] }
 0x285   :  { %19208 = vst [vmem:[#allocation39_spill] sm:$0xff] %v17213_v2  ;;  %v4485_v7 = vsel %vm392_vm5, %v4431_v23, %v4484_v28  ;;  %v4723_v55 = vadd.f32 %v4722_v43, %v4721_v35  ;;  %v4456_v60 = vrot.slane %v4455_v5, 2  ;;  %v4743_v39 = vrot.slane %v4742_v11, 2  ;;  %19210 = vst [vmem:[#allocation55_spill] sm:$0xff] %v17225_v20  ;;  %v17235_v18 = vpop.f32.mrb[127].mxu0  ;;  %v10441_v62 = vld [vmem:[%s19048_s0 + $0xbe0] sm:$0xff] }
 0x286   :  { %v4437_v0 = vrot.slane %v4436_v16, 1  ;;  %v4346_v19 = vmax.f32 %v19211_v30, 0.0  ;;  %v4705_v17 = vmax.f32 %v16666_v59, 0.0  ;;  %v4708_v21 = vmax.f32 %v19212_v48, 0.0  ;;  %19213 = vst [vmem:[#allocation46_spill] sm:$0xff] %v17232_v49  ;;  %19215 = vst [vmem:[#allocation11_spill] sm:$0xff] %v17235_v18  ;;  %13887 = vmatmul.mubr.msk.f32.gmra.mrb[232].mxu0 %vm45_vm1, %v10441_v62 }
 0x287   :  { %v4724_v23 = vrot.slane %v4723_v55, 1  ;;  %v4457_v35 = vadd.f32 %v4456_v60, %v4455_v5  ;;  %v4744_v52 = vadd.f32 %v4743_v39, %v4742_v11  ;;  %v5075_v15 = vmax.f32 %v19214_v24, 0.0  ;;  %v10808_v43 = vld [vmem:[%s19048_s0 + $0x7e8] sm:$0xff]  ;;  %v17253_v2 = vpop.f32.mrb[128].mxu1  ;;  %v17255_v62 = vpop.f32.mrb[128].mxu0  ;;  %v19219_v20 = vld [vmem:[#allocation15_spill] sm:$0xff] }
 0x288   :  { %v4438_v59 = vadd.f32 %v4437_v0, %v4436_v16  ;;  %v4446_v28 = vsel %vm23_vm2, %v4346_v19, 0.0  ;;  %v4733_v53 = vsel %vm23_vm2, %v4705_v17, 0.0  ;;  %v4754_v5 = vsel %vm23_vm2, %v4708_v21, 0.0  ;;  %13907 = vmatmul.mubr.msk.f32.gmra.mrb[232].mxu1 %vm45_vm1, %v10808_v43  ;;  %19216 = vst [vmem:[#allocation47_spill] sm:$0xff] %v17253_v2  ;;  %19217 = vst [vmem:[#allocation56_spill] sm:$0xff] %v17255_v62  ;;  %v17276_v62 = vpop.f32.mrb[129].mxu0 }
 0x289   :  { %v4725_v11 = vadd.f32 %v4724_v23, %v4723_v55  ;;  %v4458_v37 = vrot.slane %v4457_v35, 1  ;;  %v4745_v60 = vrot.slane %v4744_v52, 1  ;;  %v4447_v39 = vrot.slane %v4446_v28, 4  ;;  %19223 = vst [vmem:[#allocation15_spill] sm:$0xff] %v17276_v62 }
 0x28a   :  { %v4486_v30 = vsel %vm394_vm6, %v4438_v59, %v4485_v7  ;;  %v4734_v48 = vrot.slane %v4733_v53, 4  ;;  %v4755_v24 = vrot.slane %v4754_v5, 4  ;;  %v5097_v16 = vsel %vm23_vm2, %v5075_v15, 0.0  ;;  %v19218_v59 = vld [vmem:[#allocation14_spill] sm:$0xff] }
 0x28b   :  { %v4847_v0 = vsel %vm388_vm3, %v4732_v31, %v4725_v11  ;;  %v4459_v19 = vadd.f32 %v4458_v37, %v4457_v35  ;;  %v17251_v17 = vadd.f32 %v4745_v60, %v4744_v52  ;;  %v4448_v21 = vadd.f32 %v4447_v39, %v4446_v28  ;;  %v10442_v35 = vld [vmem:[%s19048_s0 + $0xce0] sm:$0xff]  ;;  %v10809_v52 = vld [vmem:[%s19048_s0 + $0x8e8] sm:$0xff]  ;;  %v17273_v39 = vpop.f32.mrb[129].mxu1 }
 0x28c   :  { %v4487_v55 = vsel %vm396_vm7, %v4445_v51, %v4486_v30  ;;  %v4735_v23 = vadd.f32 %v4734_v48, %v4733_v53  ;;  %v4756_v43 = vadd.f32 %v4755_v24, %v4754_v5  ;;  %v5098_v18 = vrot.slane %v5097_v16, 4  ;;  %v19221_v5 = vld [vmem:[#allocation48_spill] sm:$0xff]  ;;  %13889 = vmatprep.mubr.msk.f32.mxu0 %vm45_vm1, %v10442_v35  ;;  %13909 = vmatprep.mubr.msk.f32.mxu1 %vm45_vm1, %v10809_v52 }
 0x28d   :  { %v4449_v7 = vrot.slane %v4448_v21, 2  ;;  %v4707_v49 = vmax.f32 %v19218_v59, 0.0  ;;  %v5074_v15 = vmax.f32 %v19219_v20, 0.0  ;;  %v4710_v31 = vmax.f32 %v19220_v36, 0.0  ;;  %19222 = vst [vmem:[#allocation14_spill] sm:$0xff] %v17273_v39 }
 0x28e   :  { %v4736_v28 = vrot.slane %v4735_v23, 2  ;;  %v4757_v51 = vrot.slane %v4756_v43, 2  ;;  %v5099_v53 = vadd.f32 %v5098_v18, %v5097_v16  ;;  %v5077_v11 = vmax.f32 %v19221_v5, 0.0 }
 0x28f   :  { %v4450_v20 = vadd.f32 %v4449_v7, %v4448_v21  ;;  %v4747_v36 = vsel %vm23_vm2, %v4707_v49, 0.0  ;;  %v5090_v37 = vsel %vm23_vm2, %v5074_v15, 0.0  ;;  %v4768_v60 = vsel %vm23_vm2, %v4710_v31, 0.0  ;;  %v10443_v15 = vld [vmem:[%s19048_s0 + $0xde0] sm:$0xff] }
 0x290   :  { %v4737_v30 = vadd.f32 %v4736_v28, %v4735_v23  ;;  %v4758_v48 = vadd.f32 %v4757_v51, %v4756_v43  ;;  %v5100_v24 = vrot.slane %v5099_v53, 2  ;;  %v4748_v59 = vrot.slane %v4747_v36, 4  ;;  %v10810_v23 = vld [vmem:[%s19048_s0 + $0x9e8] sm:$0xff]  ;;  %13890 = vmatmul.mubr.msk.f32.gmra.mrb[234].mxu0 %vm45_vm1, %v10443_v15 }
 0x291   :  { %v4451_v18 = vrot.slane %v4450_v20, 1  ;;  %v5091_v16 = vrot.slane %v5090_v37, 4  ;;  %v4769_v5 = vrot.slane %v4768_v60, 4  ;;  %v5111_v35 = vsel %vm23_vm2, %v5077_v11, 0.0  ;;  %13910 = vmatmul.mubr.msk.f32.gmra.mrb[234].mxu1 %vm45_vm1, %v10810_v23 }
 0x292   :  { %v4738_v21 = vrot.slane %v4737_v30, 1  ;;  %v4759_v7 = vrot.slane %v4758_v48, 1  ;;  %v5101_v49 = vadd.f32 %v5100_v24, %v5099_v53  ;;  %v4749_v52 = vadd.f32 %v4748_v59, %v4747_v36 }
 0x293   :  { %v4452_v43 = vadd.f32 %v4451_v18, %v4450_v20  ;;  %v5092_v31 = vadd.f32 %v5091_v16, %v5090_v37  ;;  %v4770_v28 = vadd.f32 %v4769_v5, %v4768_v60  ;;  %v5112_v51 = vrot.slane %v5111_v35, 4  ;;  %v17291_v18 = vpop.f32.mrb[130].mxu0  ;;  %v17293_v16 = vpop.f32.mrb[130].mxu1 }
 0x294   :  { %v4739_v11 = vadd.f32 %v4738_v21, %v4737_v30  ;;  %v4760_v62 = vadd.f32 %v4759_v7, %v4758_v48  ;;  %v5102_v53 = vrot.slane %v5101_v49, 1  ;;  %v4750_v36 = vrot.slane %v4749_v52, 2  ;;  %19225 = vst [vmem:[#allocation48_spill] sm:$0xff] %v17293_v16  ;;  %v10444_v30 = vld [vmem:[%s19048_s0 + $0xee0] sm:$0xff]  ;;  %v19226_v21 = vld [vmem:[#allocation17_spill] sm:$0xff]  ;;  %v17308_v23 = vpop.f32.mrb[131].mxu0 }
 0x295   :  { %v4488_v24 = vsel %vm398_vm8, %v4452_v43, %v4487_v55  ;;  %v5093_v59 = vrot.slane %v5092_v31, 2  ;;  %v4771_v39 = vrot.slane %v4770_v28, 2  ;;  %v5113_v2 = vadd.f32 %v5112_v51, %v5111_v35  ;;  %v10811_v55 = vld [vmem:[%s19048_s0 + $0xae8] sm:$0xff]  ;;  %13892 = vmatprep.mubr.msk.f32.mxu0 %vm45_vm1, %v10444_v30  ;;  %19228 = vst [vmem:[#allocation17_spill] sm:$0xff] %v17308_v23 }
 0x296   :  { %v17288_v12 = vsel %vm400_vm9, %v4459_v19, %v4488_v24  ;;  %v4848_v20 = vsel %vm390_vm4, %v4739_v11, %v4847_v0  ;;  %v5103_v37 = vadd.f32 %v5102_v53, %v5101_v49  ;;  %v4751_v60 = vadd.f32 %v4750_v36, %v4749_v52  ;;  %13912 = vmatprep.mubr.msk.f32.mxu1 %vm45_vm1, %v10811_v55  ;;  %v19227_v52 = vld [vmem:[#allocation19_spill] sm:$0xff] }
 0x297   :  { %19224 = vst [vmem:[#allocation16_spill] sm:$0xff] %v17288_v12  ;;  %v4849_v19 = vsel %vm392_vm5, %v17251_v17, %v4848_v20  ;;  %v5094_v48 = vadd.f32 %v5093_v59, %v5092_v31  ;;  %v4772_v5 = vadd.f32 %v4771_v39, %v4770_v28  ;;  %v5114_v0 = vrot.slane %v5113_v2, 2  ;;  %v19229_v17 = vld [vmem:[#allocation20_spill] sm:$0xff]  ;;  %v10445_v39 = vld [vmem:[%s19048_s0 + $0xfe0] sm:$0xff]  ;;  %v17320_v59 = vpop.f32.mrb[131].mxu1 }
 0x298   :  { %v4752_v35 = vrot.slane %v4751_v60, 1  ;;  %v4709_v7 = vmax.f32 %v19226_v21, 0.0  ;;  %v5076_v49 = vmax.f32 %v16740_v8, 0.0  ;;  %v4712_v15 = vmax.f32 %v19227_v52, 0.0  ;;  %v10812_v28 = vld [vmem:[%s19048_s0 + $0xbe8] sm:$0xff]  ;;  %19230 = vst [vmem:[#allocation19_spill] sm:$0xff] %v17320_v59  ;;  %13893 = vmatmul.mubr.msk.f32.gmra.mrb[236].mxu0 %vm45_vm1, %v10445_v39 }
 0x299   :  { %v5095_v43 = vrot.slane %v5094_v48, 1  ;;  %v4773_v51 = vrot.slane %v4772_v5, 1  ;;  %v5115_v11 = vadd.f32 %v5114_v0, %v5113_v2  ;;  %v5079_v31 = vmax.f32 %v19229_v17, 0.0  ;;  %13913 = vmatmul.mubr.msk.f32.gmra.mrb[236].mxu1 %vm45_vm1, %v10812_v28  ;;  %v17332_v17 = vpop.f32.mrb[132].mxu0  ;;  %v19233_v39 = vld [vmem:[#allocation22_spill] sm:$0xff]  ;;  %v19234_v28 = vld [vmem:[#allocation41_spill] sm:$0xff] }
 0x29a   :  { %v4753_v53 = vadd.f32 %v4752_v35, %v4751_v60  ;;  %v4761_v8 = vsel %vm23_vm2, %v4709_v7, 0.0  ;;  %v5104_v36 = vsel %vm23_vm2, %v5076_v49, 0.0  ;;  %v4782_v24 = vsel %vm23_vm2, %v4712_v15, 0.0  ;;  %19231 = vst [vmem:[#allocation20_spill] sm:$0xff] %v17332_v17 }
 0x29b   :  { %v5096_v2 = vadd.f32 %v5095_v43, %v5094_v48  ;;  %v17324_v20 = vadd.f32 %v4773_v51, %v4772_v5  ;;  %v5116_v30 = vrot.slane %v5115_v11, 1  ;;  %v4762_v55 = vrot.slane %v4761_v8, 4  ;;  %v17334_v48 = vpop.f32.mrb[132].mxu1 }
 0x29c   :  { %v4850_v0 = vsel %vm394_vm6, %v4753_v53, %v4849_v19  ;;  %v5105_v60 = vrot.slane %v5104_v36, 4  ;;  %v4783_v35 = vrot.slane %v4782_v24, 4  ;;  %v5125_v21 = vsel %vm23_vm2, %v5079_v31, 0.0  ;;  %19232 = vst [vmem:[#allocation57_spill] sm:$0xff] %v17334_v48  ;;  %v10813_v31 = vld [vmem:[%s19048_s0 + $0xce8] sm:$0xff]  ;;  %v19235_v53 = vld [vmem:[#allocation42_spill] sm:$0xff] }
 0x29d   :  { %v5218_v7 = vsel %vm388_vm3, %v5103_v37, %v5096_v2  ;;  %v17329_v49 = vadd.f32 %v5116_v30, %v5115_v11  ;;  %v4763_v52 = vadd.f32 %v4762_v55, %v4761_v8  ;;  %v4851_v15 = vsel %vm396_vm7, %v4760_v62, %v4850_v0  ;;  %v11172_v37 = vld [vmem:[%s19048_s0 + $0xf0] sm:$0xff]  ;;  %13915 = vmatprep.mubr.msk.f32.mxu1 %vm45_vm1, %v10813_v31 }
 0x29e   :  { %v5106_v5 = vadd.f32 %v5105_v60, %v5104_v36  ;;  %v4784_v43 = vadd.f32 %v4783_v35, %v4782_v24  ;;  %v5126_v51 = vrot.slane %v5125_v21, 4  ;;  %v4711_v19 = vmax.f32 %v19233_v39, 0.0  ;;  %v19236_v2 = vld [vmem:[#allocation49_spill] sm:$0xff]  ;;  %13923 = vmatprep.mubr.msk.f32.mxu0 %vm45_vm1, %v11172_v37  ;;  %v17349_v60 = vpop.f32.mrb[133].mxu0 }
 0x29f   :  { %v4764_v11 = vrot.slane %v4763_v52, 2  ;;  %v5078_v62 = vmax.f32 %v19234_v28, 0.0  ;;  %v4714_v8 = vmax.f32 %v19235_v53, 0.0  ;;  %v5081_v30 = vmax.f32 %v19236_v2, 0.0  ;;  %19237 = vst [vmem:[#allocation22_spill] sm:$0xff] %v17349_v60  ;;  %v17354_v60 = vpop.f32.mrb[133].mxu1 }
 0x2a0   :  { %v5107_v36 = vrot.slane %v5106_v5, 2  ;;  %v4785_v24 = vrot.slane %v4784_v43, 2  ;;  %v5127_v55 = vadd.f32 %v5126_v51, %v5125_v21  ;;  %v4775_v0 = vsel %vm23_vm2, %v4711_v19, 0.0 }
 0x2a1   :  { %v4765_v35 = vadd.f32 %v4764_v11, %v4763_v52  ;;  %v4776_v39 = vrot.slane %v4775_v0, 4  ;;  %v5118_v12 = vsel %vm23_vm2, %v5078_v62, 0.0  ;;  %v4796_v28 = vsel %vm23_vm2, %v4714_v8, 0.0  ;;  %v10814_v52 = vld [vmem:[%s19048_s0 + $0xde8] sm:$0xff] }
 0x2a2   :  { %v5108_v53 = vadd.f32 %v5107_v36, %v5106_v5  ;;  %v4786_v48 = vadd.f32 %v4785_v24, %v4784_v43  ;;  %v5128_v2 = vrot.slane %v5127_v55, 2  ;;  %v5119_v17 = vrot.slane %v5118_v12, 4  ;;  %v11173_v5 = vld [vmem:[%s19048_s0 + $0x1f0] sm:$0xff]  ;;  %13916 = vmatmul.mubr.msk.f32.gmra.mrb[238].mxu1 %vm45_vm1, %v10814_v52 }
 0x2a3   :  { %v4766_v31 = vrot.slane %v4765_v35, 1  ;;  %v4777_v59 = vadd.f32 %v4776_v39, %v4775_v0  ;;  %v4797_v37 = vrot.slane %v4796_v28, 4  ;;  %v5139_v23 = vsel %vm23_vm2, %v5081_v30, 0.0  ;;  %13924 = vmatmul.mubr.msk.f32.vlgmr.msra.gmra.mrb[238].mxu0 %vm45_vm1, %v11173_v5 }
 0x2a4   :  { %v5109_v21 = vrot.slane %v5108_v53, 1  ;;  %v4787_v51 = vrot.slane %v4786_v48, 1  ;;  %v5129_v19 = vadd.f32 %v5128_v2, %v5127_v55  ;;  %v5120_v16 = vadd.f32 %v5119_v17, %v5118_v12 }
 0x2a5   :  { %v4767_v43 = vadd.f32 %v4766_v31, %v4765_v35  ;;  %v4778_v11 = vrot.slane %v4777_v59, 2  ;;  %v4798_v62 = vadd.f32 %v4797_v37, %v4796_v28  ;;  %v5140_v8 = vrot.slane %v5139_v23, 4  ;;  %v10815_v35 = vld [vmem:[%s19048_s0 + $0xee8] sm:$0xff]  ;;  %v11174_v28 = vld [vmem:[%s19048_s0 + $0x2f0] sm:$0xff] }
 0x2a6   :  { %v5110_v30 = vadd.f32 %v5109_v21, %v5108_v53  ;;  %v4788_v12 = vadd.f32 %v4787_v51, %v4786_v48  ;;  %v5130_v17 = vrot.slane %v5129_v19, 1  ;;  %v5121_v36 = vrot.slane %v5120_v16, 2  ;;  %13918 = vmatprep.mubr.msk.f32.mxu1 %vm45_vm1, %v10815_v35  ;;  %13926 = vmatprep.mubr.msk.f32.mxu0 %vm45_vm1, %v11174_v28 }
 0x2a7   :  { %v4852_v24 = vsel %vm398_vm8, %v4767_v43, %v4851_v15  ;;  %v4779_v55 = vadd.f32 %v4778_v11, %v4777_v59  ;;  %v4799_v0 = vrot.slane %v4798_v62, 2  ;;  %v5141_v39 = vadd.f32 %v5140_v8, %v5139_v23  ;;  %v17376_v15 = vpop.f32.mrb[134].mxu0  ;;  %v17378_v59 = vpop.f32.mrb[134].mxu1  ;;  %v19243_v43 = vld [vmem:[#allocation25_spill] sm:$0xff] }
 0x2a8   :  { %v17373_v2 = vsel %vm400_vm9, %v17324_v20, %v4852_v24  ;;  %v5219_v48 = vsel %vm390_vm4, %v5110_v30, %v5218_v7  ;;  %v5131_v53 = vadd.f32 %v5130_v17, %v5129_v19  ;;  %v5122_v31 = vadd.f32 %v5121_v36, %v5120_v16  ;;  %19239 = vst [vmem:[#allocation42_spill] sm:$0xff] %v17378_v59  ;;  %v17384_v20 = vpop.f32.mrb[135].mxu0  ;;  %v19241_v7 = vld [vmem:[#allocation24_spill] sm:$0xff]  ;;  %v19242_v16 = vld [vmem:[#allocation50_spill] sm:$0xff]  ;;  %v19244_v36 = vld [vmem:[#allocation27_spill] sm:$0xff]  ;;  %v17390_v35 = vpop.f32.mrb[135].mxu1 }
 0x2a9   :  { %19238 = vst [vmem:[#allocation41_spill] sm:$0xff] %v17373_v2  ;;  %v4780_v23 = vrot.slane %v4779_v55, 1  ;;  %v5220_v37 = vsel %vm392_vm5, %v17329_v49, %v5219_v48  ;;  %v4800_v21 = vadd.f32 %v4799_v0, %v4798_v62  ;;  %v5142_v51 = vrot.slane %v5141_v39, 2  ;;  %19240 = vst [vmem:[#allocation49_spill] sm:$0xff] %v17384_v20  ;;  %v10816_v49 = vld [vmem:[%s19048_s0 + $0xfe8] sm:$0xff]  ;;  %v11175_v62 = vld [vmem:[%s19048_s0 + $0x3f0] sm:$0xff] }
 0x2aa   :  { %v5123_v52 = vrot.slane %v5122_v31, 1  ;;  %v4713_v19 = vmax.f32 %v19241_v7, 0.0  ;;  %v5080_v5 = vmax.f32 %v19242_v16, 0.0  ;;  %v4716_v11 = vmax.f32 %v19243_v43, 0.0  ;;  %19245 = vst [vmem:[#allocation24_spill] sm:$0xff] %v17390_v35  ;;  %13919 = vmatmul.mubr.msk.f32.gmra.mrb[240].mxu1 %vm45_vm1, %v10816_v49  ;;  %13927 = vmatmul.mubr.msk.f32.gmra.mrb[240].mxu0 %vm45_vm1, %v11175_v62  ;;  %v17413_v49 = vpop.f32.mrb[136].mxu0 }
 0x2ab   :  { %v4781_v8 = vadd.f32 %v4780_v23, %v4779_v55  ;;  %v4801_v30 = vrot.slane %v4800_v21, 1  ;;  %v5143_v17 = vadd.f32 %v5142_v51, %v5141_v39  ;;  %v5083_v24 = vmax.f32 %v19244_v36, 0.0  ;;  %19246 = vst [vmem:[#allocation50_spill] sm:$0xff] %v17413_v49  ;;  %v19249_v2 = vld [vmem:[#allocation52_spill] sm:$0xff] }
 0x2ac   :  { %v5124_v0 = vadd.f32 %v5123_v52, %v5122_v31  ;;  %v4789_v28 = vsel %vm23_vm2, %v4713_v19, 0.0  ;;  %v5132_v48 = vsel %vm23_vm2, %v5080_v5, 0.0  ;;  %v4810_v55 = vsel %vm23_vm2, %v4716_v11, 0.0 }
 0x2ad   :  { %v17404_v39 = vsel %vm388_vm3, %v4788_v12, %v4781_v8  ;;  %v17406_v23 = vadd.f32 %v4801_v30, %v4800_v21  ;;  %v5144_v51 = vrot.slane %v5143_v17, 1  ;;  %v4790_v7 = vrot.slane %v4789_v28, 4  ;;  %v17415_v12 = vpop.f32.mrb[136].mxu1  ;;  %v19248_v30 = vld [vmem:[#allocation43_spill] sm:$0xff] }
 0x2ae   :  { %v5221_v16 = vsel %vm394_vm6, %v5124_v0, %v5220_v37  ;;  %v5133_v31 = vrot.slane %v5132_v48, 4  ;;  %v4811_v52 = vrot.slane %v4810_v55, 4  ;;  %v5153_v19 = vsel %vm23_vm2, %v5083_v24, 0.0  ;;  %19247 = vst [vmem:[#allocation25_spill] sm:$0xff] %v17415_v12  ;;  %v11176_v24 = vld [vmem:[%s19048_s0 + $0x4f0] sm:$0xff] }
 0x2af   :  { %v17410_v5 = vadd.f32 %v5144_v51, %v5143_v17  ;;  %v4791_v43 = vadd.f32 %v4790_v7, %v4789_v28  ;;  %v5222_v11 = vsel %vm396_vm7, %v5131_v53, %v5221_v16  ;;  %v5154_v36 = vrot.slane %v5153_v19, 4  ;;  %v11543_v17 = vld [vmem:[%s19048_s0 + $0xf8] sm:$0xff]  ;;  %v19250_v28 = vld [vmem:[#allocation53_spill] sm:$0xff]  ;;  %13929 = vmatprep.mubr.msk.f32.mxu0 %vm45_vm1, %v11176_v24 }
 0x2b0   :  { %v5134_v21 = vadd.f32 %v5133_v31, %v5132_v48  ;;  %v4812_v8 = vadd.f32 %v4811_v52, %v4810_v55  ;;  %v4715_v62 = vmax.f32 %v19248_v30, 0.0  ;;  %v5082_v37 = vmax.f32 %v19249_v2, 0.0  ;;  %v19251_v7 = vld [vmem:[#allocation54_spill] sm:$0xff]  ;;  %13949 = vmatprep.mubr.msk.f32.mxu1 %vm45_vm1, %v11543_v17  ;;  %v17431_v52 = vpop.f32.mrb[137].mxu0 }
 0x2b1   :  { %v4792_v53 = vrot.slane %v4791_v43, 2  ;;  %v5155_v0 = vadd.f32 %v5154_v36, %v5153_v19  ;;  %v4718_v51 = vmax.f32 %v19250_v28, 0.0  ;;  %v5085_v16 = vmax.f32 %v19251_v7, 0.0  ;;  %19252 = vst [vmem:[#allocation27_spill] sm:$0xff] %v17431_v52  ;;  %v17453_v52 = vpop.f32.mrb[138].mxu0 }
 0x2b2   :  { %v5135_v48 = vrot.slane %v5134_v21, 2  ;;  %v4813_v2 = vrot.slane %v4812_v8, 2  ;;  %v4803_v55 = vsel %vm23_vm2, %v4715_v62, 0.0  ;;  %v5146_v31 = vsel %vm23_vm2, %v5082_v37, 0.0  ;;  %v11177_v62 = vld [vmem:[%s19048_s0 + $0x5f0] sm:$0xff] }
 0x2b3   :  { %v4793_v30 = vadd.f32 %v4792_v53, %v4791_v43  ;;  %v5156_v12 = vrot.slane %v5155_v0, 2  ;;  %v4804_v49 = vrot.slane %v4803_v55, 4  ;;  %v5147_v19 = vrot.slane %v5146_v31, 4  ;;  %v11544_v43 = vld [vmem:[%s19048_s0 + $0x1f8] sm:$0xff]  ;;  %13930 = vmatmul.mubr.msk.f32.gmra.mrb[242].mxu0 %vm45_vm1, %v11177_v62 }
 0x2b4   :  { %v5136_v36 = vadd.f32 %v5135_v48, %v5134_v21  ;;  %v4814_v28 = vadd.f32 %v4813_v2, %v4812_v8  ;;  %v4824_v7 = vsel %vm23_vm2, %v4718_v51, 0.0  ;;  %v5167_v24 = vsel %vm23_vm2, %v5085_v16, 0.0  ;;  %v17441_v48 = vpop.f32.mrb[137].mxu1  ;;  %13950 = vmatmul.mubr.msk.f32.vlgmr.msra.gmra.mrb[242].mxu1 %vm45_vm1, %v11544_v43 }
 0x2b5   :  { %v4794_v35 = vrot.slane %v4793_v30, 1  ;;  %v5157_v17 = vadd.f32 %v5156_v12, %v5155_v0  ;;  %v4805_v20 = vadd.f32 %v4804_v49, %v4803_v55  ;;  %v5148_v59 = vadd.f32 %v5147_v19, %v5146_v31  ;;  %19253 = vst [vmem:[#allocation43_spill] sm:$0xff] %v17441_v48  ;;  %v11178_v19 = vld [vmem:[%s19048_s0 + $0x6f0] sm:$0xff]  ;;  %v11545_v48 = vld [vmem:[%s19048_s0 + $0x2f8] sm:$0xff] }
 0x2b6   :  { %v5137_v37 = vrot.slane %v5136_v36, 1  ;;  %v4815_v53 = vrot.slane %v4814_v28, 1  ;;  %v4825_v21 = vrot.slane %v4824_v7, 4  ;;  %v5168_v8 = vrot.slane %v5167_v24, 4  ;;  %13932 = vmatprep.mubr.msk.f32.mxu0 %vm45_vm1, %v11178_v19  ;;  %13952 = vmatprep.mubr.msk.f32.mxu1 %vm45_vm1, %v11545_v48 }
 0x2b7   :  { %v4795_v49 = vadd.f32 %v4794_v35, %v4793_v30  ;;  %v5158_v12 = vrot.slane %v5157_v17, 1  ;;  %v4806_v0 = vrot.slane %v4805_v20, 2  ;;  %v5149_v51 = vrot.slane %v5148_v59, 2 }
 0x2b8   :  { %v5138_v16 = vadd.f32 %v5137_v37, %v5136_v36  ;;  %v4816_v2 = vadd.f32 %v4815_v53, %v4814_v28  ;;  %v4826_v55 = vadd.f32 %v4825_v21, %v4824_v7  ;;  %v5169_v31 = vadd.f32 %v5168_v8, %v5167_v24  ;;  %v17455_v36 = vpop.f32.mrb[138].mxu1  ;;  %v17462_v53 = vpop.f32.mrb[139].mxu0 }
 0x2b9   :  { %v4855_v62 = vsel %vm390_vm4, %v4795_v49, %v17404_v39  ;;  %v5159_v43 = vadd.f32 %v5158_v12, %v5157_v17  ;;  %v4807_v35 = vadd.f32 %v4806_v0, %v4805_v20  ;;  %v5150_v30 = vadd.f32 %v5149_v51, %v5148_v59  ;;  %v19255_v17 = vld [vmem:[#allocation28_spill] sm:$0xff] }
 0x2ba   :  { %v5223_v28 = vsel %vm398_vm8, %v5138_v16, %v5222_v11  ;;  %v4856_v7 = vsel %vm392_vm5, %v17406_v23, %v4855_v62  ;;  %v4827_v24 = vrot.slane %v4826_v55, 2  ;;  %v5170_v37 = vrot.slane %v5169_v31, 2  ;;  %v17473_v16 = vpop.f32.mrb[139].mxu1 }
 0x2bb   :  { %v17466_v59 = vsel %vm400_vm9, %v17410_v5, %v5223_v28  ;;  %v4808_v20 = vrot.slane %v4807_v35, 1  ;;  %v5151_v39 = vrot.slane %v5150_v30, 1  ;;  %v4717_v21 = vmax.f32 %v19255_v17, 0.0  ;;  %v11179_v5 = vld [vmem:[%s19048_s0 + $0x7f0] sm:$0xff] }
 0x2bc   :  { %19254 = vst [vmem:[#allocation52_spill] sm:$0xff] %v17466_v59  ;;  %v4828_v8 = vadd.f32 %v4827_v24, %v4826_v55  ;;  %v5171_v49 = vadd.f32 %v5170_v37, %v5169_v31  ;;  %v5084_v11 = vmax.f32 %v16902_v14, 0.0  ;;  %v5087_v23 = vmax.f32 %v16925_v41, 0.0  ;;  %v11546_v55 = vld [vmem:[%s19048_s0 + $0x3f8] sm:$0xff]  ;;  %13933 = vmatmul.mubr.msk.f32.gmra.mrb[244].mxu0 %vm45_vm1, %v11179_v5  ;;  %v17492_v5 = vpop.f32.mrb[140].mxu0 }
 0x2bd   :  { %v4809_v12 = vadd.f32 %v4808_v20, %v4807_v35  ;;  %v5152_v0 = vadd.f32 %v5151_v39, %v5150_v30  ;;  %v4817_v48 = vsel %vm23_vm2, %v4717_v21, 0.0  ;;  %v5446_v51 = vmax.f32 %v16927_v61, 0.0  ;;  %13953 = vmatmul.mubr.msk.f32.gmra.mrb[244].mxu1 %vm45_vm1, %v11546_v55  ;;  %v17508_v55 = vpop.f32.mrb[141].mxu0 }
 0x2be   :  { %v4829_v31 = vrot.slane %v4828_v8, 1  ;;  %v5172_v14 = vrot.slane %v5171_v49, 1  ;;  %v4818_v19 = vrot.slane %v4817_v48, 4  ;;  %v5160_v41 = vsel %vm23_vm2, %v5084_v11, 0.0  ;;  %19257 = vst [vmem:[#allocation54_spill] sm:$0xff] %v17508_v55 }
 0x2bf   :  { %v4857_v61 = vsel %vm394_vm6, %v4809_v12, %v4856_v7  ;;  %v5225_v62 = vsel %vm388_vm3, %v5159_v43, %v5152_v0  ;;  %v5161_v35 = vrot.slane %v5160_v41, 4  ;;  %v5181_v30 = vsel %vm23_vm2, %v5087_v23, 0.0  ;;  %v17494_v7 = vpop.f32.mrb[140].mxu1  ;;  %v11180_v43 = vld [vmem:[%s19048_s0 + $0x8f0] sm:$0xff] }
 0x2c0   :  { %v4830_v28 = vadd.f32 %v4829_v31, %v4828_v8  ;;  %v17487_v24 = vadd.f32 %v5172_v14, %v5171_v49  ;;  %v4819_v37 = vadd.f32 %v4818_v19, %v4817_v48  ;;  %v4858_v20 = vsel %vm396_vm7, %v4816_v2, %v4857_v61  ;;  %19256 = vst [vmem:[#allocation53_spill] sm:$0xff] %v17494_v7 }
 0x2c1   :  { %v5162_v39 = vadd.f32 %v5161_v35, %v5160_v41  ;;  %v5182_v17 = vrot.slane %v5181_v30, 4  ;;  %v5468_v21 = vsel %vm23_vm2, %v5446_v51, 0.0  ;;  %v5086_v11 = vmax.f32 %v16933_v57, 0.0  ;;  %13935 = vmatprep.mubr.msk.f32.mxu0 %vm45_vm1, %v11180_v43  ;;  %v11547_v57 = vld [vmem:[%s19048_s0 + $0x4f8] sm:$0xff] }
 0x2c2   :  { %v4820_v8 = vrot.slane %v4819_v37, 2  ;;  %v5469_v49 = vrot.slane %v5468_v21, 4  ;;  %v5445_v23 = vmax.f32 %v16936_v56, 0.0  ;;  %v5089_v2 = vmax.f32 %v16952_v54, 0.0  ;;  %13955 = vmatprep.mubr.msk.f32.mxu1 %vm45_vm1, %v11547_v57 }
 0x2c3   :  { %v5163_v12 = vrot.slane %v5162_v39, 2  ;;  %v5183_v0 = vadd.f32 %v5182_v17, %v5181_v30  ;;  %v5174_v48 = vsel %vm23_vm2, %v5086_v11, 0.0  ;;  %v5448_v51 = vmax.f32 %v16954_v29, 0.0 }
 0x2c4   :  { %v4821_v31 = vadd.f32 %v4820_v8, %v4819_v37  ;;  %v5470_v56 = vadd.f32 %v5469_v49, %v5468_v21  ;;  %v5175_v14 = vrot.slane %v5174_v48, 4  ;;  %v5461_v54 = vsel %vm23_vm2, %v5445_v23, 0.0  ;;  %v17513_v49 = vpop.f32.mrb[141].mxu1  ;;  %v11548_v23 = vld [vmem:[%s19048_s0 + $0x5f8] sm:$0xff] }
 0x2c5   :  { %v5164_v19 = vadd.f32 %v5163_v12, %v5162_v39  ;;  %v5184_v41 = vrot.slane %v5183_v0, 2  ;;  %v5462_v61 = vrot.slane %v5461_v54, 4  ;;  %v5195_v35 = vsel %vm23_vm2, %v5089_v2, 0.0  ;;  %v11181_v39 = vld [vmem:[%s19048_s0 + $0x9f0] sm:$0xff]  ;;  %13956 = vmatmul.mubr.msk.f32.gmra.mrb[246].mxu1 %vm45_vm1, %v11548_v23 }
 0x2c6   :  { %v4822_v43 = vrot.slane %v4821_v31, 1  ;;  %v5471_v30 = vrot.slane %v5470_v56, 2  ;;  %v5176_v17 = vadd.f32 %v5175_v14, %v5174_v48  ;;  %v5196_v11 = vrot.slane %v5195_v35, 4  ;;  %13936 = vmatmul.mubr.msk.f32.gmra.mrb[246].mxu0 %vm45_vm1, %v11181_v39 }
 0x2c7   :  { %v5165_v59 = vrot.slane %v5164_v19, 1  ;;  %v5185_v29 = vadd.f32 %v5184_v41, %v5183_v0  ;;  %v5463_v7 = vadd.f32 %v5462_v61, %v5461_v54  ;;  %v5482_v57 = vsel %vm23_vm2, %v5448_v51, 0.0 }
 0x2c8   :  { %v4823_v55 = vadd.f32 %v4822_v43, %v4821_v31  ;;  %v5472_v37 = vadd.f32 %v5471_v30, %v5470_v56  ;;  %v5177_v21 = vrot.slane %v5176_v17, 2  ;;  %v5197_v8 = vadd.f32 %v5196_v11, %v5195_v35 }
 0x2c9   :  { %v5166_v2 = vadd.f32 %v5165_v59, %v5164_v19  ;;  %v5186_v12 = vrot.slane %v5185_v29, 1  ;;  %v5464_v0 = vrot.slane %v5463_v7, 2  ;;  %v5483_v48 = vrot.slane %v5482_v57, 4  ;;  %v11182_v59 = vld [vmem:[%s19048_s0 + $0xaf0] sm:$0xff]  ;;  %v11549_v19 = vld [vmem:[%s19048_s0 + $0x6f8] sm:$0xff] }
 0x2ca   :  { %v4859_v51 = vsel %vm398_vm8, %v4823_v55, %v4858_v20  ;;  %v5473_v31 = vrot.slane %v5472_v37, 1  ;;  %v5178_v56 = vadd.f32 %v5177_v21, %v5176_v17  ;;  %v5198_v14 = vrot.slane %v5197_v8, 2  ;;  %v17538_v17 = vpop.f32.mrb[142].mxu0  ;;  %13938 = vmatprep.mubr.msk.f32.mxu0 %vm45_vm1, %v11182_v59  ;;  %13958 = vmatprep.mubr.msk.f32.mxu1 %vm45_vm1, %v11549_v19 }
 0x2cb   :  { %v17525_v54 = vsel %vm400_vm9, %v4830_v28, %v4859_v51  ;;  %v5226_v41 = vsel %vm390_vm4, %v5166_v2, %v5225_v62  ;;  %v5187_v61 = vadd.f32 %v5186_v12, %v5185_v29  ;;  %v5465_v35 = vadd.f32 %v5464_v0, %v5463_v7  ;;  %v17536_v28 = vpop.f32.mrb[142].mxu1  ;;  %v17550_v51 = vpop.f32.mrb[143].mxu0 }
 0x2cc   :  { %19258 = vst [vmem:[#allocation28_spill] sm:$0xff] %v17525_v54  ;;  %v5474_v43 = vadd.f32 %v5473_v31, %v5472_v37  ;;  %v5179_v20 = vrot.slane %v5178_v56, 1  ;;  %v5227_v55 = vsel %vm392_vm5, %v17487_v24, %v5226_v41  ;;  %v5199_v30 = vadd.f32 %v5198_v14, %v5197_v8  ;;  %v17544_v37 = vpop.f32.mrb[143].mxu1 }
 0x2cd   :  { %v5466_v62 = vrot.slane %v5465_v35, 1  ;;  %v5484_v7 = vadd.f32 %v5483_v48, %v5482_v57  ;;  %v5088_v11 = vmax.f32 %v16970_v25, 0.0  ;;  %v5447_v29 = vmax.f32 %v16982_v22, 0.0  ;;  %v11183_v25 = vld [vmem:[%s19048_s0 + $0xbf0] sm:$0xff]  ;;  %v11550_v22 = vld [vmem:[%s19048_s0 + $0x7f8] sm:$0xff] }
 0x2ce   :  { %v5180_v21 = vadd.f32 %v5179_v20, %v5178_v56  ;;  %v5200_v39 = vrot.slane %v5199_v30, 1  ;;  %v5450_v24 = vmax.f32 %v16997_v3, 0.0  ;;  %v5817_v8 = vmax.f32 %v16999_v6, 0.0  ;;  %13939 = vmatmul.mubr.msk.f32.gmra.mrb[248].mxu0 %vm45_vm1, %v11183_v25  ;;  %13959 = vmatmul.mubr.msk.f32.gmra.mrb[248].mxu1 %vm45_vm1, %v11550_v22 }
 0x2cf   :  { %v5467_v23 = vadd.f32 %v5466_v62, %v5465_v35  ;;  %v5485_v2 = vrot.slane %v5484_v7, 2  ;;  %v5188_v12 = vsel %vm23_vm2, %v5088_v11, 0.0  ;;  %v5475_v0 = vsel %vm23_vm2, %v5447_v29, 0.0  ;;  %v17575_v11 = vpop.f32.mrb[144].mxu1  ;;  %v17577_v29 = vpop.f32.mrb[144].mxu0 }
 0x2d0   :  { %v5228_v3 = vsel %vm394_vm6, %v5180_v21, %v5227_v55  ;;  %v17559_v57 = vadd.f32 %v5200_v39, %v5199_v30  ;;  %v5189_v6 = vrot.slane %v5188_v12, 4  ;;  %v5476_v48 = vrot.slane %v5475_v0, 4  ;;  %v11184_v55 = vld [vmem:[%s19048_s0 + $0xcf0] sm:$0xff]  ;;  %v11551_v30 = vld [vmem:[%s19048_s0 + $0x8f8] sm:$0xff] }
 0x2d1   :  { %v5589_v31 = vsel %vm388_vm3, %v5474_v43, %v5467_v23  ;;  %v5486_v56 = vadd.f32 %v5485_v2, %v5484_v7  ;;  %v5229_v14 = vsel %vm396_vm7, %v5187_v61, %v5228_v3  ;;  %v5496_v41 = vsel %vm23_vm2, %v5450_v24, 0.0  ;;  %13941 = vmatprep.mubr.msk.f32.mxu0 %vm45_vm1, %v11184_v55  ;;  %13961 = vmatprep.mubr.msk.f32.mxu1 %vm45_vm1, %v11551_v30  ;;  %v17582_v23 = vpop.f32.mrb[145].mxu1 }
 0x2d2   :  { %v5190_v35 = vadd.f32 %v5189_v6, %v5188_v12  ;;  %v5477_v59 = vadd.f32 %v5476_v48, %v5475_v0  ;;  %v5497_v19 = vrot.slane %v5496_v41, 4  ;;  %v5839_v20 = vsel %vm23_vm2, %v5817_v8, 0.0 }
 0x2d3   :  { %v5487_v62 = vrot.slane %v5486_v56, 1  ;;  %v5840_v43 = vrot.slane %v5839_v20, 4  ;;  %v5449_v7 = vmax.f32 %v17005_v46, 0.0  ;;  %v5816_v61 = vmax.f32 %v17011_v47, 0.0 }
 0x2d4   :  { %v5191_v21 = vrot.slane %v5190_v35, 2  ;;  %v5478_v39 = vrot.slane %v5477_v59, 2  ;;  %v5498_v24 = vadd.f32 %v5497_v19, %v5496_v41  ;;  %v5452_v8 = vmax.f32 %v17026_v27, 0.0 }
 0x2d5   :  { %v5488_v2 = vadd.f32 %v5487_v62, %v5486_v56  ;;  %v5841_v12 = vadd.f32 %v5840_v43, %v5839_v20  ;;  %v5489_v46 = vsel %vm23_vm2, %v5449_v7, 0.0  ;;  %v5832_v47 = vsel %vm23_vm2, %v5816_v61, 0.0 }
 0x2d6   :  { %v5192_v0 = vadd.f32 %v5191_v21, %v5190_v35  ;;  %v5479_v25 = vadd.f32 %v5478_v39, %v5477_v59  ;;  %v5499_v22 = vrot.slane %v5498_v24, 2  ;;  %v5490_v3 = vrot.slane %v5489_v46, 4  ;;  %v17589_v21 = vpop.f32.mrb[145].mxu0  ;;  %v11185_v39 = vld [vmem:[%s19048_s0 + $0xdf0] sm:$0xff] }
 0x2d7   :  { %v5842_v6 = vrot.slane %v5841_v12, 2  ;;  %v5833_v48 = vrot.slane %v5832_v47, 4  ;;  %v5510_v55 = vsel %vm23_vm2, %v5452_v8, 0.0  ;;  %v5819_v41 = vmax.f32 %v17028_v42, 0.0  ;;  %v11552_v42 = vld [vmem:[%s19048_s0 + $0x9f8] sm:$0xff]  ;;  %13942 = vmatmul.mubr.msk.f32.gmra.mrb[250].mxu0 %vm45_vm1, %v11185_v39 }
 0x2d8   :  { %v5193_v19 = vrot.slane %v5192_v0, 1  ;;  %v5480_v27 = vrot.slane %v5479_v25, 1  ;;  %v5500_v30 = vadd.f32 %v5499_v22, %v5498_v24  ;;  %v5491_v54 = vadd.f32 %v5490_v3, %v5489_v46  ;;  %13962 = vmatmul.mubr.msk.f32.gmra.mrb[250].mxu1 %vm45_vm1, %v11552_v42 }
 0x2d9   :  { %v5843_v56 = vadd.f32 %v5842_v6, %v5841_v12  ;;  %v5834_v20 = vadd.f32 %v5833_v48, %v5832_v47  ;;  %v5511_v62 = vrot.slane %v5510_v55, 4  ;;  %v5853_v43 = vsel %vm23_vm2, %v5819_v41, 0.0 }
 0x2da   :  { %v5194_v7 = vadd.f32 %v5193_v19, %v5192_v0  ;;  %v5481_v35 = vadd.f32 %v5480_v27, %v5479_v25  ;;  %v5501_v59 = vrot.slane %v5500_v30, 1  ;;  %v5492_v61 = vrot.slane %v5491_v54, 2 }
 0x2db   :  { %v5844_v24 = vrot.slane %v5843_v56, 1  ;;  %v5835_v8 = vrot.slane %v5834_v20, 2  ;;  %v5512_v12 = vadd.f32 %v5511_v62, %v5510_v55  ;;  %v5854_v46 = vrot.slane %v5853_v43, 4  ;;  %v11186_v55 = vld [vmem:[%s19048_s0 + $0xef0] sm:$0xff] }
 0x2dc   :  { %v5230_v47 = vsel %vm398_vm8, %v5194_v7, %v5229_v14  ;;  %v5590_v0 = vsel %vm390_vm4, %v5481_v35, %v5589_v31  ;;  %v5502_v25 = vadd.f32 %v5501_v59, %v5500_v30  ;;  %v5493_v22 = vadd.f32 %v5492_v61, %v5491_v54  ;;  %v11553_v14 = vld [vmem:[%s19048_s0 + $0xaf8] sm:$0xff]  ;;  %v17613_v30 = vpop.f32.mrb[146].mxu0  ;;  %13944 = vmatprep.mubr.msk.f32.mxu0 %vm45_vm1, %v11186_v55 }
 0x2dd   :  { %v17603_v3 = vsel %vm400_vm9, %v17559_v57, %v5230_v47  ;;  %v5845_v6 = vadd.f32 %v5844_v24, %v5843_v56  ;;  %v5591_v48 = vsel %vm392_vm5, %v5488_v2, %v5590_v0  ;;  %v5836_v41 = vadd.f32 %v5835_v8, %v5834_v20  ;;  %v17615_v57 = vpop.f32.mrb[146].mxu1  ;;  %13964 = vmatprep.mubr.msk.f32.mxu1 %vm45_vm1, %v11553_v14  ;;  %v17622_v7 = vpop.f32.mrb[147].mxu0 }
 0x2de   :  { %19259 = vst [vmem:[#allocation58_spill] sm:$0xff] %v17603_v3  ;;  %v5494_v19 = vrot.slane %v5493_v22, 1  ;;  %v5513_v31 = vrot.slane %v5512_v12, 2  ;;  %v5855_v27 = vadd.f32 %v5854_v46, %v5853_v43  ;;  %v5451_v54 = vmax.f32 %v17043_v1, 0.0  ;;  %v17627_v8 = vpop.f32.mrb[147].mxu1 }
 0x2df   :  { %v5837_v2 = vrot.slane %v5836_v41, 1  ;;  %v5818_v56 = vmax.f32 %v17048_v58, 0.0  ;;  %v5454_v20 = vmax.f32 %v17072_v45, 0.0  ;;  %v5821_v62 = vmax.f32 %v17074_v44, 0.0  ;;  %v11187_v58 = vld [vmem:[%s19048_s0 + $0xff0] sm:$0xff]  ;;  %v11554_v45 = vld [vmem:[%s19048_s0 + $0xbf8] sm:$0xff] }
 0x2e0   :  { %v5495_v43 = vadd.f32 %v5494_v19, %v5493_v22  ;;  %v5514_v35 = vadd.f32 %v5513_v31, %v5512_v12  ;;  %v5856_v1 = vrot.slane %v5855_v27, 2  ;;  %v5503_v59 = vsel %vm23_vm2, %v5451_v54, 0.0  ;;  %13945 = vmatmul.mubr.msk.f32.gmra.mrb[252].mxu0 %vm45_vm1, %v11187_v58  ;;  %13965 = vmatmul.mubr.msk.f32.gmra.mrb[252].mxu1 %vm45_vm1, %v11554_v45 }
 0x2e1   :  { %v5838_v61 = vadd.f32 %v5837_v2, %v5836_v41  ;;  %v5504_v39 = vrot.slane %v5503_v59, 4  ;;  %v5846_v42 = vsel %vm23_vm2, %v5818_v56, 0.0  ;;  %v5524_v24 = vsel %vm23_vm2, %v5454_v20, 0.0 }
 0x2e2   :  { %v5592_v44 = vsel %vm394_vm6, %v5495_v43, %v5591_v48  ;;  %v5515_v12 = vrot.slane %v5514_v35, 1  ;;  %v5857_v46 = vadd.f32 %v5856_v1, %v5855_v27  ;;  %v5847_v47 = vrot.slane %v5846_v42, 4  ;;  %v11555_v48 = vld [vmem:[%s19048_s0 + $0xcf8] sm:$0xff]  ;;  %v17645_v43 = vpop.f32.mrb[148].mxu0 }
 0x2e3   :  { %v5960_v0 = vsel %vm388_vm3, %v5845_v6, %v5838_v61  ;;  %v5505_v22 = vadd.f32 %v5504_v39, %v5503_v59  ;;  %v5593_v41 = vsel %vm396_vm7, %v5502_v25, %v5592_v44  ;;  %v5525_v55 = vrot.slane %v5524_v24, 4  ;;  %v17647_v6 = vpop.f32.mrb[148].mxu1  ;;  %13967 = vmatprep.mubr.msk.f32.mxu1 %vm45_vm1, %v11555_v48  ;;  %v17652_v59 = vpop.f32.mrb[149].mxu0 }
 0x2e4   :  { %v5516_v14 = vadd.f32 %v5515_v12, %v5514_v35  ;;  %v5858_v19 = vrot.slane %v5857_v46, 1  ;;  %v5848_v31 = vadd.f32 %v5847_v47, %v5846_v42  ;;  %v5867_v54 = vsel %vm23_vm2, %v5821_v62, 0.0  ;;  %v17659_v3 = vpop.f32.mrb[149].mxu1 }
 0x2e5   :  { %v5506_v27 = vrot.slane %v5505_v22, 2  ;;  %v5526_v2 = vadd.f32 %v5525_v55, %v5524_v24  ;;  %v5868_v56 = vrot.slane %v5867_v54, 4  ;;  %v5453_v20 = vmax.f32 %v17080_v63, 0.0 }
 0x2e6   :  { %v5859_v25 = vadd.f32 %v5858_v19, %v5857_v46  ;;  %v5849_v35 = vrot.slane %v5848_v31, 2  ;;  %v5820_v1 = vmax.f32 %v17086_v34, 0.0  ;;  %v5456_v62 = vmax.f32 %v17103_v9, 0.0 }
 0x2e7   :  { %v5507_v61 = vadd.f32 %v5506_v27, %v5505_v22  ;;  %v5527_v39 = vrot.slane %v5526_v2, 2  ;;  %v5869_v42 = vadd.f32 %v5868_v56, %v5867_v54  ;;  %v5517_v24 = vsel %vm23_vm2, %v5453_v20, 0.0 }
 0x2e8   :  { %v5850_v63 = vadd.f32 %v5849_v35, %v5848_v31  ;;  %v5518_v58 = vrot.slane %v5517_v24, 4  ;;  %v5860_v45 = vsel %vm23_vm2, %v5820_v1, 0.0  ;;  %v5538_v44 = vsel %vm23_vm2, %v5456_v62, 0.0 }
 0x2e9   :  { %v5508_v12 = vrot.slane %v5507_v61, 1  ;;  %v5528_v46 = vadd.f32 %v5527_v39, %v5526_v2  ;;  %v5870_v47 = vrot.slane %v5869_v42, 2  ;;  %v5861_v55 = vrot.slane %v5860_v45, 4  ;;  %v11556_v2 = vld [vmem:[%s19048_s0 + $0xdf8] sm:$0xff] }
 0x2ea   :  { %v5851_v34 = vrot.slane %v5850_v63, 1  ;;  %v5519_v19 = vadd.f32 %v5518_v58, %v5517_v24  ;;  %v5539_v9 = vrot.slane %v5538_v44, 4  ;;  %v5823_v48 = vmax.f32 %v17105_v4, 0.0  ;;  %13968 = vmatmul.mubr.msk.f32.gmra.mrb[254].mxu1 %vm45_vm1, %v11556_v2 }
 0x2eb   :  { %v5509_v22 = vadd.f32 %v5508_v12, %v5507_v61  ;;  %v5529_v27 = vrot.slane %v5528_v46, 1  ;;  %v5871_v54 = vadd.f32 %v5870_v47, %v5869_v42  ;;  %v5862_v56 = vadd.f32 %v5861_v55, %v5860_v45 }
 0x2ec   :  { %v5852_v20 = vadd.f32 %v5851_v34, %v5850_v63  ;;  %v5520_v31 = vrot.slane %v5519_v19, 2  ;;  %v5540_v35 = vadd.f32 %v5539_v9, %v5538_v44  ;;  %v5881_v1 = vsel %vm23_vm2, %v5823_v48, 0.0  ;;  %v17676_v9 = vpop.f32.mrb[150].mxu0 }
 0x2ed   :  { %v5594_v62 = vsel %vm398_vm8, %v5509_v22, %v5593_v41  ;;  %v5530_v39 = vadd.f32 %v5529_v27, %v5528_v46  ;;  %v5872_v24 = vrot.slane %v5871_v54, 1  ;;  %v5863_v4 = vrot.slane %v5862_v56, 2  ;;  %v11557_v41 = vld [vmem:[%s19048_s0 + $0xef8] sm:$0xff]  ;;  %v17683_v27 = vpop.f32.mrb[151].mxu0 }
 0x2ee   :  { %v17667_v61 = vsel %vm400_vm9, %v5516_v14, %v5594_v62  ;;  %v5961_v42 = vsel %vm390_vm4, %v5852_v20, %v5960_v0  ;;  %v5521_v63 = vadd.f32 %v5520_v31, %v5519_v19  ;;  %v5541_v58 = vrot.slane %v5540_v35, 2  ;;  %v17678_v0 = vpop.f32.mrb[150].mxu1  ;;  %13970 = vmatprep.mubr.msk.f32.mxu1 %vm45_vm1, %v11557_v41  ;;  %v11558_v31 = vld [vmem:[%s19048_s0 + $0xff8] sm:$0xff] }
 0x2ef   :  { %19260 = vst [vmem:[#allocation59_spill] sm:$0xff] %v17667_v61  ;;  %v5873_v45 = vadd.f32 %v5872_v24, %v5871_v54  ;;  %v5864_v44 = vadd.f32 %v5863_v4, %v5862_v56  ;;  %v5962_v12 = vsel %vm392_vm5, %v5859_v25, %v5961_v42  ;;  %v5882_v47 = vrot.slane %v5881_v1, 4  ;;  %v17687_v20 = vpop.f32.mrb[151].mxu1  ;;  %13971 = vmatmul.mubr.msk.f32.gmra.mrb[0].mxu1 %vm45_vm1, %v11558_v31 }
 0x2f0   :  { %v5522_v46 = vrot.slane %v5521_v63, 1  ;;  %v5542_v55 = vadd.f32 %v5541_v58, %v5540_v35  ;;  %v5455_v34 = vmax.f32 %v17120_v38, 0.0  ;;  %v5822_v14 = vmax.f32 %v17131_v13, 0.0 }
 0x2f1   :  { %v5865_v19 = vrot.slane %v5864_v44, 1  ;;  %v5883_v48 = vadd.f32 %v5882_v47, %v5881_v1  ;;  %v5458_v25 = vmax.f32 %v17148_v50, 0.0  ;;  %v5825_v22 = vmax.f32 %v17150_v32, 0.0 }
 0x2f2   :  { %v5523_v54 = vadd.f32 %v5522_v46, %v5521_v63  ;;  %v5543_v56 = vrot.slane %v5542_v55, 1  ;;  %v5531_v38 = vsel %vm23_vm2, %v5455_v34, 0.0  ;;  %v5874_v13 = vsel %vm23_vm2, %v5822_v14, 0.0  ;;  %v17699_v14 = vpop.f32.mrb[152].mxu0 }
 0x2f3   :  { %v5866_v35 = vadd.f32 %v5865_v19, %v5864_v44  ;;  %v5884_v1 = vrot.slane %v5883_v48, 2  ;;  %v5532_v2 = vrot.slane %v5531_v38, 4  ;;  %v5875_v50 = vrot.slane %v5874_v13, 4  ;;  %v17701_v19 = vpop.f32.mrb[152].mxu1 }
 0x2f4   :  { %v5596_v32 = vsel %vm388_vm3, %v5530_v39, %v5523_v54  ;;  %v5544_v62 = vadd.f32 %v5543_v56, %v5542_v55  ;;  %v5552_v24 = vsel %vm23_vm2, %v5458_v25, 0.0  ;;  %v5895_v4 = vsel %vm23_vm2, %v5825_v22, 0.0  ;;  %19261 = vst [vmem:[#allocation60_spill] sm:$0xff] %v17701_v19  ;;  %v17704_v54 = vpop.f32.mrb[153].mxu0 }
 0x2f5   :  { %v5963_v42 = vsel %vm394_vm6, %v5866_v35, %v5962_v12  ;;  %v5885_v63 = vadd.f32 %v5884_v1, %v5883_v48  ;;  %v5533_v58 = vadd.f32 %v5532_v2, %v5531_v38  ;;  %v5876_v47 = vadd.f32 %v5875_v50, %v5874_v13  ;;  %19262 = vst [vmem:[#allocation61_spill] sm:$0xff] %v17704_v54 }
 0x2f6   :  { %v5964_v41 = vsel %vm396_vm7, %v5873_v45, %v5963_v42  ;;  %v5553_v44 = vrot.slane %v5552_v24, 4  ;;  %v5896_v46 = vrot.slane %v5895_v4, 4  ;;  %v5457_v34 = vmax.f32 %v17156_v40, 0.0 }
 0x2f7   :  { %v5886_v39 = vrot.slane %v5885_v63, 1  ;;  %v5534_v55 = vrot.slane %v5533_v58, 2  ;;  %v5877_v25 = vrot.slane %v5876_v47, 2  ;;  %v5824_v22 = vmax.f32 %v17162_v26, 0.0 }
 0x2f8   :  { %v5554_v12 = vadd.f32 %v5553_v44, %v5552_v24  ;;  %v5897_v48 = vadd.f32 %v5896_v46, %v5895_v4  ;;  %v5545_v56 = vsel %vm23_vm2, %v5457_v34, 0.0  ;;  %v5460_v45 = vmax.f32 %v17179_v33, 0.0 }
 0x2f9   :  { %v5887_v38 = vadd.f32 %v5886_v39, %v5885_v63  ;;  %v5535_v13 = vadd.f32 %v5534_v55, %v5533_v58  ;;  %v5878_v40 = vadd.f32 %v5877_v25, %v5876_v47  ;;  %v5546_v31 = vrot.slane %v5545_v56, 4 }
 0x2fa   :  { %v5555_v35 = vrot.slane %v5554_v12, 2  ;;  %v5898_v1 = vrot.slane %v5897_v48, 2  ;;  %v5888_v2 = vsel %vm23_vm2, %v5824_v22, 0.0  ;;  %v5566_v50 = vsel %vm23_vm2, %v5460_v45, 0.0  ;;  %v17712_v22 = vpop.f32.mrb[153].mxu1 }
 0x2fb   :  { %v5536_v42 = vrot.slane %v5535_v13, 1  ;;  %v5879_v26 = vrot.slane %v5878_v40, 1  ;;  %v5547_v61 = vadd.f32 %v5546_v31, %v5545_v56  ;;  %v5889_v54 = vrot.slane %v5888_v2, 4  ;;  %19263 = vst [vmem:[#allocation62_spill] sm:$0xff] %v17712_v22 }
 0x2fc   :  { %v5556_v24 = vadd.f32 %v5555_v35, %v5554_v12  ;;  %v5899_v4 = vadd.f32 %v5898_v1, %v5897_v48  ;;  %v5567_v44 = vrot.slane %v5566_v50, 4  ;;  %v5827_v46 = vmax.f32 %v17181_v10, 0.0 }
 0x2fd   :  { %v5537_v33 = vadd.f32 %v5536_v42, %v5535_v13  ;;  %v5880_v63 = vadd.f32 %v5879_v26, %v5878_v40  ;;  %v5548_v58 = vrot.slane %v5547_v61, 2  ;;  %v5890_v47 = vadd.f32 %v5889_v54, %v5888_v2  ;;  %v19266_v26 = vld [vmem:[#allocation35_spill] sm:$0xff] }
 0x2fe   :  { %v5557_v34 = vrot.slane %v5556_v24, 1  ;;  %v5900_v39 = vrot.slane %v5899_v4, 1  ;;  %v5568_v55 = vadd.f32 %v5567_v44, %v5566_v50  ;;  %v5909_v25 = vsel %vm23_vm2, %v5827_v46, 0.0  ;;  %v19265_v50 = vld [vmem:[#allocation33_spill] sm:$0xff] }
 0x2ff   :  { %v5597_v45 = vsel %vm390_vm4, %v5537_v33, %v5596_v32  ;;  %v5965_v56 = vsel %vm398_vm8, %v5880_v63, %v5964_v41  ;;  %v5549_v12 = vadd.f32 %v5548_v58, %v5547_v61  ;;  %v5891_v48 = vrot.slane %v5890_v47, 2  ;;  %v19267_v32 = vld [vmem:[#allocation40_spill] sm:$0xff]  ;;  %v19268_v41 = vld [vmem:[#allocation55_spill] sm:$0xff]  ;;  %v17724_v33 = vpop.f32.mrb[154].mxu0 }
 0x300   :  { %v17717_v31 = vsel %vm400_vm9, %v5887_v38, %v5965_v56  ;;  %v5558_v10 = vadd.f32 %v5557_v34, %v5556_v24  ;;  %v5901_v13 = vadd.f32 %v5900_v39, %v5899_v4  ;;  %v5598_v54 = vsel %vm392_vm5, %v5544_v62, %v5597_v45  ;;  %19269 = vst [vmem:[#allocation33_spill] sm:$0xff] %v17724_v33  ;;  %v17726_v38 = vpop.f32.mrb[154].mxu1  ;;  %v17728_v58 = vpop.f32.mrb[155].mxu0 }
 0x301   :  { %19264 = vst [vmem:[#allocation63_spill] sm:$0xff] %v17717_v31  ;;  %v5550_v40 = vrot.slane %v5549_v12, 1  ;;  %v5892_v35 = vadd.f32 %v5891_v48, %v5890_v47  ;;  %v5569_v1 = vrot.slane %v5568_v55, 2  ;;  %v5910_v2 = vrot.slane %v5909_v25, 4  ;;  %19270 = vst [vmem:[#allocation35_spill] sm:$0xff] %v17726_v38  ;;  %v17734_v56 = vpop.f32.mrb[155].mxu1 }
 0x302   :  { %v5459_v42 = vmax.f32 %v19265_v50, 0.0  ;;  %v5826_v44 = vmax.f32 %v19266_v26, 0.0  ;;  %v5829_v46 = vmax.f32 %v19267_v32, 0.0  ;;  %v6188_v61 = vmax.f32 %v19268_v41, 0.0  ;;  %19271 = vst [vmem:[#allocation40_spill] sm:$0xff] %v17728_v58  ;;  %19272 = vst [vmem:[#allocation55_spill] sm:$0xff] %v17734_v56 }
 0x303   :  { %v5551_v24 = vadd.f32 %v5550_v40, %v5549_v12  ;;  %v5893_v4 = vrot.slane %v5892_v35, 1  ;;  %v5570_v63 = vadd.f32 %v5569_v1, %v5568_v55  ;;  %v5911_v62 = vadd.f32 %v5910_v2, %v5909_v25  ;;  %v17741_v41 = vpop.f32.mrb[156].mxu1  ;;  %v19278_v38 = vld [vmem:[#allocation47_spill] sm:$0xff] }
 0x304   :  { %v5559_v47 = vsel %vm23_vm2, %v5459_v42, 0.0  ;;  %v5902_v34 = vsel %vm23_vm2, %v5826_v44, 0.0  ;;  %v5923_v39 = vsel %vm23_vm2, %v5829_v46, 0.0  ;;  %v6210_v45 = vsel %vm23_vm2, %v6188_v61, 0.0  ;;  %v17739_v46 = vpop.f32.mrb[156].mxu0  ;;  %19274 = vst [vmem:[#allocation65_spill] sm:$0xff] %v17741_v41 }
 0x305   :  { %v5599_v48 = vsel %vm394_vm6, %v5551_v24, %v5598_v54  ;;  %v5894_v50 = vadd.f32 %v5893_v4, %v5892_v35  ;;  %v5571_v26 = vrot.slane %v5570_v63, 1  ;;  %v5912_v12 = vrot.slane %v5911_v62, 2  ;;  %19273 = vst [vmem:[#allocation64_spill] sm:$0xff] %v17739_v46  ;;  %v19275_v35 = vld [vmem:[#allocation46_spill] sm:$0xff]  ;;  %v17744_v4 = vpop.f32.mrb[157].mxu0 }
 0x306   :  { %v5560_v40 = vrot.slane %v5559_v47, 4  ;;  %v5600_v55 = vsel %vm396_vm7, %v5558_v10, %v5599_v48  ;;  %v5903_v25 = vrot.slane %v5902_v34, 4  ;;  %v5924_v1 = vrot.slane %v5923_v39, 4  ;;  %19276 = vst [vmem:[#allocation46_spill] sm:$0xff] %v17744_v4  ;;  %v19277_v48 = vld [vmem:[#allocation11_spill] sm:$0xff] }
 0x307   :  { %v5967_v2 = vsel %vm388_vm3, %v5901_v13, %v5894_v50  ;;  %v5572_v42 = vadd.f32 %v5571_v26, %v5570_v63  ;;  %v5913_v44 = vadd.f32 %v5912_v12, %v5911_v62  ;;  %v6211_v32 = vrot.slane %v6210_v45, 4 }
 0x308   :  { %v5561_v61 = vadd.f32 %v5560_v40, %v5559_v47  ;;  %v5904_v31 = vadd.f32 %v5903_v25, %v5902_v34  ;;  %v5925_v54 = vadd.f32 %v5924_v1, %v5923_v39  ;;  %v5828_v24 = vmax.f32 %v19275_v35, 0.0 }
 0x309   :  { %v5914_v56 = vrot.slane %v5913_v44, 1  ;;  %v6212_v10 = vadd.f32 %v6211_v32, %v6210_v45  ;;  %v6187_v58 = vmax.f32 %v19277_v48, 0.0  ;;  %v5831_v13 = vmax.f32 %v19278_v38, 0.0  ;;  %v19279_v48 = vld [vmem:[#allocation56_spill] sm:$0xff] }
 0x30a   :  { %v5562_v63 = vrot.slane %v5561_v61, 2  ;;  %v5905_v62 = vrot.slane %v5904_v31, 2  ;;  %v5926_v50 = vrot.slane %v5925_v54, 2  ;;  %v5916_v26 = vsel %vm23_vm2, %v5828_v24, 0.0 }
 0x30b   :  { %v5915_v12 = vadd.f32 %v5914_v56, %v5913_v44  ;;  %v6213_v41 = vrot.slane %v6212_v10, 2  ;;  %v5917_v47 = vrot.slane %v5916_v26, 4  ;;  %v6203_v34 = vsel %vm23_vm2, %v6187_v58, 0.0  ;;  %v17753_v58 = vpop.f32.mrb[157].mxu1 }
 0x30c   :  { %v5563_v39 = vadd.f32 %v5562_v63, %v5561_v61  ;;  %v5906_v40 = vadd.f32 %v5905_v62, %v5904_v31  ;;  %v5927_v25 = vadd.f32 %v5926_v50, %v5925_v54  ;;  %v6204_v1 = vrot.slane %v6203_v34, 4 }
 0x30d   :  { %v6214_v35 = vadd.f32 %v6213_v41, %v6212_v10  ;;  %v5918_v45 = vadd.f32 %v5917_v47, %v5916_v26  ;;  %v5937_v32 = vsel %vm23_vm2, %v5831_v13, 0.0  ;;  %v6190_v38 = vmax.f32 %v19279_v48, 0.0 }
 0x30e   :  { %v5564_v4 = vrot.slane %v5563_v39, 1  ;;  %v5907_v46 = vrot.slane %v5906_v40, 1  ;;  %v5928_v33 = vrot.slane %v5927_v25, 1  ;;  %v6205_v22 = vadd.f32 %v6204_v1, %v6203_v34  ;;  %v19280_v34 = vld [vmem:[#allocation14_spill] sm:$0xff] }
 0x30f   :  { %v6215_v24 = vrot.slane %v6214_v35, 1  ;;  %v5919_v56 = vrot.slane %v5918_v45, 2  ;;  %v5938_v44 = vrot.slane %v5937_v32, 4  ;;  %v6224_v19 = vsel %vm23_vm2, %v6190_v38, 0.0 }
 0x310   :  { %v5565_v31 = vadd.f32 %v5564_v4, %v5563_v39  ;;  %v5908_v61 = vadd.f32 %v5907_v46, %v5906_v40  ;;  %v5929_v54 = vadd.f32 %v5928_v33, %v5927_v25  ;;  %v6206_v41 = vrot.slane %v6205_v22, 2  ;;  %v17762_v33 = vpop.f32.mrb[158].mxu1  ;;  %v17764_v39 = vpop.f32.mrb[158].mxu0 }
 0x311   :  { %v6216_v10 = vadd.f32 %v6215_v24, %v6214_v35  ;;  %v5920_v63 = vadd.f32 %v5919_v56, %v5918_v45  ;;  %v5939_v13 = vadd.f32 %v5938_v44, %v5937_v32  ;;  %v6225_v62 = vrot.slane %v6224_v19, 4  ;;  %v19282_v35 = vld [vmem:[#allocation15_spill] sm:$0xff]  ;;  %v17771_v56 = vpop.f32.mrb[159].mxu0 }
 0x312   :  { %v5601_v50 = vsel %vm398_vm8, %v5565_v31, %v5600_v55  ;;  %v5968_v26 = vsel %vm390_vm4, %v5908_v61, %v5967_v2  ;;  %v6207_v47 = vadd.f32 %v6206_v41, %v6205_v22  ;;  %v5830_v1 = vmax.f32 %v19280_v34, 0.0  ;;  %v17768_v22 = vpop.f32.mrb[159].mxu1  ;;  %19284 = vst [vmem:[#allocation56_spill] sm:$0xff] %v17771_v56  ;;  %v19285_v61 = vld [vmem:[#allocation48_spill] sm:$0xff] }
 0x313   :  { %v17759_v48 = vsel %vm400_vm9, %v5572_v42, %v5601_v50  ;;  %v5921_v38 = vrot.slane %v5920_v63, 1  ;;  %v5969_v4 = vsel %vm392_vm5, %v5915_v12, %v5968_v26  ;;  %v5940_v46 = vrot.slane %v5939_v13, 2  ;;  %19283 = vst [vmem:[#allocation47_spill] sm:$0xff] %v17768_v22 }
 0x314   :  { %19281 = vst [vmem:[#allocation11_spill] sm:$0xff] %v17759_v48  ;;  %v6208_v40 = vrot.slane %v6207_v47, 1  ;;  %v6226_v25 = vadd.f32 %v6225_v62, %v6224_v19  ;;  %v5930_v55 = vsel %vm23_vm2, %v5830_v1, 0.0  ;;  %v6189_v2 = vmax.f32 %v19282_v35, 0.0  ;;  %v17781_v35 = vpop.f32.mrb[160].mxu0 }
 0x315   :  { %v5922_v45 = vadd.f32 %v5921_v38, %v5920_v63  ;;  %v5941_v32 = vadd.f32 %v5940_v46, %v5939_v13  ;;  %v5931_v42 = vrot.slane %v5930_v55, 4  ;;  %v6192_v24 = vmax.f32 %v17291_v18, 0.0  ;;  %19287 = vst [vmem:[#allocation15_spill] sm:$0xff] %v17781_v35 }
 0x316   :  { %v6209_v12 = vadd.f32 %v6208_v40, %v6207_v47  ;;  %v6227_v44 = vrot.slane %v6226_v25, 2  ;;  %v6217_v31 = vsel %vm23_vm2, %v6189_v2, 0.0  ;;  %v6559_v41 = vmax.f32 %v19285_v61, 0.0  ;;  %v17779_v40 = vpop.f32.mrb[160].mxu1  ;;  %v19290_v61 = vld [vmem:[#allocation20_spill] sm:$0xff] }
 0x317   :  { %v5970_v19 = vsel %vm394_vm6, %v5922_v45, %v5969_v4  ;;  %v5942_v62 = vrot.slane %v5941_v32, 1  ;;  %v5932_v50 = vadd.f32 %v5931_v42, %v5930_v55  ;;  %v6218_v26 = vrot.slane %v6217_v31, 4  ;;  %19286 = vst [vmem:[#allocation14_spill] sm:$0xff] %v17779_v40  ;;  %v19288_v55 = vld [vmem:[#allocation17_spill] sm:$0xff]  ;;  %v19289_v42 = vld [vmem:[#allocation19_spill] sm:$0xff] }
 0x318   :  { %v6331_v34 = vsel %vm388_vm3, %v6216_v10, %v6209_v12  ;;  %v6228_v63 = vadd.f32 %v6227_v44, %v6226_v25  ;;  %v5971_v13 = vsel %vm396_vm7, %v5929_v54, %v5970_v19  ;;  %v6238_v18 = vsel %vm23_vm2, %v6192_v24, 0.0 }
 0x319   :  { %v5943_v1 = vadd.f32 %v5942_v62, %v5941_v32  ;;  %v5933_v38 = vrot.slane %v5932_v50, 2  ;;  %v6219_v47 = vadd.f32 %v6218_v26, %v6217_v31  ;;  %v6239_v46 = vrot.slane %v6238_v18, 4 }
 0x31a   :  { %v6229_v2 = vrot.slane %v6228_v63, 1  ;;  %v6581_v4 = vsel %vm23_vm2, %v6559_v41, 0.0  ;;  %v6191_v45 = vmax.f32 %v19288_v55, 0.0  ;;  %v6558_v10 = vmax.f32 %v19289_v42, 0.0  ;;  %v17789_v41 = vpop.f32.mrb[161].mxu1 }
 0x31b   :  { %v5934_v25 = vadd.f32 %v5933_v38, %v5932_v50  ;;  %v6220_v12 = vrot.slane %v6219_v47, 2  ;;  %v6240_v54 = vadd.f32 %v6239_v46, %v6238_v18  ;;  %v6582_v44 = vrot.slane %v6581_v4, 4  ;;  %19291 = vst [vmem:[#allocation48_spill] sm:$0xff] %v17789_v41  ;;  %v19292_v38 = vld [vmem:[#allocation57_spill] sm:$0xff]  ;;  %v17795_v41 = vpop.f32.mrb[161].mxu0 }
 0x31c   :  { %v6230_v24 = vadd.f32 %v6229_v2, %v6228_v63  ;;  %v6231_v32 = vsel %vm23_vm2, %v6191_v45, 0.0  ;;  %v6574_v31 = vsel %vm23_vm2, %v6558_v10, 0.0  ;;  %v6194_v19 = vmax.f32 %v19290_v61, 0.0  ;;  %19293 = vst [vmem:[#allocation17_spill] sm:$0xff] %v17795_v41 }
 0x31d   :  { %v5935_v62 = vrot.slane %v5934_v25, 1  ;;  %v6221_v26 = vadd.f32 %v6220_v12, %v6219_v47  ;;  %v6241_v48 = vrot.slane %v6240_v54, 2  ;;  %v6583_v35 = vadd.f32 %v6582_v44, %v6581_v4 }
 0x31e   :  { %v6232_v55 = vrot.slane %v6231_v32, 4  ;;  %v6575_v40 = vrot.slane %v6574_v31, 4  ;;  %v6252_v50 = vsel %vm23_vm2, %v6194_v19, 0.0  ;;  %v6561_v18 = vmax.f32 %v19292_v38, 0.0 }
 0x31f   :  { %v5936_v46 = vadd.f32 %v5935_v62, %v5934_v25  ;;  %v6222_v63 = vrot.slane %v6221_v26, 1  ;;  %v6242_v2 = vadd.f32 %v6241_v48, %v6240_v54  ;;  %v6584_v45 = vrot.slane %v6583_v35, 2 }
 0x320   :  { %v6233_v42 = vadd.f32 %v6232_v55, %v6231_v32  ;;  %v6576_v10 = vadd.f32 %v6575_v40, %v6574_v31  ;;  %v6253_v56 = vrot.slane %v6252_v50, 4  ;;  %v6595_v61 = vsel %vm23_vm2, %v6561_v18, 0.0  ;;  %v17802_v18 = vpop.f32.mrb[162].mxu0 }
 0x321   :  { %v5972_v47 = vsel %vm398_vm8, %v5936_v46, %v5971_v13  ;;  %v6223_v4 = vadd.f32 %v6222_v63, %v6221_v26  ;;  %v6243_v12 = vrot.slane %v6242_v2, 1  ;;  %v6585_v44 = vadd.f32 %v6584_v45, %v6583_v35  ;;  %19295 = vst [vmem:[#allocation20_spill] sm:$0xff] %v17802_v18  ;;  %v17804_v35 = vpop.f32.mrb[162].mxu1  ;;  %v19297_v63 = vld [vmem:[#allocation22_spill] sm:$0xff] }
 0x322   :  { %v17798_v19 = vsel %vm400_vm9, %v5943_v1, %v5972_v47  ;;  %v6234_v38 = vrot.slane %v6233_v42, 2  ;;  %v6577_v25 = vrot.slane %v6576_v10, 2  ;;  %v6254_v62 = vadd.f32 %v6253_v56, %v6252_v50  ;;  %19296 = vst [vmem:[#allocation57_spill] sm:$0xff] %v17804_v35  ;;  %v17808_v50 = vpop.f32.mrb[163].mxu0 }
 0x323   :  { %19294 = vst [vmem:[#allocation19_spill] sm:$0xff] %v17798_v19  ;;  %v6332_v48 = vsel %vm390_vm4, %v6223_v4, %v6331_v34  ;;  %v6244_v54 = vadd.f32 %v6243_v12, %v6242_v2  ;;  %v6586_v40 = vrot.slane %v6585_v44, 1  ;;  %v6596_v32 = vrot.slane %v6595_v61, 4  ;;  %19298 = vst [vmem:[#allocation22_spill] sm:$0xff] %v17808_v50  ;;  %v19299_v12 = vld [vmem:[#allocation42_spill] sm:$0xff] }
 0x324   :  { %v6235_v31 = vadd.f32 %v6234_v38, %v6233_v42  ;;  %v6333_v55 = vsel %vm392_vm5, %v6230_v24, %v6332_v48  ;;  %v6578_v13 = vadd.f32 %v6577_v25, %v6576_v10  ;;  %v6255_v26 = vrot.slane %v6254_v62, 2 }
 0x325   :  { %v6587_v46 = vadd.f32 %v6586_v40, %v6585_v44  ;;  %v6597_v1 = vadd.f32 %v6596_v32, %v6595_v61  ;;  %v6193_v45 = vmax.f32 %v19297_v63, 0.0  ;;  %v6560_v56 = vmax.f32 %v17354_v60, 0.0  ;;  %v17814_v44 = vpop.f32.mrb[163].mxu1 }
 0x326   :  { %v6236_v34 = vrot.slane %v6235_v31, 1  ;;  %v6579_v2 = vrot.slane %v6578_v13, 1  ;;  %v6256_v47 = vadd.f32 %v6255_v26, %v6254_v62  ;;  %v6196_v42 = vmax.f32 %v17376_v15, 0.0  ;;  %19300 = vst [vmem:[#allocation42_spill] sm:$0xff] %v17814_v44 }
 0x327   :  { %v6598_v24 = vrot.slane %v6597_v1, 2  ;;  %v6245_v10 = vsel %vm23_vm2, %v6193_v45, 0.0  ;;  %v6588_v4 = vsel %vm23_vm2, %v6560_v56, 0.0  ;;  %v6563_v38 = vmax.f32 %v19299_v12, 0.0 }
 0x328   :  { %v6237_v61 = vadd.f32 %v6236_v34, %v6235_v31  ;;  %v6580_v25 = vadd.f32 %v6579_v2, %v6578_v13  ;;  %v6257_v48 = vrot.slane %v6256_v47, 1  ;;  %v6246_v60 = vrot.slane %v6245_v10, 4  ;;  %v17821_v13 = vpop.f32.mrb[164].mxu0  ;;  %v17823_v34 = vpop.f32.mrb[164].mxu1 }
 0x329   :  { %v6599_v40 = vadd.f32 %v6598_v24, %v6597_v1  ;;  %v6589_v32 = vrot.slane %v6588_v4, 4  ;;  %v6266_v63 = vsel %vm23_vm2, %v6196_v42, 0.0  ;;  %v6609_v62 = vsel %vm23_vm2, %v6563_v38, 0.0  ;;  %19301 = vst [vmem:[#allocation66_spill] sm:$0xff] %v17821_v13  ;;  %19302 = vst [vmem:[#allocation67_spill] sm:$0xff] %v17823_v34  ;;  %v19303_v42 = vld [vmem:[#allocation49_spill] sm:$0xff] }
 0x32a   :  { %v6334_v15 = vsel %vm394_vm6, %v6237_v61, %v6333_v55  ;;  %v6702_v26 = vsel %vm388_vm3, %v6587_v46, %v6580_v25  ;;  %v6258_v45 = vadd.f32 %v6257_v48, %v6256_v47  ;;  %v6247_v56 = vadd.f32 %v6246_v60, %v6245_v10  ;;  %v19304_v38 = vld [vmem:[#allocation24_spill] sm:$0xff]  ;;  %v19305_v47 = vld [vmem:[#allocation50_spill] sm:$0xff]  ;;  %v17830_v60 = vpop.f32.mrb[165].mxu0 }
 0x32b   :  { %v6600_v19 = vrot.slane %v6599_v40, 1  ;;  %v6335_v12 = vsel %vm396_vm7, %v6244_v54, %v6334_v15  ;;  %v6590_v44 = vadd.f32 %v6589_v32, %v6588_v4  ;;  %v6267_v31 = vrot.slane %v6266_v63, 4  ;;  %19306 = vst [vmem:[#allocation49_spill] sm:$0xff] %v17830_v60 }
 0x32c   :  { %v6248_v1 = vrot.slane %v6247_v56, 2  ;;  %v6610_v2 = vrot.slane %v6609_v62, 4  ;;  %v6195_v24 = vmax.f32 %v19303_v42, 0.0  ;;  %v6562_v50 = vmax.f32 %v19304_v38, 0.0 }
 0x32d   :  { %v6601_v55 = vadd.f32 %v6600_v19, %v6599_v40  ;;  %v6591_v61 = vrot.slane %v6590_v44, 2  ;;  %v6268_v46 = vadd.f32 %v6267_v31, %v6266_v63  ;;  %v6198_v10 = vmax.f32 %v19305_v47, 0.0  ;;  %v19307_v40 = vld [vmem:[#allocation25_spill] sm:$0xff]  ;;  %v17835_v47 = vpop.f32.mrb[165].mxu1 }
 0x32e   :  { %v6249_v25 = vadd.f32 %v6248_v1, %v6247_v56  ;;  %v6611_v48 = vadd.f32 %v6610_v2, %v6609_v62  ;;  %v6259_v54 = vsel %vm23_vm2, %v6195_v24, 0.0  ;;  %v6602_v4 = vsel %vm23_vm2, %v6562_v50, 0.0 }
 0x32f   :  { %v6592_v32 = vadd.f32 %v6591_v61, %v6590_v44  ;;  %v6269_v15 = vrot.slane %v6268_v46, 2  ;;  %v6260_v34 = vrot.slane %v6259_v54, 4  ;;  %v6603_v13 = vrot.slane %v6602_v4, 4 }
 0x330   :  { %v6250_v42 = vrot.slane %v6249_v25, 1  ;;  %v6612_v35 = vrot.slane %v6611_v48, 2  ;;  %v6280_v19 = vsel %vm23_vm2, %v6198_v10, 0.0  ;;  %v6565_v63 = vmax.f32 %v19307_v40, 0.0 }
 0x331   :  { %v6593_v31 = vrot.slane %v6592_v32, 1  ;;  %v6270_v38 = vadd.f32 %v6269_v15, %v6268_v46  ;;  %v6261_v56 = vadd.f32 %v6260_v34, %v6259_v54  ;;  %v6604_v62 = vadd.f32 %v6603_v13, %v6602_v4  ;;  %v17845_v15 = vpop.f32.mrb[166].mxu1 }
 0x332   :  { %v6251_v1 = vadd.f32 %v6250_v42, %v6249_v25  ;;  %v6613_v2 = vadd.f32 %v6612_v35, %v6611_v48  ;;  %v6281_v24 = vrot.slane %v6280_v19, 4  ;;  %v6623_v50 = vsel %vm23_vm2, %v6565_v63, 0.0 }
 0x333   :  { %v6594_v44 = vadd.f32 %v6593_v31, %v6592_v32  ;;  %v6271_v61 = vrot.slane %v6270_v38, 1  ;;  %v6262_v60 = vrot.slane %v6261_v56, 2  ;;  %v6605_v18 = vrot.slane %v6604_v62, 2  ;;  %v17843_v32 = vpop.f32.mrb[166].mxu0  ;;  %v19310_v31 = vld [vmem:[#allocation43_spill] sm:$0xff] }
 0x334   :  { %v6336_v41 = vsel %vm398_vm8, %v6251_v1, %v6335_v12  ;;  %v6614_v10 = vrot.slane %v6613_v2, 1  ;;  %v6282_v22 = vadd.f32 %v6281_v24, %v6280_v19  ;;  %v6624_v40 = vrot.slane %v6623_v50, 4  ;;  %v19309_v19 = vld [vmem:[#allocation27_spill] sm:$0xff] }
 0x335   :  { %v17839_v46 = vsel %vm400_vm9, %v6258_v45, %v6336_v41  ;;  %v6703_v13 = vsel %vm390_vm4, %v6594_v44, %v6702_v26  ;;  %v6272_v35 = vadd.f32 %v6271_v61, %v6270_v38  ;;  %v6263_v34 = vadd.f32 %v6262_v60, %v6261_v56  ;;  %v17849_v45 = vpop.f32.mrb[167].mxu0 }
 0x336   :  { %19308 = vst [vmem:[#allocation24_spill] sm:$0xff] %v17839_v46  ;;  %v6615_v25 = vadd.f32 %v6614_v10, %v6613_v2  ;;  %v6606_v48 = vadd.f32 %v6605_v18, %v6604_v62  ;;  %v6704_v54 = vsel %vm392_vm5, %v6601_v55, %v6703_v13  ;;  %v6283_v4 = vrot.slane %v6282_v22, 2  ;;  %v17855_v2 = vpop.f32.mrb[167].mxu1 }
 0x337   :  { %v6264_v12 = vrot.slane %v6263_v34, 1  ;;  %v6625_v42 = vadd.f32 %v6624_v40, %v6623_v50  ;;  %v6197_v63 = vmax.f32 %v19309_v19, 0.0  ;;  %v6564_v41 = vmax.f32 %v19310_v31, 0.0  ;;  %v17862_v31 = vpop.f32.mrb[168].mxu0 }
 0x338   :  { %v6607_v26 = vrot.slane %v6606_v48, 1  ;;  %v6284_v38 = vadd.f32 %v6283_v4, %v6282_v22  ;;  %v6200_v60 = vmax.f32 %v17453_v52, 0.0  ;;  %v6567_v18 = vmax.f32 %v17455_v36, 0.0  ;;  %19311 = vst [vmem:[#allocation50_spill] sm:$0xff] %v17862_v31 }
 0x339   :  { %v6265_v55 = vadd.f32 %v6264_v12, %v6263_v34  ;;  %v6626_v56 = vrot.slane %v6625_v42, 2  ;;  %v6273_v62 = vsel %vm23_vm2, %v6197_v63, 0.0  ;;  %v6616_v1 = vsel %vm23_vm2, %v6564_v41, 0.0  ;;  %v17864_v41 = vpop.f32.mrb[168].mxu1 }
 0x33a   :  { %v6608_v24 = vadd.f32 %v6607_v26, %v6606_v48  ;;  %v6285_v50 = vrot.slane %v6284_v38, 1  ;;  %v6274_v44 = vrot.slane %v6273_v62, 4  ;;  %v6617_v61 = vrot.slane %v6616_v1, 4  ;;  %19312 = vst [vmem:[#allocation25_spill] sm:$0xff] %v17864_v41 }
 0x33b   :  { %v6338_v10 = vsel %vm388_vm3, %v6272_v35, %v6265_v55  ;;  %v6627_v40 = vadd.f32 %v6626_v56, %v6625_v42  ;;  %v6294_v22 = vsel %vm23_vm2, %v6200_v60, 0.0  ;;  %v6637_v52 = vsel %vm23_vm2, %v6567_v18, 0.0 }
 0x33c   :  { %v6705_v36 = vsel %vm394_vm6, %v6608_v24, %v6704_v54  ;;  %v6286_v13 = vadd.f32 %v6285_v50, %v6284_v38  ;;  %v6275_v34 = vadd.f32 %v6274_v44, %v6273_v62  ;;  %v6618_v4 = vadd.f32 %v6617_v61, %v6616_v1 }
 0x33d   :  { %v6628_v12 = vrot.slane %v6627_v40, 1  ;;  %v6706_v19 = vsel %vm396_vm7, %v6615_v25, %v6705_v36  ;;  %v6295_v63 = vrot.slane %v6294_v22, 4  ;;  %v6638_v48 = vrot.slane %v6637_v52, 4  ;;  %v17871_v36 = vpop.f32.mrb[169].mxu0 }
 0x33e   :  { %v6276_v35 = vrot.slane %v6275_v34, 2  ;;  %v6619_v42 = vrot.slane %v6618_v4, 2  ;;  %v6199_v26 = vmax.f32 %v17462_v53, 0.0  ;;  %v6566_v60 = vmax.f32 %v17473_v16, 0.0  ;;  %19313 = vst [vmem:[#allocation27_spill] sm:$0xff] %v17871_v36 }
 0x33f   :  { %v6629_v18 = vadd.f32 %v6628_v12, %v6627_v40  ;;  %v6296_v54 = vadd.f32 %v6295_v63, %v6294_v22  ;;  %v6639_v38 = vadd.f32 %v6638_v48, %v6637_v52  ;;  %v6202_v55 = vmax.f32 %v17492_v5, 0.0  ;;  %v19314_v40 = vld [vmem:[#allocation53_spill] sm:$0xff] }
 0x340   :  { %v6277_v56 = vadd.f32 %v6276_v35, %v6275_v34  ;;  %v6620_v62 = vadd.f32 %v6619_v42, %v6618_v4  ;;  %v6287_v25 = vsel %vm23_vm2, %v6199_v26, 0.0  ;;  %v6630_v1 = vsel %vm23_vm2, %v6566_v60, 0.0  ;;  %v17876_v42 = vpop.f32.mrb[169].mxu1 }
 0x341   :  { %v6297_v24 = vrot.slane %v6296_v54, 2  ;;  %v6640_v50 = vrot.slane %v6639_v38, 2  ;;  %v6288_v44 = vrot.slane %v6287_v25, 4  ;;  %v6631_v61 = vrot.slane %v6630_v1, 4 }
 0x342   :  { %v6278_v53 = vrot.slane %v6277_v56, 1  ;;  %v6621_v46 = vrot.slane %v6620_v62, 1  ;;  %v6308_v16 = vsel %vm23_vm2, %v6202_v55, 0.0  ;;  %v6569_v22 = vmax.f32 %v19314_v40, 0.0 }
 0x343   :  { %v6298_v52 = vadd.f32 %v6297_v24, %v6296_v54  ;;  %v6641_v5 = vadd.f32 %v6640_v50, %v6639_v38  ;;  %v6289_v34 = vadd.f32 %v6288_v44, %v6287_v25  ;;  %v6632_v4 = vadd.f32 %v6631_v61, %v6630_v1  ;;  %v17883_v25 = vpop.f32.mrb[170].mxu0  ;;  %v17885_v1 = vpop.f32.mrb[170].mxu1 }
 0x344   :  { %v6279_v12 = vadd.f32 %v6278_v53, %v6277_v56  ;;  %v6622_v63 = vadd.f32 %v6621_v46, %v6620_v62  ;;  %v6309_v48 = vrot.slane %v6308_v16, 4  ;;  %v6651_v35 = vsel %vm23_vm2, %v6569_v22, 0.0  ;;  %v19316_v53 = vld [vmem:[#allocation54_spill] sm:$0xff] }
 0x345   :  { %v6299_v26 = vrot.slane %v6298_v52, 1  ;;  %v6642_v60 = vrot.slane %v6641_v5, 1  ;;  %v6290_v36 = vrot.slane %v6289_v34, 2  ;;  %v6633_v41 = vrot.slane %v6632_v4, 2 }
 0x346   :  { %v6339_v31 = vsel %vm390_vm4, %v6279_v12, %v6338_v10  ;;  %v6707_v55 = vsel %vm398_vm8, %v6622_v63, %v6706_v19  ;;  %v6310_v40 = vadd.f32 %v6309_v48, %v6308_v16  ;;  %v6652_v54 = vrot.slane %v6651_v35, 4  ;;  %v17888_v10 = vpop.f32.mrb[171].mxu0  ;;  %v17894_v12 = vpop.f32.mrb[171].mxu1 }
 0x347   :  { %v17881_v38 = vsel %vm400_vm9, %v6629_v18, %v6707_v55  ;;  %v6300_v56 = vadd.f32 %v6299_v26, %v6298_v52  ;;  %v6643_v46 = vadd.f32 %v6642_v60, %v6641_v5  ;;  %v6291_v62 = vadd.f32 %v6290_v36, %v6289_v34 }
 0x348   :  { %19315 = vst [vmem:[#allocation43_spill] sm:$0xff] %v17881_v38  ;;  %v6340_v24 = vsel %vm392_vm5, %v6286_v13, %v6339_v31  ;;  %v6634_v50 = vadd.f32 %v6633_v41, %v6632_v4  ;;  %v6311_v44 = vrot.slane %v6310_v40, 2  ;;  %v6653_v61 = vadd.f32 %v6652_v54, %v6651_v35 }
 0x349   :  { %v6292_v19 = vrot.slane %v6291_v62, 1  ;;  %v6201_v16 = vmax.f32 %v19316_v53, 0.0  ;;  %v6568_v18 = vmax.f32 %v17513_v49, 0.0  ;;  %v6571_v22 = vmax.f32 %v17536_v28, 0.0 }
 0x34a   :  { %v6635_v52 = vrot.slane %v6634_v50, 1  ;;  %v6312_v36 = vadd.f32 %v6311_v44, %v6310_v40  ;;  %v6654_v5 = vrot.slane %v6653_v61, 2  ;;  %v6930_v34 = vmax.f32 %v17538_v17, 0.0 }
 0x34b   :  { %v6293_v13 = vadd.f32 %v6292_v19, %v6291_v62  ;;  %v6301_v31 = vsel %vm23_vm2, %v6201_v16, 0.0  ;;  %v6644_v41 = vsel %vm23_vm2, %v6568_v18, 0.0  ;;  %v6665_v4 = vsel %vm23_vm2, %v6571_v22, 0.0 }
 0x34c   :  { %v6636_v63 = vadd.f32 %v6635_v52, %v6634_v50  ;;  %v6313_v48 = vrot.slane %v6312_v36, 1  ;;  %v6655_v35 = vadd.f32 %v6654_v5, %v6653_v61  ;;  %v6302_v49 = vrot.slane %v6301_v31, 4  ;;  %v17903_v50 = vpop.f32.mrb[172].mxu0  ;;  %v17905_v61 = vpop.f32.mrb[172].mxu1 }
 0x34d   :  { %v6341_v28 = vsel %vm394_vm6, %v6293_v13, %v6340_v24  ;;  %v6645_v26 = vrot.slane %v6644_v41, 4  ;;  %v6666_v60 = vrot.slane %v6665_v4, 4  ;;  %v6952_v55 = vsel %vm23_vm2, %v6930_v34, 0.0 }
 0x34e   :  { %v6709_v17 = vsel %vm388_vm3, %v6643_v46, %v6636_v63  ;;  %v6314_v40 = vadd.f32 %v6313_v48, %v6312_v36  ;;  %v6656_v54 = vrot.slane %v6655_v35, 1  ;;  %v6303_v62 = vadd.f32 %v6302_v49, %v6301_v31  ;;  %v17913_v49 = vpop.f32.mrb[173].mxu0 }
 0x34f   :  { %v6342_v44 = vsel %vm396_vm7, %v6300_v56, %v6341_v28  ;;  %v6646_v19 = vadd.f32 %v6645_v26, %v6644_v41  ;;  %v6667_v53 = vadd.f32 %v6666_v60, %v6665_v4  ;;  %v6953_v16 = vrot.slane %v6952_v55, 4  ;;  %19317 = vst [vmem:[#allocation53_spill] sm:$0xff] %v17913_v49 }
 0x350   :  { %v6657_v18 = vadd.f32 %v6656_v54, %v6655_v35  ;;  %v6304_v24 = vrot.slane %v6303_v62, 2  ;;  %v6570_v22 = vmax.f32 %v17544_v37, 0.0  ;;  %v6929_v52 = vmax.f32 %v17550_v51, 0.0 }
 0x351   :  { %v6647_v5 = vrot.slane %v6646_v19, 2  ;;  %v6668_v46 = vrot.slane %v6667_v53, 2  ;;  %v6954_v36 = vadd.f32 %v6953_v16, %v6952_v55  ;;  %v6573_v34 = vmax.f32 %v17575_v11, 0.0 }
 0x352   :  { %v6305_v13 = vadd.f32 %v6304_v24, %v6303_v62  ;;  %v6658_v56 = vsel %vm23_vm2, %v6570_v22, 0.0  ;;  %v6945_v31 = vsel %vm23_vm2, %v6929_v52, 0.0  ;;  %v6932_v41 = vmax.f32 %v17577_v29, 0.0 }
 0x353   :  { %v6648_v4 = vadd.f32 %v6647_v5, %v6646_v19  ;;  %v6669_v63 = vadd.f32 %v6668_v46, %v6667_v53  ;;  %v6955_v48 = vrot.slane %v6954_v36, 2  ;;  %v6659_v35 = vrot.slane %v6658_v56, 4  ;;  %v17917_v5 = vpop.f32.mrb[173].mxu1 }
 0x354   :  { %v6306_v37 = vrot.slane %v6305_v13, 1  ;;  %v6946_v51 = vrot.slane %v6945_v31, 4  ;;  %v6679_v28 = vsel %vm23_vm2, %v6573_v34, 0.0  ;;  %v6966_v26 = vsel %vm23_vm2, %v6932_v41, 0.0 }
 0x355   :  { %v6649_v11 = vrot.slane %v6648_v4, 1  ;;  %v6670_v60 = vrot.slane %v6669_v63, 1  ;;  %v6956_v55 = vadd.f32 %v6955_v48, %v6954_v36  ;;  %v6660_v54 = vadd.f32 %v6659_v35, %v6658_v56  ;;  %v17925_v35 = vpop.f32.mrb[174].mxu1 }
 0x356   :  { %v6307_v62 = vadd.f32 %v6306_v37, %v6305_v13  ;;  %v6947_v16 = vadd.f32 %v6946_v51, %v6945_v31  ;;  %v6680_v24 = vrot.slane %v6679_v28, 4  ;;  %v6967_v29 = vrot.slane %v6966_v26, 4  ;;  %v17927_v37 = vpop.f32.mrb[174].mxu0 }
 0x357   :  { %v6650_v19 = vadd.f32 %v6649_v11, %v6648_v4  ;;  %v6671_v53 = vadd.f32 %v6670_v60, %v6669_v63  ;;  %v6957_v22 = vrot.slane %v6956_v55, 1  ;;  %v6661_v52 = vrot.slane %v6660_v54, 2 }
 0x358   :  { %v6343_v46 = vsel %vm398_vm8, %v6307_v62, %v6342_v44  ;;  %v6948_v38 = vrot.slane %v6947_v16, 2  ;;  %v6681_v34 = vadd.f32 %v6680_v24, %v6679_v28  ;;  %v6968_v49 = vadd.f32 %v6967_v29, %v6966_v26  ;;  %v17932_v26 = vpop.f32.mrb[175].mxu1 }
 0x359   :  { %v17921_v41 = vsel %vm400_vm9, %v6314_v40, %v6343_v46  ;;  %v6710_v36 = vsel %vm390_vm4, %v6650_v19, %v6709_v17  ;;  %v6958_v13 = vadd.f32 %v6957_v22, %v6956_v55  ;;  %v6662_v56 = vadd.f32 %v6661_v52, %v6660_v54 }
 0x35a   :  { %19318 = vst [vmem:[#allocation54_spill] sm:$0xff] %v17921_v41  ;;  %v6711_v31 = vsel %vm392_vm5, %v6657_v18, %v6710_v36  ;;  %v6949_v4 = vadd.f32 %v6948_v38, %v6947_v16  ;;  %v6682_v63 = vrot.slane %v6681_v34, 2  ;;  %v6969_v48 = vrot.slane %v6968_v49, 2  ;;  %v17935_v18 = vpop.f32.mrb[175].mxu0  ;;  %v17943_v36 = vpop.f32.mrb[176].mxu1 }
 0x35b   :  { %v6663_v44 = vrot.slane %v6662_v56, 1  ;;  %v6572_v51 = vmax.f32 %v17582_v23, 0.0  ;;  %v6931_v28 = vmax.f32 %v17589_v21, 0.0  ;;  %v6934_v40 = vmax.f32 %v17613_v30, 0.0 }
 0x35c   :  { %v6950_v17 = vrot.slane %v6949_v4, 1  ;;  %v6683_v11 = vadd.f32 %v6682_v63, %v6681_v34  ;;  %v6970_v60 = vadd.f32 %v6969_v48, %v6968_v49  ;;  %v7301_v38 = vmax.f32 %v17615_v57, 0.0 }
 0x35d   :  { %v6664_v55 = vadd.f32 %v6663_v44, %v6662_v56  ;;  %v6672_v54 = vsel %vm23_vm2, %v6572_v51, 0.0  ;;  %v6959_v62 = vsel %vm23_vm2, %v6931_v28, 0.0  ;;  %v6980_v23 = vsel %vm23_vm2, %v6934_v40, 0.0  ;;  %v17945_v56 = vpop.f32.mrb[176].mxu0 }
 0x35e   :  { %v6951_v16 = vadd.f32 %v6950_v17, %v6949_v4  ;;  %v6684_v21 = vrot.slane %v6683_v11, 1  ;;  %v6971_v24 = vrot.slane %v6970_v60, 1  ;;  %v6673_v30 = vrot.slane %v6672_v54, 4 }
 0x35f   :  { %v6712_v29 = vsel %vm394_vm6, %v6664_v55, %v6711_v31  ;;  %v6960_v19 = vrot.slane %v6959_v62, 4  ;;  %v6981_v22 = vrot.slane %v6980_v23, 4  ;;  %v7323_v49 = vsel %vm23_vm2, %v7301_v38, 0.0 }
 0x360   :  { %v7073_v57 = vsel %vm388_vm3, %v6958_v13, %v6951_v16  ;;  %v6685_v52 = vadd.f32 %v6684_v21, %v6683_v11  ;;  %v6972_v46 = vadd.f32 %v6971_v24, %v6970_v60  ;;  %v6674_v34 = vadd.f32 %v6673_v30, %v6672_v54 }
 0x361   :  { %v6713_v4 = vsel %vm396_vm7, %v6671_v53, %v6712_v29  ;;  %v6961_v63 = vadd.f32 %v6960_v19, %v6959_v62  ;;  %v6982_v48 = vadd.f32 %v6981_v22, %v6980_v23  ;;  %v7324_v44 = vrot.slane %v7323_v49, 4  ;;  %v17955_v62 = vpop.f32.mrb[177].mxu1  ;;  %v17958_v29 = vpop.f32.mrb[177].mxu0 }
 0x362   :  { %v6675_v51 = vrot.slane %v6674_v34, 2  ;;  %v6933_v31 = vmax.f32 %v17622_v7, 0.0  ;;  %v7300_v28 = vmax.f32 %v17627_v8, 0.0  ;;  %v6936_v40 = vmax.f32 %v17645_v43, 0.0  ;;  %19319 = vst [vmem:[#allocation68_spill] sm:$0xff] %v17955_v62  ;;  %19320 = vst [vmem:[#allocation69_spill] sm:$0xff] %v17958_v29 }
 0x363   :  { %v6962_v13 = vrot.slane %v6961_v63, 2  ;;  %v6983_v17 = vrot.slane %v6982_v48, 2  ;;  %v7325_v11 = vadd.f32 %v7324_v44, %v7323_v49  ;;  %v7303_v60 = vmax.f32 %v17647_v6, 0.0 }
 0x364   :  { %v6676_v38 = vadd.f32 %v6675_v51, %v6674_v34  ;;  %v6973_v55 = vsel %vm23_vm2, %v6933_v31, 0.0  ;;  %v7316_v53 = vsel %vm23_vm2, %v7300_v28, 0.0  ;;  %v6994_v54 = vsel %vm23_vm2, %v6936_v40, 0.0 }
 0x365   :  { %v6963_v23 = vadd.f32 %v6962_v13, %v6961_v63  ;;  %v6984_v7 = vadd.f32 %v6983_v17, %v6982_v48  ;;  %v7326_v16 = vrot.slane %v7325_v11, 2  ;;  %v6974_v8 = vrot.slane %v6973_v55, 4 }
 0x366   :  { %v6677_v21 = vrot.slane %v6676_v38, 1  ;;  %v7317_v43 = vrot.slane %v7316_v53, 4  ;;  %v6995_v24 = vrot.slane %v6994_v54, 4  ;;  %v7337_v30 = vsel %vm23_vm2, %v7303_v60, 0.0 }
 0x367   :  { %v6964_v6 = vrot.slane %v6963_v23, 1  ;;  %v6985_v19 = vrot.slane %v6984_v7, 1  ;;  %v7327_v22 = vadd.f32 %v7326_v16, %v7325_v11  ;;  %v6975_v49 = vadd.f32 %v6974_v8, %v6973_v55 }
 0x368   :  { %v6678_v34 = vadd.f32 %v6677_v21, %v6676_v38  ;;  %v7318_v44 = vadd.f32 %v7317_v43, %v7316_v53  ;;  %v6996_v51 = vadd.f32 %v6995_v24, %v6994_v54  ;;  %v7338_v31 = vrot.slane %v7337_v30, 4  ;;  %v17965_v38 = vpop.f32.mrb[178].mxu0  ;;  %v17967_v53 = vpop.f32.mrb[178].mxu1 }
 0x369   :  { %v6965_v28 = vadd.f32 %v6964_v6, %v6963_v23  ;;  %v6986_v63 = vadd.f32 %v6985_v19, %v6984_v7  ;;  %v7328_v48 = vrot.slane %v7327_v22, 1  ;;  %v6976_v40 = vrot.slane %v6975_v49, 2  ;;  %v17973_v43 = vpop.f32.mrb[179].mxu0 }
 0x36a   :  { %v6714_v13 = vsel %vm398_vm8, %v6678_v34, %v6713_v4  ;;  %v7319_v17 = vrot.slane %v7318_v44, 2  ;;  %v6997_v41 = vrot.slane %v6996_v51, 2  ;;  %v7339_v62 = vadd.f32 %v7338_v31, %v7337_v30 }
 0x36b   :  { %v17962_v60 = vsel %vm400_vm9, %v6685_v52, %v6714_v13  ;;  %v7074_v29 = vsel %vm390_vm4, %v6965_v28, %v7073_v57  ;;  %v7329_v11 = vadd.f32 %v7328_v48, %v7327_v22  ;;  %v6977_v55 = vadd.f32 %v6976_v40, %v6975_v49  ;;  %v17979_v22 = vpop.f32.mrb[179].mxu1  ;;  %v17985_v40 = vpop.f32.mrb[180].mxu0 }
 0x36c   :  { %19321 = vst [vmem:[#allocation70_spill] sm:$0xff] %v17962_v60  ;;  %v7075_v54 = vsel %vm392_vm5, %v6972_v46, %v7074_v29  ;;  %v7320_v23 = vadd.f32 %v7319_v17, %v7318_v44  ;;  %v6998_v7 = vadd.f32 %v6997_v41, %v6996_v51  ;;  %v7340_v16 = vrot.slane %v7339_v62, 2  ;;  %v17987_v13 = vpop.f32.mrb[180].mxu1 }
 0x36d   :  { %v6978_v4 = vrot.slane %v6977_v55, 1  ;;  %v6935_v8 = vmax.f32 %v17652_v59, 0.0  ;;  %v7302_v21 = vmax.f32 %v17659_v3, 0.0  ;;  %v6938_v52 = vmax.f32 %v17676_v9, 0.0 }
 0x36e   :  { %v7321_v57 = vrot.slane %v7320_v23, 1  ;;  %v6999_v24 = vrot.slane %v6998_v7, 1  ;;  %v7341_v30 = vadd.f32 %v7340_v16, %v7339_v62  ;;  %v7305_v6 = vmax.f32 %v17678_v0, 0.0 }
 0x36f   :  { %v6979_v19 = vadd.f32 %v6978_v4, %v6977_v55  ;;  %v6987_v46 = vsel %vm23_vm2, %v6935_v8, 0.0  ;;  %v7330_v41 = vsel %vm23_vm2, %v7302_v21, 0.0  ;;  %v7008_v29 = vsel %vm23_vm2, %v6938_v52, 0.0  ;;  %v19322_v8 = vld [vmem:[#allocation60_spill] sm:$0xff] }
 0x370   :  { %v7322_v59 = vadd.f32 %v7321_v57, %v7320_v23  ;;  %v7000_v3 = vadd.f32 %v6999_v24, %v6998_v7  ;;  %v7342_v49 = vrot.slane %v7341_v30, 1  ;;  %v6988_v9 = vrot.slane %v6987_v46, 4  ;;  %v17994_v24 = vpop.f32.mrb[181].mxu0 }
 0x371   :  { %v7076_v34 = vsel %vm394_vm6, %v6979_v19, %v7075_v54  ;;  %v7331_v44 = vrot.slane %v7330_v41, 4  ;;  %v7009_v51 = vrot.slane %v7008_v29, 4  ;;  %v7351_v62 = vsel %vm23_vm2, %v7305_v6, 0.0 }
 0x372   :  { %v7444_v0 = vsel %vm388_vm3, %v7329_v11, %v7322_v59  ;;  %v7343_v31 = vadd.f32 %v7342_v49, %v7341_v30  ;;  %v6989_v28 = vadd.f32 %v6988_v9, %v6987_v46  ;;  %v7077_v48 = vsel %vm396_vm7, %v6986_v63, %v7076_v34 }
 0x373   :  { %v7332_v17 = vadd.f32 %v7331_v44, %v7330_v41  ;;  %v7010_v55 = vadd.f32 %v7009_v51, %v7008_v29  ;;  %v7352_v23 = vrot.slane %v7351_v62, 4  ;;  %v6937_v7 = vmax.f32 %v17683_v27, 0.0 }
 0x374   :  { %v6990_v54 = vrot.slane %v6989_v28, 2  ;;  %v7304_v16 = vmax.f32 %v17687_v20, 0.0  ;;  %v6940_v4 = vmax.f32 %v17699_v14, 0.0  ;;  %v7307_v11 = vmax.f32 %v19322_v8, 0.0 }
 0x375   :  { %v7333_v21 = vrot.slane %v7332_v17, 2  ;;  %v7011_v52 = vrot.slane %v7010_v55, 2  ;;  %v7353_v57 = vadd.f32 %v7352_v23, %v7351_v62  ;;  %v7001_v63 = vsel %vm23_vm2, %v6937_v7, 0.0  ;;  %v17999_v23 = vpop.f32.mrb[181].mxu1 }
 0x376   :  { %v6991_v30 = vadd.f32 %v6990_v54, %v6989_v28  ;;  %v7002_v6 = vrot.slane %v7001_v63, 4  ;;  %v7344_v19 = vsel %vm23_vm2, %v7304_v16, 0.0  ;;  %v7022_v27 = vsel %vm23_vm2, %v6940_v4, 0.0 }
 0x377   :  { %v7334_v46 = vadd.f32 %v7333_v21, %v7332_v17  ;;  %v7012_v41 = vadd.f32 %v7011_v52, %v7010_v55  ;;  %v7354_v20 = vrot.slane %v7353_v57, 2  ;;  %v7345_v29 = vrot.slane %v7344_v19, 4 }
 0x378   :  { %v6992_v14 = vrot.slane %v6991_v30, 1  ;;  %v7003_v59 = vadd.f32 %v7002_v6, %v7001_v63  ;;  %v7023_v49 = vrot.slane %v7022_v27, 4  ;;  %v7365_v9 = vsel %vm23_vm2, %v7307_v11, 0.0 }
 0x379   :  { %v7335_v34 = vrot.slane %v7334_v46, 1  ;;  %v7013_v44 = vrot.slane %v7012_v41, 1  ;;  %v7355_v51 = vadd.f32 %v7354_v20, %v7353_v57  ;;  %v7346_v62 = vadd.f32 %v7345_v29, %v7344_v19 }
 0x37a   :  { %v6993_v28 = vadd.f32 %v6992_v14, %v6991_v30  ;;  %v7004_v7 = vrot.slane %v7003_v59, 2  ;;  %v7024_v54 = vadd.f32 %v7023_v49, %v7022_v27  ;;  %v7366_v16 = vrot.slane %v7365_v9, 4  ;;  %v18006_v30 = vpop.f32.mrb[182].mxu0  ;;  %v18008_v27 = vpop.f32.mrb[182].mxu1  ;;  %v19327_v49 = vld [vmem:[#allocation61_spill] sm:$0xff] }
 0x37b   :  { %v7336_v4 = vadd.f32 %v7335_v34, %v7334_v46  ;;  %v7014_v17 = vadd.f32 %v7013_v44, %v7012_v41  ;;  %v7356_v55 = vrot.slane %v7355_v51, 1  ;;  %v7347_v8 = vrot.slane %v7346_v62, 2  ;;  %19324 = vst [vmem:[#allocation71_spill] sm:$0xff] %v18006_v30  ;;  %19325 = vst [vmem:[#allocation72_spill] sm:$0xff] %v18008_v27  ;;  %v19329_v44 = vld [vmem:[#allocation33_spill] sm:$0xff] }
 0x37c   :  { %v7078_v21 = vsel %vm398_vm8, %v6993_v28, %v7077_v48  ;;  %v7005_v52 = vadd.f32 %v7004_v7, %v7003_v59  ;;  %v7025_v63 = vrot.slane %v7024_v54, 2  ;;  %v7367_v6 = vadd.f32 %v7366_v16, %v7365_v9  ;;  %v18011_v48 = vpop.f32.mrb[183].mxu0  ;;  %v19330_v7 = vld [vmem:[#allocation35_spill] sm:$0xff] }
 0x37d   :  { %v18003_v11 = vsel %vm400_vm9, %v7000_v3, %v7078_v21  ;;  %v7445_v57 = vsel %vm390_vm4, %v7336_v4, %v7444_v0  ;;  %v7357_v19 = vadd.f32 %v7356_v55, %v7355_v51  ;;  %v7348_v20 = vadd.f32 %v7347_v8, %v7346_v62  ;;  %19326 = vst [vmem:[#allocation73_spill] sm:$0xff] %v18011_v48  ;;  %v19328_v3 = vld [vmem:[#allocation62_spill] sm:$0xff]  ;;  %v18017_v4 = vpop.f32.mrb[183].mxu1 }
 0x37e   :  { %19323 = vst [vmem:[#allocation60_spill] sm:$0xff] %v18003_v11  ;;  %v7006_v46 = vrot.slane %v7005_v52, 1  ;;  %v7446_v41 = vsel %vm392_vm5, %v7343_v31, %v7445_v57  ;;  %v7026_v29 = vadd.f32 %v7025_v63, %v7024_v54  ;;  %v7368_v14 = vrot.slane %v7367_v6, 2  ;;  %19331 = vst [vmem:[#allocation61_spill] sm:$0xff] %v18017_v4  ;;  %v19336_v11 = vld [vmem:[#allocation64_spill] sm:$0xff] }
 0x37f   :  { %v7349_v59 = vrot.slane %v7348_v20, 1  ;;  %v6939_v9 = vmax.f32 %v19327_v49, 0.0  ;;  %v7306_v34 = vmax.f32 %v19328_v3, 0.0  ;;  %v6942_v0 = vmax.f32 %v19329_v44, 0.0 }
 0x380   :  { %v7007_v51 = vadd.f32 %v7006_v46, %v7005_v52  ;;  %v7027_v62 = vrot.slane %v7026_v29, 1  ;;  %v7369_v28 = vadd.f32 %v7368_v14, %v7367_v6  ;;  %v7309_v16 = vmax.f32 %v19330_v7, 0.0 }
 0x381   :  { %v7350_v55 = vadd.f32 %v7349_v59, %v7348_v20  ;;  %v7015_v31 = vsel %vm23_vm2, %v6939_v9, 0.0  ;;  %v7358_v54 = vsel %vm23_vm2, %v7306_v34, 0.0  ;;  %v7036_v8 = vsel %vm23_vm2, %v6942_v0, 0.0  ;;  %v18026_v9 = vpop.f32.mrb[184].mxu0  ;;  %v18028_v34 = vpop.f32.mrb[184].mxu1 }
 0x382   :  { %v7080_v21 = vsel %vm388_vm3, %v7014_v17, %v7007_v51  ;;  %v7028_v63 = vadd.f32 %v7027_v62, %v7026_v29  ;;  %v7370_v57 = vrot.slane %v7369_v28, 1  ;;  %v7016_v49 = vrot.slane %v7015_v31, 4  ;;  %19332 = vst [vmem:[#allocation62_spill] sm:$0xff] %v18026_v9  ;;  %19333 = vst [vmem:[#allocation33_spill] sm:$0xff] %v18028_v34  ;;  %v19334_v29 = vld [vmem:[#allocation40_spill] sm:$0xff]  ;;  %v19335_v62 = vld [vmem:[#allocation55_spill] sm:$0xff] }
 0x383   :  { %v7447_v52 = vsel %vm394_vm6, %v7350_v55, %v7446_v41  ;;  %v7359_v46 = vrot.slane %v7358_v54, 4  ;;  %v7037_v6 = vrot.slane %v7036_v8, 4  ;;  %v7379_v14 = vsel %vm23_vm2, %v7309_v16, 0.0  ;;  %v19337_v16 = vld [vmem:[#allocation65_spill] sm:$0xff]  ;;  %v18040_v27 = vpop.f32.mrb[185].mxu1 }
 0x384   :  { %v7371_v3 = vadd.f32 %v7370_v57, %v7369_v28  ;;  %v7017_v44 = vadd.f32 %v7016_v49, %v7015_v31  ;;  %v7448_v20 = vsel %vm396_vm7, %v7357_v19, %v7447_v52  ;;  %v7380_v59 = vrot.slane %v7379_v14, 4  ;;  %v18036_v52 = vpop.f32.mrb[185].mxu0  ;;  %19339 = vst [vmem:[#allocation40_spill] sm:$0xff] %v18040_v27 }
 0x385   :  { %v7360_v0 = vadd.f32 %v7359_v46, %v7358_v54  ;;  %v7038_v17 = vadd.f32 %v7037_v6, %v7036_v8  ;;  %v6941_v51 = vmax.f32 %v19334_v29, 0.0  ;;  %v7308_v7 = vmax.f32 %v19335_v62, 0.0  ;;  %19338 = vst [vmem:[#allocation35_spill] sm:$0xff] %v18036_v52 }
 0x386   :  { %v7018_v41 = vrot.slane %v7017_v44, 2  ;;  %v7381_v55 = vadd.f32 %v7380_v59, %v7379_v14  ;;  %v6944_v60 = vmax.f32 %v19336_v11, 0.0  ;;  %v7311_v28 = vmax.f32 %v19337_v16, 0.0 }
 0x387   :  { %v7361_v31 = vrot.slane %v7360_v0, 2  ;;  %v7039_v57 = vrot.slane %v7038_v17, 2  ;;  %v7029_v19 = vsel %vm23_vm2, %v6941_v51, 0.0  ;;  %v7372_v49 = vsel %vm23_vm2, %v7308_v7, 0.0 }
 0x388   :  { %v7019_v54 = vadd.f32 %v7018_v41, %v7017_v44  ;;  %v7382_v8 = vrot.slane %v7381_v55, 2  ;;  %v7030_v46 = vrot.slane %v7029_v19, 4  ;;  %v7373_v6 = vrot.slane %v7372_v49, 4 }
 0x389   :  { %v7362_v29 = vadd.f32 %v7361_v31, %v7360_v0  ;;  %v7040_v62 = vadd.f32 %v7039_v57, %v7038_v17  ;;  %v7050_v14 = vsel %vm23_vm2, %v6944_v60, 0.0  ;;  %v7393_v11 = vsel %vm23_vm2, %v7311_v28, 0.0 }
 0x38a   :  { %v7020_v59 = vrot.slane %v7019_v54, 1  ;;  %v7383_v16 = vadd.f32 %v7382_v8, %v7381_v55  ;;  %v7031_v34 = vadd.f32 %v7030_v46, %v7029_v19  ;;  %v7374_v9 = vadd.f32 %v7373_v6, %v7372_v49  ;;  %v18043_v49 = vpop.f32.mrb[186].mxu0  ;;  %v18045_v8 = vpop.f32.mrb[186].mxu1 }
 0x38b   :  { %v7363_v4 = vrot.slane %v7362_v29, 1  ;;  %v7041_v51 = vrot.slane %v7040_v62, 1  ;;  %v7051_v48 = vrot.slane %v7050_v14, 4  ;;  %v7394_v7 = vrot.slane %v7393_v11, 4  ;;  %v18049_v27 = vpop.f32.mrb[187].mxu0 }
 0x38c   :  { %v7021_v44 = vadd.f32 %v7020_v59, %v7019_v54  ;;  %v7384_v41 = vrot.slane %v7383_v16, 1  ;;  %v7032_v52 = vrot.slane %v7031_v34, 2  ;;  %v7375_v30 = vrot.slane %v7374_v9, 2 }
 0x38d   :  { %v7364_v0 = vadd.f32 %v7363_v4, %v7362_v29  ;;  %v7042_v17 = vadd.f32 %v7041_v51, %v7040_v62  ;;  %v7052_v31 = vadd.f32 %v7051_v48, %v7050_v14  ;;  %v7395_v60 = vadd.f32 %v7394_v7, %v7393_v11  ;;  %v19341_v29 = vld [vmem:[#allocation46_spill] sm:$0xff] }
 0x38e   :  { %v7081_v28 = vsel %vm390_vm4, %v7021_v44, %v7080_v21  ;;  %v7385_v57 = vadd.f32 %v7384_v41, %v7383_v16  ;;  %v7033_v55 = vadd.f32 %v7032_v52, %v7031_v34  ;;  %v7376_v19 = vadd.f32 %v7375_v30, %v7374_v9  ;;  %v18059_v16 = vpop.f32.mrb[187].mxu1 }
 0x38f   :  { %v7449_v46 = vsel %vm398_vm8, %v7364_v0, %v7448_v20  ;;  %v7082_v54 = vsel %vm392_vm5, %v7028_v63, %v7081_v28  ;;  %v7053_v6 = vrot.slane %v7052_v31, 2  ;;  %v7396_v59 = vrot.slane %v7395_v60, 2  ;;  %19342 = vst [vmem:[#allocation64_spill] sm:$0xff] %v18059_v16 }
 0x390   :  { %v18052_v48 = vsel %vm400_vm9, %v7371_v3, %v7449_v46  ;;  %v7034_v4 = vrot.slane %v7033_v55, 1  ;;  %v7377_v21 = vrot.slane %v7376_v19, 1  ;;  %v6943_v34 = vmax.f32 %v19341_v29, 0.0  ;;  %v19346_v29 = vld [vmem:[#allocation56_spill] sm:$0xff] }
 0x391   :  { %19340 = vst [vmem:[#allocation55_spill] sm:$0xff] %v18052_v48  ;;  %v7054_v30 = vadd.f32 %v7053_v6, %v7052_v31  ;;  %v7397_v9 = vadd.f32 %v7396_v59, %v7395_v60  ;;  %v7310_v52 = vmax.f32 %v17753_v58, 0.0  ;;  %v7313_v62 = vmax.f32 %v17762_v33, 0.0  ;;  %v19343_v6 = vld [vmem:[#allocation47_spill] sm:$0xff] }
 0x392   :  { %v7035_v20 = vadd.f32 %v7034_v4, %v7033_v55  ;;  %v7378_v14 = vadd.f32 %v7377_v21, %v7376_v19  ;;  %v7043_v63 = vsel %vm23_vm2, %v6943_v34, 0.0  ;;  %v7672_v11 = vmax.f32 %v17764_v39, 0.0  ;;  %v18068_v4 = vpop.f32.mrb[188].mxu0  ;;  %v18070_v21 = vpop.f32.mrb[188].mxu1 }
 0x393   :  { %v7055_v3 = vrot.slane %v7054_v30, 1  ;;  %v7398_v51 = vrot.slane %v7397_v9, 1  ;;  %v7044_v7 = vrot.slane %v7043_v63, 4  ;;  %v7386_v44 = vsel %vm23_vm2, %v7310_v52, 0.0  ;;  %19344 = vst [vmem:[#allocation65_spill] sm:$0xff] %v18068_v4  ;;  %19345 = vst [vmem:[#allocation46_spill] sm:$0xff] %v18070_v21 }
 0x394   :  { %v7083_v41 = vsel %vm394_vm6, %v7035_v20, %v7082_v54  ;;  %v7451_v0 = vsel %vm388_vm3, %v7385_v57, %v7378_v14  ;;  %v7387_v58 = vrot.slane %v7386_v44, 4  ;;  %v7407_v33 = vsel %vm23_vm2, %v7313_v62, 0.0  ;;  %v19347_v52 = vld [vmem:[#allocation14_spill] sm:$0xff]  ;;  %v19348_v20 = vld [vmem:[#allocation15_spill] sm:$0xff] }
 0x395   :  { %v7056_v31 = vadd.f32 %v7055_v3, %v7054_v30  ;;  %v7399_v60 = vadd.f32 %v7398_v51, %v7397_v9  ;;  %v7045_v28 = vadd.f32 %v7044_v7, %v7043_v63  ;;  %v7084_v55 = vsel %vm396_vm7, %v7042_v17, %v7083_v41  ;;  %v18076_v63 = vpop.f32.mrb[189].mxu0 }
 0x396   :  { %v7388_v39 = vadd.f32 %v7387_v58, %v7386_v44  ;;  %v7408_v19 = vrot.slane %v7407_v33, 4  ;;  %v7694_v46 = vsel %vm23_vm2, %v7672_v11, 0.0  ;;  %v7312_v59 = vmax.f32 %v19343_v6, 0.0  ;;  %19349 = vst [vmem:[#allocation47_spill] sm:$0xff] %v18076_v63 }
 0x397   :  { %v7046_v54 = vrot.slane %v7045_v28, 2  ;;  %v7695_v57 = vrot.slane %v7694_v46, 4  ;;  %v7671_v34 = vmax.f32 %v19346_v29, 0.0  ;;  %v7315_v30 = vmax.f32 %v19347_v52, 0.0 }
 0x398   :  { %v7389_v9 = vrot.slane %v7388_v39, 2  ;;  %v7409_v62 = vadd.f32 %v7408_v19, %v7407_v33  ;;  %v7400_v17 = vsel %vm23_vm2, %v7312_v59, 0.0  ;;  %v7674_v14 = vmax.f32 %v19348_v20, 0.0 }
 0x399   :  { %v7047_v11 = vadd.f32 %v7046_v54, %v7045_v28  ;;  %v7696_v3 = vadd.f32 %v7695_v57, %v7694_v46  ;;  %v7401_v51 = vrot.slane %v7400_v17, 4  ;;  %v7687_v7 = vsel %vm23_vm2, %v7671_v34, 0.0  ;;  %v18081_v57 = vpop.f32.mrb[189].mxu1 }
 0x39a   :  { %v7390_v44 = vadd.f32 %v7389_v9, %v7388_v39  ;;  %v7410_v41 = vrot.slane %v7409_v62, 2  ;;  %v7688_v58 = vrot.slane %v7687_v7, 4  ;;  %v7421_v6 = vsel %vm23_vm2, %v7315_v30, 0.0  ;;  %19350 = vst [vmem:[#allocation56_spill] sm:$0xff] %v18081_v57 }
 0x39b   :  { %v7048_v29 = vrot.slane %v7047_v11, 1  ;;  %v7697_v52 = vrot.slane %v7696_v3, 2  ;;  %v7402_v48 = vadd.f32 %v7401_v51, %v7400_v17  ;;  %v7422_v33 = vrot.slane %v7421_v6, 4 }
 0x39c   :  { %v7391_v19 = vrot.slane %v7390_v44, 1  ;;  %v7411_v59 = vadd.f32 %v7410_v41, %v7409_v62  ;;  %v7689_v21 = vadd.f32 %v7688_v58, %v7687_v7  ;;  %v7708_v20 = vsel %vm23_vm2, %v7674_v14, 0.0 }
 0x39d   :  { %v7049_v63 = vadd.f32 %v7048_v29, %v7047_v11  ;;  %v7698_v28 = vadd.f32 %v7697_v52, %v7696_v3  ;;  %v7403_v46 = vrot.slane %v7402_v48, 2  ;;  %v7423_v54 = vadd.f32 %v7422_v33, %v7421_v6  ;;  %v18089_v6 = vpop.f32.mrb[190].mxu1  ;;  %v18091_v29 = vpop.f32.mrb[190].mxu0  ;;  %v19355_v33 = vld [vmem:[#allocation17_spill] sm:$0xff] }
 0x39e   :  { %v7392_v39 = vadd.f32 %v7391_v19, %v7390_v44  ;;  %v7412_v34 = vrot.slane %v7411_v59, 1  ;;  %v7690_v9 = vrot.slane %v7689_v21, 2  ;;  %v7709_v4 = vrot.slane %v7708_v20, 4  ;;  %19352 = vst [vmem:[#allocation15_spill] sm:$0xff] %v18089_v6  ;;  %19353 = vst [vmem:[#allocation74_spill] sm:$0xff] %v18091_v29  ;;  %v18095_v19 = vpop.f32.mrb[191].mxu1 }
 0x39f   :  { %v7085_v30 = vsel %vm398_vm8, %v7049_v63, %v7084_v55  ;;  %v7699_v16 = vrot.slane %v7698_v28, 1  ;;  %v7404_v17 = vadd.f32 %v7403_v46, %v7402_v48  ;;  %v7424_v51 = vrot.slane %v7423_v54, 2  ;;  %v19354_v48 = vld [vmem:[#allocation48_spill] sm:$0xff] }
 0x3a0   :  { %v18085_v62 = vsel %vm400_vm9, %v7056_v31, %v7085_v30  ;;  %v7452_v14 = vsel %vm390_vm4, %v7392_v39, %v7451_v0  ;;  %v7413_v11 = vadd.f32 %v7412_v34, %v7411_v59  ;;  %v7691_v3 = vadd.f32 %v7690_v9, %v7689_v21  ;;  %19356 = vst [vmem:[#allocation48_spill] sm:$0xff] %v18095_v19  ;;  %v19357_v21 = vld [vmem:[#allocation20_spill] sm:$0xff]  ;;  %v18101_v9 = vpop.f32.mrb[191].mxu0  ;;  %v19366_v19 = vld [vmem:[#allocation67_spill] sm:$0xff] }
 0x3a1   :  { %19351 = vst [vmem:[#allocation14_spill] sm:$0xff] %v18085_v62  ;;  %v7700_v7 = vadd.f32 %v7699_v16, %v7698_v28  ;;  %v7405_v41 = vrot.slane %v7404_v17, 1  ;;  %v7453_v58 = vsel %vm392_vm5, %v7399_v60, %v7452_v14  ;;  %v7425_v44 = vadd.f32 %v7424_v51, %v7423_v54  ;;  %v19358_v28 = vld [vmem:[#allocation57_spill] sm:$0xff]  ;;  %19359 = vst [vmem:[#allocation17_spill] sm:$0xff] %v18101_v9 }
 0x3a2   :  { %v7692_v55 = vrot.slane %v7691_v3, 1  ;;  %v7710_v63 = vadd.f32 %v7709_v4, %v7708_v20  ;;  %v7314_v52 = vmax.f32 %v19354_v48, 0.0  ;;  %v7673_v31 = vmax.f32 %v19355_v33, 0.0 }
 0x3a3   :  { %v7406_v0 = vadd.f32 %v7405_v41, %v7404_v17  ;;  %v7426_v59 = vrot.slane %v7425_v44, 1  ;;  %v7676_v16 = vmax.f32 %v19357_v21, 0.0  ;;  %v8043_v46 = vmax.f32 %v19358_v28, 0.0  ;;  %v19360_v28 = vld [vmem:[#allocation22_spill] sm:$0xff] }
 0x3a4   :  { %v7693_v60 = vadd.f32 %v7692_v55, %v7691_v3  ;;  %v7711_v54 = vrot.slane %v7710_v63, 2  ;;  %v7414_v39 = vsel %vm23_vm2, %v7314_v52, 0.0  ;;  %v7701_v34 = vsel %vm23_vm2, %v7673_v31, 0.0 }
 0x3a5   :  { %v7454_v4 = vsel %vm394_vm6, %v7406_v0, %v7453_v58  ;;  %v7427_v20 = vadd.f32 %v7426_v59, %v7425_v44  ;;  %v7415_v30 = vrot.slane %v7414_v39, 4  ;;  %v7702_v51 = vrot.slane %v7701_v34, 4  ;;  %v19361_v58 = vld [vmem:[#allocation42_spill] sm:$0xff]  ;;  %v18110_v0 = vpop.f32.mrb[192].mxu1  ;;  %v18112_v59 = vpop.f32.mrb[192].mxu0 }
 0x3a6   :  { %v7815_v17 = vsel %vm388_vm3, %v7700_v7, %v7693_v60  ;;  %v7712_v14 = vadd.f32 %v7711_v54, %v7710_v63  ;;  %v7455_v41 = vsel %vm396_vm7, %v7413_v11, %v7454_v4  ;;  %v7722_v48 = vsel %vm23_vm2, %v7676_v16, 0.0  ;;  %19362 = vst [vmem:[#allocation20_spill] sm:$0xff] %v18110_v0  ;;  %19363 = vst [vmem:[#allocation57_spill] sm:$0xff] %v18112_v59  ;;  %v19364_v60 = vld [vmem:[#allocation66_spill] sm:$0xff]  ;;  %v18115_v54 = vpop.f32.mrb[193].mxu1 }
 0x3a7   :  { %v7416_v3 = vadd.f32 %v7415_v30, %v7414_v39  ;;  %v7703_v55 = vadd.f32 %v7702_v51, %v7701_v34  ;;  %v7723_v33 = vrot.slane %v7722_v48, 4  ;;  %v8065_v52 = vsel %vm23_vm2, %v8043_v46, 0.0  ;;  %19365 = vst [vmem:[#allocation22_spill] sm:$0xff] %v18115_v54 }
 0x3a8   :  { %v7713_v31 = vrot.slane %v7712_v14, 1  ;;  %v8066_v21 = vrot.slane %v8065_v52, 4  ;;  %v7675_v62 = vmax.f32 %v19360_v28, 0.0  ;;  %v8042_v44 = vmax.f32 %v19361_v58, 0.0 }
 0x3a9   :  { %v7417_v7 = vrot.slane %v7416_v3, 2  ;;  %v7704_v63 = vrot.slane %v7703_v55, 2  ;;  %v7724_v11 = vadd.f32 %v7723_v33, %v7722_v48  ;;  %v7678_v16 = vmax.f32 %v19364_v60, 0.0 }
 0x3aa   :  { %v7714_v39 = vadd.f32 %v7713_v31, %v7712_v14  ;;  %v8067_v34 = vadd.f32 %v8066_v21, %v8065_v52  ;;  %v7715_v46 = vsel %vm23_vm2, %v7675_v62, 0.0  ;;  %v8058_v4 = vsel %vm23_vm2, %v8042_v44, 0.0 }
 0x3ab   :  { %v7418_v30 = vadd.f32 %v7417_v7, %v7416_v3  ;;  %v7705_v51 = vadd.f32 %v7704_v63, %v7703_v55  ;;  %v7725_v28 = vrot.slane %v7724_v11, 2  ;;  %v7716_v58 = vrot.slane %v7715_v46, 4  ;;  %v18122_v7 = vpop.f32.mrb[193].mxu0 }
 0x3ac   :  { %v8068_v0 = vrot.slane %v8067_v34, 2  ;;  %v8059_v9 = vrot.slane %v8058_v4, 4  ;;  %v7736_v59 = vsel %vm23_vm2, %v7678_v16, 0.0  ;;  %v8045_v48 = vmax.f32 %v19366_v19, 0.0 }
 0x3ad   :  { %v7419_v33 = vrot.slane %v7418_v30, 1  ;;  %v7706_v60 = vrot.slane %v7705_v51, 1  ;;  %v7726_v29 = vadd.f32 %v7725_v28, %v7724_v11  ;;  %v7717_v54 = vadd.f32 %v7716_v58, %v7715_v46 }
 0x3ae   :  { %v8069_v14 = vadd.f32 %v8068_v0, %v8067_v34  ;;  %v8060_v52 = vadd.f32 %v8059_v9, %v8058_v4  ;;  %v7737_v31 = vrot.slane %v7736_v59, 4  ;;  %v8079_v62 = vsel %vm23_vm2, %v8045_v48, 0.0  ;;  %v19368_v48 = vld [vmem:[#allocation49_spill] sm:$0xff] }
 0x3af   :  { %v7420_v21 = vadd.f32 %v7419_v33, %v7418_v30  ;;  %v7707_v3 = vadd.f32 %v7706_v60, %v7705_v51  ;;  %v7727_v55 = vrot.slane %v7726_v29, 1  ;;  %v7718_v44 = vrot.slane %v7717_v54, 2  ;;  %v18133_v60 = vpop.f32.mrb[194].mxu1 }
 0x3b0   :  { %v8070_v63 = vrot.slane %v8069_v14, 1  ;;  %v8061_v6 = vrot.slane %v8060_v52, 2  ;;  %v7738_v16 = vadd.f32 %v7737_v31, %v7736_v59  ;;  %v8080_v57 = vrot.slane %v8079_v62, 4  ;;  %v18131_v59 = vpop.f32.mrb[194].mxu0 }
 0x3b1   :  { %v7456_v19 = vsel %vm398_vm8, %v7420_v21, %v7455_v41  ;;  %v7816_v11 = vsel %vm390_vm4, %v7707_v3, %v7815_v17  ;;  %v7728_v46 = vadd.f32 %v7727_v55, %v7726_v29  ;;  %v7719_v0 = vadd.f32 %v7718_v44, %v7717_v54  ;;  %v18138_v54 = vpop.f32.mrb[195].mxu0  ;;  %v18143_v3 = vpop.f32.mrb[195].mxu1 }
 0x3b2   :  { %v18127_v9 = vsel %vm400_vm9, %v7427_v20, %v7456_v19  ;;  %v8071_v34 = vadd.f32 %v8070_v63, %v8069_v14  ;;  %v7817_v4 = vsel %vm392_vm5, %v7714_v39, %v7816_v11  ;;  %v8062_v30 = vadd.f32 %v8061_v6, %v8060_v52 }
 0x3b3   :  { %19367 = vst [vmem:[#allocation42_spill] sm:$0xff] %v18127_v9  ;;  %v7720_v51 = vrot.slane %v7719_v0, 1  ;;  %v7739_v28 = vrot.slane %v7738_v16, 2  ;;  %v8081_v58 = vadd.f32 %v8080_v57, %v8079_v62  ;;  %v7677_v33 = vmax.f32 %v19368_v48, 0.0 }
 0x3b4   :  { %v8063_v41 = vrot.slane %v8062_v30, 1  ;;  %v8044_v29 = vmax.f32 %v17835_v47, 0.0  ;;  %v7680_v17 = vmax.f32 %v17843_v32, 0.0  ;;  %v8047_v20 = vmax.f32 %v17845_v15, 0.0 }
 0x3b5   :  { %v7721_v39 = vadd.f32 %v7720_v51, %v7719_v0  ;;  %v7740_v6 = vadd.f32 %v7739_v28, %v7738_v16  ;;  %v8082_v14 = vrot.slane %v8081_v58, 2  ;;  %v7729_v57 = vsel %vm23_vm2, %v7677_v33, 0.0 }
 0x3b6   :  { %v8064_v52 = vadd.f32 %v8063_v41, %v8062_v30  ;;  %v7730_v31 = vrot.slane %v7729_v57, 4  ;;  %v8072_v62 = vsel %vm23_vm2, %v8044_v29, 0.0  ;;  %v7750_v21 = vsel %vm23_vm2, %v7680_v17, 0.0 }
 0x3b7   :  { %v7818_v47 = vsel %vm394_vm6, %v7721_v39, %v7817_v4  ;;  %v7741_v32 = vrot.slane %v7740_v6, 1  ;;  %v8083_v55 = vadd.f32 %v8082_v14, %v8081_v58  ;;  %v8073_v15 = vrot.slane %v8072_v62, 4  ;;  %v18150_v4 = vpop.f32.mrb[196].mxu0  ;;  %v18152_v58 = vpop.f32.mrb[196].mxu1 }
 0x3b8   :  { %v8186_v44 = vsel %vm388_vm3, %v8071_v34, %v8064_v52  ;;  %v7731_v63 = vadd.f32 %v7730_v31, %v7729_v57  ;;  %v7819_v16 = vsel %vm396_vm7, %v7728_v46, %v7818_v47  ;;  %v7751_v19 = vrot.slane %v7750_v21, 4  ;;  %19369 = vst [vmem:[#allocation66_spill] sm:$0xff] %v18152_v58  ;;  %v19370_v46 = vld [vmem:[#allocation50_spill] sm:$0xff] }
 0x3b9   :  { %v7742_v11 = vadd.f32 %v7741_v32, %v7740_v6  ;;  %v8084_v0 = vrot.slane %v8083_v55, 1  ;;  %v8074_v30 = vadd.f32 %v8073_v15, %v8072_v62  ;;  %v8093_v51 = vsel %vm23_vm2, %v8047_v20, 0.0  ;;  %v18156_v6 = vpop.f32.mrb[197].mxu0 }
 0x3ba   :  { %v7732_v28 = vrot.slane %v7731_v63, 2  ;;  %v7752_v48 = vadd.f32 %v7751_v19, %v7750_v21  ;;  %v8094_v33 = vrot.slane %v8093_v51, 4  ;;  %v7679_v41 = vmax.f32 %v17849_v45, 0.0  ;;  %19371 = vst [vmem:[#allocation67_spill] sm:$0xff] %v18156_v6  ;;  %v18163_v6 = vpop.f32.mrb[197].mxu1 }
 0x3bb   :  { %v8085_v29 = vadd.f32 %v8084_v0, %v8083_v55  ;;  %v8075_v34 = vrot.slane %v8074_v30, 2  ;;  %v8046_v17 = vmax.f32 %v17855_v2, 0.0  ;;  %v7682_v39 = vmax.f32 %v19370_v46, 0.0  ;;  %v19372_v46 = vld [vmem:[#allocation25_spill] sm:$0xff] }
 0x3bc   :  { %v7733_v14 = vadd.f32 %v7732_v28, %v7731_v63  ;;  %v7753_v57 = vrot.slane %v7752_v48, 2  ;;  %v8095_v20 = vadd.f32 %v8094_v33, %v8093_v51  ;;  %v7743_v52 = vsel %vm23_vm2, %v7679_v41, 0.0 }
 0x3bd   :  { %v8076_v31 = vadd.f32 %v8075_v34, %v8074_v30  ;;  %v7744_v62 = vrot.slane %v7743_v52, 4  ;;  %v8086_v45 = vsel %vm23_vm2, %v8046_v17, 0.0  ;;  %v7764_v21 = vsel %vm23_vm2, %v7682_v39, 0.0 }
 0x3be   :  { %v7734_v47 = vrot.slane %v7733_v14, 1  ;;  %v7754_v32 = vadd.f32 %v7753_v57, %v7752_v48  ;;  %v8096_v55 = vrot.slane %v8095_v20, 2  ;;  %v8087_v15 = vrot.slane %v8086_v45, 4 }
 0x3bf   :  { %v8077_v2 = vrot.slane %v8076_v31, 1  ;;  %v7745_v19 = vadd.f32 %v7744_v62, %v7743_v52  ;;  %v7765_v0 = vrot.slane %v7764_v21, 4  ;;  %v8049_v9 = vmax.f32 %v19372_v46, 0.0 }
 0x3c0   :  { %v7735_v63 = vadd.f32 %v7734_v47, %v7733_v14  ;;  %v7755_v28 = vrot.slane %v7754_v32, 1  ;;  %v8097_v51 = vadd.f32 %v8096_v55, %v8095_v20  ;;  %v8088_v33 = vadd.f32 %v8087_v15, %v8086_v45  ;;  %v19374_v15 = vld [vmem:[#allocation27_spill] sm:$0xff] }
 0x3c1   :  { %v8078_v41 = vadd.f32 %v8077_v2, %v8076_v31  ;;  %v7746_v30 = vrot.slane %v7745_v19, 2  ;;  %v7766_v34 = vadd.f32 %v7765_v0, %v7764_v21  ;;  %v8107_v17 = vsel %vm23_vm2, %v8049_v9, 0.0  ;;  %v18175_v0 = vpop.f32.mrb[198].mxu1 }
 0x3c2   :  { %v7820_v48 = vsel %vm398_vm8, %v7735_v63, %v7819_v16  ;;  %v7756_v39 = vadd.f32 %v7755_v28, %v7754_v32  ;;  %v8098_v57 = vrot.slane %v8097_v51, 1  ;;  %v8089_v58 = vrot.slane %v8088_v33, 2  ;;  %v18173_v32 = vpop.f32.mrb[198].mxu0 }
 0x3c3   :  { %v18167_v52 = vsel %vm400_vm9, %v7742_v11, %v7820_v48  ;;  %v8187_v14 = vsel %vm390_vm4, %v8078_v41, %v8186_v44  ;;  %v7747_v62 = vadd.f32 %v7746_v30, %v7745_v19  ;;  %v7767_v20 = vrot.slane %v7766_v34, 2 }
 0x3c4   :  { %19373 = vst [vmem:[#allocation49_spill] sm:$0xff] %v18167_v52  ;;  %v8099_v45 = vadd.f32 %v8098_v57, %v8097_v51  ;;  %v8090_v31 = vadd.f32 %v8089_v58, %v8088_v33  ;;  %v8188_v21 = vsel %vm392_vm5, %v8085_v29, %v8187_v14  ;;  %v8108_v47 = vrot.slane %v8107_v17, 4  ;;  %v18179_v58 = vpop.f32.mrb[199].mxu0  ;;  %v18183_v33 = vpop.f32.mrb[199].mxu1 }
 0x3c5   :  { %v7748_v9 = vrot.slane %v7747_v62, 1  ;;  %v7768_v55 = vadd.f32 %v7767_v20, %v7766_v34  ;;  %v7681_v2 = vmax.f32 %v19374_v15, 0.0  ;;  %v8048_v16 = vmax.f32 %v17876_v42, 0.0 }
 0x3c6   :  { %v8091_v11 = vrot.slane %v8090_v31, 1  ;;  %v8109_v46 = vadd.f32 %v8108_v47, %v8107_v17  ;;  %v7684_v44 = vmax.f32 %v17883_v25, 0.0  ;;  %v8051_v19 = vmax.f32 %v17885_v1, 0.0 }
 0x3c7   :  { %v7749_v29 = vadd.f32 %v7748_v9, %v7747_v62  ;;  %v7769_v63 = vrot.slane %v7768_v55, 1  ;;  %v7757_v28 = vsel %vm23_vm2, %v7681_v2, 0.0  ;;  %v8100_v51 = vsel %vm23_vm2, %v8048_v16, 0.0  ;;  %v18191_v2 = vpop.f32.mrb[200].mxu0  ;;  %v18193_v16 = vpop.f32.mrb[200].mxu1 }
 0x3c8   :  { %v8092_v42 = vadd.f32 %v8091_v11, %v8090_v31  ;;  %v8110_v41 = vrot.slane %v8109_v46, 2  ;;  %v7758_v30 = vrot.slane %v7757_v28, 4  ;;  %v8101_v34 = vrot.slane %v8100_v51, 4 }
 0x3c9   :  { %v7822_v17 = vsel %vm388_vm3, %v7756_v39, %v7749_v29  ;;  %v7770_v48 = vadd.f32 %v7769_v63, %v7768_v55  ;;  %v7778_v25 = vsel %vm23_vm2, %v7684_v44, 0.0  ;;  %v8121_v1 = vsel %vm23_vm2, %v8051_v19, 0.0  ;;  %v18196_v19 = vpop.f32.mrb[201].mxu0 }
 0x3ca   :  { %v8189_v57 = vsel %vm394_vm6, %v8092_v42, %v8188_v21  ;;  %v8111_v14 = vadd.f32 %v8110_v41, %v8109_v46  ;;  %v7759_v62 = vadd.f32 %v7758_v30, %v7757_v28  ;;  %v8102_v20 = vadd.f32 %v8101_v34, %v8100_v51  ;;  %19375 = vst [vmem:[#allocation50_spill] sm:$0xff] %v18196_v19 }
 0x3cb   :  { %v8190_v47 = vsel %vm396_vm7, %v8099_v45, %v8189_v57  ;;  %v7779_v9 = vrot.slane %v7778_v25, 4  ;;  %v8122_v15 = vrot.slane %v8121_v1, 4  ;;  %v7683_v31 = vmax.f32 %v17888_v10, 0.0 }
 0x3cc   :  { %v8112_v39 = vrot.slane %v8111_v14, 1  ;;  %v7760_v55 = vrot.slane %v7759_v62, 2  ;;  %v8103_v11 = vrot.slane %v8102_v20, 2  ;;  %v8050_v44 = vmax.f32 %v17894_v12, 0.0 }
 0x3cd   :  { %v7780_v21 = vadd.f32 %v7779_v9, %v7778_v25  ;;  %v8123_v46 = vadd.f32 %v8122_v15, %v8121_v1  ;;  %v7771_v29 = vsel %vm23_vm2, %v7683_v31, 0.0  ;;  %v7686_v45 = vmax.f32 %v17903_v50, 0.0 }
 0x3ce   :  { %v8113_v63 = vadd.f32 %v8112_v39, %v8111_v14  ;;  %v7761_v28 = vadd.f32 %v7760_v55, %v7759_v62  ;;  %v8104_v10 = vadd.f32 %v8103_v11, %v8102_v20  ;;  %v7772_v51 = vrot.slane %v7771_v29, 4 }
 0x3cf   :  { %v7781_v42 = vrot.slane %v7780_v21, 2  ;;  %v8124_v41 = vrot.slane %v8123_v46, 2  ;;  %v8114_v30 = vsel %vm23_vm2, %v8050_v44, 0.0  ;;  %v7792_v34 = vsel %vm23_vm2, %v7686_v45, 0.0  ;;  %v18204_v44 = vpop.f32.mrb[201].mxu1 }
 0x3d0   :  { %v7762_v57 = vrot.slane %v7761_v28, 1  ;;  %v8105_v12 = vrot.slane %v8104_v10, 1  ;;  %v7773_v52 = vadd.f32 %v7772_v51, %v7771_v29  ;;  %v8115_v19 = vrot.slane %v8114_v30, 4 }
 0x3d1   :  { %v7782_v25 = vadd.f32 %v7781_v42, %v7780_v21  ;;  %v8125_v1 = vadd.f32 %v8124_v41, %v8123_v46  ;;  %v7793_v9 = vrot.slane %v7792_v34, 4  ;;  %v8053_v15 = vmax.f32 %v17905_v61, 0.0 }
 0x3d2   :  { %v7763_v50 = vadd.f32 %v7762_v57, %v7761_v28  ;;  %v8106_v14 = vadd.f32 %v8105_v12, %v8104_v10  ;;  %v7774_v62 = vrot.slane %v7773_v52, 2  ;;  %v8116_v20 = vadd.f32 %v8115_v19, %v8114_v30 }
 0x3d3   :  { %v7783_v31 = vrot.slane %v7782_v25, 1  ;;  %v8126_v39 = vrot.slane %v8125_v1, 1  ;;  %v7794_v55 = vadd.f32 %v7793_v9, %v7792_v34  ;;  %v8135_v11 = vsel %vm23_vm2, %v8053_v15, 0.0  ;;  %v19377_v34 = vld [vmem:[#allocation53_spill] sm:$0xff] }
 0x3d4   :  { %v7823_v45 = vsel %vm390_vm4, %v7763_v50, %v7822_v17  ;;  %v8191_v29 = vsel %vm398_vm8, %v8106_v14, %v8190_v47  ;;  %v7775_v21 = vadd.f32 %v7774_v62, %v7773_v52  ;;  %v8117_v46 = vrot.slane %v8116_v20, 2  ;;  %v18216_v47 = vpop.f32.mrb[202].mxu0 }
 0x3d5   :  { %v18209_v51 = vsel %vm400_vm9, %v8113_v63, %v8191_v29  ;;  %v7784_v61 = vadd.f32 %v7783_v31, %v7782_v25  ;;  %v8127_v28 = vadd.f32 %v8126_v39, %v8125_v1  ;;  %v7824_v19 = vsel %vm392_vm5, %v7770_v48, %v7823_v45  ;;  %v18218_v63 = vpop.f32.mrb[202].mxu1  ;;  %v18220_v15 = vpop.f32.mrb[203].mxu0 }
 0x3d6   :  { %19376 = vst [vmem:[#allocation25_spill] sm:$0xff] %v18209_v51  ;;  %v7776_v10 = vrot.slane %v7775_v21, 1  ;;  %v8118_v42 = vadd.f32 %v8117_v46, %v8116_v20  ;;  %v7795_v41 = vrot.slane %v7794_v55, 2  ;;  %v8136_v30 = vrot.slane %v8135_v11, 4  ;;  %v18226_v62 = vpop.f32.mrb[203].mxu1 }
 0x3d7   :  { %v7685_v57 = vmax.f32 %v19377_v34, 0.0  ;;  %v8052_v12 = vmax.f32 %v17917_v5, 0.0  ;;  %v8055_v17 = vmax.f32 %v17925_v35, 0.0  ;;  %v8414_v52 = vmax.f32 %v17927_v37, 0.0  ;;  %v18233_v34 = vpop.f32.mrb[204].mxu1 }
 0x3d8   :  { %v7777_v25 = vadd.f32 %v7776_v10, %v7775_v21  ;;  %v8119_v1 = vrot.slane %v8118_v42, 1  ;;  %v7796_v9 = vadd.f32 %v7795_v41, %v7794_v55  ;;  %v8137_v48 = vadd.f32 %v8136_v30, %v8135_v11  ;;  %v18231_v30 = vpop.f32.mrb[204].mxu0  ;;  %19378 = vst [vmem:[#allocation27_spill] sm:$0xff] %v18233_v34 }
 0x3d9   :  { %v7785_v50 = vsel %vm23_vm2, %v7685_v57, 0.0  ;;  %v8128_v14 = vsel %vm23_vm2, %v8052_v12, 0.0  ;;  %v8149_v5 = vsel %vm23_vm2, %v8055_v17, 0.0  ;;  %v8436_v35 = vsel %vm23_vm2, %v8414_v52, 0.0  ;;  %v18236_v17 = vpop.f32.mrb[205].mxu0 }
 0x3da   :  { %v7825_v37 = vsel %vm394_vm6, %v7777_v25, %v7824_v19  ;;  %v8120_v20 = vadd.f32 %v8119_v1, %v8118_v42  ;;  %v7797_v31 = vrot.slane %v7796_v9, 1  ;;  %v8138_v39 = vrot.slane %v8137_v48, 2  ;;  %19379 = vst [vmem:[#allocation53_spill] sm:$0xff] %v18236_v17 }
 0x3db   :  { %v7786_v45 = vrot.slane %v7785_v50, 4  ;;  %v7826_v55 = vsel %vm396_vm7, %v7784_v61, %v7825_v37  ;;  %v8129_v11 = vrot.slane %v8128_v14, 4  ;;  %v8150_v29 = vrot.slane %v8149_v5, 4 }
 0x3dc   :  { %v8193_v21 = vsel %vm388_vm3, %v8127_v28, %v8120_v20  ;;  %v7798_v46 = vadd.f32 %v7797_v31, %v7796_v9  ;;  %v8139_v10 = vadd.f32 %v8138_v39, %v8137_v48  ;;  %v8437_v41 = vrot.slane %v8436_v35, 4 }
 0x3dd   :  { %v7787_v57 = vadd.f32 %v7786_v45, %v7785_v50  ;;  %v8130_v12 = vadd.f32 %v8129_v11, %v8128_v14  ;;  %v8151_v19 = vadd.f32 %v8150_v29, %v8149_v5  ;;  %v8054_v42 = vmax.f32 %v17932_v26, 0.0 }
 0x3de   :  { %v8140_v52 = vrot.slane %v8139_v10, 1  ;;  %v8438_v61 = vadd.f32 %v8437_v41, %v8436_v35  ;;  %v8413_v25 = vmax.f32 %v17935_v18, 0.0  ;;  %v8057_v28 = vmax.f32 %v17943_v36, 0.0 }
 0x3df   :  { %v7788_v1 = vrot.slane %v7787_v57, 2  ;;  %v8131_v9 = vrot.slane %v8130_v12, 2  ;;  %v8152_v48 = vrot.slane %v8151_v19, 2  ;;  %v8142_v37 = vsel %vm23_vm2, %v8054_v42, 0.0 }
 0x3e0   :  { %v8141_v20 = vadd.f32 %v8140_v52, %v8139_v10  ;;  %v8439_v31 = vrot.slane %v8438_v61, 2  ;;  %v8143_v50 = vrot.slane %v8142_v37, 4  ;;  %v8429_v14 = vsel %vm23_vm2, %v8413_v25, 0.0  ;;  %v18245_v25 = vpop.f32.mrb[205].mxu1 }
 0x3e1   :  { %v7789_v5 = vadd.f32 %v7788_v1, %v7787_v57  ;;  %v8132_v26 = vadd.f32 %v8131_v9, %v8130_v12  ;;  %v8153_v39 = vadd.f32 %v8152_v48, %v8151_v19  ;;  %v8430_v45 = vrot.slane %v8429_v14, 4 }
 0x3e2   :  { %v8440_v11 = vadd.f32 %v8439_v31, %v8438_v61  ;;  %v8144_v35 = vadd.f32 %v8143_v50, %v8142_v37  ;;  %v8163_v18 = vsel %vm23_vm2, %v8057_v28, 0.0  ;;  %v8416_v36 = vmax.f32 %v17945_v56, 0.0  ;;  %v19380_v50 = vld [vmem:[#allocation68_spill] sm:$0xff] }
 0x3e3   :  { %v7790_v29 = vrot.slane %v7789_v5, 1  ;;  %v8133_v41 = vrot.slane %v8132_v26, 1  ;;  %v8154_v51 = vrot.slane %v8153_v39, 1  ;;  %v8431_v17 = vadd.f32 %v8430_v45, %v8429_v14 }
 0x3e4   :  { %v8441_v42 = vrot.slane %v8440_v11, 1  ;;  %v8145_v10 = vrot.slane %v8144_v35, 2  ;;  %v8164_v52 = vrot.slane %v8163_v18, 4  ;;  %v8450_v34 = vsel %vm23_vm2, %v8416_v36, 0.0 }
 0x3e5   :  { %v7791_v57 = vadd.f32 %v7790_v29, %v7789_v5  ;;  %v8134_v12 = vadd.f32 %v8133_v41, %v8132_v26  ;;  %v8155_v19 = vadd.f32 %v8154_v51, %v8153_v39  ;;  %v8432_v61 = vrot.slane %v8431_v17, 2  ;;  %v18254_v51 = vpop.f32.mrb[206].mxu1  ;;  %v18256_v39 = vpop.f32.mrb[206].mxu0 }
 0x3e6   :  { %v8442_v1 = vadd.f32 %v8441_v42, %v8440_v11  ;;  %v8146_v9 = vadd.f32 %v8145_v10, %v8144_v35  ;;  %v8165_v28 = vadd.f32 %v8164_v52, %v8163_v18  ;;  %v8451_v48 = vrot.slane %v8450_v34, 4  ;;  %v19382_v18 = vld [vmem:[#allocation69_spill] sm:$0xff]  ;;  %v18263_v10 = vpop.f32.mrb[207].mxu0 }
 0x3e7   :  { %v7827_v56 = vsel %vm398_vm8, %v7791_v57, %v7826_v55  ;;  %v8194_v37 = vsel %vm390_vm4, %v8134_v12, %v8193_v21  ;;  %v8433_v31 = vadd.f32 %v8432_v61, %v8431_v17  ;;  %v8056_v14 = vmax.f32 %v19380_v50, 0.0  ;;  %v18260_v17 = vpop.f32.mrb[207].mxu1 }
 0x3e8   :  { %v18251_v45 = vsel %vm400_vm9, %v7798_v46, %v7827_v56  ;;  %v8147_v36 = vrot.slane %v8146_v9, 1  ;;  %v8195_v5 = vsel %vm392_vm5, %v8141_v20, %v8194_v37  ;;  %v8166_v26 = vrot.slane %v8165_v28, 2 }
 0x3e9   :  { %19381 = vst [vmem:[#allocation68_spill] sm:$0xff] %v18251_v45  ;;  %v8434_v11 = vrot.slane %v8433_v31, 1  ;;  %v8452_v35 = vadd.f32 %v8451_v48, %v8450_v34  ;;  %v8156_v55 = vsel %vm23_vm2, %v8056_v14, 0.0  ;;  %v8415_v21 = vmax.f32 %v19382_v18, 0.0 }
 0x3ea   :  { %v8148_v29 = vadd.f32 %v8147_v36, %v8146_v9  ;;  %v8167_v41 = vadd.f32 %v8166_v26, %v8165_v28  ;;  %v8157_v46 = vrot.slane %v8156_v55, 4  ;;  %v8418_v42 = vmax.f32 %v17965_v38, 0.0  ;;  %v18271_v26 = vpop.f32.mrb[208].mxu1 }
 0x3eb   :  { %v8435_v20 = vadd.f32 %v8434_v11, %v8433_v31  ;;  %v8453_v52 = vrot.slane %v8452_v35, 2  ;;  %v8443_v57 = vsel %vm23_vm2, %v8415_v21, 0.0  ;;  %v8785_v12 = vmax.f32 %v17967_v53, 0.0  ;;  %v18273_v11 = vpop.f32.mrb[208].mxu0 }
 0x3ec   :  { %v8196_v34 = vsel %vm394_vm6, %v8148_v29, %v8195_v5  ;;  %v8168_v61 = vrot.slane %v8167_v41, 1  ;;  %v8158_v48 = vadd.f32 %v8157_v46, %v8156_v55  ;;  %v8444_v56 = vrot.slane %v8443_v57, 4 }
 0x3ed   :  { %v8557_v37 = vsel %vm388_vm3, %v8442_v1, %v8435_v20  ;;  %v8454_v9 = vadd.f32 %v8453_v52, %v8452_v35  ;;  %v8197_v28 = vsel %vm396_vm7, %v8155_v19, %v8196_v34  ;;  %v8464_v38 = vsel %vm23_vm2, %v8418_v42, 0.0 }
 0x3ee   :  { %v8169_v50 = vadd.f32 %v8168_v61, %v8167_v41  ;;  %v8159_v14 = vrot.slane %v8158_v48, 2  ;;  %v8445_v31 = vadd.f32 %v8444_v56, %v8443_v57  ;;  %v8465_v36 = vrot.slane %v8464_v38, 4 }
 0x3ef   :  { %v8455_v53 = vrot.slane %v8454_v9, 1  ;;  %v8807_v5 = vsel %vm23_vm2, %v8785_v12, 0.0  ;;  %v8417_v55 = vmax.f32 %v17973_v43, 0.0  ;;  %v8784_v1 = vmax.f32 %v17979_v22, 0.0  ;;  %v18281_v12 = vpop.f32.mrb[209].mxu1 }
 0x3f0   :  { %v8160_v35 = vadd.f32 %v8159_v14, %v8158_v48  ;;  %v8446_v18 = vrot.slane %v8445_v31, 2  ;;  %v8466_v19 = vadd.f32 %v8465_v36, %v8464_v38  ;;  %v8808_v21 = vrot.slane %v8807_v5, 4 }
 0x3f1   :  { %v8456_v29 = vadd.f32 %v8455_v53, %v8454_v9  ;;  %v8457_v41 = vsel %vm23_vm2, %v8417_v55, 0.0  ;;  %v8800_v46 = vsel %vm23_vm2, %v8784_v1, 0.0  ;;  %v8420_v42 = vmax.f32 %v17985_v40, 0.0 }
 0x3f2   :  { %v8161_v20 = vrot.slane %v8160_v35, 1  ;;  %v8447_v52 = vadd.f32 %v8446_v18, %v8445_v31  ;;  %v8467_v57 = vrot.slane %v8466_v19, 2  ;;  %v8809_v34 = vadd.f32 %v8808_v21, %v8807_v5  ;;  %v18287_v21 = vpop.f32.mrb[209].mxu0 }
 0x3f3   :  { %v8458_v43 = vrot.slane %v8457_v41, 4  ;;  %v8801_v61 = vrot.slane %v8800_v46, 4  ;;  %v8478_v22 = vsel %vm23_vm2, %v8420_v42, 0.0  ;;  %v8787_v48 = vmax.f32 %v17987_v13, 0.0  ;;  %19383 = vst [vmem:[#allocation69_spill] sm:$0xff] %v18287_v21 }
 0x3f4   :  { %v8162_v56 = vadd.f32 %v8161_v20, %v8160_v35  ;;  %v8448_v9 = vrot.slane %v8447_v52, 1  ;;  %v8468_v38 = vadd.f32 %v8467_v57, %v8466_v19  ;;  %v8810_v14 = vrot.slane %v8809_v34, 2 }
 0x3f5   :  { %v8459_v36 = vadd.f32 %v8458_v43, %v8457_v41  ;;  %v8802_v53 = vadd.f32 %v8801_v61, %v8800_v46  ;;  %v8479_v55 = vrot.slane %v8478_v22, 4  ;;  %v8821_v40 = vsel %vm23_vm2, %v8787_v48, 0.0  ;;  %v18294_v48 = vpop.f32.mrb[210].mxu0 }
 0x3f6   :  { %v8198_v31 = vsel %vm398_vm8, %v8162_v56, %v8197_v28  ;;  %v8449_v5 = vadd.f32 %v8448_v9, %v8447_v52  ;;  %v8469_v1 = vrot.slane %v8468_v38, 1  ;;  %v8811_v18 = vadd.f32 %v8810_v14, %v8809_v34  ;;  %19385 = vst [vmem:[#allocation76_spill] sm:$0xff] %v18294_v48  ;;  %v18296_v34 = vpop.f32.mrb[210].mxu1  ;;  %v18300_v14 = vpop.f32.mrb[211].mxu0 }
 0x3f7   :  { %v18290_v42 = vsel %vm400_vm9, %v8169_v50, %v8198_v31  ;;  %v8460_v13 = vrot.slane %v8459_v36, 2  ;;  %v8803_v35 = vrot.slane %v8802_v53, 2  ;;  %v8480_v20 = vadd.f32 %v8479_v55, %v8478_v22  ;;  %19386 = vst [vmem:[#allocation77_spill] sm:$0xff] %v18296_v34  ;;  %19387 = vst [vmem:[#allocation78_spill] sm:$0xff] %v18300_v14 }
 0x3f8   :  { %19384 = vst [vmem:[#allocation75_spill] sm:$0xff] %v18290_v42  ;;  %v8558_v19 = vsel %vm390_vm4, %v8449_v5, %v8557_v37  ;;  %v8470_v41 = vadd.f32 %v8469_v1, %v8468_v38  ;;  %v8812_v46 = vrot.slane %v8811_v18, 1  ;;  %v8822_v57 = vrot.slane %v8821_v40, 4  ;;  %v19389_v1 = vld [vmem:[#allocation72_spill] sm:$0xff] }
 0x3f9   :  { %v8461_v43 = vadd.f32 %v8460_v13, %v8459_v36  ;;  %v8559_v61 = vsel %vm392_vm5, %v8456_v29, %v8558_v19  ;;  %v8804_v28 = vadd.f32 %v8803_v35, %v8802_v53  ;;  %v8481_v52 = vrot.slane %v8480_v20, 2  ;;  %v19388_v36 = vld [vmem:[#allocation71_spill] sm:$0xff] }
 0x3fa   :  { %v8813_v56 = vadd.f32 %v8812_v46, %v8811_v18  ;;  %v8823_v50 = vadd.f32 %v8822_v57, %v8821_v40  ;;  %v8419_v9 = vmax.f32 %v17994_v24, 0.0  ;;  %v8786_v22 = vmax.f32 %v17999_v23, 0.0  ;;  %v18306_v18 = vpop.f32.mrb[211].mxu1 }
 0x3fb   :  { %v8462_v37 = vrot.slane %v8461_v43, 1  ;;  %v8805_v38 = vrot.slane %v8804_v28, 1  ;;  %v8482_v55 = vadd.f32 %v8481_v52, %v8480_v20  ;;  %v8422_v31 = vmax.f32 %v19388_v36, 0.0  ;;  %19390 = vst [vmem:[#allocation71_spill] sm:$0xff] %v18306_v18 }
 0x3fc   :  { %v8824_v29 = vrot.slane %v8823_v50, 2  ;;  %v8471_v53 = vsel %vm23_vm2, %v8419_v9, 0.0  ;;  %v8814_v5 = vsel %vm23_vm2, %v8786_v22, 0.0  ;;  %v8789_v13 = vmax.f32 %v19389_v1, 0.0 }
 0x3fd   :  { %v8463_v40 = vadd.f32 %v8462_v37, %v8461_v43  ;;  %v8806_v24 = vadd.f32 %v8805_v38, %v8804_v28  ;;  %v8483_v35 = vrot.slane %v8482_v55, 1  ;;  %v8472_v23 = vrot.slane %v8471_v53, 4  ;;  %v18313_v28 = vpop.f32.mrb[212].mxu0  ;;  %v18315_v37 = vpop.f32.mrb[212].mxu1 }
 0x3fe   :  { %v8825_v19 = vadd.f32 %v8824_v29, %v8823_v50  ;;  %v8815_v46 = vrot.slane %v8814_v5, 4  ;;  %v8492_v57 = vsel %vm23_vm2, %v8422_v31, 0.0  ;;  %v8835_v20 = vsel %vm23_vm2, %v8789_v13, 0.0  ;;  %19391 = vst [vmem:[#allocation72_spill] sm:$0xff] %v18313_v28  ;;  %19392 = vst [vmem:[#allocation79_spill] sm:$0xff] %v18315_v37  ;;  %v19393_v31 = vld [vmem:[#allocation73_spill] sm:$0xff] }
 0x3ff   :  { %v8560_v52 = vsel %vm394_vm6, %v8463_v40, %v8559_v61  ;;  %v8928_v9 = vsel %vm388_vm3, %v8813_v56, %v8806_v24  ;;  %v8484_v36 = vadd.f32 %v8483_v35, %v8482_v55  ;;  %v8473_v22 = vadd.f32 %v8472_v23, %v8471_v53  ;;  %v19394_v13 = vld [vmem:[#allocation61_spill] sm:$0xff]  ;;  %v19395_v55 = vld [vmem:[#allocation62_spill] sm:$0xff]  ;;  %v18322_v23 = vpop.f32.mrb[213].mxu0 }
 0x400   :  { %v8826_v42 = vrot.slane %v8825_v19, 1  ;;  %v8561_v1 = vsel %vm396_vm7, %v8470_v41, %v8560_v52  ;;  %v8816_v45 = vadd.f32 %v8815_v46, %v8814_v5  ;;  %v8493_v43 = vrot.slane %v8492_v57, 4  ;;  %19396 = vst [vmem:[#allocation73_spill] sm:$0xff] %v18322_v23 }
 0x401   :  { %v8474_v50 = vrot.slane %v8473_v22, 2  ;;  %v8836_v38 = vrot.slane %v8835_v20, 4  ;;  %v8421_v29 = vmax.f32 %v19393_v31, 0.0  ;;  %v8788_v18 = vmax.f32 %v19394_v13, 0.0 }
 0x402   :  { %v8827_v61 = vadd.f32 %v8826_v42, %v8825_v19  ;;  %v8817_v40 = vrot.slane %v8816_v45, 2  ;;  %v8494_v56 = vadd.f32 %v8493_v43, %v8492_v57  ;;  %v8424_v53 = vmax.f32 %v19395_v55, 0.0  ;;  %v19397_v19 = vld [vmem:[#allocation33_spill] sm:$0xff]  ;;  %v18327_v55 = vpop.f32.mrb[213].mxu1 }
 0x403   :  { %v8475_v24 = vadd.f32 %v8474_v50, %v8473_v22  ;;  %v8837_v35 = vadd.f32 %v8836_v38, %v8835_v20  ;;  %v8485_v41 = vsel %vm23_vm2, %v8421_v29, 0.0  ;;  %v8828_v5 = vsel %vm23_vm2, %v8788_v18, 0.0 }
 0x404   :  { %v8818_v46 = vadd.f32 %v8817_v40, %v8816_v45  ;;  %v8495_v52 = vrot.slane %v8494_v56, 2  ;;  %v8486_v37 = vrot.slane %v8485_v41, 4  ;;  %v8829_v28 = vrot.slane %v8828_v5, 4 }
 0x405   :  { %v8476_v31 = vrot.slane %v8475_v24, 1  ;;  %v8838_v14 = vrot.slane %v8837_v35, 2  ;;  %v8506_v42 = vsel %vm23_vm2, %v8424_v53, 0.0  ;;  %v8791_v57 = vmax.f32 %v19397_v19, 0.0 }
 0x406   :  { %v8819_v43 = vrot.slane %v8818_v46, 1  ;;  %v8496_v13 = vadd.f32 %v8495_v52, %v8494_v56  ;;  %v8487_v22 = vadd.f32 %v8486_v37, %v8485_v41  ;;  %v8830_v20 = vadd.f32 %v8829_v28, %v8828_v5  ;;  %v18337_v52 = vpop.f32.mrb[214].mxu1 }
 0x407   :  { %v8477_v50 = vadd.f32 %v8476_v31, %v8475_v24  ;;  %v8839_v38 = vadd.f32 %v8838_v14, %v8837_v35  ;;  %v8507_v29 = vrot.slane %v8506_v42, 4  ;;  %v8849_v18 = vsel %vm23_vm2, %v8791_v57, 0.0 }
 0x408   :  { %v8820_v45 = vadd.f32 %v8819_v43, %v8818_v46  ;;  %v8497_v40 = vrot.slane %v8496_v13, 1  ;;  %v8488_v23 = vrot.slane %v8487_v22, 2  ;;  %v8831_v34 = vrot.slane %v8830_v20, 2  ;;  %v18335_v46 = vpop.f32.mrb[214].mxu0  ;;  %v19400_v43 = vld [vmem:[#allocation40_spill] sm:$0xff] }
 0x409   :  { %v8562_v48 = vsel %vm398_vm8, %v8477_v50, %v8561_v1  ;;  %v8840_v53 = vrot.slane %v8839_v38, 1  ;;  %v8508_v21 = vadd.f32 %v8507_v29, %v8506_v42  ;;  %v8850_v19 = vrot.slane %v8849_v18, 4  ;;  %v19399_v42 = vld [vmem:[#allocation35_spill] sm:$0xff] }
 0x40a   :  { %v18331_v56 = vsel %vm400_vm9, %v8484_v36, %v8562_v48  ;;  %v8929_v28 = vsel %vm390_vm4, %v8820_v45, %v8928_v9  ;;  %v8498_v14 = vadd.f32 %v8497_v40, %v8496_v13  ;;  %v8489_v37 = vadd.f32 %v8488_v23, %v8487_v22  ;;  %v18341_v36 = vpop.f32.mrb[215].mxu0 }
 0x40b   :  { %19398 = vst [vmem:[#allocation61_spill] sm:$0xff] %v18331_v56  ;;  %v8841_v24 = vadd.f32 %v8840_v53, %v8839_v38  ;;  %v8832_v35 = vadd.f32 %v8831_v34, %v8830_v20  ;;  %v8930_v41 = vsel %vm392_vm5, %v8827_v61, %v8929_v28  ;;  %v8509_v5 = vrot.slane %v8508_v21, 2  ;;  %19401 = vst [vmem:[#allocation62_spill] sm:$0xff] %v18341_v36  ;;  %v18347_v38 = vpop.f32.mrb[215].mxu1 }
 0x40c   :  { %v8490_v1 = vrot.slane %v8489_v37, 1  ;;  %v8851_v31 = vadd.f32 %v8850_v19, %v8849_v18  ;;  %v8423_v57 = vmax.f32 %v19399_v42, 0.0  ;;  %v8790_v48 = vmax.f32 %v19400_v43, 0.0  ;;  %19402 = vst [vmem:[#allocation33_spill] sm:$0xff] %v18347_v38  ;;  %v18354_v43 = vpop.f32.mrb[216].mxu0 }
 0x40d   :  { %v8833_v9 = vrot.slane %v8832_v35, 1  ;;  %v8510_v13 = vadd.f32 %v8509_v5, %v8508_v21  ;;  %v8426_v23 = vmax.f32 %v18043_v49, 0.0  ;;  %v8793_v34 = vmax.f32 %v18045_v8, 0.0  ;;  %19403 = vst [vmem:[#allocation35_spill] sm:$0xff] %v18354_v43 }
 0x40e   :  { %v8491_v61 = vadd.f32 %v8490_v1, %v8489_v37  ;;  %v8852_v22 = vrot.slane %v8851_v31, 2  ;;  %v8499_v20 = vsel %vm23_vm2, %v8423_v57, 0.0  ;;  %v8842_v50 = vsel %vm23_vm2, %v8790_v48, 0.0  ;;  %v18356_v48 = vpop.f32.mrb[216].mxu1 }
 0x40f   :  { %v8834_v29 = vadd.f32 %v8833_v9, %v8832_v35  ;;  %v8511_v18 = vrot.slane %v8510_v13, 1  ;;  %v8500_v45 = vrot.slane %v8499_v20, 4  ;;  %v8843_v40 = vrot.slane %v8842_v50, 4  ;;  %19404 = vst [vmem:[#allocation40_spill] sm:$0xff] %v18356_v48  ;;  %v18363_v48 = vpop.f32.mrb[217].mxu0 }
 0x410   :  { %v8564_v53 = vsel %vm388_vm3, %v8498_v14, %v8491_v61  ;;  %v8853_v19 = vadd.f32 %v8852_v22, %v8851_v31  ;;  %v8520_v21 = vsel %vm23_vm2, %v8426_v23, 0.0  ;;  %v8863_v49 = vsel %vm23_vm2, %v8793_v34, 0.0  ;;  %v19405_v23 = vld [vmem:[#allocation64_spill] sm:$0xff]  ;;  %v19406_v22 = vld [vmem:[#allocation65_spill] sm:$0xff] }
 0x411   :  { %v8931_v8 = vsel %vm394_vm6, %v8834_v29, %v8930_v41  ;;  %v8512_v28 = vadd.f32 %v8511_v18, %v8510_v13  ;;  %v8501_v37 = vadd.f32 %v8500_v45, %v8499_v20  ;;  %v8844_v5 = vadd.f32 %v8843_v40, %v8842_v50  ;;  %19407 = vst [vmem:[#allocation64_spill] sm:$0xff] %v18363_v48 }
 0x412   :  { %v8854_v1 = vrot.slane %v8853_v19, 1  ;;  %v8932_v42 = vsel %vm396_vm7, %v8841_v24, %v8931_v8  ;;  %v8521_v57 = vrot.slane %v8520_v21, 4  ;;  %v8864_v35 = vrot.slane %v8863_v49, 4 }
 0x413   :  { %v8502_v14 = vrot.slane %v8501_v37, 2  ;;  %v8845_v31 = vrot.slane %v8844_v5, 2  ;;  %v8425_v9 = vmax.f32 %v18049_v27, 0.0  ;;  %v8792_v34 = vmax.f32 %v19405_v23, 0.0  ;;  %v18368_v23 = vpop.f32.mrb[217].mxu1 }
 0x414   :  { %v8855_v61 = vadd.f32 %v8854_v1, %v8853_v19  ;;  %v8522_v41 = vadd.f32 %v8521_v57, %v8520_v21  ;;  %v8865_v13 = vadd.f32 %v8864_v35, %v8863_v49  ;;  %v8428_v20 = vmax.f32 %v19406_v22, 0.0  ;;  %v19408_v21 = vld [vmem:[#allocation46_spill] sm:$0xff]  ;;  %19409 = vst [vmem:[#allocation65_spill] sm:$0xff] %v18368_v23 }
 0x415   :  { %v8503_v50 = vadd.f32 %v8502_v14, %v8501_v37  ;;  %v8846_v29 = vadd.f32 %v8845_v31, %v8844_v5  ;;  %v8513_v24 = vsel %vm23_vm2, %v8425_v9, 0.0  ;;  %v8856_v18 = vsel %vm23_vm2, %v8792_v34, 0.0 }
 0x416   :  { %v8523_v45 = vrot.slane %v8522_v41, 2  ;;  %v8866_v40 = vrot.slane %v8865_v13, 2  ;;  %v8514_v8 = vrot.slane %v8513_v24, 4  ;;  %v8857_v56 = vrot.slane %v8856_v18, 4 }
 0x417   :  { %v8504_v27 = vrot.slane %v8503_v50, 1  ;;  %v8847_v43 = vrot.slane %v8846_v29, 1  ;;  %v8534_v19 = vsel %vm23_vm2, %v8428_v20, 0.0  ;;  %v8795_v49 = vmax.f32 %v19408_v21, 0.0 }
 0x418   :  { %v8524_v1 = vadd.f32 %v8523_v45, %v8522_v41  ;;  %v8867_v57 = vadd.f32 %v8866_v40, %v8865_v13  ;;  %v8515_v37 = vadd.f32 %v8514_v8, %v8513_v24  ;;  %v8858_v5 = vadd.f32 %v8857_v56, %v8856_v18  ;;  %v18377_v24 = vpop.f32.mrb[218].mxu1 }
 0x419   :  { %v8505_v35 = vadd.f32 %v8504_v27, %v8503_v50  ;;  %v8848_v14 = vadd.f32 %v8847_v43, %v8846_v29  ;;  %v8535_v31 = vrot.slane %v8534_v19, 4  ;;  %v8877_v9 = vsel %vm23_vm2, %v8795_v49, 0.0  ;;  %v18375_v29 = vpop.f32.mrb[218].mxu0  ;;  %19412 = vst [vmem:[#allocation81_spill] sm:$0xff] %v18377_v24  ;;  %v19414_v27 = vld [vmem:[#allocation47_spill] sm:$0xff]  ;;  %v19415_v49 = vld [vmem:[#allocation56_spill] sm:$0xff] }
 0x41a   :  { %v8525_v34 = vrot.slane %v8524_v1, 1  ;;  %v8868_v22 = vrot.slane %v8867_v57, 1  ;;  %v8516_v48 = vrot.slane %v8515_v37, 2  ;;  %v8859_v38 = vrot.slane %v8858_v5, 2  ;;  %19411 = vst [vmem:[#allocation80_spill] sm:$0xff] %v18375_v29 }
 0x41b   :  { %v8565_v36 = vsel %vm390_vm4, %v8505_v35, %v8564_v53  ;;  %v8933_v20 = vsel %vm398_vm8, %v8848_v14, %v8932_v42  ;;  %v8536_v21 = vadd.f32 %v8535_v31, %v8534_v19  ;;  %v8878_v41 = vrot.slane %v8877_v9, 4  ;;  %v18380_v53 = vpop.f32.mrb[219].mxu0  ;;  %v19416_v35 = vld [vmem:[#allocation15_spill] sm:$0xff]  ;;  %v19417_v14 = vld [vmem:[#allocation74_spill] sm:$0xff] }
 0x41c   :  { %v18373_v13 = vsel %vm400_vm9, %v8855_v61, %v8933_v20  ;;  %v8526_v56 = vadd.f32 %v8525_v34, %v8524_v1  ;;  %v8869_v43 = vadd.f32 %v8868_v22, %v8867_v57  ;;  %v8517_v50 = vadd.f32 %v8516_v48, %v8515_v37  ;;  %19413 = vst [vmem:[#allocation82_spill] sm:$0xff] %v18380_v53  ;;  %v18386_v34 = vpop.f32.mrb[219].mxu1 }
 0x41d   :  { %19410 = vst [vmem:[#allocation46_spill] sm:$0xff] %v18373_v13  ;;  %v8566_v18 = vsel %vm392_vm5, %v8512_v28, %v8565_v36  ;;  %v8860_v45 = vadd.f32 %v8859_v38, %v8858_v5  ;;  %v8537_v40 = vrot.slane %v8536_v21, 2  ;;  %v8879_v8 = vadd.f32 %v8878_v41, %v8877_v9  ;;  %19418 = vst [vmem:[#allocation47_spill] sm:$0xff] %v18386_v34  ;;  %v19422_v34 = vld [vmem:[#allocation17_spill] sm:$0xff] }
 0x41e   :  { %v8518_v42 = vrot.slane %v8517_v50, 1  ;;  %v8427_v19 = vmax.f32 %v19414_v27, 0.0  ;;  %v8794_v61 = vmax.f32 %v19415_v49, 0.0  ;;  %v8797_v1 = vmax.f32 %v19416_v35, 0.0 }
 0x41f   :  { %v8861_v57 = vrot.slane %v8860_v45, 1  ;;  %v8538_v48 = vadd.f32 %v8537_v40, %v8536_v21  ;;  %v8880_v37 = vrot.slane %v8879_v8, 2  ;;  %v9156_v31 = vmax.f32 %v19417_v14, 0.0 }
 0x420   :  { %v8519_v36 = vadd.f32 %v8518_v42, %v8517_v50  ;;  %v8527_v38 = vsel %vm23_vm2, %v8427_v19, 0.0  ;;  %v8870_v28 = vsel %vm23_vm2, %v8794_v61, 0.0  ;;  %v8891_v5 = vsel %vm23_vm2, %v8797_v1, 0.0 }
 0x421   :  { %v8862_v9 = vadd.f32 %v8861_v57, %v8860_v45  ;;  %v8539_v22 = vrot.slane %v8538_v48, 1  ;;  %v8881_v20 = vadd.f32 %v8880_v37, %v8879_v8  ;;  %v8528_v41 = vrot.slane %v8527_v38, 4  ;;  %v18395_v45 = vpop.f32.mrb[220].mxu0  ;;  %v18397_v8 = vpop.f32.mrb[220].mxu1  ;;  %v19421_v37 = vld [vmem:[#allocation48_spill] sm:$0xff] }
 0x422   :  { %v8567_v27 = vsel %vm394_vm6, %v8519_v36, %v8566_v18  ;;  %v8871_v49 = vrot.slane %v8870_v28, 4  ;;  %v8892_v21 = vrot.slane %v8891_v5, 4  ;;  %v9178_v40 = vsel %vm23_vm2, %v9156_v31, 0.0  ;;  %19419 = vst [vmem:[#allocation56_spill] sm:$0xff] %v18395_v45  ;;  %19420 = vst [vmem:[#allocation15_spill] sm:$0xff] %v18397_v8  ;;  %v18409_v24 = vpop.f32.mrb[221].mxu1 }
 0x423   :  { %v8935_v35 = vsel %vm388_vm3, %v8869_v43, %v8862_v9  ;;  %v8540_v14 = vadd.f32 %v8539_v22, %v8538_v48  ;;  %v8882_v50 = vrot.slane %v8881_v20, 1  ;;  %v8529_v42 = vadd.f32 %v8528_v41, %v8527_v38  ;;  %v19423_v9 = vld [vmem:[#allocation20_spill] sm:$0xff] }
 0x424   :  { %v8568_v19 = vsel %vm396_vm7, %v8526_v56, %v8567_v27  ;;  %v8872_v61 = vadd.f32 %v8871_v49, %v8870_v28  ;;  %v8893_v13 = vadd.f32 %v8892_v21, %v8891_v5  ;;  %v9179_v1 = vrot.slane %v9178_v40, 4  ;;  %v19424_v5 = vld [vmem:[#allocation57_spill] sm:$0xff] }
 0x425   :  { %v8883_v57 = vadd.f32 %v8882_v50, %v8881_v20  ;;  %v8530_v18 = vrot.slane %v8529_v42, 2  ;;  %v8796_v36 = vmax.f32 %v19421_v37, 0.0  ;;  %v9155_v31 = vmax.f32 %v19422_v34, 0.0  ;;  %v18405_v50 = vpop.f32.mrb[221].mxu0 }
 0x426   :  { %v8873_v53 = vrot.slane %v8872_v61, 2  ;;  %v8894_v43 = vrot.slane %v8893_v13, 2  ;;  %v9180_v48 = vadd.f32 %v9179_v1, %v9178_v40  ;;  %v8799_v38 = vmax.f32 %v19423_v9, 0.0  ;;  %19425 = vst [vmem:[#allocation74_spill] sm:$0xff] %v18405_v50 }
 0x427   :  { %v8531_v22 = vadd.f32 %v8530_v18, %v8529_v42  ;;  %v8884_v56 = vsel %vm23_vm2, %v8796_v36, 0.0  ;;  %v9171_v28 = vsel %vm23_vm2, %v9155_v31, 0.0  ;;  %v9158_v41 = vmax.f32 %v19424_v5, 0.0 }
 0x428   :  { %v8874_v27 = vadd.f32 %v8873_v53, %v8872_v61  ;;  %v8895_v49 = vadd.f32 %v8894_v43, %v8893_v13  ;;  %v9181_v20 = vrot.slane %v9180_v48, 2  ;;  %v8885_v21 = vrot.slane %v8884_v56, 4 }
 0x429   :  { %v8532_v37 = vrot.slane %v8531_v22, 1  ;;  %v9172_v34 = vrot.slane %v9171_v28, 4  ;;  %v8905_v8 = vsel %vm23_vm2, %v8799_v38, 0.0  ;;  %v9192_v40 = vsel %vm23_vm2, %v9158_v41, 0.0 }
 0x42a   :  { %v8875_v1 = vrot.slane %v8874_v27, 1  ;;  %v8896_v42 = vrot.slane %v8895_v49, 1  ;;  %v9182_v18 = vadd.f32 %v9181_v20, %v9180_v48  ;;  %v8886_v36 = vadd.f32 %v8885_v21, %v8884_v56  ;;  %v18417_v21 = vpop.f32.mrb[222].mxu1 }
 0x42b   :  { %v8533_v9 = vadd.f32 %v8532_v37, %v8531_v22  ;;  %v9173_v31 = vadd.f32 %v9172_v34, %v9171_v28  ;;  %v8906_v45 = vrot.slane %v8905_v8, 4  ;;  %v9193_v5 = vrot.slane %v9192_v40, 4  ;;  %v18419_v37 = vpop.f32.mrb[222].mxu0  ;;  %v19427_v34 = vld [vmem:[#allocation22_spill] sm:$0xff] }
 0x42c   :  { %v8876_v53 = vadd.f32 %v8875_v1, %v8874_v27  ;;  %v8897_v13 = vadd.f32 %v8896_v42, %v8895_v49  ;;  %v9183_v61 = vrot.slane %v9182_v18, 1  ;;  %v8887_v43 = vrot.slane %v8886_v36, 2 }
 0x42d   :  { %v8569_v50 = vsel %vm398_vm8, %v8533_v9, %v8568_v19  ;;  %v9174_v29 = vrot.slane %v9173_v31, 2  ;;  %v8907_v38 = vadd.f32 %v8906_v45, %v8905_v8  ;;  %v9194_v23 = vadd.f32 %v9193_v5, %v9192_v40 }
 0x42e   :  { %v18413_v41 = vsel %vm400_vm9, %v8540_v14, %v8569_v50  ;;  %v8936_v48 = vsel %vm390_vm4, %v8876_v53, %v8935_v35  ;;  %v9184_v22 = vadd.f32 %v9183_v61, %v9182_v18  ;;  %v8888_v56 = vadd.f32 %v8887_v43, %v8886_v36  ;;  %v18424_v50 = vpop.f32.mrb[223].mxu1 }
 0x42f   :  { %19426 = vst [vmem:[#allocation48_spill] sm:$0xff] %v18413_v41  ;;  %v8937_v28 = vsel %vm392_vm5, %v8883_v57, %v8936_v48  ;;  %v9175_v27 = vadd.f32 %v9174_v29, %v9173_v31  ;;  %v8908_v49 = vrot.slane %v8907_v38, 2  ;;  %v9195_v20 = vrot.slane %v9194_v23, 2  ;;  %v18427_v57 = vpop.f32.mrb[223].mxu0 }
 0x430   :  { %v8889_v19 = vrot.slane %v8888_v56, 1  ;;  %v8798_v45 = vmax.f32 %v19427_v34, 0.0  ;;  %v9157_v8 = vmax.f32 %v18122_v7, 0.0  ;;  %v9160_v14 = vmax.f32 %v18131_v59, 0.0 }
 0x431   :  { %v9176_v35 = vrot.slane %v9175_v27, 1  ;;  %v8909_v40 = vadd.f32 %v8908_v49, %v8907_v38  ;;  %v9196_v1 = vadd.f32 %v9195_v20, %v9194_v23  ;;  %v9527_v29 = vmax.f32 %v18133_v60, 0.0  ;;  %v18435_v49 = vpop.f32.mrb[224].mxu1  ;;  %v18437_v20 = vpop.f32.mrb[224].mxu0 }
 0x432   :  { %v8890_v42 = vadd.f32 %v8889_v19, %v8888_v56  ;;  %v8898_v18 = vsel %vm23_vm2, %v8798_v45, 0.0  ;;  %v9185_v36 = vsel %vm23_vm2, %v9157_v8, 0.0  ;;  %v9206_v9 = vsel %vm23_vm2, %v9160_v14, 0.0  ;;  %19428 = vst [vmem:[#allocation17_spill] sm:$0xff] %v18435_v49  ;;  %19429 = vst [vmem:[#allocation20_spill] sm:$0xff] %v18437_v20 }
 0x433   :  { %v9177_v31 = vadd.f32 %v9176_v35, %v9175_v27  ;;  %v8910_v7 = vrot.slane %v8909_v40, 1  ;;  %v9197_v5 = vrot.slane %v9196_v1, 1  ;;  %v8899_v59 = vrot.slane %v8898_v18, 4 }
 0x434   :  { %v8938_v53 = vsel %vm394_vm6, %v8890_v42, %v8937_v28  ;;  %v9186_v61 = vrot.slane %v9185_v36, 4  ;;  %v9207_v43 = vrot.slane %v9206_v9, 4  ;;  %v9549_v23 = vsel %vm23_vm2, %v9527_v29, 0.0  ;;  %v19430_v29 = vld [vmem:[#allocation66_spill] sm:$0xff] }
 0x435   :  { %v9299_v60 = vsel %vm388_vm3, %v9184_v22, %v9177_v31  ;;  %v8911_v38 = vadd.f32 %v8910_v7, %v8909_v40  ;;  %v9198_v48 = vadd.f32 %v9197_v5, %v9196_v1  ;;  %v8900_v56 = vadd.f32 %v8899_v59, %v8898_v18 }
 0x436   :  { %v8939_v27 = vsel %vm396_vm7, %v8897_v13, %v8938_v53  ;;  %v9187_v19 = vadd.f32 %v9186_v61, %v9185_v36  ;;  %v9208_v34 = vadd.f32 %v9207_v43, %v9206_v9  ;;  %v9550_v45 = vrot.slane %v9549_v23, 4  ;;  %v18447_v9 = vpop.f32.mrb[225].mxu1  ;;  %v18450_v43 = vpop.f32.mrb[225].mxu0 }
 0x437   :  { %v8901_v8 = vrot.slane %v8900_v56, 2  ;;  %v9159_v28 = vmax.f32 %v18138_v54, 0.0  ;;  %v9526_v14 = vmax.f32 %v18143_v3, 0.0  ;;  %v9162_v35 = vmax.f32 %v18150_v4, 0.0  ;;  %19431 = vst [vmem:[#allocation57_spill] sm:$0xff] %v18447_v9  ;;  %19432 = vst [vmem:[#allocation22_spill] sm:$0xff] %v18450_v43 }
 0x438   :  { %v9188_v22 = vrot.slane %v9187_v19, 2  ;;  %v9209_v40 = vrot.slane %v9208_v34, 2  ;;  %v9551_v1 = vadd.f32 %v9550_v45, %v9549_v23  ;;  %v9529_v42 = vmax.f32 %v19430_v29, 0.0 }
 0x439   :  { %v8902_v18 = vadd.f32 %v8901_v8, %v8900_v56  ;;  %v9199_v31 = vsel %vm23_vm2, %v9159_v28, 0.0  ;;  %v9542_v13 = vsel %vm23_vm2, %v9526_v14, 0.0  ;;  %v9220_v36 = vsel %vm23_vm2, %v9162_v35, 0.0 }
 0x43a   :  { %v9189_v7 = vadd.f32 %v9188_v22, %v9187_v19  ;;  %v9210_v54 = vadd.f32 %v9209_v40, %v9208_v34  ;;  %v9552_v5 = vrot.slane %v9551_v1, 2  ;;  %v9200_v3 = vrot.slane %v9199_v31, 4 }
 0x43b   :  { %v8903_v59 = vrot.slane %v8902_v18, 1  ;;  %v9543_v4 = vrot.slane %v9542_v13, 4  ;;  %v9221_v53 = vrot.slane %v9220_v36, 4  ;;  %v9563_v61 = vsel %vm23_vm2, %v9529_v42, 0.0 }
 0x43c   :  { %v9190_v23 = vrot.slane %v9189_v7, 1  ;;  %v9211_v56 = vrot.slane %v9210_v54, 1  ;;  %v9553_v45 = vadd.f32 %v9552_v5, %v9551_v1  ;;  %v9201_v8 = vadd.f32 %v9200_v3, %v9199_v31  ;;  %v19434_v3 = vld [vmem:[#allocation67_spill] sm:$0xff] }
 0x43d   :  { %v8904_v28 = vadd.f32 %v8903_v59, %v8902_v18  ;;  %v9544_v14 = vadd.f32 %v9543_v4, %v9542_v13  ;;  %v9222_v35 = vadd.f32 %v9221_v53, %v9220_v36  ;;  %v9564_v29 = vrot.slane %v9563_v61, 4  ;;  %v18457_v18 = vpop.f32.mrb[226].mxu0  ;;  %v18459_v13 = vpop.f32.mrb[226].mxu1 }
 0x43e   :  { %v9191_v41 = vadd.f32 %v9190_v23, %v9189_v7  ;;  %v9212_v19 = vadd.f32 %v9211_v56, %v9210_v54  ;;  %v9554_v34 = vrot.slane %v9553_v45, 1  ;;  %v9202_v22 = vrot.slane %v9201_v8, 2  ;;  %v18465_v53 = vpop.f32.mrb[227].mxu0 }
 0x43f   :  { %v8940_v40 = vsel %vm398_vm8, %v8904_v28, %v8939_v27  ;;  %v9545_v9 = vrot.slane %v9544_v14, 2  ;;  %v9223_v20 = vrot.slane %v9222_v35, 2  ;;  %v9565_v49 = vadd.f32 %v9564_v29, %v9563_v61 }
 0x440   :  { %v18454_v42 = vsel %vm400_vm9, %v8911_v38, %v8940_v40  ;;  %v9300_v43 = vsel %vm390_vm4, %v9191_v41, %v9299_v60  ;;  %v9555_v1 = vadd.f32 %v9554_v34, %v9553_v45  ;;  %v9203_v31 = vadd.f32 %v9202_v22, %v9201_v8  ;;  %v18477_v40 = vpop.f32.mrb[228].mxu0 }
 0x441   :  { %19433 = vst [vmem:[#allocation66_spill] sm:$0xff] %v18454_v42  ;;  %v9301_v36 = vsel %vm392_vm5, %v9198_v48, %v9300_v43  ;;  %v9546_v7 = vadd.f32 %v9545_v9, %v9544_v14  ;;  %v9224_v54 = vadd.f32 %v9223_v20, %v9222_v35  ;;  %v9566_v5 = vrot.slane %v9565_v49, 2  ;;  %v18471_v43 = vpop.f32.mrb[227].mxu1 }
 0x442   :  { %v9204_v27 = vrot.slane %v9203_v31, 1  ;;  %v9161_v59 = vmax.f32 %v19434_v3, 0.0  ;;  %v9528_v4 = vmax.f32 %v18163_v6, 0.0  ;;  %v9164_v38 = vmax.f32 %v18173_v32, 0.0 }
 0x443   :  { %v9547_v41 = vrot.slane %v9546_v7, 1  ;;  %v9225_v60 = vrot.slane %v9224_v54, 1  ;;  %v9567_v61 = vadd.f32 %v9566_v5, %v9565_v49  ;;  %v9531_v23 = vmax.f32 %v18175_v0, 0.0 }
 0x444   :  { %v9205_v56 = vadd.f32 %v9204_v27, %v9203_v31  ;;  %v9213_v48 = vsel %vm23_vm2, %v9161_v59, 0.0  ;;  %v9556_v20 = vsel %vm23_vm2, %v9528_v4, 0.0  ;;  %v9234_v9 = vsel %vm23_vm2, %v9164_v38, 0.0  ;;  %v18479_v31 = vpop.f32.mrb[228].mxu1 }
 0x445   :  { %v9548_v45 = vadd.f32 %v9547_v41, %v9546_v7  ;;  %v9226_v6 = vadd.f32 %v9225_v60, %v9224_v54  ;;  %v9568_v8 = vrot.slane %v9567_v61, 1  ;;  %v9214_v32 = vrot.slane %v9213_v48, 4  ;;  %v18486_v60 = vpop.f32.mrb[229].mxu0 }
 0x446   :  { %v9302_v28 = vsel %vm394_vm6, %v9205_v56, %v9301_v36  ;;  %v9557_v14 = vrot.slane %v9556_v20, 4  ;;  %v9235_v35 = vrot.slane %v9234_v9, 4  ;;  %v9577_v49 = vsel %vm23_vm2, %v9531_v23, 0.0 }
 0x447   :  { %v9670_v0 = vsel %vm388_vm3, %v9555_v1, %v9548_v45  ;;  %v9569_v29 = vadd.f32 %v9568_v8, %v9567_v61  ;;  %v9215_v34 = vadd.f32 %v9214_v32, %v9213_v48  ;;  %v9303_v22 = vsel %vm396_vm7, %v9212_v19, %v9302_v28 }
 0x448   :  { %v9558_v7 = vadd.f32 %v9557_v14, %v9556_v20  ;;  %v9236_v54 = vadd.f32 %v9235_v35, %v9234_v9  ;;  %v9578_v5 = vrot.slane %v9577_v49, 4  ;;  %v9163_v27 = vmax.f32 %v18179_v58, 0.0 }
 0x449   :  { %v9216_v36 = vrot.slane %v9215_v34, 2  ;;  %v9530_v3 = vmax.f32 %v18183_v33, 0.0  ;;  %v9166_v59 = vmax.f32 %v18191_v2, 0.0  ;;  %v9533_v1 = vmax.f32 %v18193_v16, 0.0 }
 0x44a   :  { %v9559_v4 = vrot.slane %v9558_v7, 2  ;;  %v9237_v38 = vrot.slane %v9236_v54, 2  ;;  %v9579_v41 = vadd.f32 %v9578_v5, %v9577_v49  ;;  %v9227_v19 = vsel %vm23_vm2, %v9163_v27, 0.0  ;;  %v18491_v49 = vpop.f32.mrb[229].mxu1 }
 0x44b   :  { %v9217_v61 = vadd.f32 %v9216_v36, %v9215_v34  ;;  %v9228_v23 = vrot.slane %v9227_v19, 4  ;;  %v9570_v56 = vsel %vm23_vm2, %v9530_v3, 0.0  ;;  %v9248_v58 = vsel %vm23_vm2, %v9166_v59, 0.0 }
 0x44c   :  { %v9560_v48 = vadd.f32 %v9559_v4, %v9558_v7  ;;  %v9238_v20 = vadd.f32 %v9237_v38, %v9236_v54  ;;  %v9580_v33 = vrot.slane %v9579_v41, 2  ;;  %v9571_v9 = vrot.slane %v9570_v56, 4 }
 0x44d   :  { %v9218_v2 = vrot.slane %v9217_v61, 1  ;;  %v9229_v45 = vadd.f32 %v9228_v23, %v9227_v19  ;;  %v9249_v16 = vrot.slane %v9248_v58, 4  ;;  %v9591_v8 = vsel %vm23_vm2, %v9533_v1, 0.0 }
 0x44e   :  { %v9561_v32 = vrot.slane %v9560_v48, 1  ;;  %v9239_v28 = vrot.slane %v9238_v20, 1  ;;  %v9581_v14 = vadd.f32 %v9580_v33, %v9579_v41  ;;  %v9572_v35 = vadd.f32 %v9571_v9, %v9570_v56 }
 0x44f   :  { %v9219_v34 = vadd.f32 %v9218_v2, %v9217_v61  ;;  %v9230_v5 = vrot.slane %v9229_v45, 2  ;;  %v9250_v27 = vadd.f32 %v9249_v16, %v9248_v58  ;;  %v9592_v36 = vrot.slane %v9591_v8, 4  ;;  %v18498_v61 = vpop.f32.mrb[230].mxu0  ;;  %v18500_v58 = vpop.f32.mrb[230].mxu1  ;;  %v19436_v16 = vld [vmem:[#allocation50_spill] sm:$0xff] }
 0x450   :  { %v9562_v3 = vadd.f32 %v9561_v32, %v9560_v48  ;;  %v9240_v7 = vadd.f32 %v9239_v28, %v9238_v20  ;;  %v9582_v54 = vrot.slane %v9581_v14, 1  ;;  %v9573_v59 = vrot.slane %v9572_v35, 2 }
 0x451   :  { %v9304_v4 = vsel %vm398_vm8, %v9219_v34, %v9303_v22  ;;  %v9231_v38 = vadd.f32 %v9230_v5, %v9229_v45  ;;  %v9251_v19 = vrot.slane %v9250_v27, 2  ;;  %v9593_v23 = vadd.f32 %v9592_v36, %v9591_v8  ;;  %v18503_v22 = vpop.f32.mrb[231].mxu0  ;;  %v18509_v34 = vpop.f32.mrb[231].mxu1 }
 0x452   :  { %v18495_v1 = vsel %vm400_vm9, %v9226_v6, %v9304_v4  ;;  %v9671_v41 = vsel %vm390_vm4, %v9562_v3, %v9670_v0  ;;  %v9583_v56 = vadd.f32 %v9582_v54, %v9581_v14  ;;  %v9574_v33 = vadd.f32 %v9573_v59, %v9572_v35 }
 0x453   :  { %19435 = vst [vmem:[#allocation67_spill] sm:$0xff] %v18495_v1  ;;  %v9232_v48 = vrot.slane %v9231_v38, 1  ;;  %v9672_v20 = vsel %vm392_vm5, %v9569_v29, %v9671_v41  ;;  %v9252_v9 = vadd.f32 %v9251_v19, %v9250_v27  ;;  %v9594_v2 = vrot.slane %v9593_v23, 2 }
 0x454   :  { %v9575_v45 = vrot.slane %v9574_v33, 1  ;;  %v9165_v8 = vmax.f32 %v19436_v16, 0.0  ;;  %v9532_v6 = vmax.f32 %v18204_v44, 0.0  ;;  %v9168_v0 = vmax.f32 %v18216_v47, 0.0 }
 0x455   :  { %v9233_v32 = vadd.f32 %v9232_v48, %v9231_v38  ;;  %v9253_v28 = vrot.slane %v9252_v9, 1  ;;  %v9595_v14 = vadd.f32 %v9594_v2, %v9593_v23  ;;  %v9535_v35 = vmax.f32 %v18218_v63, 0.0  ;;  %v18518_v48 = vpop.f32.mrb[232].mxu0  ;;  %v18520_v2 = vpop.f32.mrb[232].mxu1 }
 0x456   :  { %v9576_v5 = vadd.f32 %v9575_v45, %v9574_v33  ;;  %v9241_v29 = vsel %vm23_vm2, %v9165_v8, 0.0  ;;  %v9584_v27 = vsel %vm23_vm2, %v9532_v6, 0.0  ;;  %v9262_v36 = vsel %vm23_vm2, %v9168_v0, 0.0  ;;  %v19437_v0 = vld [vmem:[#allocation27_spill] sm:$0xff]  ;;  %v18532_v1 = vpop.f32.mrb[233].mxu1 }
 0x457   :  { %v9306_v3 = vsel %vm388_vm3, %v9240_v7, %v9233_v32  ;;  %v9254_v54 = vadd.f32 %v9253_v28, %v9252_v9  ;;  %v9596_v44 = vrot.slane %v9595_v14, 1  ;;  %v9242_v59 = vrot.slane %v9241_v29, 4  ;;  %19439 = vst [vmem:[#allocation27_spill] sm:$0xff] %v18532_v1 }
 0x458   :  { %v9673_v47 = vsel %vm394_vm6, %v9576_v5, %v9672_v20  ;;  %v9585_v4 = vrot.slane %v9584_v27, 4  ;;  %v9263_v38 = vrot.slane %v9262_v36, 4  ;;  %v9605_v63 = vsel %vm23_vm2, %v9535_v35, 0.0  ;;  %v18528_v5 = vpop.f32.mrb[233].mxu0 }
 0x459   :  { %v9597_v19 = vadd.f32 %v9596_v44, %v9595_v14  ;;  %v9243_v23 = vadd.f32 %v9242_v59, %v9241_v29  ;;  %v9674_v41 = vsel %vm396_vm7, %v9583_v56, %v9673_v47  ;;  %v9606_v33 = vrot.slane %v9605_v63, 4  ;;  %19438 = vst [vmem:[#allocation50_spill] sm:$0xff] %v18528_v5 }
 0x45a   :  { %v9586_v45 = vadd.f32 %v9585_v4, %v9584_v27  ;;  %v9264_v7 = vadd.f32 %v9263_v38, %v9262_v36  ;;  %v9167_v9 = vmax.f32 %v18220_v15, 0.0  ;;  %v9534_v16 = vmax.f32 %v18226_v62, 0.0 }
 0x45b   :  { %v9244_v20 = vrot.slane %v9243_v23, 2  ;;  %v9607_v8 = vadd.f32 %v9606_v33, %v9605_v63  ;;  %v9170_v6 = vmax.f32 %v18231_v30, 0.0  ;;  %v9537_v32 = vmax.f32 %v19437_v0, 0.0 }
 0x45c   :  { %v9587_v28 = vrot.slane %v9586_v45, 2  ;;  %v9265_v14 = vrot.slane %v9264_v7, 2  ;;  %v9255_v56 = vsel %vm23_vm2, %v9167_v9, 0.0  ;;  %v9598_v35 = vsel %vm23_vm2, %v9534_v16, 0.0 }
 0x45d   :  { %v9245_v29 = vadd.f32 %v9244_v20, %v9243_v23  ;;  %v9608_v27 = vrot.slane %v9607_v8, 2  ;;  %v9256_v36 = vrot.slane %v9255_v56, 4  ;;  %v9599_v15 = vrot.slane %v9598_v35, 4 }
 0x45e   :  { %v9588_v44 = vadd.f32 %v9587_v28, %v9586_v45  ;;  %v9266_v62 = vadd.f32 %v9265_v14, %v9264_v7  ;;  %v9276_v59 = vsel %vm23_vm2, %v9170_v6, 0.0  ;;  %v9619_v30 = vsel %vm23_vm2, %v9537_v32, 0.0 }
 0x45f   :  { %v9246_v47 = vrot.slane %v9245_v29, 1  ;;  %v9609_v4 = vadd.f32 %v9608_v27, %v9607_v8  ;;  %v9257_v38 = vadd.f32 %v9256_v36, %v9255_v56  ;;  %v9600_v63 = vadd.f32 %v9599_v15, %v9598_v35  ;;  %v18535_v35 = vpop.f32.mrb[234].mxu0  ;;  %v18537_v27 = vpop.f32.mrb[234].mxu1 }
 0x460   :  { %v9589_v33 = vrot.slane %v9588_v44, 1  ;;  %v9267_v9 = vrot.slane %v9266_v62, 1  ;;  %v9277_v0 = vrot.slane %v9276_v59, 4  ;;  %v9620_v16 = vrot.slane %v9619_v30, 4  ;;  %v18541_v1 = vpop.f32.mrb[235].mxu0 }
 0x461   :  { %v9247_v23 = vadd.f32 %v9246_v47, %v9245_v29  ;;  %v9610_v20 = vrot.slane %v9609_v4, 1  ;;  %v9258_v42 = vrot.slane %v9257_v38, 2  ;;  %v9601_v5 = vrot.slane %v9600_v63, 2 }
 0x462   :  { %v9590_v45 = vadd.f32 %v9589_v33, %v9588_v44  ;;  %v9268_v7 = vadd.f32 %v9267_v9, %v9266_v62  ;;  %v9278_v28 = vadd.f32 %v9277_v0, %v9276_v59  ;;  %v9621_v6 = vadd.f32 %v9620_v16, %v9619_v30  ;;  %v19441_v59 = vld [vmem:[#allocation53_spill] sm:$0xff]  ;;  %v18551_v9 = vpop.f32.mrb[235].mxu1 }
 0x463   :  { %v9307_v32 = vsel %vm390_vm4, %v9247_v23, %v9306_v3  ;;  %v9611_v14 = vadd.f32 %v9610_v20, %v9609_v4  ;;  %v9259_v8 = vadd.f32 %v9258_v42, %v9257_v38  ;;  %v9602_v56 = vadd.f32 %v9601_v5, %v9600_v63 }
 0x464   :  { %v9675_v36 = vsel %vm398_vm8, %v9590_v45, %v9674_v41  ;;  %v9308_v29 = vsel %vm392_vm5, %v9254_v54, %v9307_v32  ;;  %v9279_v15 = vrot.slane %v9278_v28, 2  ;;  %v9622_v47 = vrot.slane %v9621_v6, 2 }
 0x465   :  { %v18544_v44 = vsel %vm400_vm9, %v9597_v19, %v9675_v36  ;;  %v9260_v62 = vrot.slane %v9259_v8, 1  ;;  %v9603_v3 = vrot.slane %v9602_v56, 1  ;;  %v9169_v42 = vmax.f32 %v19441_v59, 0.0 }
 0x466   :  { %19440 = vst [vmem:[#allocation83_spill] sm:$0xff] %v18544_v44  ;;  %v9280_v5 = vadd.f32 %v9279_v15, %v9278_v28  ;;  %v9623_v30 = vadd.f32 %v9622_v47, %v9621_v6  ;;  %v9536_v4 = vmax.f32 %v18245_v25, 0.0  ;;  %v9539_v38 = vmax.f32 %v18254_v51, 0.0  ;;  %v18560_v47 = vpop.f32.mrb[236].mxu0 }
 0x467   :  { %v9261_v41 = vadd.f32 %v9260_v62, %v9259_v8  ;;  %v9604_v63 = vadd.f32 %v9603_v3, %v9602_v56  ;;  %v9269_v54 = vsel %vm23_vm2, %v9169_v42, 0.0  ;;  %v9898_v33 = vmax.f32 %v18256_v39, 0.0  ;;  %v18562_v62 = vpop.f32.mrb[236].mxu1 }
 0x468   :  { %v9281_v19 = vrot.slane %v9280_v5, 1  ;;  %v9624_v0 = vrot.slane %v9623_v30, 1  ;;  %v9270_v16 = vrot.slane %v9269_v54, 4  ;;  %v9612_v23 = vsel %vm23_vm2, %v9536_v4, 0.0  ;;  %v18568_v4 = vpop.f32.mrb[237].mxu0 }
 0x469   :  { %v9309_v20 = vsel %vm394_vm6, %v9261_v41, %v9308_v29  ;;  %v9677_v45 = vsel %vm388_vm3, %v9611_v14, %v9604_v63  ;;  %v9613_v25 = vrot.slane %v9612_v23, 4  ;;  %v9633_v51 = vsel %vm23_vm2, %v9539_v38, 0.0 }
 0x46a   :  { %v9282_v28 = vadd.f32 %v9281_v19, %v9280_v5  ;;  %v9625_v6 = vadd.f32 %v9624_v0, %v9623_v30  ;;  %v9271_v32 = vadd.f32 %v9270_v16, %v9269_v54  ;;  %v9310_v8 = vsel %vm396_vm7, %v9268_v7, %v9309_v20 }
 0x46b   :  { %v9614_v39 = vadd.f32 %v9613_v25, %v9612_v23  ;;  %v9634_v56 = vrot.slane %v9633_v51, 4  ;;  %v9920_v36 = vsel %vm23_vm2, %v9898_v33, 0.0  ;;  %v9538_v15 = vmax.f32 %v18260_v17, 0.0 }
 0x46c   :  { %v9272_v29 = vrot.slane %v9271_v32, 2  ;;  %v9921_v14 = vrot.slane %v9920_v36, 4  ;;  %v9897_v3 = vmax.f32 %v18263_v10, 0.0  ;;  %v9541_v59 = vmax.f32 %v18271_v26, 0.0 }
 0x46d   :  { %v9615_v42 = vrot.slane %v9614_v39, 2  ;;  %v9635_v5 = vadd.f32 %v9634_v56, %v9633_v51  ;;  %v9626_v7 = vsel %vm23_vm2, %v9538_v15, 0.0  ;;  %v9900_v30 = vmax.f32 %v18273_v11, 0.0 }
 0x46e   :  { %v9273_v38 = vadd.f32 %v9272_v29, %v9271_v32  ;;  %v9922_v17 = vadd.f32 %v9921_v14, %v9920_v36  ;;  %v9627_v41 = vrot.slane %v9626_v7, 4  ;;  %v9913_v63 = vsel %vm23_vm2, %v9897_v3, 0.0  ;;  %v18573_v29 = vpop.f32.mrb[237].mxu1 }
 0x46f   :  { %v9616_v54 = vadd.f32 %v9615_v42, %v9614_v39  ;;  %v9636_v33 = vrot.slane %v9635_v5, 2  ;;  %v9914_v19 = vrot.slane %v9913_v63, 4  ;;  %v9647_v10 = vsel %vm23_vm2, %v9541_v59, 0.0 }
 0x470   :  { %v9274_v0 = vrot.slane %v9273_v38, 1  ;;  %v9923_v26 = vrot.slane %v9922_v17, 2  ;;  %v9628_v16 = vadd.f32 %v9627_v41, %v9626_v7  ;;  %v9648_v23 = vrot.slane %v9647_v10, 4 }
 0x471   :  { %v9617_v20 = vrot.slane %v9616_v54, 1  ;;  %v9637_v25 = vadd.f32 %v9636_v33, %v9635_v5  ;;  %v9915_v51 = vadd.f32 %v9914_v19, %v9913_v63  ;;  %v9934_v11 = vsel %vm23_vm2, %v9900_v30, 0.0 }
 0x472   :  { %v9275_v56 = vadd.f32 %v9274_v0, %v9273_v38  ;;  %v9924_v32 = vadd.f32 %v9923_v26, %v9922_v17  ;;  %v9629_v36 = vrot.slane %v9628_v16, 2  ;;  %v9649_v15 = vadd.f32 %v9648_v23, %v9647_v10  ;;  %v18581_v10 = vpop.f32.mrb[238].mxu1  ;;  %v18583_v0 = vpop.f32.mrb[238].mxu0  ;;  %v19445_v23 = vld [vmem:[#allocation69_spill] sm:$0xff] }
 0x473   :  { %v9618_v39 = vadd.f32 %v9617_v20, %v9616_v54  ;;  %v9638_v14 = vrot.slane %v9637_v25, 1  ;;  %v9916_v3 = vrot.slane %v9915_v51, 2  ;;  %v9935_v42 = vrot.slane %v9934_v11, 4  ;;  %19443 = vst [vmem:[#allocation84_spill] sm:$0xff] %v18581_v10  ;;  %19444 = vst [vmem:[#allocation85_spill] sm:$0xff] %v18583_v0  ;;  %v18587_v20 = vpop.f32.mrb[239].mxu1 }
 0x474   :  { %v9311_v59 = vsel %vm398_vm8, %v9275_v56, %v9310_v8  ;;  %v9925_v44 = vrot.slane %v9924_v32, 1  ;;  %v9630_v7 = vadd.f32 %v9629_v36, %v9628_v16  ;;  %v9650_v41 = vrot.slane %v9649_v15, 2  ;;  %19446 = vst [vmem:[#allocation69_spill] sm:$0xff] %v18587_v20  ;;  %v19448_v56 = vld [vmem:[#allocation77_spill] sm:$0xff] }
 0x475   :  { %v18577_v5 = vsel %vm400_vm9, %v9282_v28, %v9311_v59  ;;  %v9678_v30 = vsel %vm390_vm4, %v9618_v39, %v9677_v45  ;;  %v9639_v38 = vadd.f32 %v9638_v14, %v9637_v25  ;;  %v9917_v17 = vadd.f32 %v9916_v3, %v9915_v51  ;;  %v19447_v51 = vld [vmem:[#allocation76_spill] sm:$0xff]  ;;  %v18593_v14 = vpop.f32.mrb[239].mxu0 }
 0x476   :  { %19442 = vst [vmem:[#allocation53_spill] sm:$0xff] %v18577_v5  ;;  %v9926_v63 = vadd.f32 %v9925_v44, %v9924_v32  ;;  %v9631_v33 = vrot.slane %v9630_v7, 1  ;;  %v9679_v19 = vsel %vm392_vm5, %v9625_v6, %v9678_v30  ;;  %v9651_v54 = vadd.f32 %v9650_v41, %v9649_v15  ;;  %19449 = vst [vmem:[#allocation76_spill] sm:$0xff] %v18593_v14  ;;  %v19456_v14 = vld [vmem:[#allocation79_spill] sm:$0xff] }
 0x477   :  { %v9918_v8 = vrot.slane %v9917_v17, 1  ;;  %v9936_v26 = vadd.f32 %v9935_v42, %v9934_v11  ;;  %v9540_v16 = vmax.f32 %v18281_v12, 0.0  ;;  %v9899_v28 = vmax.f32 %v19445_v23, 0.0 }
 0x478   :  { %v9632_v45 = vadd.f32 %v9631_v33, %v9630_v7  ;;  %v9652_v25 = vrot.slane %v9651_v54, 1  ;;  %v9902_v44 = vmax.f32 %v19447_v51, 0.0  ;;  %v10269_v32 = vmax.f32 %v19448_v56, 0.0  ;;  %v19450_v51 = vld [vmem:[#allocation78_spill] sm:$0xff] }
 0x479   :  { %v9919_v6 = vadd.f32 %v9918_v8, %v9917_v17  ;;  %v9937_v36 = vrot.slane %v9936_v26, 2  ;;  %v9640_v15 = vsel %vm23_vm2, %v9540_v16, 0.0  ;;  %v9927_v39 = vsel %vm23_vm2, %v9899_v28, 0.0 }
 0x47a   :  { %v9680_v12 = vsel %vm394_vm6, %v9632_v45, %v9679_v19  ;;  %v9653_v11 = vadd.f32 %v9652_v25, %v9651_v54  ;;  %v9641_v3 = vrot.slane %v9640_v15, 4  ;;  %v9928_v42 = vrot.slane %v9927_v39, 4  ;;  %v19451_v19 = vld [vmem:[#allocation71_spill] sm:$0xff]  ;;  %v18602_v45 = vpop.f32.mrb[240].mxu1  ;;  %v18604_v25 = vpop.f32.mrb[240].mxu0 }
 0x47b   :  { %v10041_v59 = vsel %vm388_vm3, %v9926_v63, %v9919_v6  ;;  %v9938_v7 = vadd.f32 %v9937_v36, %v9936_v26  ;;  %v9681_v41 = vsel %vm396_vm7, %v9639_v38, %v9680_v12  ;;  %v9948_v30 = vsel %vm23_vm2, %v9902_v44, 0.0  ;;  %19452 = vst [vmem:[#allocation77_spill] sm:$0xff] %v18602_v45  ;;  %19453 = vst [vmem:[#allocation78_spill] sm:$0xff] %v18604_v25  ;;  %v19454_v6 = vld [vmem:[#allocation72_spill] sm:$0xff]  ;;  %v18607_v36 = vpop.f32.mrb[241].mxu1 }
 0x47c   :  { %v9642_v17 = vadd.f32 %v9641_v3, %v9640_v15  ;;  %v9929_v33 = vadd.f32 %v9928_v42, %v9927_v39  ;;  %v9949_v8 = vrot.slane %v9948_v30, 4  ;;  %v10291_v16 = vsel %vm23_vm2, %v10269_v32, 0.0  ;;  %19455 = vst [vmem:[#allocation71_spill] sm:$0xff] %v18607_v36 }
 0x47d   :  { %v9939_v23 = vrot.slane %v9938_v7, 1  ;;  %v10292_v28 = vrot.slane %v10291_v16, 4  ;;  %v9901_v56 = vmax.f32 %v19450_v51, 0.0  ;;  %v10268_v54 = vmax.f32 %v19451_v19, 0.0 }
 0x47e   :  { %v9643_v63 = vrot.slane %v9642_v17, 2  ;;  %v9930_v26 = vrot.slane %v9929_v33, 2  ;;  %v9950_v38 = vadd.f32 %v9949_v8, %v9948_v30  ;;  %v9904_v44 = vmax.f32 %v19454_v6, 0.0 }
 0x47f   :  { %v9940_v15 = vadd.f32 %v9939_v23, %v9938_v7  ;;  %v10293_v39 = vadd.f32 %v10292_v28, %v10291_v16  ;;  %v9941_v32 = vsel %vm23_vm2, %v9901_v56, 0.0  ;;  %v10284_v12 = vsel %vm23_vm2, %v10268_v54, 0.0 }
 0x480   :  { %v9644_v3 = vadd.f32 %v9643_v63, %v9642_v17  ;;  %v9931_v42 = vadd.f32 %v9930_v26, %v9929_v33  ;;  %v9951_v51 = vrot.slane %v9950_v38, 2  ;;  %v9942_v19 = vrot.slane %v9941_v32, 4  ;;  %v18614_v63 = vpop.f32.mrb[241].mxu0 }
 0x481   :  { %v10294_v5 = vrot.slane %v10293_v39, 2  ;;  %v10285_v45 = vrot.slane %v10284_v12, 4  ;;  %v9962_v25 = vsel %vm23_vm2, %v9904_v44, 0.0  ;;  %v10271_v30 = vmax.f32 %v19456_v14, 0.0 }
 0x482   :  { %v9645_v8 = vrot.slane %v9644_v3, 1  ;;  %v9932_v6 = vrot.slane %v9931_v42, 1  ;;  %v9952_v20 = vadd.f32 %v9951_v51, %v9950_v38  ;;  %v9943_v36 = vadd.f32 %v9942_v19, %v9941_v32 }
 0x483   :  { %v10295_v7 = vadd.f32 %v10294_v5, %v10293_v39  ;;  %v10286_v16 = vadd.f32 %v10285_v45, %v10284_v12  ;;  %v9963_v23 = vrot.slane %v9962_v25, 4  ;;  %v10305_v28 = vsel %vm23_vm2, %v10271_v30, 0.0  ;;  %v19458_v30 = vld [vmem:[#allocation73_spill] sm:$0xff] }
 0x484   :  { %v9646_v56 = vadd.f32 %v9645_v8, %v9644_v3  ;;  %v9933_v17 = vadd.f32 %v9932_v6, %v9931_v42  ;;  %v9953_v33 = vrot.slane %v9952_v20, 1  ;;  %v9944_v54 = vrot.slane %v9943_v36, 2  ;;  %v18625_v6 = vpop.f32.mrb[242].mxu1 }
 0x485   :  { %v10296_v26 = vrot.slane %v10295_v7, 1  ;;  %v10287_v0 = vrot.slane %v10286_v16, 2  ;;  %v9964_v44 = vadd.f32 %v9963_v23, %v9962_v25  ;;  %v10306_v10 = vrot.slane %v10305_v28, 4  ;;  %v18623_v25 = vpop.f32.mrb[242].mxu0 }
 0x486   :  { %v9682_v14 = vsel %vm398_vm8, %v9646_v56, %v9681_v41  ;;  %v10042_v38 = vsel %vm390_vm4, %v9933_v17, %v10041_v59  ;;  %v9954_v32 = vadd.f32 %v9953_v33, %v9952_v20  ;;  %v9945_v5 = vadd.f32 %v9944_v54, %v9943_v36  ;;  %v18630_v36 = vpop.f32.mrb[243].mxu0  ;;  %v18635_v17 = vpop.f32.mrb[243].mxu1 }
 0x487   :  { %v18619_v45 = vsel %vm400_vm9, %v9653_v11, %v9682_v14  ;;  %v10297_v39 = vadd.f32 %v10296_v26, %v10295_v7  ;;  %v10043_v12 = vsel %vm392_vm5, %v9940_v15, %v10042_v38  ;;  %v10288_v3 = vadd.f32 %v10287_v0, %v10286_v16  ;;  %19459 = vst [vmem:[#allocation79_spill] sm:$0xff] %v18635_v17 }
 0x488   :  { %19457 = vst [vmem:[#allocation72_spill] sm:$0xff] %v18619_v45  ;;  %v9946_v42 = vrot.slane %v9945_v5, 1  ;;  %v9965_v51 = vrot.slane %v9964_v44, 2  ;;  %v10307_v19 = vadd.f32 %v10306_v10, %v10305_v28  ;;  %v9903_v8 = vmax.f32 %v19458_v30, 0.0 }
 0x489   :  { %v10289_v41 = vrot.slane %v10288_v3, 1  ;;  %v10270_v20 = vmax.f32 %v18327_v55, 0.0  ;;  %v9906_v59 = vmax.f32 %v18335_v46, 0.0  ;;  %v10273_v11 = vmax.f32 %v18337_v52, 0.0 }
 0x48a   :  { %v9947_v15 = vadd.f32 %v9946_v42, %v9945_v5  ;;  %v9966_v0 = vadd.f32 %v9965_v51, %v9964_v44  ;;  %v10308_v7 = vrot.slane %v10307_v19, 2  ;;  %v9955_v10 = vsel %vm23_vm2, %v9903_v8, 0.0 }
 0x48b   :  { %v10290_v16 = vadd.f32 %v10289_v41, %v10288_v3  ;;  %v9956_v23 = vrot.slane %v9955_v10, 4  ;;  %v10298_v28 = vsel %vm23_vm2, %v10270_v20, 0.0  ;;  %v9976_v56 = vsel %vm23_vm2, %v9906_v59, 0.0  ;;  %v19460_v41 = vld [vmem:[#allocation62_spill] sm:$0xff] }
 0x48c   :  { %v10044_v55 = vsel %vm394_vm6, %v9947_v15, %v10043_v12  ;;  %v9967_v46 = vrot.slane %v9966_v0, 1  ;;  %v10309_v33 = vadd.f32 %v10308_v7, %v10307_v19  ;;  %v10299_v52 = vrot.slane %v10298_v28, 4  ;;  %v18642_v12 = vpop.f32.mrb[244].mxu0  ;;  %v18644_v19 = vpop.f32.mrb[244].mxu1  ;;  %v19463_v15 = vld [vmem:[#allocation33_spill] sm:$0xff] }
 0x48d   :  { %v10412_v54 = vsel %vm388_vm3, %v10297_v39, %v10290_v16  ;;  %v9957_v26 = vadd.f32 %v9956_v23, %v9955_v10  ;;  %v10045_v44 = vsel %vm396_vm7, %v9954_v32, %v10044_v55  ;;  %v9977_v14 = vrot.slane %v9976_v56, 4  ;;  %19461 = vst [vmem:[#allocation73_spill] sm:$0xff] %v18642_v12  ;;  %19462 = vst [vmem:[#allocation62_spill] sm:$0xff] %v18644_v19  ;;  %v19464_v32 = vld [vmem:[#allocation35_spill] sm:$0xff]  ;;  %v19466_v19 = vld [vmem:[#allocation40_spill] sm:$0xff]  ;;  %v18655_v12 = vpop.f32.mrb[245].mxu1 }
 0x48e   :  { %v9968_v38 = vadd.f32 %v9967_v46, %v9966_v0  ;;  %v10310_v5 = vrot.slane %v10309_v33, 1  ;;  %v10300_v3 = vadd.f32 %v10299_v52, %v10298_v28  ;;  %v10319_v42 = vsel %vm23_vm2, %v10273_v11, 0.0  ;;  %v18648_v0 = vpop.f32.mrb[245].mxu0  ;;  %19467 = vst [vmem:[#allocation35_spill] sm:$0xff] %v18655_v12 }
 0x48f   :  { %v9958_v51 = vrot.slane %v9957_v26, 2  ;;  %v9978_v30 = vadd.f32 %v9977_v14, %v9976_v56  ;;  %v10320_v8 = vrot.slane %v10319_v42, 4  ;;  %v9905_v20 = vmax.f32 %v19460_v41, 0.0  ;;  %19465 = vst [vmem:[#allocation33_spill] sm:$0xff] %v18648_v0 }
 0x490   :  { %v10311_v59 = vadd.f32 %v10310_v5, %v10309_v33  ;;  %v10301_v39 = vrot.slane %v10300_v3, 2  ;;  %v10272_v7 = vmax.f32 %v19463_v15, 0.0  ;;  %v9908_v10 = vmax.f32 %v19464_v32, 0.0 }
 0x491   :  { %v9959_v16 = vadd.f32 %v9958_v51, %v9957_v26  ;;  %v9979_v23 = vrot.slane %v9978_v30, 2  ;;  %v10321_v11 = vadd.f32 %v10320_v8, %v10319_v42  ;;  %v9969_v28 = vsel %vm23_vm2, %v9905_v20, 0.0 }
 0x492   :  { %v10302_v56 = vadd.f32 %v10301_v39, %v10300_v3  ;;  %v9970_v55 = vrot.slane %v9969_v28, 4  ;;  %v10312_v46 = vsel %vm23_vm2, %v10272_v7, 0.0  ;;  %v9990_v52 = vsel %vm23_vm2, %v9908_v10, 0.0 }
 0x493   :  { %v9960_v14 = vrot.slane %v9959_v16, 1  ;;  %v9980_v33 = vadd.f32 %v9979_v23, %v9978_v30  ;;  %v10322_v5 = vrot.slane %v10321_v11, 2  ;;  %v10313_v41 = vrot.slane %v10312_v46, 4 }
 0x494   :  { %v10303_v15 = vrot.slane %v10302_v56, 1  ;;  %v9971_v45 = vadd.f32 %v9970_v55, %v9969_v28  ;;  %v9991_v32 = vrot.slane %v9990_v52, 4  ;;  %v10275_v0 = vmax.f32 %v19466_v19, 0.0 }
 0x495   :  { %v9961_v26 = vadd.f32 %v9960_v14, %v9959_v16  ;;  %v9981_v51 = vrot.slane %v9980_v33, 1  ;;  %v10323_v42 = vadd.f32 %v10322_v5, %v10321_v11  ;;  %v10314_v8 = vadd.f32 %v10313_v41, %v10312_v46  ;;  %v19469_v5 = vld [vmem:[#allocation64_spill] sm:$0xff] }
 0x496   :  { %v10304_v20 = vadd.f32 %v10303_v15, %v10302_v56  ;;  %v9972_v3 = vrot.slane %v9971_v45, 2  ;;  %v9992_v39 = vadd.f32 %v9991_v32, %v9990_v52  ;;  %v10333_v7 = vsel %vm23_vm2, %v10275_v0, 0.0  ;;  %v18665_v15 = vpop.f32.mrb[246].mxu0  ;;  %v18667_v32 = vpop.f32.mrb[246].mxu1 }
 0x497   :  { %v10046_v30 = vsel %vm398_vm8, %v9961_v26, %v10045_v44  ;;  %v9982_v10 = vadd.f32 %v9981_v51, %v9980_v33  ;;  %v10324_v23 = vrot.slane %v10323_v42, 1  ;;  %v10315_v17 = vrot.slane %v10314_v8, 2  ;;  %v19470_v44 = vld [vmem:[#allocation65_spill] sm:$0xff]  ;;  %19471 = vst [vmem:[#allocation64_spill] sm:$0xff] %v18665_v15 }
 0x498   :  { %v18659_v28 = vsel %vm400_vm9, %v9968_v38, %v10046_v30  ;;  %v10413_v19 = vsel %vm390_vm4, %v10304_v20, %v10412_v54  ;;  %v9973_v16 = vadd.f32 %v9972_v3, %v9971_v45  ;;  %v9993_v11 = vrot.slane %v9992_v39, 2  ;;  %19472 = vst [vmem:[#allocation65_spill] sm:$0xff] %v18667_v32  ;;  %v19473_v54 = vld [vmem:[#allocation80_spill] sm:$0xff]  ;;  %v19474_v51 = vld [vmem:[#allocation81_spill] sm:$0xff] }
 0x499   :  { %19468 = vst [vmem:[#allocation40_spill] sm:$0xff] %v18659_v28  ;;  %v10325_v55 = vadd.f32 %v10324_v23, %v10323_v42  ;;  %v10316_v56 = vadd.f32 %v10315_v17, %v10314_v8  ;;  %v10414_v46 = vsel %vm392_vm5, %v10311_v59, %v10413_v19  ;;  %v10334_v52 = vrot.slane %v10333_v7, 4  ;;  %v18671_v17 = vpop.f32.mrb[247].mxu0 }
 0x49a   :  { %v9974_v0 = vrot.slane %v9973_v16, 1  ;;  %v9994_v14 = vadd.f32 %v9993_v11, %v9992_v39  ;;  %v9907_v41 = vmax.f32 %v19469_v5, 0.0  ;;  %v10274_v33 = vmax.f32 %v19470_v44, 0.0  ;;  %19475 = vst [vmem:[#allocation80_spill] sm:$0xff] %v18671_v17  ;;  %v18675_v39 = vpop.f32.mrb[247].mxu1 }
 0x49b   :  { %v10317_v38 = vrot.slane %v10316_v56, 1  ;;  %v10335_v26 = vadd.f32 %v10334_v52, %v10333_v7  ;;  %v9910_v45 = vmax.f32 %v19473_v54, 0.0  ;;  %v10277_v42 = vmax.f32 %v19474_v51, 0.0  ;;  %19476 = vst [vmem:[#allocation81_spill] sm:$0xff] %v18675_v39  ;;  %v18683_v39 = vpop.f32.mrb[248].mxu0  ;;  %v18685_v17 = vpop.f32.mrb[248].mxu1 }
 0x49c   :  { %v9975_v59 = vadd.f32 %v9974_v0, %v9973_v16  ;;  %v9995_v8 = vrot.slane %v9994_v14, 1  ;;  %v9983_v20 = vsel %vm23_vm2, %v9907_v41, 0.0  ;;  %v10326_v3 = vsel %vm23_vm2, %v10274_v33, 0.0  ;;  %19479 = vst [vmem:[#allocation86_spill] sm:$0xff] %v18685_v17  ;;  %v18696_v12 = vpop.f32.mrb[249].mxu1 }
 0x49d   :  { %v10318_v30 = vadd.f32 %v10317_v38, %v10316_v56  ;;  %v10336_v23 = vrot.slane %v10335_v26, 2  ;;  %v9984_v19 = vrot.slane %v9983_v20, 4  ;;  %v10327_v11 = vrot.slane %v10326_v3, 4  ;;  %v19477_v56 = vld [vmem:[#allocation82_spill] sm:$0xff] }
 0x49e   :  { %v10048_v7 = vsel %vm388_vm3, %v9982_v10, %v9975_v59  ;;  %v9996_v52 = vadd.f32 %v9995_v8, %v9994_v14  ;;  %v10004_v5 = vsel %vm23_vm2, %v9910_v45, 0.0  ;;  %v10347_v44 = vsel %vm23_vm2, %v10277_v42, 0.0  ;;  %19478 = vst [vmem:[#allocation82_spill] sm:$0xff] %v18683_v39  ;;  %v19480_v59 = vld [vmem:[#allocation47_spill] sm:$0xff]  ;;  %v18688_v8 = vpop.f32.mrb[249].mxu0 }
 0x49f   :  { %v10415_v16 = vsel %vm394_vm6, %v10318_v30, %v10414_v46  ;;  %v10337_v0 = vadd.f32 %v10336_v23, %v10335_v26  ;;  %v9985_v54 = vadd.f32 %v9984_v19, %v9983_v20  ;;  %v10328_v41 = vadd.f32 %v10327_v11, %v10326_v3  ;;  %19481 = vst [vmem:[#allocation47_spill] sm:$0xff] %v18688_v8 }
 0x4a0   :  { %v10416_v33 = vsel %vm396_vm7, %v10325_v55, %v10415_v16  ;;  %v10005_v51 = vrot.slane %v10004_v5, 4  ;;  %v10348_v28 = vrot.slane %v10347_v44, 4  ;;  %v9909_v38 = vmax.f32 %v19477_v56, 0.0  ;;  %v19482_v55 = vld [vmem:[#allocation56_spill] sm:$0xff] }
 0x4a1   :  { %v10338_v10 = vrot.slane %v10337_v0, 1  ;;  %v9986_v14 = vrot.slane %v9985_v54, 2  ;;  %v10329_v45 = vrot.slane %v10328_v41, 2  ;;  %v10276_v42 = vmax.f32 %v19480_v59, 0.0 }
 0x4a2   :  { %v10006_v46 = vadd.f32 %v10005_v51, %v10004_v5  ;;  %v10349_v26 = vadd.f32 %v10348_v28, %v10347_v44  ;;  %v9997_v20 = vsel %vm23_vm2, %v9909_v38, 0.0  ;;  %v9912_v3 = vmax.f32 %v19482_v55, 0.0  ;;  %v19483_v51 = vld [vmem:[#allocation15_spill] sm:$0xff] }
 0x4a3   :  { %v10339_v30 = vadd.f32 %v10338_v10, %v10337_v0  ;;  %v9987_v23 = vadd.f32 %v9986_v14, %v9985_v54  ;;  %v10330_v19 = vadd.f32 %v10329_v45, %v10328_v41  ;;  %v9998_v11 = vrot.slane %v9997_v20, 4 }
 0x4a4   :  { %v10007_v16 = vrot.slane %v10006_v46, 2  ;;  %v10350_v56 = vrot.slane %v10349_v26, 2  ;;  %v10340_v17 = vsel %vm23_vm2, %v10276_v42, 0.0  ;;  %v10018_v39 = vsel %vm23_vm2, %v9912_v3, 0.0 }
 0x4a5   :  { %v9988_v32 = vrot.slane %v9987_v23, 1  ;;  %v10331_v59 = vrot.slane %v10330_v19, 1  ;;  %v9999_v15 = vadd.f32 %v9998_v11, %v9997_v20  ;;  %v10341_v8 = vrot.slane %v10340_v17, 4 }
 0x4a6   :  { %v10008_v5 = vadd.f32 %v10007_v16, %v10006_v46  ;;  %v10351_v28 = vadd.f32 %v10350_v56, %v10349_v26  ;;  %v10019_v44 = vrot.slane %v10018_v39, 4  ;;  %v10279_v38 = vmax.f32 %v19483_v51, 0.0  ;;  %v19485_v56 = vld [vmem:[#allocation74_spill] sm:$0xff] }
 0x4a7   :  { %v9989_v55 = vadd.f32 %v9988_v32, %v9987_v23  ;;  %v10332_v0 = vadd.f32 %v10331_v59, %v10330_v19  ;;  %v10000_v54 = vrot.slane %v9999_v15, 2  ;;  %v10342_v41 = vadd.f32 %v10341_v8, %v10340_v17 }
 0x4a8   :  { %v10009_v10 = vrot.slane %v10008_v5, 1  ;;  %v10352_v14 = vrot.slane %v10351_v28, 1  ;;  %v10020_v45 = vadd.f32 %v10019_v44, %v10018_v39  ;;  %v10361_v42 = vsel %vm23_vm2, %v10279_v38, 0.0 }
 0x4a9   :  { %v10049_v3 = vsel %vm390_vm4, %v9989_v55, %v10048_v7  ;;  %v10417_v20 = vsel %vm398_vm8, %v10332_v0, %v10416_v33  ;;  %v10001_v46 = vadd.f32 %v10000_v54, %v9999_v15  ;;  %v10343_v26 = vrot.slane %v10342_v41, 2  ;;  %v18708_v33 = vpop.f32.mrb[250].mxu0 }
 0x4aa   :  { %v18701_v11 = vsel %vm400_vm9, %v10339_v30, %v10417_v20  ;;  %v10010_v32 = vadd.f32 %v10009_v10, %v10008_v5  ;;  %v10353_v23 = vadd.f32 %v10352_v14, %v10351_v28  ;;  %v10050_v17 = vsel %vm392_vm5, %v9996_v52, %v10049_v3  ;;  %v18710_v30 = vpop.f32.mrb[250].mxu1  ;;  %v18712_v38 = vpop.f32.mrb[251].mxu0 }
 0x4ab   :  { %19484 = vst [vmem:[#allocation56_spill] sm:$0xff] %v18701_v11  ;;  %v10002_v8 = vrot.slane %v10001_v46, 1  ;;  %v10344_v19 = vadd.f32 %v10343_v26, %v10342_v41  ;;  %v10021_v39 = vrot.slane %v10020_v45, 2  ;;  %v10362_v16 = vrot.slane %v10361_v42, 4  ;;  %v18718_v54 = vpop.f32.mrb[251].mxu1 }
 0x4ac   :  { %v9911_v59 = vmax.f32 %v19485_v56, 0.0  ;;  %v10278_v44 = vmax.f32 %v18409_v24, 0.0  ;;  %v10281_v7 = vmax.f32 %v18417_v21, 0.0  ;;  %v10640_v15 = vmax.f32 %v18419_v37, 0.0  ;;  %19486 = vst [vmem:[#allocation15_spill] sm:$0xff] %v18718_v54  ;;  %v18725_v56 = vpop.f32.mrb[252].mxu1 }
 0x4ad   :  { %v10003_v5 = vadd.f32 %v10002_v8, %v10001_v46  ;;  %v10345_v28 = vrot.slane %v10344_v19, 1  ;;  %v10022_v51 = vadd.f32 %v10021_v39, %v10020_v45  ;;  %v10363_v52 = vadd.f32 %v10362_v16, %v10361_v42  ;;  %v18723_v16 = vpop.f32.mrb[252].mxu0  ;;  %19488 = vst [vmem:[#allocation87_spill] sm:$0xff] %v18725_v56 }
 0x4ae   :  { %v10011_v55 = vsel %vm23_vm2, %v9911_v59, 0.0  ;;  %v10354_v0 = vsel %vm23_vm2, %v10278_v44, 0.0  ;;  %v10375_v24 = vsel %vm23_vm2, %v10281_v7, 0.0  ;;  %v10662_v21 = vsel %vm23_vm2, %v10640_v15, 0.0  ;;  %19487 = vst [vmem:[#allocation74_spill] sm:$0xff] %v18723_v16  ;;  %v18728_v7 = vpop.f32.mrb[253].mxu0 }
 0x4af   :  { %v10051_v37 = vsel %vm394_vm6, %v10003_v5, %v10050_v17  ;;  %v10346_v41 = vadd.f32 %v10345_v28, %v10344_v19  ;;  %v10023_v10 = vrot.slane %v10022_v51, 1  ;;  %v10364_v14 = vrot.slane %v10363_v52, 2  ;;  %19489 = vst [vmem:[#allocation88_spill] sm:$0xff] %v18728_v7  ;;  %v19490_v28 = vld [vmem:[#allocation17_spill] sm:$0xff] }
 0x4b0   :  { %v10012_v3 = vrot.slane %v10011_v55, 4  ;;  %v10052_v45 = vsel %vm396_vm7, %v10010_v32, %v10051_v37  ;;  %v10355_v42 = vrot.slane %v10354_v0, 4  ;;  %v10376_v20 = vrot.slane %v10375_v24, 4 }
 0x4b1   :  { %v10419_v46 = vsel %vm388_vm3, %v10353_v23, %v10346_v41  ;;  %v10024_v26 = vadd.f32 %v10023_v10, %v10022_v51  ;;  %v10365_v8 = vadd.f32 %v10364_v14, %v10363_v52  ;;  %v10663_v39 = vrot.slane %v10662_v21, 4 }
 0x4b2   :  { %v10013_v59 = vadd.f32 %v10012_v3, %v10011_v55  ;;  %v10356_v44 = vadd.f32 %v10355_v42, %v10354_v0  ;;  %v10377_v17 = vadd.f32 %v10376_v20, %v10375_v24  ;;  %v10280_v19 = vmax.f32 %v18424_v50, 0.0 }
 0x4b3   :  { %v10366_v15 = vrot.slane %v10365_v8, 1  ;;  %v10664_v32 = vadd.f32 %v10663_v39, %v10662_v21  ;;  %v10639_v5 = vmax.f32 %v18427_v57, 0.0  ;;  %v10283_v23 = vmax.f32 %v19490_v28, 0.0  ;;  %v19491_v39 = vld [vmem:[#allocation20_spill] sm:$0xff] }
 0x4b4   :  { %v10014_v51 = vrot.slane %v10013_v59, 2  ;;  %v10357_v52 = vrot.slane %v10356_v44, 2  ;;  %v10378_v37 = vrot.slane %v10377_v17, 2  ;;  %v10368_v41 = vsel %vm23_vm2, %v10280_v19, 0.0 }
 0x4b5   :  { %v10367_v10 = vadd.f32 %v10366_v15, %v10365_v8  ;;  %v10665_v14 = vrot.slane %v10664_v32, 2  ;;  %v10369_v55 = vrot.slane %v10368_v41, 4  ;;  %v10655_v0 = vsel %vm23_vm2, %v10639_v5, 0.0  ;;  %v18737_v5 = vpop.f32.mrb[253].mxu1 }
 0x4b6   :  { %v10015_v24 = vadd.f32 %v10014_v51, %v10013_v59  ;;  %v10358_v50 = vadd.f32 %v10357_v52, %v10356_v44  ;;  %v10379_v3 = vadd.f32 %v10378_v37, %v10377_v17  ;;  %v10656_v42 = vrot.slane %v10655_v0, 4 }
 0x4b7   :  { %v10666_v20 = vadd.f32 %v10665_v14, %v10664_v32  ;;  %v10370_v21 = vadd.f32 %v10369_v55, %v10368_v41  ;;  %v10389_v57 = vsel %vm23_vm2, %v10283_v23, 0.0  ;;  %v10642_v28 = vmax.f32 %v19491_v39, 0.0 }
 0x4b8   :  { %v10016_v11 = vrot.slane %v10015_v24, 1  ;;  %v10359_v7 = vrot.slane %v10358_v50, 1  ;;  %v10380_v56 = vrot.slane %v10379_v3, 1  ;;  %v10657_v16 = vadd.f32 %v10656_v42, %v10655_v0  ;;  %v19492_v0 = vld [vmem:[#allocation57_spill] sm:$0xff] }
 0x4b9   :  { %v10667_v19 = vrot.slane %v10666_v20, 1  ;;  %v10371_v8 = vrot.slane %v10370_v21, 2  ;;  %v10390_v15 = vrot.slane %v10389_v57, 4  ;;  %v10676_v54 = vsel %vm23_vm2, %v10642_v28, 0.0 }
 0x4ba   :  { %v10017_v59 = vadd.f32 %v10016_v11, %v10015_v24  ;;  %v10360_v44 = vadd.f32 %v10359_v7, %v10358_v50  ;;  %v10381_v17 = vadd.f32 %v10380_v56, %v10379_v3  ;;  %v10658_v32 = vrot.slane %v10657_v16, 2  ;;  %v18746_v56 = vpop.f32.mrb[254].mxu1 }
 0x4bb   :  { %v10668_v51 = vadd.f32 %v10667_v19, %v10666_v20  ;;  %v10372_v52 = vadd.f32 %v10371_v8, %v10370_v21  ;;  %v10391_v23 = vadd.f32 %v10390_v15, %v10389_v57  ;;  %v10677_v37 = vrot.slane %v10676_v54, 4  ;;  %v19493_v20 = vld [vmem:[#allocation22_spill] sm:$0xff]  ;;  %v18750_v21 = vpop.f32.mrb[255].mxu1 }
 0x4bc   :  { %v10053_v41 = vsel %vm398_vm8, %v10017_v59, %v10052_v45  ;;  %v10420_v14 = vsel %vm390_vm4, %v10360_v44, %v10419_v46  ;;  %v10659_v55 = vadd.f32 %v10658_v32, %v10657_v16  ;;  %v10282_v42 = vmax.f32 %v19492_v0, 0.0 }
 0x4bd   :  { %v18743_v39 = vsel %vm400_vm9, %v10024_v26, %v10053_v41  ;;  %v10373_v28 = vrot.slane %v10372_v52, 1  ;;  %v10421_v11 = vsel %vm392_vm5, %v10367_v10, %v10420_v14  ;;  %v10392_v7 = vrot.slane %v10391_v23, 2 }
 0x4be   :  { %v10660_v24 = vrot.slane %v10659_v55, 1  ;;  %v10678_v50 = vadd.f32 %v10677_v37, %v10676_v54  ;;  %v10382_v3 = vsel %vm23_vm2, %v10282_v42, 0.0  ;;  %v10641_v45 = vmax.f32 %v19493_v20, 0.0  ;;  %v18756_v37 = vpop.f32.mrb[0].mxu1 }
 0x4bf   :  { %v10374_v46 = vadd.f32 %v10373_v28, %v10372_v52  ;;  %v10393_v16 = vadd.f32 %v10392_v7, %v10391_v23  ;;  %v10383_v57 = vrot.slane %v10382_v3, 4  ;;  %v10644_v26 = vmax.f32 %v18457_v18, 0.0  ;;  %v18761_v14 = vpop.f32.mrb[1].mxu1 }
 0x4c0   :  { %v10661_v19 = vadd.f32 %v10660_v24, %v10659_v55  ;;  %v10679_v8 = vrot.slane %v10678_v50, 2  ;;  %v10669_v10 = vsel %vm23_vm2, %v10641_v45, 0.0  ;;  %v11011_v15 = vmax.f32 %v18459_v13, 0.0 }
 0x4c1   :  { %v10422_v59 = vsel %vm394_vm6, %v10374_v46, %v10421_v11  ;;  %v10394_v54 = vrot.slane %v10393_v16, 1  ;;  %v10384_v44 = vadd.f32 %v10383_v57, %v10382_v3  ;;  %v10670_v32 = vrot.slane %v10669_v10, 4 }
 0x4c2   :  { %v10783_v41 = vsel %vm388_vm3, %v10668_v51, %v10661_v19  ;;  %v10680_v52 = vadd.f32 %v10679_v8, %v10678_v50  ;;  %v10423_v23 = vsel %vm396_vm7, %v10381_v17, %v10422_v59  ;;  %v10690_v18 = vsel %vm23_vm2, %v10644_v26, 0.0 }
 0x4c3   :  { %v10395_v55 = vadd.f32 %v10394_v54, %v10393_v16  ;;  %v10385_v0 = vrot.slane %v10384_v44, 2  ;;  %v10671_v42 = vadd.f32 %v10670_v32, %v10669_v10  ;;  %v10691_v13 = vrot.slane %v10690_v18, 4 }
 0x4c4   :  { %v10681_v28 = vrot.slane %v10680_v52, 1  ;;  %v11033_v11 = vsel %vm23_vm2, %v11011_v15, 0.0  ;;  %v10643_v7 = vmax.f32 %v18465_v53, 0.0  ;;  %v11010_v24 = vmax.f32 %v18471_v43, 0.0 }
 0x4c5   :  { %v10386_v3 = vadd.f32 %v10385_v0, %v10384_v44  ;;  %v10672_v51 = vrot.slane %v10671_v42, 2  ;;  %v10692_v50 = vadd.f32 %v10691_v13, %v10690_v18  ;;  %v11034_v20 = vrot.slane %v11033_v11, 4 }
 0x4c6   :  { %v10682_v17 = vadd.f32 %v10681_v28, %v10680_v52  ;;  %v10683_v45 = vsel %vm23_vm2, %v10643_v7, 0.0  ;;  %v11026_v46 = vsel %vm23_vm2, %v11010_v24, 0.0  ;;  %v10646_v16 = vmax.f32 %v18477_v40, 0.0 }
 0x4c7   :  { %v10387_v57 = vrot.slane %v10386_v3, 1  ;;  %v10673_v26 = vadd.f32 %v10672_v51, %v10671_v42  ;;  %v10693_v19 = vrot.slane %v10692_v50, 2  ;;  %v11035_v8 = vadd.f32 %v11034_v20, %v11033_v11 }
 0x4c8   :  { %v10684_v10 = vrot.slane %v10683_v45, 4  ;;  %v11027_v15 = vrot.slane %v11026_v46, 4  ;;  %v10704_v53 = vsel %vm23_vm2, %v10646_v16, 0.0  ;;  %v11013_v43 = vmax.f32 %v18479_v31, 0.0 }
 0x4c9   :  { %v10388_v59 = vadd.f32 %v10387_v57, %v10386_v3  ;;  %v10674_v54 = vrot.slane %v10673_v26, 1  ;;  %v10694_v44 = vadd.f32 %v10693_v19, %v10692_v50  ;;  %v11036_v32 = vrot.slane %v11035_v8, 2 }
 0x4ca   :  { %v10685_v52 = vadd.f32 %v10684_v10, %v10683_v45  ;;  %v11028_v18 = vadd.f32 %v11027_v15, %v11026_v46  ;;  %v10705_v0 = vrot.slane %v10704_v53, 4  ;;  %v11047_v13 = vsel %vm23_vm2, %v11013_v43, 0.0 }
 0x4cb   :  { %v10424_v40 = vsel %vm398_vm8, %v10388_v59, %v10423_v23  ;;  %v10675_v42 = vadd.f32 %v10674_v54, %v10673_v26  ;;  %v10695_v28 = vrot.slane %v10694_v44, 1  ;;  %v11037_v11 = vadd.f32 %v11036_v32, %v11035_v8 }
 0x4cc   :  { %v18774_v7 = vsel %vm400_vm9, %v10395_v55, %v10424_v40  ;;  %v10686_v24 = vrot.slane %v10685_v52, 2  ;;  %v11029_v51 = vrot.slane %v11028_v18, 2  ;;  %v10706_v31 = vadd.f32 %v10705_v0, %v10704_v53 }
 0x4cd   :  { %v10784_v3 = vsel %vm390_vm4, %v10675_v42, %v10783_v41  ;;  %v10696_v50 = vadd.f32 %v10695_v28, %v10694_v44  ;;  %v11038_v20 = vrot.slane %v11037_v11, 1  ;;  %v11048_v45 = vrot.slane %v11047_v13, 4 }
 0x4ce   :  { %v10687_v46 = vadd.f32 %v10686_v24, %v10685_v52  ;;  %v10785_v16 = vsel %vm392_vm5, %v10682_v17, %v10784_v3  ;;  %v11030_v57 = vadd.f32 %v11029_v51, %v11028_v18  ;;  %v10707_v19 = vrot.slane %v10706_v31, 2 }
 0x4cf   :  { %v11039_v23 = vadd.f32 %v11038_v20, %v11037_v11  ;;  %v11049_v26 = vadd.f32 %v11048_v45, %v11047_v13  ;;  %v10645_v8 = vmax.f32 %v18486_v60, 0.0  ;;  %v11012_v55 = vmax.f32 %v18491_v49, 0.0 }
 0x4d0   :  { %v10688_v10 = vrot.slane %v10687_v46, 1  ;;  %v11031_v15 = vrot.slane %v11030_v57, 1  ;;  %v10708_v43 = vadd.f32 %v10707_v19, %v10706_v31  ;;  %v10648_v53 = vmax.f32 %v18498_v61, 0.0 }
 0x4d1   :  { %v11050_v41 = vrot.slane %v11049_v26, 2  ;;  %v10697_v59 = vsel %vm23_vm2, %v10645_v8, 0.0  ;;  %v11040_v54 = vsel %vm23_vm2, %v11012_v55, 0.0  ;;  %v11015_v17 = vmax.f32 %v18500_v58, 0.0 }
 0x4d2   :  { %v10689_v44 = vadd.f32 %v10688_v10, %v10687_v46  ;;  %v11032_v32 = vadd.f32 %v11031_v15, %v11030_v57  ;;  %v10709_v52 = vrot.slane %v10708_v43, 1  ;;  %v10698_v18 = vrot.slane %v10697_v59, 4 }
 0x4d3   :  { %v11051_v0 = vadd.f32 %v11050_v41, %v11049_v26  ;;  %v11041_v60 = vrot.slane %v11040_v54, 4  ;;  %v10718_v49 = vsel %vm23_vm2, %v10648_v53, 0.0  ;;  %v11061_v13 = vsel %vm23_vm2, %v11015_v17, 0.0 }
 0x4d4   :  { %v10786_v40 = vsel %vm394_vm6, %v10689_v44, %v10785_v16  ;;  %v11154_v61 = vsel %vm388_vm3, %v11039_v23, %v11032_v32  ;;  %v10710_v42 = vadd.f32 %v10709_v52, %v10708_v43  ;;  %v10699_v28 = vadd.f32 %v10698_v18, %v10697_v59 }
 0x4d5   :  { %v11052_v11 = vrot.slane %v11051_v0, 1  ;;  %v10787_v24 = vsel %vm396_vm7, %v10696_v50, %v10786_v40  ;;  %v11042_v58 = vadd.f32 %v11041_v60, %v11040_v54  ;;  %v10719_v51 = vrot.slane %v10718_v49, 4 }
 0x4d6   :  { %v10700_v31 = vrot.slane %v10699_v28, 2  ;;  %v11062_v3 = vrot.slane %v11061_v13, 4  ;;  %v10647_v20 = vmax.f32 %v18503_v22, 0.0  ;;  %v11014_v45 = vmax.f32 %v18509_v34, 0.0 }
 0x4d7   :  { %v11053_v46 = vadd.f32 %v11052_v11, %v11051_v0  ;;  %v11043_v57 = vrot.slane %v11042_v58, 2  ;;  %v10720_v19 = vadd.f32 %v10719_v51, %v10718_v49  ;;  %v10650_v16 = vmax.f32 %v18518_v48, 0.0 }
 0x4d8   :  { %v10701_v26 = vadd.f32 %v10700_v31, %v10699_v28  ;;  %v11063_v23 = vadd.f32 %v11062_v3, %v11061_v13  ;;  %v10711_v8 = vsel %vm23_vm2, %v10647_v20, 0.0  ;;  %v11054_v55 = vsel %vm23_vm2, %v11014_v45, 0.0 }
 0x4d9   :  { %v11044_v50 = vadd.f32 %v11043_v57, %v11042_v58  ;;  %v10721_v10 = vrot.slane %v10720_v19, 2  ;;  %v10712_v15 = vrot.slane %v10711_v8, 4  ;;  %v11055_v43 = vrot.slane %v11054_v55, 4 }
 0x4da   :  { %v10702_v53 = vrot.slane %v10701_v26, 1  ;;  %v11064_v41 = vrot.slane %v11063_v23, 2  ;;  %v10732_v22 = vsel %vm23_vm2, %v10650_v16, 0.0  ;;  %v11017_v34 = vmax.f32 %v18520_v2, 0.0 }
 0x4db   :  { %v11045_v59 = vrot.slane %v11044_v50, 1  ;;  %v10722_v54 = vadd.f32 %v10721_v10, %v10720_v19  ;;  %v10713_v17 = vadd.f32 %v10712_v15, %v10711_v8  ;;  %v11056_v48 = vadd.f32 %v11055_v43, %v11054_v55 }
 0x4dc   :  { %v10703_v44 = vadd.f32 %v10702_v53, %v10701_v26  ;;  %v11065_v32 = vadd.f32 %v11064_v41, %v11063_v23  ;;  %v10733_v52 = vrot.slane %v10732_v22, 4  ;;  %v11075_v18 = vsel %vm23_vm2, %v11017_v34, 0.0  ;;  %v19494_v23 = vld [vmem:[#allocation50_spill] sm:$0xff] }
 0x4dd   :  { %v11046_v0 = vadd.f32 %v11045_v59, %v11044_v50  ;;  %v10723_v60 = vrot.slane %v10722_v54, 1  ;;  %v10714_v49 = vrot.slane %v10713_v17, 2  ;;  %v11057_v13 = vrot.slane %v11056_v48, 2 }
 0x4de   :  { %v10788_v40 = vsel %vm398_vm8, %v10703_v44, %v10787_v24  ;;  %v11066_v28 = vrot.slane %v11065_v32, 1  ;;  %v10734_v11 = vadd.f32 %v10733_v52, %v10732_v22  ;;  %v11076_v58 = vrot.slane %v11075_v18, 4  ;;  %v19495_v24 = vld [vmem:[#allocation27_spill] sm:$0xff] }
 0x4df   :  { %v18799_v2 = vsel %vm400_vm9, %v10710_v42, %v10788_v40  ;;  %v11155_v51 = vsel %vm390_vm4, %v11046_v0, %v11154_v61  ;;  %v10724_v31 = vadd.f32 %v10723_v60, %v10722_v54  ;;  %v10715_v3 = vadd.f32 %v10714_v49, %v10713_v17 }
 0x4e0   :  { %v11067_v20 = vadd.f32 %v11066_v28, %v11065_v32  ;;  %v11058_v45 = vadd.f32 %v11057_v13, %v11056_v48  ;;  %v11156_v57 = vsel %vm392_vm5, %v11053_v46, %v11155_v51  ;;  %v10735_v19 = vrot.slane %v10734_v11, 2 }
 0x4e1   :  { %v10716_v16 = vrot.slane %v10715_v3, 1  ;;  %v11077_v26 = vadd.f32 %v11076_v58, %v11075_v18  ;;  %v10649_v8 = vmax.f32 %v19494_v23, 0.0  ;;  %v11016_v55 = vmax.f32 %v19495_v24, 0.0 }
 0x4e2   :  { %v11059_v50 = vrot.slane %v11058_v45, 1  ;;  %v10736_v10 = vadd.f32 %v10735_v19, %v10734_v11  ;;  %v10652_v42 = vmax.f32 %v18535_v35, 0.0  ;;  %v11019_v15 = vmax.f32 %v18537_v27, 0.0 }
 0x4e3   :  { %v10717_v61 = vadd.f32 %v10716_v16, %v10715_v3  ;;  %v11078_v43 = vrot.slane %v11077_v26, 2  ;;  %v10725_v53 = vsel %vm23_vm2, %v10649_v8, 0.0  ;;  %v11068_v41 = vsel %vm23_vm2, %v11016_v55, 0.0 }
 0x4e4   :  { %v11060_v46 = vadd.f32 %v11059_v50, %v11058_v45  ;;  %v10737_v22 = vrot.slane %v10736_v10, 1  ;;  %v10726_v34 = vrot.slane %v10725_v53, 4  ;;  %v11069_v59 = vrot.slane %v11068_v41, 4 }
 0x4e5   :  { %v10790_v54 = vsel %vm388_vm3, %v10724_v31, %v10717_v61  ;;  %v11079_v17 = vadd.f32 %v11078_v43, %v11077_v26  ;;  %v10746_v48 = vsel %vm23_vm2, %v10652_v42, 0.0  ;;  %v11089_v44 = vsel %vm23_vm2, %v11019_v15, 0.0 }
 0x4e6   :  { %v11157_v35 = vsel %vm394_vm6, %v11060_v46, %v11156_v57  ;;  %v10738_v27 = vadd.f32 %v10737_v22, %v10736_v10  ;;  %v10727_v32 = vadd.f32 %v10726_v34, %v10725_v53  ;;  %v11070_v52 = vadd.f32 %v11069_v59, %v11068_v41 }
 0x4e7   :  { %v11080_v18 = vrot.slane %v11079_v17, 1  ;;  %v11158_v0 = vsel %vm396_vm7, %v11067_v20, %v11157_v35  ;;  %v10747_v60 = vrot.slane %v10746_v48, 4  ;;  %v11090_v49 = vrot.slane %v11089_v44, 4 }
 0x4e8   :  { %v10728_v13 = vrot.slane %v10727_v32, 2  ;;  %v11071_v40 = vrot.slane %v11070_v52, 2  ;;  %v10651_v28 = vmax.f32 %v18541_v1, 0.0  ;;  %v11018_v11 = vmax.f32 %v18551_v9, 0.0 }
 0x4e9   :  { %v11081_v58 = vadd.f32 %v11080_v18, %v11079_v17  ;;  %v10748_v51 = vadd.f32 %v10747_v60, %v10746_v48  ;;  %v11091_v31 = vadd.f32 %v11090_v49, %v11089_v44  ;;  %v10654_v3 = vmax.f32 %v18560_v47, 0.0 }
 0x4ea   :  { %v10729_v45 = vadd.f32 %v10728_v13, %v10727_v32  ;;  %v11072_v57 = vadd.f32 %v11071_v40, %v11070_v52  ;;  %v10739_v19 = vsel %vm23_vm2, %v10651_v28, 0.0  ;;  %v11082_v16 = vsel %vm23_vm2, %v11018_v11, 0.0  ;;  %v19496_v11 = vld [vmem:[#allocation84_spill] sm:$0xff] }
 0x4eb   :  { %v10749_v20 = vrot.slane %v10748_v51, 2  ;;  %v11092_v26 = vrot.slane %v11091_v31, 2  ;;  %v10740_v23 = vrot.slane %v10739_v19, 4  ;;  %v11083_v8 = vrot.slane %v11082_v16, 4 }
 0x4ec   :  { %v10730_v24 = vrot.slane %v10729_v45, 1  ;;  %v11073_v55 = vrot.slane %v11072_v57, 1  ;;  %v10760_v1 = vsel %vm23_vm2, %v10654_v3, 0.0  ;;  %v11021_v9 = vmax.f32 %v18562_v62, 0.0 }
 0x4ed   :  { %v10750_v50 = vadd.f32 %v10749_v20, %v10748_v51  ;;  %v11093_v10 = vadd.f32 %v11092_v26, %v11091_v31  ;;  %v10741_v42 = vadd.f32 %v10740_v23, %v10739_v19  ;;  %v11084_v47 = vadd.f32 %v11083_v8, %v11082_v16 }
 0x4ee   :  { %v10731_v15 = vadd.f32 %v10730_v24, %v10729_v45  ;;  %v11074_v61 = vadd.f32 %v11073_v55, %v11072_v57  ;;  %v10761_v43 = vrot.slane %v10760_v1, 4  ;;  %v11103_v53 = vsel %vm23_vm2, %v11021_v9, 0.0 }
 0x4ef   :  { %v10751_v41 = vrot.slane %v10750_v50, 1  ;;  %v11094_v46 = vrot.slane %v11093_v10, 1  ;;  %v10742_v22 = vrot.slane %v10741_v42, 2  ;;  %v11085_v34 = vrot.slane %v11084_v47, 2 }
 0x4f0   :  { %v10791_v59 = vsel %vm390_vm4, %v10731_v15, %v10790_v54  ;;  %v11159_v17 = vsel %vm398_vm8, %v11074_v61, %v11158_v0  ;;  %v10762_v48 = vadd.f32 %v10761_v43, %v10760_v1  ;;  %v11104_v44 = vrot.slane %v11103_v53, 4 }
 0x4f1   :  { %v18825_v62 = vsel %vm400_vm9, %v11081_v58, %v11159_v17  ;;  %v10752_v35 = vadd.f32 %v10751_v41, %v10750_v50  ;;  %v11095_v32 = vadd.f32 %v11094_v46, %v11093_v10  ;;  %v10743_v52 = vadd.f32 %v10742_v22, %v10741_v42  ;;  %v19497_v58 = vld [vmem:[#allocation85_spill] sm:$0xff]  ;;  %v19499_v46 = vld [vmem:[#allocation76_spill] sm:$0xff] }
 0x4f2   :  { %v10792_v18 = vsel %vm392_vm5, %v10738_v27, %v10791_v59  ;;  %v11086_v60 = vadd.f32 %v11085_v34, %v11084_v47  ;;  %v10763_v49 = vrot.slane %v10762_v48, 2  ;;  %v11105_v13 = vadd.f32 %v11104_v44, %v11103_v53  ;;  %v19498_v53 = vld [vmem:[#allocation69_spill] sm:$0xff] }
 0x4f3   :  { %v10744_v40 = vrot.slane %v10743_v52, 1  ;;  %v10653_v28 = vmax.f32 %v18568_v4, 0.0  ;;  %v11020_v54 = vmax.f32 %v18573_v29, 0.0  ;;  %v11023_v0 = vmax.f32 %v19496_v11, 0.0 }
 0x4f4   :  { %v11087_v51 = vrot.slane %v11086_v60, 1  ;;  %v10764_v31 = vadd.f32 %v10763_v49, %v10762_v48  ;;  %v11106_v3 = vrot.slane %v11105_v13, 2  ;;  %v11382_v45 = vmax.f32 %v19497_v58, 0.0  ;;  %v19500_v48 = vld [vmem:[#allocation77_spill] sm:$0xff] }
 0x4f5   :  { %v10745_v57 = vadd.f32 %v10744_v40, %v10743_v52  ;;  %v10753_v19 = vsel %vm23_vm2, %v10653_v28, 0.0  ;;  %v11096_v27 = vsel %vm23_vm2, %v11020_v54, 0.0  ;;  %v11117_v16 = vsel %vm23_vm2, %v11023_v0, 0.0 }
 0x4f6   :  { %v11088_v20 = vadd.f32 %v11087_v51, %v11086_v60  ;;  %v10765_v26 = vrot.slane %v10764_v31, 1  ;;  %v11107_v23 = vadd.f32 %v11106_v3, %v11105_v13  ;;  %v10754_v4 = vrot.slane %v10753_v19, 4 }
 0x4f7   :  { %v10793_v29 = vsel %vm394_vm6, %v10745_v57, %v10792_v18  ;;  %v11097_v8 = vrot.slane %v11096_v27, 4  ;;  %v11118_v24 = vrot.slane %v11117_v16, 4  ;;  %v11404_v55 = vsel %vm23_vm2, %v11382_v45, 0.0 }
 0x4f8   :  { %v11161_v1 = vsel %vm388_vm3, %v11095_v32, %v11088_v20  ;;  %v10766_v9 = vadd.f32 %v10765_v26, %v10764_v31  ;;  %v10755_v50 = vadd.f32 %v10754_v4, %v10753_v19  ;;  %v10794_v10 = vsel %vm396_vm7, %v10752_v35, %v10793_v29  ;;  %v19501_v35 = vld [vmem:[#allocation78_spill] sm:$0xff] }
 0x4f9   :  { %v11098_v42 = vadd.f32 %v11097_v8, %v11096_v27  ;;  %v11119_v47 = vadd.f32 %v11118_v24, %v11117_v16  ;;  %v11405_v15 = vrot.slane %v11404_v55, 4  ;;  %v11108_v61 = vrot.slane %v11107_v23, 1 }
 0x4fa   :  { %v10756_v43 = vrot.slane %v10755_v50, 2  ;;  %v11022_v41 = vmax.f32 %v19498_v53, 0.0  ;;  %v11381_v22 = vmax.f32 %v19499_v46, 0.0  ;;  %v11025_v44 = vmax.f32 %v19500_v48, 0.0 }
 0x4fb   :  { %v11099_v34 = vrot.slane %v11098_v42, 2  ;;  %v11120_v59 = vrot.slane %v11119_v47, 2  ;;  %v11406_v17 = vadd.f32 %v11405_v15, %v11404_v55  ;;  %v11384_v60 = vmax.f32 %v19501_v35, 0.0 }
 0x4fc   :  { %v10757_v52 = vadd.f32 %v10756_v43, %v10755_v50  ;;  %v11110_v32 = vsel %vm23_vm2, %v11022_v41, 0.0  ;;  %v11397_v18 = vsel %vm23_vm2, %v11381_v22, 0.0  ;;  %v11131_v0 = vsel %vm23_vm2, %v11025_v44, 0.0  ;;  %v19502_v22 = vld [vmem:[#allocation71_spill] sm:$0xff] }
 0x4fd   :  { %v11100_v49 = vadd.f32 %v11099_v34, %v11098_v42  ;;  %v11121_v13 = vadd.f32 %v11120_v59, %v11119_v47  ;;  %v11407_v40 = vrot.slane %v11406_v17, 2  ;;  %v11111_v28 = vrot.slane %v11110_v32, 4 }
 0x4fe   :  { %v10758_v54 = vrot.slane %v10757_v52, 1  ;;  %v11398_v11 = vrot.slane %v11397_v18, 4  ;;  %v11418_v51 = vsel %vm23_vm2, %v11384_v60, 0.0  ;;  %v11109_v31 = vadd.f32 %v11108_v61, %v11107_v23 }
 0x4ff   :  { %v11101_v3 = vrot.slane %v11100_v49, 1  ;;  %v11408_v58 = vadd.f32 %v11407_v40, %v11406_v17  ;;  %v11112_v45 = vadd.f32 %v11111_v28, %v11110_v32  ;;  %v11132_v27 = vrot.slane %v11131_v0, 4 }
 0x500   :  { %v10759_v57 = vadd.f32 %v10758_v54, %v10757_v52  ;;  %v11399_v19 = vadd.f32 %v11398_v11, %v11397_v18  ;;  %v11419_v16 = vrot.slane %v11418_v51, 4  ;;  %v11122_v26 = vrot.slane %v11121_v13, 1 }
 0x501   :  { %v11102_v20 = vadd.f32 %v11101_v3, %v11100_v49  ;;  %v11409_v4 = vrot.slane %v11408_v58, 1  ;;  %v11113_v29 = vrot.slane %v11112_v45, 2  ;;  %v11133_v55 = vadd.f32 %v11132_v27, %v11131_v0  ;;  %v19504_v27 = vld [vmem:[#allocation73_spill] sm:$0xff] }
 0x502   :  { %v10795_v8 = vsel %vm398_vm8, %v10759_v57, %v10794_v10  ;;  %v11400_v24 = vrot.slane %v11399_v19, 2  ;;  %v11420_v50 = vadd.f32 %v11419_v16, %v11418_v51  ;;  %v11024_v34 = vmax.f32 %v19502_v22, 0.0  ;;  %v19503_v57 = vld [vmem:[#allocation79_spill] sm:$0xff] }
 0x503   :  { %v18849_v42 = vsel %vm400_vm9, %v10766_v9, %v10795_v8  ;;  %v11162_v23 = vsel %vm390_vm4, %v11102_v20, %v11161_v1  ;;  %v11410_v47 = vadd.f32 %v11409_v4, %v11408_v58  ;;  %v11114_v15 = vadd.f32 %v11113_v29, %v11112_v45  ;;  %v19505_v29 = vld [vmem:[#allocation62_spill] sm:$0xff] }
 0x504   :  { %v11163_v61 = vsel %vm392_vm5, %v11109_v31, %v11162_v23  ;;  %v11401_v43 = vadd.f32 %v11400_v24, %v11399_v19  ;;  %v11134_v53 = vrot.slane %v11133_v55, 2  ;;  %v11421_v41 = vrot.slane %v11420_v50, 2 }
 0x505   :  { %v11115_v46 = vrot.slane %v11114_v15, 1  ;;  %v11383_v10 = vmax.f32 %v18614_v63, 0.0  ;;  %v11386_v59 = vmax.f32 %v18623_v25, 0.0  ;;  %v11753_v44 = vmax.f32 %v18625_v6, 0.0 }
 0x506   :  { %v11402_v17 = vrot.slane %v11401_v43, 1  ;;  %v11135_v48 = vadd.f32 %v11134_v53, %v11133_v55  ;;  %v11422_v9 = vadd.f32 %v11421_v41, %v11420_v50  ;;  %v11124_v52 = vsel %vm23_vm2, %v11024_v34, 0.0 }
 0x507   :  { %v11116_v1 = vadd.f32 %v11115_v46, %v11114_v15  ;;  %v11411_v32 = vsel %vm23_vm2, %v11383_v10, 0.0  ;;  %v11432_v18 = vsel %vm23_vm2, %v11386_v59, 0.0  ;;  %v11123_v35 = vadd.f32 %v11122_v26, %v11121_v13 }
 0x508   :  { %v11403_v60 = vadd.f32 %v11402_v17, %v11401_v43  ;;  %v11125_v49 = vrot.slane %v11124_v52, 4  ;;  %v11412_v63 = vrot.slane %v11411_v32, 4  ;;  %v11433_v28 = vrot.slane %v11432_v18, 4 }
 0x509   :  { %v11164_v40 = vsel %vm394_vm6, %v11116_v1, %v11163_v61  ;;  %v11775_v25 = vsel %vm23_vm2, %v11753_v44, 0.0  ;;  %v11136_v11 = vrot.slane %v11135_v48, 1  ;;  %v11423_v6 = vrot.slane %v11422_v9, 1 }
 0x50a   :  { %v11525_v54 = vsel %vm388_vm3, %v11410_v47, %v11403_v60  ;;  %v11126_v0 = vadd.f32 %v11125_v49, %v11124_v52  ;;  %v11165_v51 = vsel %vm396_vm7, %v11123_v35, %v11164_v40  ;;  %v11413_v31 = vadd.f32 %v11412_v63, %v11411_v32 }
 0x50b   :  { %v11434_v3 = vadd.f32 %v11433_v28, %v11432_v18  ;;  %v11776_v58 = vrot.slane %v11775_v25, 4  ;;  %v11385_v13 = vmax.f32 %v18630_v36, 0.0  ;;  %v11752_v19 = vmax.f32 %v19503_v57, 0.0  ;;  %v19507_v57 = vld [vmem:[#allocation35_spill] sm:$0xff] }
 0x50c   :  { %v11127_v45 = vrot.slane %v11126_v0, 2  ;;  %v11388_v16 = vmax.f32 %v19504_v27, 0.0  ;;  %v11414_v20 = vrot.slane %v11413_v31, 2  ;;  %v11755_v8 = vmax.f32 %v19505_v29, 0.0 }
 0x50d   :  { %v11435_v26 = vrot.slane %v11434_v3, 2  ;;  %v11777_v4 = vadd.f32 %v11776_v58, %v11775_v25  ;;  %v11425_v55 = vsel %vm23_vm2, %v11385_v13, 0.0  ;;  %v11768_v50 = vsel %vm23_vm2, %v11752_v19, 0.0  ;;  %v19508_v19 = vld [vmem:[#allocation64_spill] sm:$0xff] }
 0x50e   :  { %v11128_v24 = vadd.f32 %v11127_v45, %v11126_v0  ;;  %v11446_v23 = vsel %vm23_vm2, %v11388_v16, 0.0  ;;  %v11137_v47 = vadd.f32 %v11136_v11, %v11135_v48  ;;  %v11415_v15 = vadd.f32 %v11414_v20, %v11413_v31  ;;  %v19506_v45 = vld [vmem:[#allocation33_spill] sm:$0xff] }
 0x50f   :  { %v11778_v61 = vrot.slane %v11777_v4, 2  ;;  %v11426_v36 = vrot.slane %v11425_v55, 4  ;;  %v11769_v53 = vrot.slane %v11768_v50, 4  ;;  %v11447_v41 = vrot.slane %v11446_v23, 4 }
 0x510   :  { %v11129_v43 = vrot.slane %v11128_v24, 1  ;;  %v11789_v46 = vsel %vm23_vm2, %v11755_v8, 0.0  ;;  %v11416_v22 = vrot.slane %v11415_v15, 1  ;;  %v11436_v34 = vadd.f32 %v11435_v26, %v11434_v3 }
 0x511   :  { %v11779_v10 = vadd.f32 %v11778_v61, %v11777_v4  ;;  %v11427_v59 = vadd.f32 %v11426_v36, %v11425_v55  ;;  %v11770_v44 = vadd.f32 %v11769_v53, %v11768_v50  ;;  %v11448_v1 = vadd.f32 %v11447_v41, %v11446_v23  ;;  %v19509_v4 = vld [vmem:[#allocation65_spill] sm:$0xff] }
 0x512   :  { %v11130_v17 = vadd.f32 %v11129_v43, %v11128_v24  ;;  %v11790_v52 = vrot.slane %v11789_v46, 4  ;;  %v11424_v32 = vadd.f32 %v11423_v6, %v11422_v9  ;;  %v11417_v18 = vadd.f32 %v11416_v22, %v11415_v15 }
 0x513   :  { %v11780_v35 = vrot.slane %v11779_v10, 1  ;;  %v11428_v48 = vrot.slane %v11427_v59, 2  ;;  %v11771_v49 = vrot.slane %v11770_v44, 2  ;;  %v11449_v40 = vrot.slane %v11448_v1, 2 }
 0x514   :  { %v11166_v60 = vsel %vm398_vm8, %v11130_v17, %v11165_v51  ;;  %v11791_v63 = vadd.f32 %v11790_v52, %v11789_v46  ;;  %v11526_v25 = vsel %vm390_vm4, %v11417_v18, %v11525_v54  ;;  %v11437_v11 = vrot.slane %v11436_v34, 1 }
 0x515   :  { %v18874_v28 = vsel %vm400_vm9, %v11137_v47, %v11166_v60  ;;  %v11429_v0 = vadd.f32 %v11428_v48, %v11427_v59  ;;  %v11527_v31 = vsel %vm392_vm5, %v11424_v32, %v11526_v25  ;;  %v11772_v3 = vadd.f32 %v11771_v49, %v11770_v44  ;;  %v19511_v32 = vld [vmem:[#allocation81_spill] sm:$0xff]  ;;  %v19513_v60 = vld [vmem:[#allocation86_spill] sm:$0xff] }
 0x516   :  { %v11450_v58 = vadd.f32 %v11449_v40, %v11448_v1  ;;  %v11792_v9 = vrot.slane %v11791_v63, 2  ;;  %v11387_v13 = vmax.f32 %v19506_v45, 0.0  ;;  %v11754_v51 = vmax.f32 %v19507_v57, 0.0  ;;  %v19510_v1 = vld [vmem:[#allocation80_spill] sm:$0xff] }
 0x517   :  { %v11430_v6 = vrot.slane %v11429_v0, 1  ;;  %v11390_v27 = vmax.f32 %v19508_v19, 0.0  ;;  %v11781_v16 = vadd.f32 %v11780_v35, %v11779_v10  ;;  %v11773_v20 = vrot.slane %v11772_v3, 1  ;;  %v19512_v35 = vld [vmem:[#allocation82_spill] sm:$0xff] }
 0x518   :  { %v11793_v26 = vadd.f32 %v11792_v9, %v11791_v63  ;;  %v11757_v29 = vmax.f32 %v19509_v4, 0.0  ;;  %v11439_v8 = vsel %vm23_vm2, %v11387_v13, 0.0  ;;  %v11782_v24 = vsel %vm23_vm2, %v11754_v51, 0.0 }
 0x519   :  { %v11431_v54 = vadd.f32 %v11430_v6, %v11429_v0  ;;  %v11460_v55 = vsel %vm23_vm2, %v11390_v27, 0.0  ;;  %v11438_v50 = vadd.f32 %v11437_v11, %v11436_v34  ;;  %v11774_v23 = vadd.f32 %v11773_v20, %v11772_v3 }
 0x51a   :  { %v11451_v47 = vrot.slane %v11450_v58, 1  ;;  %v11440_v15 = vrot.slane %v11439_v8, 4  ;;  %v11783_v36 = vrot.slane %v11782_v24, 4  ;;  %v11461_v43 = vrot.slane %v11460_v55, 4 }
 0x51b   :  { %v11528_v61 = vsel %vm394_vm6, %v11431_v54, %v11527_v31  ;;  %v11803_v53 = vsel %vm23_vm2, %v11757_v29, 0.0  ;;  %v11896_v41 = vsel %vm388_vm3, %v11781_v16, %v11774_v23  ;;  %v11794_v46 = vrot.slane %v11793_v26, 1 }
 0x51c   :  { %v11441_v22 = vadd.f32 %v11440_v15, %v11439_v8  ;;  %v11529_v10 = vsel %vm396_vm7, %v11438_v50, %v11528_v61  ;;  %v11784_v59 = vadd.f32 %v11783_v36, %v11782_v24  ;;  %v11462_v17 = vadd.f32 %v11461_v43, %v11460_v55 }
 0x51d   :  { %v11804_v44 = vrot.slane %v11803_v53, 4  ;;  %v11389_v34 = vmax.f32 %v19510_v1, 0.0  ;;  %v11756_v18 = vmax.f32 %v19511_v32, 0.0  ;;  %v11392_v48 = vmax.f32 %v19512_v35, 0.0 }
 0x51e   :  { %v11442_v52 = vrot.slane %v11441_v22, 2  ;;  %v11759_v49 = vmax.f32 %v19513_v60, 0.0  ;;  %v11785_v40 = vrot.slane %v11784_v59, 2  ;;  %v11463_v63 = vrot.slane %v11462_v17, 2 }
 0x51f   :  { %v11805_v25 = vadd.f32 %v11804_v44, %v11803_v53  ;;  %v11453_v11 = vsel %vm23_vm2, %v11389_v34, 0.0  ;;  %v11796_v3 = vsel %vm23_vm2, %v11756_v18, 0.0  ;;  %v11474_v9 = vsel %vm23_vm2, %v11392_v48, 0.0 }
 0x520   :  { %v11443_v0 = vadd.f32 %v11442_v52, %v11441_v22  ;;  %v11454_v31 = vrot.slane %v11453_v11, 4  ;;  %v11786_v6 = vadd.f32 %v11785_v40, %v11784_v59  ;;  %v11464_v45 = vadd.f32 %v11463_v63, %v11462_v17 }
 0x521   :  { %v11806_v13 = vrot.slane %v11805_v25, 2  ;;  %v11797_v57 = vrot.slane %v11796_v3, 4  ;;  %v11475_v27 = vrot.slane %v11474_v9, 4  ;;  %v11817_v16 = vsel %vm23_vm2, %v11759_v49, 0.0 }
 0x522   :  { %v11444_v51 = vrot.slane %v11443_v0, 1  ;;  %v11455_v19 = vadd.f32 %v11454_v31, %v11453_v11  ;;  %v11787_v20 = vrot.slane %v11786_v6, 1  ;;  %v11465_v4 = vrot.slane %v11464_v45, 1 }
 0x523   :  { %v11807_v29 = vadd.f32 %v11806_v13, %v11805_v25  ;;  %v11798_v54 = vadd.f32 %v11797_v57, %v11796_v3  ;;  %v11476_v55 = vadd.f32 %v11475_v27, %v11474_v9  ;;  %v11818_v50 = vrot.slane %v11817_v16, 4 }
 0x524   :  { %v11445_v8 = vadd.f32 %v11444_v51, %v11443_v0  ;;  %v11456_v24 = vrot.slane %v11455_v19, 2  ;;  %v11452_v23 = vadd.f32 %v11451_v47, %v11450_v58  ;;  %v11795_v15 = vadd.f32 %v11794_v46, %v11793_v26  ;;  %v19514_v47 = vld [vmem:[#allocation47_spill] sm:$0xff] }
 0x525   :  { %v11788_v61 = vadd.f32 %v11787_v20, %v11786_v6  ;;  %v11799_v36 = vrot.slane %v11798_v54, 2  ;;  %v11477_v22 = vrot.slane %v11476_v55, 2  ;;  %v11819_v59 = vadd.f32 %v11818_v50, %v11817_v16  ;;  %v19515_v16 = vld [vmem:[#allocation15_spill] sm:$0xff] }
 0x526   :  { %v11530_v43 = vsel %vm398_vm8, %v11445_v8, %v11529_v10  ;;  %v11457_v53 = vadd.f32 %v11456_v24, %v11455_v19  ;;  %v11466_v1 = vadd.f32 %v11465_v4, %v11464_v45  ;;  %v11808_v52 = vrot.slane %v11807_v29, 1  ;;  %v19517_v24 = vld [vmem:[#allocation87_spill] sm:$0xff] }
 0x527   :  { %v18899_v17 = vsel %vm400_vm9, %v11452_v23, %v11530_v43  ;;  %v11897_v44 = vsel %vm390_vm4, %v11788_v61, %v11896_v41  ;;  %v11800_v34 = vadd.f32 %v11799_v36, %v11798_v54  ;;  %v11478_v58 = vadd.f32 %v11477_v22, %v11476_v55  ;;  %v19516_v54 = vld [vmem:[#allocation74_spill] sm:$0xff] }
 0x528   :  { %v11458_v32 = vrot.slane %v11457_v53, 1  ;;  %v11898_v18 = vsel %vm392_vm5, %v11795_v15, %v11897_v44  ;;  %v11391_v46 = vmax.f32 %v19514_v47, 0.0  ;;  %v11758_v10 = vmax.f32 %v18696_v12, 0.0 }
 0x529   :  { %v11801_v26 = vrot.slane %v11800_v34, 1  ;;  %v11394_v35 = vmax.f32 %v18708_v33, 0.0  ;;  %v11820_v60 = vrot.slane %v11819_v59, 2  ;;  %v11761_v49 = vmax.f32 %v18710_v30, 0.0 }
 0x52a   :  { %v11459_v48 = vadd.f32 %v11458_v32, %v11457_v53  ;;  %v11467_v41 = vsel %vm23_vm2, %v11391_v46, 0.0  ;;  %v11810_v63 = vsel %vm23_vm2, %v11758_v10, 0.0  ;;  %v11809_v11 = vadd.f32 %v11808_v52, %v11807_v29 }
 0x52b   :  { %v11802_v40 = vadd.f32 %v11801_v26, %v11800_v34  ;;  %v11488_v25 = vsel %vm23_vm2, %v11394_v35, 0.0  ;;  %v11479_v31 = vrot.slane %v11478_v58, 1  ;;  %v11468_v3 = vrot.slane %v11467_v41, 4 }
 0x52c   :  { %v11532_v0 = vsel %vm388_vm3, %v11466_v1, %v11459_v48  ;;  %v11811_v9 = vrot.slane %v11810_v63, 4  ;;  %v11489_v33 = vrot.slane %v11488_v25, 4  ;;  %v11831_v6 = vsel %vm23_vm2, %v11761_v49, 0.0 }
 0x52d   :  { %v11899_v12 = vsel %vm394_vm6, %v11802_v40, %v11898_v18  ;;  %v11821_v45 = vadd.f32 %v11820_v60, %v11819_v59  ;;  %v11469_v30 = vadd.f32 %v11468_v3, %v11467_v41  ;;  %v11832_v57 = vrot.slane %v11831_v6, 4 }
 0x52e   :  { %v11900_v13 = vsel %vm396_vm7, %v11809_v11, %v11899_v12  ;;  %v11812_v51 = vadd.f32 %v11811_v9, %v11810_v63  ;;  %v11490_v19 = vadd.f32 %v11489_v33, %v11488_v25  ;;  %v11393_v27 = vmax.f32 %v18712_v38, 0.0 }
 0x52f   :  { %v11760_v20 = vmax.f32 %v19515_v16, 0.0  ;;  %v11470_v4 = vrot.slane %v11469_v30, 2  ;;  %v11833_v29 = vadd.f32 %v11832_v57, %v11831_v6  ;;  %v11396_v8 = vmax.f32 %v19516_v54, 0.0 }
 0x530   :  { %v11763_v55 = vmax.f32 %v19517_v24, 0.0  ;;  %v11813_v50 = vrot.slane %v11812_v51, 2  ;;  %v11491_v23 = vrot.slane %v11490_v19, 2  ;;  %v11481_v15 = vsel %vm23_vm2, %v11393_v27, 0.0 }
 0x531   :  { %v11824_v61 = vsel %vm23_vm2, %v11760_v20, 0.0  ;;  %v11471_v36 = vadd.f32 %v11470_v4, %v11469_v30  ;;  %v11834_v43 = vrot.slane %v11833_v29, 2  ;;  %v11482_v53 = vrot.slane %v11481_v15, 4 }
 0x532   :  { %v11825_v22 = vrot.slane %v11824_v61, 4  ;;  %v11822_v59 = vrot.slane %v11821_v45, 1  ;;  %v11814_v38 = vadd.f32 %v11813_v50, %v11812_v51  ;;  %v11502_v44 = vsel %vm23_vm2, %v11396_v8, 0.0 }
 0x533   :  { %v11845_v1 = vsel %vm23_vm2, %v11763_v55, 0.0  ;;  %v11472_v34 = vrot.slane %v11471_v36, 1  ;;  %v11835_v52 = vadd.f32 %v11834_v43, %v11833_v29  ;;  %v11483_v32 = vadd.f32 %v11482_v53, %v11481_v15 }
 0x534   :  { %v11826_v18 = vadd.f32 %v11825_v22, %v11824_v61  ;;  %v11815_v26 = vrot.slane %v11814_v38, 1  ;;  %v11492_v47 = vadd.f32 %v11491_v23, %v11490_v19  ;;  %v11503_v46 = vrot.slane %v11502_v44, 4 }
 0x535   :  { %v11846_v10 = vrot.slane %v11845_v1, 4  ;;  %v11473_v35 = vadd.f32 %v11472_v34, %v11471_v36  ;;  %v11836_v48 = vrot.slane %v11835_v52, 1  ;;  %v11484_v60 = vrot.slane %v11483_v32, 2 }
 0x536   :  { %v11827_v49 = vrot.slane %v11826_v18, 2  ;;  %v11480_v40 = vadd.f32 %v11479_v31, %v11478_v58  ;;  %v11816_v41 = vadd.f32 %v11815_v26, %v11814_v38  ;;  %v11504_v63 = vadd.f32 %v11503_v46, %v11502_v44  ;;  %v19518_v58 = vld [vmem:[#allocation88_spill] sm:$0xff] }
 0x537   :  { %v11847_v25 = vadd.f32 %v11846_v10, %v11845_v1  ;;  %v11823_v11 = vadd.f32 %v11822_v59, %v11821_v45  ;;  %v11533_v3 = vsel %vm390_vm4, %v11473_v35, %v11532_v0  ;;  %v11485_v12 = vadd.f32 %v11484_v60, %v11483_v32 }
 0x538   :  { %v11828_v9 = vadd.f32 %v11827_v49, %v11826_v18  ;;  %v11901_v33 = vsel %vm398_vm8, %v11816_v41, %v11900_v13  ;;  %v11493_v6 = vrot.slane %v11492_v47, 1  ;;  %v11837_v30 = vadd.f32 %v11836_v48, %v11835_v52 }
 0x539   :  { %v11534_v57 = vsel %vm392_vm5, %v11480_v40, %v11533_v3  ;;  %v18926_v51 = vsel %vm400_vm9, %v11823_v11, %v11901_v33  ;;  %v11486_v19 = vrot.slane %v11485_v12, 1  ;;  %v11395_v31 = vmax.f32 %v19518_v58, 0.0 }
 0x53a   :  { %v11829_v27 = vrot.slane %v11828_v9, 1  ;;  %v11505_v16 = vrot.slane %v11504_v63, 2  ;;  %v11848_v20 = vrot.slane %v11847_v25, 2  ;;  %v11762_v45 = vmax.f32 %v18737_v5, 0.0 }
 0x53b   :  { %v11765_v0 = vmax.f32 %v18746_v56, 0.0  ;;  %v11487_v4 = vadd.f32 %v11486_v19, %v11485_v12  ;;  %v11495_v13 = vsel %vm23_vm2, %v11395_v31, 0.0  ;;  %v11764_v54 = vmax.f32 %v18750_v21, 0.0  ;;  %v13992_v21 = vld [vmem:[%s19050_s2] sm:$0xff]  }
 0x53c   :  { %v11830_v29 = vadd.f32 %v11829_v27, %v11828_v9  ;;  %v11494_v8 = vadd.f32 %v11493_v6, %v11492_v47  ;;  %v11496_v24 = vrot.slane %v11495_v13, 4  ;;  %v11838_v55 = vsel %vm23_vm2, %v11762_v45, 0.0 }
 0x53d   :  { %v11535_v50 = vsel %vm394_vm6, %v11487_v4, %v11534_v57  ;;  %v11839_v15 = vrot.slane %v11838_v55, 4  ;;  %v11859_v61 = vsel %vm23_vm2, %v11765_v0, 0.0  ;;  %v11506_v5 = vadd.f32 %v11505_v16, %v11504_v63 }
 0x53e   :  { %v11903_v23 = vsel %vm388_vm3, %v11837_v30, %v11830_v29  ;;  %v11849_v36 = vadd.f32 %v11848_v20, %v11847_v25  ;;  %v11497_v56 = vadd.f32 %v11496_v24, %v11495_v13  ;;  %v11536_v43 = vsel %vm396_vm7, %v11494_v8, %v11535_v50  ;;  %v13994_v30 = vld [vmem:[%s19050_s2 + $0x10] sm:$0xff]   ;;  %v19519_v50 = vld [vmem:[#allocation6_spill] sm:$0xff] }
 0x53f   :  { %v11840_v53 = vadd.f32 %v11839_v15, %v11838_v55  ;;  %v11860_v22 = vrot.slane %v11859_v61, 4  ;;  %v11852_v59 = vsel %vm23_vm2, %v11764_v54, 0.0  ;;  %v11767_v38 = vmax.f32 %v18756_v37, 0.0  ;;  %v13993_v37 = vld [vmem:[%s19050_s2 + $0x8] sm:$0xff]  }
 0x540   :  { %v11498_v44 = vrot.slane %v11497_v56, 2  ;;  %v11853_v1 = vrot.slane %v11852_v59, 4  ;;  %v11766_v34 = vmax.f32 %v18761_v14, 0.0  ;;  %v14024_v26 = vmov 0.0  }
 0x541   :  { %v11841_v52 = vrot.slane %v11840_v53, 2  ;;  %v11861_v32 = vadd.f32 %v11860_v22, %v11859_v61  ;;  %v11873_v18 = vsel %vm23_vm2, %v11767_v38, 0.0  ;;  %24 = vst.msk [vmem:[#allocation2] sm:$0xff] %vm23_vm2, %v14024_v26  ;;  %25 = vst.msk [vmem:[#allocation2 + $0x8] sm:$0xff] %vm23_vm2, %v14024_v26  ;;  %13973 = vmatprep.subr.bf16.mxu0 %v14024_v26  ;;  %13981 = vmatprep.mubr.msk.bf16.mxu0 %vm14025_vm10, %v14024_v26  ;;  %v11507_v14 = vrot.slane %v11506_v5, 1  ;;  %v13995_v61 = vld [vmem:[%s19050_s2 + $0x18] sm:$0xff]  }
 0x542   :  { %v11499_v47 = vadd.f32 %v11498_v44, %v11497_v56  ;;  %v11854_v46 = vadd.f32 %v11853_v1, %v11852_v59  ;;  %v11874_v10 = vrot.slane %v11873_v18, 4  ;;  %v11866_v35 = vsel %vm23_vm2, %v11766_v34, 0.0  ;;  %13974 = vmatpush3.bf16.msra.mxu0 %v13992_v21  ;;  %v19520_v56 = vld [vmem:[#allocation12_spill] sm:$0xff]  ;;  %v19522_v38 = vld [vmem:[#allocation23_spill] sm:$0xff]  ;;  %v19523_v34 = vld [vmem:[#allocation34_spill] sm:$0xff] }
 0x543   :  { %v11842_v48 = vadd.f32 %v11841_v52, %v11840_v53  ;;  %v11862_v60 = vrot.slane %v11861_v32, 2  ;;  %v11867_v49 = vrot.slane %v11866_v35, 4  ;;  %13975 = vmatprep.subr.bf16.mxu0 %v14024_v26  ;;  %v11850_v40 = vrot.slane %v11849_v36, 1 }
 0x544   :  { %v11500_v41 = vrot.slane %v11499_v47, 1  ;;  %v11855_v63 = vrot.slane %v11854_v46, 2  ;;  %v11875_v25 = vadd.f32 %v11874_v10, %v11873_v18  ;;  %v11508_v57 = vadd.f32 %v11507_v14, %v11506_v5  ;;  %v19524_v18 = vld [vmem:[#allocation8_spill] sm:$0xff]  ;;  %v19527_v14 = vld [vmem:[#allocation13_spill] sm:$0xff] }
 0x545   :  { %v11843_v11 = vrot.slane %v11842_v48, 1  ;;  %v11863_v3 = vadd.f32 %v11862_v60, %v11861_v32  ;;  %v11868_v12 = vadd.f32 %v11867_v49, %v11866_v35  ;;  %v11851_v31 = vadd.f32 %v11850_v40, %v11849_v36  ;;  %v19526_v35 = vld [vmem:[#allocation9_spill] sm:$0xff]  ;;  %v19528_v60 = vld [vmem:[#allocation26_spill] sm:$0xff] }
 0x546   :  { %v11501_v9 = vadd.f32 %v11500_v41, %v11499_v47  ;;  %v11856_v33 = vadd.f32 %v11855_v63, %v11854_v46  ;;  %v11876_v6 = vrot.slane %v11875_v25, 2  ;;  %13976 = vmatpush3.bf16.msra.mxu0 %v13993_v37  ;;  %v19529_v40 = vld [vmem:[#allocation21_spill] sm:$0xff]  ;;  %v19530_v63 = vld [vmem:[#allocation44_spill] sm:$0xff] }
 0x547   :  { %v11844_v19 = vadd.f32 %v11843_v11, %v11842_v48  ;;  %v11864_v27 = vrot.slane %v11863_v3, 1  ;;  %v11869_v58 = vrot.slane %v11868_v12, 2  ;;  %13977 = vmatprep.subr.bf16.mxu0 %v14024_v26  ;;  %v19531_v11 = vld [vmem:[#allocation36_spill] sm:$0xff] }
 0x548   :  { %v11537_v16 = vsel %vm398_vm8, %v11501_v9, %v11536_v43  ;;  %v11857_v20 = vrot.slane %v11856_v33, 1  ;;  %v11877_v45 = vadd.f32 %v11876_v6, %v11875_v25  ;;  %v27_v0 = vld [vmem:[#allocation2] sm:$0xff]  ;;  %v28_v4 = vld [vmem:[#allocation2 + $0x8] sm:$0xff] }
 0x549   :  { %v18956_v29 = vsel %vm400_vm9, %v11508_v57, %v11537_v16  ;;  %v11904_v13 = vsel %vm390_vm4, %v11844_v19, %v11903_v23  ;;  %v11870_v54 = vadd.f32 %v11869_v58, %v11868_v12  ;;  %v411_v15 = vadd.f32 %v19519_v50, %v27_v0  ;;  %v19521_v23 = vld [vmem:[#allocation7_spill] sm:$0xff]  ;;  %v19532_v12 = vld [vmem:[#allocation45_spill] sm:$0xff]  ;;  %v19535_v19 = vld [vmem:[#allocation18_spill] sm:$0xff] }
 0x54a   :  { %v11858_v8 = vadd.f32 %v11857_v20, %v11856_v33  ;;  %v11905_v24 = vsel %vm392_vm5, %v11851_v31, %v11904_v13  ;;  %v11878_v55 = vrot.slane %v11877_v45, 1  ;;  %13978 = vmatpush3.bf16.msra.mxu0 %v13994_v30  ;;  %v11865_v5 = vadd.f32 %v11864_v27, %v11863_v3  ;;  %v19533_v33 = vld [vmem:[#allocation37_spill] sm:$0xff]  ;;  %v19534_v30 = vld [vmem:[#allocation10_spill] sm:$0xff]  ;;  %v19537_v16 = vld [vmem:[#allocation51_spill] sm:$0xff] }
 0x54b   :  { %v11871_v36 = vrot.slane %v11870_v54, 1  ;;  %v412_v43 = vadd.f32 %v19520_v56, %v28_v4  ;;  %13979 = vmatprep.subr.bf16.mxu0 %v14024_v26  ;;  %v782_v53 = vadd.f32 %v19521_v23, %v411_v15  ;;  %v19525_v26 = vld [vmem:[#allocation38_spill] sm:$0xff]  ;;  %v19536_v58 = vld [vmem:[#allocation29_spill] sm:$0xff]  ;;  %v19539_v4 = vld [vmem:[#allocation31_spill] sm:$0xff] }
 0x54c   :  { %v11906_v21 = vsel %vm394_vm6, %v11858_v8, %v11905_v24  ;;  %v11879_v1 = vadd.f32 %v11878_v55, %v11877_v45  ;;  %v19538_v45 = vld [vmem:[#allocation30_spill] sm:$0xff]  ;;  %v19541_v24 = vld [vmem:[#allocation32_spill] sm:$0xff] }
 0x54d   :  { %v11872_v22 = vadd.f32 %v11871_v36, %v11870_v54  ;;  %v11907_v59 = vsel %vm396_vm7, %v11865_v5, %v11906_v21  ;;  %v783_v44 = vadd.f32 %v19522_v38, %v412_v43  ;;  %v1153_v52 = vadd.f32 %v19523_v34, %v782_v53  ;;  %v19540_v54 = vld [vmem:[#allocation39_spill] sm:$0xff]  ;;  %v19542_v50 = vld [vmem:[#allocation16_spill] sm:$0xff]  ;;  %v19546_v23 = vld [vmem:[#allocation58_spill] sm:$0xff] }
 0x54e   :  { %13980 = vmatpush3.bf16.msra.mxu0 %v13995_v61  ;;  %v19543_v61 = vld [vmem:[#allocation41_spill] sm:$0xff]  ;;  %v19544_v36 = vld [vmem:[#allocation28_spill] sm:$0xff]  ;;  %v19548_v38 = vld [vmem:[#allocation11_spill] sm:$0xff] }
 0x54f   :  { %v11908_v32 = vsel %vm398_vm8, %v11872_v22, %v11907_v59  ;;  %v1154_v47 = vadd.f32 %v19524_v18, %v783_v44  ;;  %v1524_v10 = vadd.f32 %v19525_v26, %v1153_v52  ;;  %v19545_v43 = vld [vmem:[#allocation52_spill] sm:$0xff]  ;;  %v19547_v22 = vld [vmem:[#allocation59_spill] sm:$0xff]  ;;  %v19552_v26 = vld [vmem:[#allocation54_spill] sm:$0xff] }
 0x550   :  { %v11909_v46 = vsel %vm400_vm9, %v11879_v1, %v11908_v32  ;;  %v19549_v1 = vld [vmem:[#allocation63_spill] sm:$0xff]  ;;  %v19551_v18 = vld [vmem:[#allocation24_spill] sm:$0xff] }
 0x551   :  { %v1525_v37 = vadd.f32 %v19526_v35, %v1154_v47  ;;  %v1895_v48 = vadd.f32 %v19527_v14, %v1524_v10  ;;  %v19550_v52 = vld [vmem:[#allocation19_spill] sm:$0xff]  ;;  %v19554_v14 = vld [vmem:[#allocation70_spill] sm:$0xff] }
 0x552   :  { %v19553_v35 = vld [vmem:[#allocation43_spill] sm:$0xff] }
 0x553   :  { %v1896_v49 = vadd.f32 %v19528_v60, %v1525_v37  ;;  %v2266_v41 = vadd.f32 %v19529_v40, %v1895_v48  ;;  %v19555_v60 = vld [vmem:[#allocation60_spill] sm:$0xff]  ;;  %v19556_v40 = vld [vmem:[#allocation14_spill] sm:$0xff] }
 0x555   :  { %v2267_v25 = vadd.f32 %v19530_v63, %v1896_v49  ;;  %v2637_v3 = vadd.f32 %v19531_v11, %v2266_v41  ;;  %v19557_v63 = vld [vmem:[#allocation55_spill] sm:$0xff]  ;;  %v19558_v11 = vld [vmem:[#allocation42_spill] sm:$0xff] }
 0x557   :  { %v2638_v9 = vadd.f32 %v19532_v12, %v2267_v25  ;;  %v3008_v6 = vadd.f32 %v19533_v33, %v2637_v3  ;;  %v19559_v12 = vld [vmem:[#allocation49_spill] sm:$0xff]  ;;  %v19560_v33 = vld [vmem:[#allocation68_spill] sm:$0xff] }
 0x559   :  { %v3009_v57 = vadd.f32 %v19534_v30, %v2638_v9  ;;  %v3379_v27 = vadd.f32 %v19535_v19, %v3008_v6  ;;  %v19561_v30 = vld [vmem:[#allocation25_spill] sm:$0xff]  ;;  %v19562_v19 = vld [vmem:[#allocation75_spill] sm:$0xff] }
 0x55b   :  { %v3380_v31 = vadd.f32 %v19536_v58, %v3009_v57  ;;  %v3750_v20 = vadd.f32 %v19537_v16, %v3379_v27  ;;  %v19563_v58 = vld [vmem:[#allocation61_spill] sm:$0xff]  ;;  %v19564_v16 = vld [vmem:[#allocation48_spill] sm:$0xff] }
 0x55d   :  { %v3751_v0 = vadd.f32 %v19538_v45, %v3380_v31  ;;  %v4121_v13 = vadd.f32 %v19539_v4, %v3750_v20  ;;  %v19565_v45 = vld [vmem:[#allocation46_spill] sm:$0xff] }
 0x55e   :  { %v19566_v4 = vld [vmem:[#allocation66_spill] sm:$0xff] }
 0x55f   :  { %v4122_v8 = vadd.f32 %v19540_v54, %v3751_v0  ;;  %v4492_v55 = vadd.f32 %v19541_v24, %v4121_v13  ;;  %v19567_v54 = vld [vmem:[#allocation67_spill] sm:$0xff]  ;;  %v19568_v24 = vld [vmem:[#allocation53_spill] sm:$0xff] }
 0x561   :  { %v4493_v15 = vadd.f32 %v19542_v50, %v4122_v8  ;;  %v4863_v5 = vadd.f32 %v19543_v61, %v4492_v55  ;;  %v19569_v50 = vld [vmem:[#allocation83_spill] sm:$0xff]  ;;  %v19570_v61 = vld [vmem:[#allocation72_spill] sm:$0xff] }
 0x563   :  { %v4864_v56 = vadd.f32 %v19544_v36, %v4493_v15  ;;  %v5234_v21 = vadd.f32 %v19545_v43, %v4863_v5  ;;  %v19571_v36 = vld [vmem:[#allocation40_spill] sm:$0xff] }
 0x565   :  { %v5235_v53 = vadd.f32 %v19546_v23, %v4864_v56  ;;  %v5605_v59 = vadd.f32 %v19547_v22, %v5234_v21  ;;  %v19572_v21 = vld [vmem:[#allocation56_spill] sm:$0xff] }
 0x567   :  { %v5606_v44 = vadd.f32 %v19548_v38, %v5235_v53  ;;  %v5976_v34 = vadd.f32 %v19549_v1, %v5605_v59 }
 0x569   :  { %v5977_v32 = vadd.f32 %v19550_v52, %v5606_v44  ;;  %v6347_v47 = vadd.f32 %v19551_v18, %v5976_v34 }
 0x56b   :  { %v6348_v10 = vadd.f32 %v19552_v26, %v5977_v32  ;;  %v6718_v37 = vadd.f32 %v19553_v35, %v6347_v47 }
 0x56d   :  { %v6719_v48 = vadd.f32 %v19554_v14, %v6348_v10  ;;  %v7089_v49 = vadd.f32 %v19555_v60, %v6718_v37 }
 0x56f   :  { %v7090_v41 = vadd.f32 %v19556_v40, %v6719_v48  ;;  %v7460_v25 = vadd.f32 %v19557_v63, %v7089_v49 }
 0x571   :  { %v7461_v3 = vadd.f32 %v19558_v11, %v7090_v41  ;;  %v7831_v9 = vadd.f32 %v19559_v12, %v7460_v25 }
 0x573   :  { %v7832_v6 = vadd.f32 %v19560_v33, %v7461_v3  ;;  %v8202_v57 = vadd.f32 %v19561_v30, %v7831_v9 }
 0x575   :  { %v8203_v27 = vadd.f32 %v19562_v19, %v7832_v6  ;;  %v8573_v31 = vadd.f32 %v19563_v58, %v8202_v57 }
 0x577   :  { %v8574_v20 = vadd.f32 %v19564_v16, %v8203_v27  ;;  %v8944_v0 = vadd.f32 %v19565_v45, %v8573_v31 }
 0x579   :  { %v8945_v13 = vadd.f32 %v19566_v4, %v8574_v20  ;;  %v9315_v8 = vadd.f32 %v19567_v54, %v8944_v0 }
 0x57b   :  { %v9316_v55 = vadd.f32 %v19568_v24, %v8945_v13  ;;  %v9686_v15 = vadd.f32 %v19569_v50, %v9315_v8 }
 0x57d   :  { %v9687_v5 = vadd.f32 %v19570_v61, %v9316_v55  ;;  %v10057_v56 = vadd.f32 %v19571_v36, %v9686_v15 }
 0x57f   :  { %v10058_v43 = vadd.f32 %v18743_v39, %v9687_v5  ;;  %v10428_v23 = vadd.f32 %v19572_v21, %v10057_v56 }
 0x581   :  { %v10429_v53 = vadd.f32 %v18774_v7, %v10058_v43  ;;  %v10799_v22 = vadd.f32 %v18799_v2, %v10428_v23 }
 0x583   :  { %v10800_v59 = vadd.f32 %v18849_v42, %v10429_v53  ;;  %v11170_v38 = vadd.f32 %v18825_v62, %v10799_v22  ;;  %v12577_v62 = vld [vmem:[%s19051_s3] ss:$0 sm:$0xff] }
 0x585   :  { %v11171_v44 = vadd.f32 %v18874_v28, %v10800_v59  ;;  %v11541_v1 = vadd.f32 %v18899_v17, %v11170_v38 }
 0x587   :  { %v11542_v34 = vadd.f32 %v18956_v29, %v11171_v44  ;;  %v11912_v52 = vadd.f32 %v18926_v51, %v11541_v1 }
 0x589   :  { %v11913_v32 = vadd.f32 %v11909_v46, %v11542_v34  ;;  %11914 = vst.msk [vmem:[#allocation2] sm:$0xff] %vm23_vm2, %v11912_v52 }
 0x58b   :  { %11915 = vst.msk [vmem:[#allocation2 + $0x8] sm:$0xff] %vm23_vm2, %v11913_v32 }
 0x590   :  { %v11919_v39 = vld [vmem:[#allocation2] sm:$0xff] }
 0x591   :  { %v11921_v2 = vmul.f32 0.00390625, %v11919_v39 }
 0x592   :  { %v11920_v7 = vld [vmem:[#allocation2 + $0x8] sm:$0xff] }
 0x593   :  { %v11922_v18 = vmul.f32 0.00390625, %v11920_v7 }
 0x595   :  { %v11923_v42 = vpack.c.bf16 %v11922_v18, %v11921_v2 }
 0x597   :  { %13982 = vmatmul.mubr.msk.bf16.vlgmr.msra.gmra.mrb[0].mxu0 %vm23_vm2, %v11923_v42 }
 0x66a   :  { %v12000_v28 = vpop.f32.mrb[0].mxu0 }
 0x66b   :  { %v13983_v17 = vpop.f32.mrb[1].mxu0  ;;  %v12001_v51 = vadd.f32 %v12577_v62, %v12000_v28 }
 0x66c   :  { %v12003_v29 = vpop.f32.mrb[2].mxu0 }
 0x66d   :  { %v12004_v46 = vadd.f32 %v12577_v62, %v12003_v29  ;;  %v13984_v47 = vpop.f32.mrb[3].mxu0 }
 0x66f   :  { %v12590_v26 = vpack.c.bf16 %v12004_v46, %v12001_v51 }
 0x671   :  { %12591 = vst [vmem:[#allocation3] sm:$0xff] %v12590_v26  }
 0x672   :  { %14011 = shalt.err (!%p14008_p4)
}
 0x673   :  { %s14012_s13 = scalar_lea.hbm %s19052_s4, 128 }
 0x674   :  { %p14013_p5 = scmp.ne.s32.totalorder %s19052_s4, %s14012_s13  ;;  %p14016_p6 = scmp.lt.u32.totalorder %s14012_s13, %s19052_s4 }
 0x676   :  { %p14018_p7 = pnand %p14016_p6, %p14013_p5 }
 0x678   :  { %14021 = shalt.err (!%p14018_p7)
}
 0x679   :  { %s14027_s18 = smov 64   ;;  %s14028_s19 = smov 4  }
 0x67a   :  { %12028 = dma.vmem_to_hbm [thread:$0]  %s12023_s10, 128, %s19052_s4, [#allocation4], %s14027_s18, %s14027_s18, %s14028_s19  }
 0x67b   :  { %14022 = dma.done.wait [#allocation4], 128  }
 0x67c   :  { %14023 = vsyncadd [#allocation4], 4294967168 }
 0x67d   :  { %12032 = vsyncpa [#allocation4], 1 }

</bundles_post_ra>
